<compile_context>
chip_gen: v7x
topology: tpu7x:2x2x1
jax: 0.10.0
libtpu: 0.0.40
codegen_flags: <defaults>
</compile_context>

<pallas_src>
import functools

import jax
import jax.numpy as jnp
from jax.experimental import pallas as pl
from jax.experimental.pallas import tpu as pltpu


# ----------------------------- Pallas kernels ------------------------------ #

def _maxpool_kernel(x_ref, o_ref):
    # x_ref: (Do, pd, Ho, ph, Wo, pw) ; o_ref: (Do, Ho, Wo)
    x = x_ref[...]
    m = jnp.max(x, axis=5)          # over pw (lane dim)
    m = jnp.max(m, axis=3)          # over ph (sublane dim)
    m = jnp.max(m, axis=1)          # over pd
    o_ref[...] = m


def _fused_conv_kernel(*refs, D, H, W, dil, eps, pad_amt, emit_raw, has_residual):
    """Conv3d(3x3x3, pad=(1,dil,dil), dilation=(1,dil,dil)) + bias
       + InstanceNorm3d(affine=False) [+ residual] + ReLU for one sample."""
    x_ref, idx_ref, w_ref, b_ref = refs[:4]
    k = 4
    res_ref = None
    if has_residual:
        res_ref = refs[k]; k += 1
    raw_ref = None
    if emit_raw:
        raw_ref = refs[k]; k += 1
    out_ref = refs[k]; k += 1
    xpad_ref = refs[k]

    P = D * H * W
    Cout = w_ref.shape[1]

    # Stage the flat activation into a lane-padded VMEM scratch so every tap is
    # a cheap static-offset slice (no HBM im2col, no out-of-bounds reads).
    xpad_ref[...] = jnp.zeros_like(xpad_ref)
    xpad_ref[:, pl.ds(pad_amt, P)] = x_ref[0]

    idx = idx_ref[...]               # (3, P) int32: (d, h, w) of each flat position
    d_idx = idx[0:1, :]
    h_idx = idx[1:2, :]
    w_idx = idx[2:3, :]

    acc = jnp.zeros((Cout, P), jnp.float32)
    for kd in range(3):
        dd = kd - 1
        for kh in range(3):
            dh = (kh - 1) * dil
            for kw in range(3):
                dw = (kw - 1) * dil
                t = (kd * 3 + kh) * 3 + kw
                shift = dd * (H * W) + dh * W + dw
                xs = xpad_ref[:, pl.ds(pad_amt + shift, P)]   # (Cin, P)
                # zero-padding mask (only the constraints that can fail)
                conds = []
                if dd > 0: conds.append(d_idx < D - dd)
                if dd < 0: conds.append(d_idx >= -dd)
                if dh > 0: conds.append(h_idx < H - dh)
                if dh < 0: conds.append(h_idx >= -dh)
                if dw > 0: conds.append(w_idx < W - dw)
                if dw < 0: conds.append(w_idx >= -dw)
                if conds:
                    ok = conds[0]
                    for c in conds[1:]:
                        ok = ok & c
                    xs = jnp.where(ok, xs, 0.0)
                acc = acc + jnp.dot(w_ref[t], xs,
                                    preferred_element_type=jnp.float32)

    raw = acc + b_ref[...]                                    # conv output (+ bias)

    # InstanceNorm3d (affine=False, biased variance) over spatial axis (lanes).
    inv_p = 1.0 / float(P)
    mean = jnp.sum(raw, axis=1, keepdims=True) * inv_p        # (Cout, 1)
    cent = raw - mean
    var = jnp.sum(cent * cent, axis=1, keepdims=True) * inv_p
    y = cent * jax.lax.rsqrt(var + eps)
    if has_residual:
        y = y + res_ref[0]
    y = jnp.maximum(y, 0.0)

    if emit_raw:
        raw_ref[0] = raw.astype(raw_ref.dtype)
    out_ref[0] = y.astype(out_ref.dtype)


# ------------------------------ JAX wrappers -------------------------------- #

def maxpool3d_flat(x_ncdhw, p_kernel):
    """MaxPool3d(p_kernel), stride = kernel.  Returns (N, C, Do*Ho*Wo) + dims."""
    pd, ph, pw = p_kernel
    N, C, D, H, W = x_ncdhw.shape
    Do, Ho, Wo = D // pd, H // ph, W // pw
    x = x_ncdhw[:, :, :Do * pd, :Ho * ph, :Wo * pw]           # no-op when divisible
    xv = x.reshape(N * C * Do, pd, Ho, ph, Wo, pw)            # free reshape (no relayout)
    out = pl.pallas_call(
        _maxpool_kernel,
        out_shape=jax.ShapeDtypeStruct((N * C * Do, Ho, Wo), x.dtype),
        grid=(N * C,),
        in_specs=[pl.BlockSpec((Do, pd, Ho, ph, Wo, pw),
                               lambda i: (i, 0, 0, 0, 0, 0))],
        out_specs=pl.BlockSpec((Do, Ho, Wo), lambda i: (i, 0, 0)),
        compiler_params=pltpu.CompilerParams(dimension_semantics=("parallel",)),
    )(xv)
    return out.reshape(N, C, Do * Ho * Wo), (Do, Ho, Wo)


def fused_conv_in_relu(x_ncp, w_oidhw, b, spatial, dil, *, residual=None,
                       return_raw=False, eps=1e-5):
    """One ResBlock stage: Conv3d + bias + InstanceNorm [+ residual] + ReLU.

    x_ncp:      (N, Cin, P) activation, P = D*H*W on the lane axis.
    residual:   optional (N, Cout, P) added after the norm (pre-ReLU).
    return_raw: additionally return the raw conv output (bias incl., pre-norm).
    """
    N, Cin, P = x_ncp.shape
    D, H, W = spatial
    assert P == D * H * W
    Cout = w_oidhw.shape[0]

    # Per-tap weights in order t = (kd*3 + kh)*3 + kw  ->  (27, Cout, Cin).
    w_taps = jnp.transpose(w_oidhw, (2, 3, 4, 0, 1)).reshape(27, Cout, Cin)
    b2 = b.reshape(Cout, 1).astype(jnp.float32)

    # (d, h, w) index of every flat spatial position (constant-folded under jit).
    p = jnp.arange(P, dtype=jnp.int32)
    idx = jnp.stack([p // (H * W), (p // W) % H, p % W], axis=0)     # (3, P)

    pad_amt = H * W + dil * W + dil        # max |flat shift| over the 27 taps

    kern = functools.partial(
        _fused_conv_kernel, D=D, H=H, W=W, dil=dil, eps=eps, pad_amt=pad_amt,
        emit_raw=return_raw, has_residual=residual is not None)

    in_specs = [
        pl.BlockSpec((1, Cin, P), lambda n: (n, 0, 0)),
        pl.BlockSpec((3, P), lambda n: (0, 0)),
        pl.BlockSpec((27, Cout, Cin), lambda n: (0, 0, 0)),
        pl.BlockSpec((Cout, 1), lambda n: (0, 0)),
    ]
    inputs = [x_ncp, idx, w_taps, b2]
    if residual is not None:
        in_specs.append(pl.BlockSpec((1, Cout, P), lambda n: (n, 0, 0)))
        inputs.append(residual)

    out_block = pl.BlockSpec((1, Cout, P), lambda n: (n, 0, 0))
    if return_raw:
        out_shape = (jax.ShapeDtypeStruct((N, Cout, P), jnp.float32),
                     jax.ShapeDtypeStruct((N, Cout, P), jnp.float32))
        out_specs = (out_block, out_block)
    else:
        out_shape = jax.ShapeDtypeStruct((N, Cout, P), jnp.float32)
        out_specs = out_block

    return pl.pallas_call(
        kern,
        out_shape=out_shape,
        grid=(N,),
        in_specs=in_specs,
        out_specs=out_specs,
        scratch_shapes=[pltpu.VMEM((Cin, P + 2 * pad_amt), jnp.float32)],
        compiler_params=pltpu.CompilerParams(dimension_semantics=("parallel",)),
    )(*inputs)


def down_forward(x_ncdhw, params, p_kernel, dilation=1):
    """down.forward: MaxPool3d(p_kernel) -> ResBlock(in_ch, out_ch, (3,3,3), dilation)."""
    N = x_ncdhw.shape[0]
    Cout = params["w1"].shape[0]
    pooled, spatial = maxpool3d_flat(x_ncdhw, p_kernel)       # (N, Cin, P) flat
    Do, Ho, Wo = spatial

    # Conv1 + IN1 + ReLU  (also emit raw conv1 output -> residual branch).
    x1_raw, x3 = fused_conv_in_relu(pooled, params["w1"], params["b1"],
                                    spatial, dilation, return_raw=True)
    # Conv2 + IN2 + ReLU.
    x6 = fused_conv_in_relu(x3, params["w2"], params["b2"], spatial, dilation)
    # Conv3 + IN3 + residual(x1) + ReLU.
    y = fused_conv_in_relu(x6, params["w3"], params["b3"], spatial, dilation,
                           residual=x1_raw)

    return y.reshape(N, Cout, Do, Ho, Wo)                     # already NCDHW


# --------------------------- pure-JAX reference ----------------------------- #

def _ref_down(x, params, p_kernel, dilation=1):
    pd, ph, pw = p_kernel
    pooled = jax.lax.reduce_window(x, -jnp.inf, jax.lax.max,
                                   (1, 1, pd, ph, pw), (1, 1, pd, ph, pw), "VALID")

    def conv(h, w, b):
        y = jax.lax.conv_general_dilated(
            h, w, window_strides=(1, 1, 1),
            padding=[(1, 1), (dilation, dilation), (dilation, dilation)],
            rhs_dilation=(1, dilation, dilation),
            dimension_numbers=("NCDHW", "OIDHW", "NCDHW"))
        return y + b[None, :, None, None, None]

    def inorm(h, eps=1e-5):
        m = jnp.mean(h, axis=(2, 3, 4), keepdims=True)
        v = jnp.mean(jnp.square(h - m), axis=(2, 3, 4), keepdims=True)
        return (h - m) / jnp.sqrt(v + eps)

    x1 = conv(pooled, params["w1"], params["b1"])
    x3 = jax.nn.relu(inorm(x1))
    x4 = conv(x3, params["w2"], params["b2"])
    x6 = jax.nn.relu(inorm(x4))
    x7 = conv(x6, params["w3"], params["b3"])
    return jax.nn.relu(inorm(x7) + x1)


# ----------------------------------- main ----------------------------------- #

if __name__ == "__main__":
    in_ch, out_ch = 4, 8
    p_kernel = (2, 2, 2)
    dilation = 1
    N, D, H, W = 2, 8, 16, 16

    key = jax.random.PRNGKey(0)
    ks = jax.random.split(key, 7)
    params = {
        "w1": 0.1 * jax.random.normal(ks[0], (out_ch, in_ch, 3, 3, 3), jnp.float32),
        "b1": 0.1 * jax.random.normal(ks[1], (out_ch,), jnp.float32),
        "w2": 0.1 * jax.random.normal(ks[2], (out_ch, out_ch, 3, 3, 3), jnp.float32),
        "b2": 0.1 * jax.random.normal(ks[3], (out_ch,), jnp.float32),
        "w3": 0.1 * jax.random.normal(ks[4], (out_ch, out_ch, 3, 3, 3), jnp.float32),
        "b3": 0.1 * jax.random.normal(ks[5], (out_ch,), jnp.float32),
    }
    x = jax.random.normal(ks[6], (N, in_ch, D, H, W), jnp.float32)

    fwd = jax.jit(functools.partial(down_forward, p_kernel=p_kernel, dilation=dilation))
    out = jax.block_until_ready(fwd(x, params))

    assert out.shape == (N, out_ch, D // 2, H // 2, W // 2), out.shape
    ref = _ref_down(x, params, p_kernel, dilation)
    err = float(jnp.max(jnp.abs(out - ref)))
    assert err < 2e-3, f"max abs err {err}"
    print("KERNEL_OK")
</pallas_src>

<mosaic_0001>
module attributes {stable_mosaic.version = 11 : i64} {
  func.func @_maxpool_kernel(%arg0: i32, %arg1: memref<4x2x8x2x8x2xf32, #tpu.memory_space<vmem>>, %arg2: memref<4x8x8xf32, #tpu.memory_space<vmem>>) attributes {dimension_semantics = [#tpu.dimension_semantics<parallel>], iteration_bounds = array<i64: 8>, scalar_prefetch = 0 : i64, scratch_operands = 0 : i64, tpu.core_type = #tpu.core_type<tc>, window_params = [{transform_indices = @transform_0, window_bounds = array<i64: 4, 2, 8, 2, 8, 2>}, {transform_indices = @transform_1, window_bounds = array<i64: 4, 8, 8>}]} {
    %c0 = arith.constant 0 : index
    %c0_0 = arith.constant 0 : index
    %c0_1 = arith.constant 0 : index
    %c0_2 = arith.constant 0 : index
    %c0_3 = arith.constant 0 : index
    %c0_4 = arith.constant 0 : index
    %0 = vector.load %arg1[%c0, %c0_0, %c0_1, %c0_2, %c0_3, %c0_4] : memref<4x2x8x2x8x2xf32, #tpu.memory_space<vmem>>, vector<4x2x8x2x8x2xf32>
    %cst = arith.constant dense<0xFF800000> : vector<4x2x8x2x8xf32>
    %1 = vector.multi_reduction <maximumf>, %0, %cst [5] : vector<4x2x8x2x8x2xf32> to vector<4x2x8x2x8xf32>
    %cst_5 = arith.constant dense<0xFF800000> : vector<4x2x8x8xf32>
    %2 = vector.multi_reduction <maximumf>, %1, %cst_5 [3] : vector<4x2x8x2x8xf32> to vector<4x2x8x8xf32>
    %cst_6 = arith.constant dense<0xFF800000> : vector<4x8x8xf32>
    %3 = vector.multi_reduction <maximumf>, %2, %cst_6 [1] : vector<4x2x8x8xf32> to vector<4x8x8xf32>
    %c0_7 = arith.constant 0 : index
    %c0_8 = arith.constant 0 : index
    %c0_9 = arith.constant 0 : index
    %4 = vector.load %arg2[%c0_7, %c0_8, %c0_9] : memref<4x8x8xf32, #tpu.memory_space<vmem>>, vector<4x8x8xf32>
    tpu.vector_store %arg2[%c0_7, %c0_8, %c0_9], %3 {strides = array<i32>} : memref<4x8x8xf32, #tpu.memory_space<vmem>>, vector<4x8x8xf32>,
    return
  }
  func.func @transform_0(%arg0: i32) -> (i32, i32, i32, i32, i32, i32) {
    %c0_i32 = arith.constant 0 : i32
    %c0_i32_0 = arith.constant 0 : i32
    %c0_i32_1 = arith.constant 0 : i32
    %c0_i32_2 = arith.constant 0 : i32
    %c0_i32_3 = arith.constant 0 : i32
    %c0_i32_4 = arith.constant 0 : i32
    return %arg0, %c0_i32, %c0_i32_0, %c0_i32_1, %c0_i32_2, %c0_i32_3 : i32, i32, i32, i32, i32, i32
  }
  func.func @transform_1(%arg0: i32) -> (i32, i32, i32) {
    %c0_i32 = arith.constant 0 : i32
    %c0_i32_0 = arith.constant 0 : i32
    %c0_i32_1 = arith.constant 0 : i32
    return %arg0, %c0_i32, %c0_i32_0 : i32, i32, i32
  }
}

module attributes {stable_mosaic.version = 11 : i64} {
  func.func @_fused_conv_kernel(%arg0: i32, %arg1: memref<1x8x256xf32, #tpu.memory_space<vmem>>, %arg2: memref<3x256xi32, #tpu.memory_space<vmem>>, %arg3: memref<27x8x8xf32, #tpu.memory_space<vmem>>, %arg4: memref<8x1xf32, #tpu.memory_space<vmem>>, %arg5: memref<1x8x256xf32, #tpu.memory_space<vmem>>, %arg6: memref<8x402xf32, #tpu.memory_space<vmem>>) attributes {dimension_semantics = [#tpu.dimension_semantics<parallel>], iteration_bounds = array<i64: 2>, scalar_prefetch = 0 : i64, scratch_operands = 1 : i64, tpu.core_type = #tpu.core_type<tc>, window_params = [{transform_indices = @transform_0, window_bounds = array<i64: 1, 8, 256>}, {pipeline_mode = #tpu.pipeline_mode<synchronous>, transform_indices = @transform_1, window_bounds = array<i64: 3, 256>}, {pipeline_mode = #tpu.pipeline_mode<synchronous>, transform_indices = @transform_2, window_bounds = array<i64: 27, 8, 8>}, {pipeline_mode = #tpu.pipeline_mode<synchronous>, transform_indices = @transform_3, window_bounds = array<i64: 8, 1>}, {transform_indices = @transform_4, window_bounds = array<i64: 1, 8, 256>}]} {
    %cst = arith.constant 0.000000e+00 : f32
    %0 = vector.broadcast %cst : f32 to vector<8x402xf32>
    %c0 = arith.constant 0 : index
    %c0_0 = arith.constant 0 : index
    %1 = vector.load %arg6[%c0, %c0_0] : memref<8x402xf32, #tpu.memory_space<vmem>>, vector<8x402xf32>
    tpu.vector_store %arg6[%c0, %c0_0], %0 {strides = array<i32>} : memref<8x402xf32, #tpu.memory_space<vmem>>, vector<8x402xf32>,
    %c0_1 = arith.constant 0 : index
    %c0_2 = arith.constant 0 : index
    %c0_3 = arith.constant 0 : index
    %2 = vector.load %arg1[%c0_1, %c0_2, %c0_3] : memref<1x8x256xf32, #tpu.memory_space<vmem>>, vector<1x8x256xf32>
    %3 = vector.shape_cast %2 : vector<1x8x256xf32> to vector<8x256xf32>
    %c0_4 = arith.constant 0 : index
    %c73 = arith.constant 73 : index
    %4 = vector.load %arg6[%c0_4, %c73] : memref<8x402xf32, #tpu.memory_space<vmem>>, vector<8x256xf32>
    tpu.vector_store %arg6[%c0_4, %c73], %3 {strides = array<i32>} : memref<8x402xf32, #tpu.memory_space<vmem>>, vector<8x256xf32>,
    %c0_5 = arith.constant 0 : index
    %c0_6 = arith.constant 0 : index
    %5 = vector.load %arg2[%c0_5, %c0_6] : memref<3x256xi32, #tpu.memory_space<vmem>>, vector<3x256xi32>
    %6 = vector.extract_strided_slice %5 {offsets = [0, 0], sizes = [1, 256], strides = [1, 1]} : vector<3x256xi32> to vector<1x256xi32>
    %7 = vector.extract_strided_slice %5 {offsets = [1, 0], sizes = [1, 256], strides = [1, 1]} : vector<3x256xi32> to vector<1x256xi32>
    %8 = vector.extract_strided_slice %5 {offsets = [2, 0], sizes = [1, 256], strides = [1, 1]} : vector<3x256xi32> to vector<1x256xi32>
    %cst_7 = arith.constant 0.000000e+00 : f32
    %9 = vector.broadcast %cst_7 : f32 to vector<8x256xf32>
    %c0_8 = arith.constant 0 : index
    %c0_9 = arith.constant 0 : index
    %10 = vector.load %arg6[%c0_8, %c0_9] : memref<8x402xf32, #tpu.memory_space<vmem>>, vector<8x256xf32>
    %c1_i32 = arith.constant 1 : i32
    %11 = vector.broadcast %c1_i32 : i32 to vector<1x256xi32>
    %12 = arith.cmpi sge, %6, %11 : vector<1x256xi32>
    %c1_i32_10 = arith.constant 1 : i32
    %13 = vector.broadcast %c1_i32_10 : i32 to vector<1x256xi32>
    %14 = arith.cmpi sge, %7, %13 : vector<1x256xi32>
    %c1_i32_11 = arith.constant 1 : i32
    %15 = vector.broadcast %c1_i32_11 : i32 to vector<1x256xi32>
    %16 = arith.cmpi sge, %8, %15 : vector<1x256xi32>
    %17 = arith.andi %12, %14 : vector<1x256xi1>
    %18 = arith.andi %17, %16 : vector<1x256xi1>
    %cst_12 = arith.constant 0.000000e+00 : f32
    %19 = vector.shape_cast %18 : vector<1x256xi1> to vector<1x256xi1>
    %20 = vector.broadcast %19 : vector<1x256xi1> to vector<8x256xi1>
    %21 = vector.broadcast %cst_12 : f32 to vector<8x256xf32>
    %22 = arith.select %20, %10, %21 : vector<8x256xi1>, vector<8x256xf32>
    %c0_13 = arith.constant 0 : index
    %c0_14 = arith.constant 0 : index
    %c0_15 = arith.constant 0 : index
    %23 = vector.load %arg3[%c0_13, %c0_14, %c0_15] : memref<27x8x8xf32, #tpu.memory_space<vmem>>, vector<1x8x8xf32>
    %24 = vector.shape_cast %23 : vector<1x8x8xf32> to vector<8x8xf32>
    %cst_16 = arith.constant dense<0.000000e+00> : vector<8x256xf32>
    %25 = tpu.matmul %24, %22, %cst_16 {dimension_numbers = #tpu.dot_dimension_numbers<[1], [0], [0], [1], [0, 0, 1, 1], [], []>} : vector<8x8xf32>, vector<8x256xf32>, vector<8x256xf32> -> vector<8x256xf32>
    %26 = arith.addf %9, %25 : vector<8x256xf32>
    %c0_17 = arith.constant 0 : index
    %c1 = arith.constant 1 : index
    %27 = vector.load %arg6[%c0_17, %c1] : memref<8x402xf32, #tpu.memory_space<vmem>>, vector<8x256xf32>
    %c1_i32_18 = arith.constant 1 : i32
    %28 = vector.broadcast %c1_i32_18 : i32 to vector<1x256xi32>
    %29 = arith.cmpi sge, %6, %28 : vector<1x256xi32>
    %c1_i32_19 = arith.constant 1 : i32
    %30 = vector.broadcast %c1_i32_19 : i32 to vector<1x256xi32>
    %31 = arith.cmpi sge, %7, %30 : vector<1x256xi32>
    %32 = arith.andi %29, %31 : vector<1x256xi1>
    %cst_20 = arith.constant 0.000000e+00 : f32
    %33 = vector.shape_cast %32 : vector<1x256xi1> to vector<1x256xi1>
    %34 = vector.broadcast %33 : vector<1x256xi1> to vector<8x256xi1>
    %35 = vector.broadcast %cst_20 : f32 to vector<8x256xf32>
    %36 = arith.select %34, %27, %35 : vector<8x256xi1>, vector<8x256xf32>
    %c1_21 = arith.constant 1 : index
    %c0_22 = arith.constant 0 : index
    %c0_23 = arith.constant 0 : index
    %37 = vector.load %arg3[%c1_21, %c0_22, %c0_23] : memref<27x8x8xf32, #tpu.memory_space<vmem>>, vector<1x8x8xf32>
    %38 = vector.shape_cast %37 : vector<1x8x8xf32> to vector<8x8xf32>
    %cst_24 = arith.constant dense<0.000000e+00> : vector<8x256xf32>
    %39 = tpu.matmul %38, %36, %cst_24 {dimension_numbers = #tpu.dot_dimension_numbers<[1], [0], [0], [1], [0, 0, 1, 1], [], []>} : vector<8x8xf32>, vector<8x256xf32>, vector<8x256xf32> -> vector<8x256xf32>
    %40 = arith.addf %26, %39 : vector<8x256xf32>
    %c0_25 = arith.constant 0 : index
    %c2 = arith.constant 2 : index
    %41 = vector.load %arg6[%c0_25, %c2] : memref<8x402xf32, #tpu.memory_space<vmem>>, vector<8x256xf32>
    %c1_i32_26 = arith.constant 1 : i32
    %42 = vector.broadcast %c1_i32_26 : i32 to vector<1x256xi32>
    %43 = arith.cmpi sge, %6, %42 : vector<1x256xi32>
    %c1_i32_27 = arith.constant 1 : i32
    %44 = vector.broadcast %c1_i32_27 : i32 to vector<1x256xi32>
    %45 = arith.cmpi sge, %7, %44 : vector<1x256xi32>
    %c7_i32 = arith.constant 7 : i32
    %46 = vector.broadcast %c7_i32 : i32 to vector<1x256xi32>
    %47 = arith.cmpi slt, %8, %46 : vector<1x256xi32>
    %48 = arith.andi %43, %45 : vector<1x256xi1>
    %49 = arith.andi %48, %47 : vector<1x256xi1>
    %cst_28 = arith.constant 0.000000e+00 : f32
    %50 = vector.shape_cast %49 : vector<1x256xi1> to vector<1x256xi1>
    %51 = vector.broadcast %50 : vector<1x256xi1> to vector<8x256xi1>
    %52 = vector.broadcast %cst_28 : f32 to vector<8x256xf32>
    %53 = arith.select %51, %41, %52 : vector<8x256xi1>, vector<8x256xf32>
    %c2_29 = arith.constant 2 : index
    %c0_30 = arith.constant 0 : index
    %c0_31 = arith.constant 0 : index
    %54 = vector.load %arg3[%c2_29, %c0_30, %c0_31] : memref<27x8x8xf32, #tpu.memory_space<vmem>>, vector<1x8x8xf32>
    %55 = vector.shape_cast %54 : vector<1x8x8xf32> to vector<8x8xf32>
    %cst_32 = arith.constant dense<0.000000e+00> : vector<8x256xf32>
    %56 = tpu.matmul %55, %53, %cst_32 {dimension_numbers = #tpu.dot_dimension_numbers<[1], [0], [0], [1], [0, 0, 1, 1], [], []>} : vector<8x8xf32>, vector<8x256xf32>, vector<8x256xf32> -> vector<8x256xf32>
    %57 = arith.addf %40, %56 : vector<8x256xf32>
    %c0_33 = arith.constant 0 : index
    %c8 = arith.constant 8 : index
    %58 = vector.load %arg6[%c0_33, %c8] : memref<8x402xf32, #tpu.memory_space<vmem>>, vector<8x256xf32>
    %c1_i32_34 = arith.constant 1 : i32
    %59 = vector.broadcast %c1_i32_34 : i32 to vector<1x256xi32>
    %60 = arith.cmpi sge, %6, %59 : vector<1x256xi32>
    %c1_i32_35 = arith.constant 1 : i32
    %61 = vector.broadcast %c1_i32_35 : i32 to vector<1x256xi32>
    %62 = arith.cmpi sge, %8, %61 : vector<1x256xi32>
    %63 = arith.andi %60, %62 : vector<1x256xi1>
    %cst_36 = arith.constant 0.000000e+00 : f32
    %64 = vector.shape_cast %63 : vector<1x256xi1> to vector<1x256xi1>
    %65 = vector.broadcast %64 : vector<1x256xi1> to vector<8x256xi1>
    %66 = vector.broadcast %cst_36 : f32 to vector<8x256xf32>
    %67 = arith.select %65, %58, %66 : vector<8x256xi1>, vector<8x256xf32>
    %c3 = arith.constant 3 : index
    %c0_37 = arith.constant 0 : index
    %c0_38 = arith.constant 0 : index
    %68 = vector.load %arg3[%c3, %c0_37, %c0_38] : memref<27x8x8xf32, #tpu.memory_space<vmem>>, vector<1x8x8xf32>
    %69 = vector.shape_cast %68 : vector<1x8x8xf32> to vector<8x8xf32>
    %cst_39 = arith.constant dense<0.000000e+00> : vector<8x256xf32>
    %70 = tpu.matmul %69, %67, %cst_39 {dimension_numbers = #tpu.dot_dimension_numbers<[1], [0], [0], [1], [0, 0, 1, 1], [], []>} : vector<8x8xf32>, vector<8x256xf32>, vector<8x256xf32> -> vector<8x256xf32>
    %71 = arith.addf %57, %70 : vector<8x256xf32>
    %c0_40 = arith.constant 0 : index
    %c9 = arith.constant 9 : index
    %72 = vector.load %arg6[%c0_40, %c9] : memref<8x402xf32, #tpu.memory_space<vmem>>, vector<8x256xf32>
    %c1_i32_41 = arith.constant 1 : i32
    %73 = vector.broadcast %c1_i32_41 : i32 to vector<1x256xi32>
    %74 = arith.cmpi sge, %6, %73 : vector<1x256xi32>
    %cst_42 = arith.constant 0.000000e+00 : f32
    %75 = vector.shape_cast %74 : vector<1x256xi1> to vector<1x256xi1>
    %76 = vector.broadcast %75 : vector<1x256xi1> to vector<8x256xi1>
    %77 = vector.broadcast %cst_42 : f32 to vector<8x256xf32>
    %78 = arith.select %76, %72, %77 : vector<8x256xi1>, vector<8x256xf32>
    %c4 = arith.constant 4 : index
    %c0_43 = arith.constant 0 : index
    %c0_44 = arith.constant 0 : index
    %79 = vector.load %arg3[%c4, %c0_43, %c0_44] : memref<27x8x8xf32, #tpu.memory_space<vmem>>, vector<1x8x8xf32>
    %80 = vector.shape_cast %79 : vector<1x8x8xf32> to vector<8x8xf32>
    %cst_45 = arith.constant dense<0.000000e+00> : vector<8x256xf32>
    %81 = tpu.matmul %80, %78, %cst_45 {dimension_numbers = #tpu.dot_dimension_numbers<[1], [0], [0], [1], [0, 0, 1, 1], [], []>} : vector<8x8xf32>, vector<8x256xf32>, vector<8x256xf32> -> vector<8x256xf32>
    %82 = arith.addf %71, %81 : vector<8x256xf32>
    %c0_46 = arith.constant 0 : index
    %c10 = arith.constant 10 : index
    %83 = vector.load %arg6[%c0_46, %c10] : memref<8x402xf32, #tpu.memory_space<vmem>>, vector<8x256xf32>
    %c1_i32_47 = arith.constant 1 : i32
    %84 = vector.broadcast %c1_i32_47 : i32 to vector<1x256xi32>
    %85 = arith.cmpi sge, %6, %84 : vector<1x256xi32>
    %c7_i32_48 = arith.constant 7 : i32
    %86 = vector.broadcast %c7_i32_48 : i32 to vector<1x256xi32>
    %87 = arith.cmpi slt, %8, %86 : vector<1x256xi32>
    %88 = arith.andi %85, %87 : vector<1x256xi1>
    %cst_49 = arith.constant 0.000000e+00 : f32
    %89 = vector.shape_cast %88 : vector<1x256xi1> to vector<1x256xi1>
    %90 = vector.broadcast %89 : vector<1x256xi1> to vector<8x256xi1>
    %91 = vector.broadcast %cst_49 : f32 to vector<8x256xf32>
    %92 = arith.select %90, %83, %91 : vector<8x256xi1>, vector<8x256xf32>
    %c5 = arith.constant 5 : index
    %c0_50 = arith.constant 0 : index
    %c0_51 = arith.constant 0 : index
    %93 = vector.load %arg3[%c5, %c0_50, %c0_51] : memref<27x8x8xf32, #tpu.memory_space<vmem>>, vector<1x8x8xf32>
    %94 = vector.shape_cast %93 : vector<1x8x8xf32> to vector<8x8xf32>
    %cst_52 = arith.constant dense<0.000000e+00> : vector<8x256xf32>
    %95 = tpu.matmul %94, %92, %cst_52 {dimension_numbers = #tpu.dot_dimension_numbers<[1], [0], [0], [1], [0, 0, 1, 1], [], []>} : vector<8x8xf32>, vector<8x256xf32>, vector<8x256xf32> -> vector<8x256xf32>
    %96 = arith.addf %82, %95 : vector<8x256xf32>
    %c0_53 = arith.constant 0 : index
    %c16 = arith.constant 16 : index
    %97 = vector.load %arg6[%c0_53, %c16] : memref<8x402xf32, #tpu.memory_space<vmem>>, vector<8x256xf32>
    %c1_i32_54 = arith.constant 1 : i32
    %98 = vector.broadcast %c1_i32_54 : i32 to vector<1x256xi32>
    %99 = arith.cmpi sge, %6, %98 : vector<1x256xi32>
    %c7_i32_55 = arith.constant 7 : i32
    %100 = vector.broadcast %c7_i32_55 : i32 to vector<1x256xi32>
    %101 = arith.cmpi slt, %7, %100 : vector<1x256xi32>
    %c1_i32_56 = arith.constant 1 : i32
    %102 = vector.broadcast %c1_i32_56 : i32 to vector<1x256xi32>
    %103 = arith.cmpi sge, %8, %102 : vector<1x256xi32>
    %104 = arith.andi %99, %101 : vector<1x256xi1>
    %105 = arith.andi %104, %103 : vector<1x256xi1>
    %cst_57 = arith.constant 0.000000e+00 : f32
    %106 = vector.shape_cast %105 : vector<1x256xi1> to vector<1x256xi1>
    %107 = vector.broadcast %106 : vector<1x256xi1> to vector<8x256xi1>
    %108 = vector.broadcast %cst_57 : f32 to vector<8x256xf32>
    %109 = arith.select %107, %97, %108 : vector<8x256xi1>, vector<8x256xf32>
    %c6 = arith.constant 6 : index
    %c0_58 = arith.constant 0 : index
    %c0_59 = arith.constant 0 : index
    %110 = vector.load %arg3[%c6, %c0_58, %c0_59] : memref<27x8x8xf32, #tpu.memory_space<vmem>>, vector<1x8x8xf32>
    %111 = vector.shape_cast %110 : vector<1x8x8xf32> to vector<8x8xf32>
    %cst_60 = arith.constant dense<0.000000e+00> : vector<8x256xf32>
    %112 = tpu.matmul %111, %109, %cst_60 {dimension_numbers = #tpu.dot_dimension_numbers<[1], [0], [0], [1], [0, 0, 1, 1], [], []>} : vector<8x8xf32>, vector<8x256xf32>, vector<8x256xf32> -> vector<8x256xf32>
    %113 = arith.addf %96, %112 : vector<8x256xf32>
    %c0_61 = arith.constant 0 : index
    %c17 = arith.constant 17 : index
    %114 = vector.load %arg6[%c0_61, %c17] : memref<8x402xf32, #tpu.memory_space<vmem>>, vector<8x256xf32>
    %c1_i32_62 = arith.constant 1 : i32
    %115 = vector.broadcast %c1_i32_62 : i32 to vector<1x256xi32>
    %116 = arith.cmpi sge, %6, %115 : vector<1x256xi32>
    %c7_i32_63 = arith.constant 7 : i32
    %117 = vector.broadcast %c7_i32_63 : i32 to vector<1x256xi32>
    %118 = arith.cmpi slt, %7, %117 : vector<1x256xi32>
    %119 = arith.andi %116, %118 : vector<1x256xi1>
    %cst_64 = arith.constant 0.000000e+00 : f32
    %120 = vector.shape_cast %119 : vector<1x256xi1> to vector<1x256xi1>
    %121 = vector.broadcast %120 : vector<1x256xi1> to vector<8x256xi1>
    %122 = vector.broadcast %cst_64 : f32 to vector<8x256xf32>
    %123 = arith.select %121, %114, %122 : vector<8x256xi1>, vector<8x256xf32>
    %c7 = arith.constant 7 : index
    %c0_65 = arith.constant 0 : index
    %c0_66 = arith.constant 0 : index
    %124 = vector.load %arg3[%c7, %c0_65, %c0_66] : memref<27x8x8xf32, #tpu.memory_space<vmem>>, vector<1x8x8xf32>
    %125 = vector.shape_cast %124 : vector<1x8x8xf32> to vector<8x8xf32>
    %cst_67 = arith.constant dense<0.000000e+00> : vector<8x256xf32>
    %126 = tpu.matmul %125, %123, %cst_67 {dimension_numbers = #tpu.dot_dimension_numbers<[1], [0], [0], [1], [0, 0, 1, 1], [], []>} : vector<8x8xf32>, vector<8x256xf32>, vector<8x256xf32> -> vector<8x256xf32>
    %127 = arith.addf %113, %126 : vector<8x256xf32>
    %c0_68 = arith.constant 0 : index
    %c18 = arith.constant 18 : index
    %128 = vector.load %arg6[%c0_68, %c18] : memref<8x402xf32, #tpu.memory_space<vmem>>, vector<8x256xf32>
    %c1_i32_69 = arith.constant 1 : i32
    %129 = vector.broadcast %c1_i32_69 : i32 to vector<1x256xi32>
    %130 = arith.cmpi sge, %6, %129 : vector<1x256xi32>
    %c7_i32_70 = arith.constant 7 : i32
    %131 = vector.broadcast %c7_i32_70 : i32 to vector<1x256xi32>
    %132 = arith.cmpi slt, %7, %131 : vector<1x256xi32>
    %c7_i32_71 = arith.constant 7 : i32
    %133 = vector.broadcast %c7_i32_71 : i32 to vector<1x256xi32>
    %134 = arith.cmpi slt, %8, %133 : vector<1x256xi32>
    %135 = arith.andi %130, %132 : vector<1x256xi1>
    %136 = arith.andi %135, %134 : vector<1x256xi1>
    %cst_72 = arith.constant 0.000000e+00 : f32
    %137 = vector.shape_cast %136 : vector<1x256xi1> to vector<1x256xi1>
    %138 = vector.broadcast %137 : vector<1x256xi1> to vector<8x256xi1>
    %139 = vector.broadcast %cst_72 : f32 to vector<8x256xf32>
    %140 = arith.select %138, %128, %139 : vector<8x256xi1>, vector<8x256xf32>
    %c8_73 = arith.constant 8 : index
    %c0_74 = arith.constant 0 : index
    %c0_75 = arith.constant 0 : index
    %141 = vector.load %arg3[%c8_73, %c0_74, %c0_75] : memref<27x8x8xf32, #tpu.memory_space<vmem>>, vector<1x8x8xf32>
    %142 = vector.shape_cast %141 : vector<1x8x8xf32> to vector<8x8xf32>
    %cst_76 = arith.constant dense<0.000000e+00> : vector<8x256xf32>
    %143 = tpu.matmul %142, %140, %cst_76 {dimension_numbers = #tpu.dot_dimension_numbers<[1], [0], [0], [1], [0, 0, 1, 1], [], []>} : vector<8x8xf32>, vector<8x256xf32>, vector<8x256xf32> -> vector<8x256xf32>
    %144 = arith.addf %127, %143 : vector<8x256xf32>
    %c0_77 = arith.constant 0 : index
    %c64 = arith.constant 64 : index
    %145 = vector.load %arg6[%c0_77, %c64] : memref<8x402xf32, #tpu.memory_space<vmem>>, vector<8x256xf32>
    %c1_i32_78 = arith.constant 1 : i32
    %146 = vector.broadcast %c1_i32_78 : i32 to vector<1x256xi32>
    %147 = arith.cmpi sge, %7, %146 : vector<1x256xi32>
    %c1_i32_79 = arith.constant 1 : i32
    %148 = vector.broadcast %c1_i32_79 : i32 to vector<1x256xi32>
    %149 = arith.cmpi sge, %8, %148 : vector<1x256xi32>
    %150 = arith.andi %147, %149 : vector<1x256xi1>
    %cst_80 = arith.constant 0.000000e+00 : f32
    %151 = vector.shape_cast %150 : vector<1x256xi1> to vector<1x256xi1>
    %152 = vector.broadcast %151 : vector<1x256xi1> to vector<8x256xi1>
    %153 = vector.broadcast %cst_80 : f32 to vector<8x256xf32>
    %154 = arith.select %152, %145, %153 : vector<8x256xi1>, vector<8x256xf32>
    %c9_81 = arith.constant 9 : index
    %c0_82 = arith.constant 0 : index
    %c0_83 = arith.constant 0 : index
    %155 = vector.load %arg3[%c9_81, %c0_82, %c0_83] : memref<27x8x8xf32, #tpu.memory_space<vmem>>, vector<1x8x8xf32>
    %156 = vector.shape_cast %155 : vector<1x8x8xf32> to vector<8x8xf32>
    %cst_84 = arith.constant dense<0.000000e+00> : vector<8x256xf32>
    %157 = tpu.matmul %156, %154, %cst_84 {dimension_numbers = #tpu.dot_dimension_numbers<[1], [0], [0], [1], [0, 0, 1, 1], [], []>} : vector<8x8xf32>, vector<8x256xf32>, vector<8x256xf32> -> vector<8x256xf32>
    %158 = arith.addf %144, %157 : vector<8x256xf32>
    %c0_85 = arith.constant 0 : index
    %c65 = arith.constant 65 : index
    %159 = vector.load %arg6[%c0_85, %c65] : memref<8x402xf32, #tpu.memory_space<vmem>>, vector<8x256xf32>
    %c1_i32_86 = arith.constant 1 : i32
    %160 = vector.broadcast %c1_i32_86 : i32 to vector<1x256xi32>
    %161 = arith.cmpi sge, %7, %160 : vector<1x256xi32>
    %cst_87 = arith.constant 0.000000e+00 : f32
    %162 = vector.shape_cast %161 : vector<1x256xi1> to vector<1x256xi1>
    %163 = vector.broadcast %162 : vector<1x256xi1> to vector<8x256xi1>
    %164 = vector.broadcast %cst_87 : f32 to vector<8x256xf32>
    %165 = arith.select %163, %159, %164 : vector<8x256xi1>, vector<8x256xf32>
    %c10_88 = arith.constant 10 : index
    %c0_89 = arith.constant 0 : index
    %c0_90 = arith.constant 0 : index
    %166 = vector.load %arg3[%c10_88, %c0_89, %c0_90] : memref<27x8x8xf32, #tpu.memory_space<vmem>>, vector<1x8x8xf32>
    %167 = vector.shape_cast %166 : vector<1x8x8xf32> to vector<8x8xf32>
    %cst_91 = arith.constant dense<0.000000e+00> : vector<8x256xf32>
    %168 = tpu.matmul %167, %165, %cst_91 {dimension_numbers = #tpu.dot_dimension_numbers<[1], [0], [0], [1], [0, 0, 1, 1], [], []>} : vector<8x8xf32>, vector<8x256xf32>, vector<8x256xf32> -> vector<8x256xf32>
    %169 = arith.addf %158, %168 : vector<8x256xf32>
    %c0_92 = arith.constant 0 : index
    %c66 = arith.constant 66 : index
    %170 = vector.load %arg6[%c0_92, %c66] : memref<8x402xf32, #tpu.memory_space<vmem>>, vector<8x256xf32>
    %c1_i32_93 = arith.constant 1 : i32
    %171 = vector.broadcast %c1_i32_93 : i32 to vector<1x256xi32>
    %172 = arith.cmpi sge, %7, %171 : vector<1x256xi32>
    %c7_i32_94 = arith.constant 7 : i32
    %173 = vector.broadcast %c7_i32_94 : i32 to vector<1x256xi32>
    %174 = arith.cmpi slt, %8, %173 : vector<1x256xi32>
    %175 = arith.andi %172, %174 : vector<1x256xi1>
    %cst_95 = arith.constant 0.000000e+00 : f32
    %176 = vector.shape_cast %175 : vector<1x256xi1> to vector<1x256xi1>
    %177 = vector.broadcast %176 : vector<1x256xi1> to vector<8x256xi1>
    %178 = vector.broadcast %cst_95 : f32 to vector<8x256xf32>
    %179 = arith.select %177, %170, %178 : vector<8x256xi1>, vector<8x256xf32>
    %c11 = arith.constant 11 : index
    %c0_96 = arith.constant 0 : index
    %c0_97 = arith.constant 0 : index
    %180 = vector.load %arg3[%c11, %c0_96, %c0_97] : memref<27x8x8xf32, #tpu.memory_space<vmem>>, vector<1x8x8xf32>
    %181 = vector.shape_cast %180 : vector<1x8x8xf32> to vector<8x8xf32>
    %cst_98 = arith.constant dense<0.000000e+00> : vector<8x256xf32>
    %182 = tpu.matmul %181, %179, %cst_98 {dimension_numbers = #tpu.dot_dimension_numbers<[1], [0], [0], [1], [0, 0, 1, 1], [], []>} : vector<8x8xf32>, vector<8x256xf32>, vector<8x256xf32> -> vector<8x256xf32>
    %183 = arith.addf %169, %182 : vector<8x256xf32>
    %c0_99 = arith.constant 0 : index
    %c72 = arith.constant 72 : index
    %184 = vector.load %arg6[%c0_99, %c72] : memref<8x402xf32, #tpu.memory_space<vmem>>, vector<8x256xf32>
    %c1_i32_100 = arith.constant 1 : i32
    %185 = vector.broadcast %c1_i32_100 : i32 to vector<1x256xi32>
    %186 = arith.cmpi sge, %8, %185 : vector<1x256xi32>
    %cst_101 = arith.constant 0.000000e+00 : f32
    %187 = vector.shape_cast %186 : vector<1x256xi1> to vector<1x256xi1>
    %188 = vector.broadcast %187 : vector<1x256xi1> to vector<8x256xi1>
    %189 = vector.broadcast %cst_101 : f32 to vector<8x256xf32>
    %190 = arith.select %188, %184, %189 : vector<8x256xi1>, vector<8x256xf32>
    %c12 = arith.constant 12 : index
    %c0_102 = arith.constant 0 : index
    %c0_103 = arith.constant 0 : index
    %191 = vector.load %arg3[%c12, %c0_102, %c0_103] : memref<27x8x8xf32, #tpu.memory_space<vmem>>, vector<1x8x8xf32>
    %192 = vector.shape_cast %191 : vector<1x8x8xf32> to vector<8x8xf32>
    %cst_104 = arith.constant dense<0.000000e+00> : vector<8x256xf32>
    %193 = tpu.matmul %192, %190, %cst_104 {dimension_numbers = #tpu.dot_dimension_numbers<[1], [0], [0], [1], [0, 0, 1, 1], [], []>} : vector<8x8xf32>, vector<8x256xf32>, vector<8x256xf32> -> vector<8x256xf32>
    %194 = arith.addf %183, %193 : vector<8x256xf32>
    %c0_105 = arith.constant 0 : index
    %c73_106 = arith.constant 73 : index
    %195 = vector.load %arg6[%c0_105, %c73_106] : memref<8x402xf32, #tpu.memory_space<vmem>>, vector<8x256xf32>
    %c13 = arith.constant 13 : index
    %c0_107 = arith.constant 0 : index
    %c0_108 = arith.constant 0 : index
    %196 = vector.load %arg3[%c13, %c0_107, %c0_108] : memref<27x8x8xf32, #tpu.memory_space<vmem>>, vector<1x8x8xf32>
    %197 = vector.shape_cast %196 : vector<1x8x8xf32> to vector<8x8xf32>
    %cst_109 = arith.constant dense<0.000000e+00> : vector<8x256xf32>
    %198 = tpu.matmul %197, %195, %cst_109 {dimension_numbers = #tpu.dot_dimension_numbers<[1], [0], [0], [1], [0, 0, 1, 1], [], []>} : vector<8x8xf32>, vector<8x256xf32>, vector<8x256xf32> -> vector<8x256xf32>
    %199 = arith.addf %194, %198 : vector<8x256xf32>
    %c0_110 = arith.constant 0 : index
    %c74 = arith.constant 74 : index
    %200 = vector.load %arg6[%c0_110, %c74] : memref<8x402xf32, #tpu.memory_space<vmem>>, vector<8x256xf32>
    %c7_i32_111 = arith.constant 7 : i32
    %201 = vector.broadcast %c7_i32_111 : i32 to vector<1x256xi32>
    %202 = arith.cmpi slt, %8, %201 : vector<1x256xi32>
    %cst_112 = arith.constant 0.000000e+00 : f32
    %203 = vector.shape_cast %202 : vector<1x256xi1> to vector<1x256xi1>
    %204 = vector.broadcast %203 : vector<1x256xi1> to vector<8x256xi1>
    %205 = vector.broadcast %cst_112 : f32 to vector<8x256xf32>
    %206 = arith.select %204, %200, %205 : vector<8x256xi1>, vector<8x256xf32>
    %c14 = arith.constant 14 : index
    %c0_113 = arith.constant 0 : index
    %c0_114 = arith.constant 0 : index
    %207 = vector.load %arg3[%c14, %c0_113, %c0_114] : memref<27x8x8xf32, #tpu.memory_space<vmem>>, vector<1x8x8xf32>
    %208 = vector.shape_cast %207 : vector<1x8x8xf32> to vector<8x8xf32>
    %cst_115 = arith.constant dense<0.000000e+00> : vector<8x256xf32>
    %209 = tpu.matmul %208, %206, %cst_115 {dimension_numbers = #tpu.dot_dimension_numbers<[1], [0], [0], [1], [0, 0, 1, 1], [], []>} : vector<8x8xf32>, vector<8x256xf32>, vector<8x256xf32> -> vector<8x256xf32>
    %210 = arith.addf %199, %209 : vector<8x256xf32>
    %c0_116 = arith.constant 0 : index
    %c80 = arith.constant 80 : index
    %211 = vector.load %arg6[%c0_116, %c80] : memref<8x402xf32, #tpu.memory_space<vmem>>, vector<8x256xf32>
    %c7_i32_117 = arith.constant 7 : i32
    %212 = vector.broadcast %c7_i32_117 : i32 to vector<1x256xi32>
    %213 = arith.cmpi slt, %7, %212 : vector<1x256xi32>
    %c1_i32_118 = arith.constant 1 : i32
    %214 = vector.broadcast %c1_i32_118 : i32 to vector<1x256xi32>
    %215 = arith.cmpi sge, %8, %214 : vector<1x256xi32>
    %216 = arith.andi %213, %215 : vector<1x256xi1>
    %cst_119 = arith.constant 0.000000e+00 : f32
    %217 = vector.shape_cast %216 : vector<1x256xi1> to vector<1x256xi1>
    %218 = vector.broadcast %217 : vector<1x256xi1> to vector<8x256xi1>
    %219 = vector.broadcast %cst_119 : f32 to vector<8x256xf32>
    %220 = arith.select %218, %211, %219 : vector<8x256xi1>, vector<8x256xf32>
    %c15 = arith.constant 15 : index
    %c0_120 = arith.constant 0 : index
    %c0_121 = arith.constant 0 : index
    %221 = vector.load %arg3[%c15, %c0_120, %c0_121] : memref<27x8x8xf32, #tpu.memory_space<vmem>>, vector<1x8x8xf32>
    %222 = vector.shape_cast %221 : vector<1x8x8xf32> to vector<8x8xf32>
    %cst_122 = arith.constant dense<0.000000e+00> : vector<8x256xf32>
    %223 = tpu.matmul %222, %220, %cst_122 {dimension_numbers = #tpu.dot_dimension_numbers<[1], [0], [0], [1], [0, 0, 1, 1], [], []>} : vector<8x8xf32>, vector<8x256xf32>, vector<8x256xf32> -> vector<8x256xf32>
    %224 = arith.addf %210, %223 : vector<8x256xf32>
    %c0_123 = arith.constant 0 : index
    %c81 = arith.constant 81 : index
    %225 = vector.load %arg6[%c0_123, %c81] : memref<8x402xf32, #tpu.memory_space<vmem>>, vector<8x256xf32>
    %c7_i32_124 = arith.constant 7 : i32
    %226 = vector.broadcast %c7_i32_124 : i32 to vector<1x256xi32>
    %227 = arith.cmpi slt, %7, %226 : vector<1x256xi32>
    %cst_125 = arith.constant 0.000000e+00 : f32
    %228 = vector.shape_cast %227 : vector<1x256xi1> to vector<1x256xi1>
    %229 = vector.broadcast %228 : vector<1x256xi1> to vector<8x256xi1>
    %230 = vector.broadcast %cst_125 : f32 to vector<8x256xf32>
    %231 = arith.select %229, %225, %230 : vector<8x256xi1>, vector<8x256xf32>
    %c16_126 = arith.constant 16 : index
    %c0_127 = arith.constant 0 : index
    %c0_128 = arith.constant 0 : index
    %232 = vector.load %arg3[%c16_126, %c0_127, %c0_128] : memref<27x8x8xf32, #tpu.memory_space<vmem>>, vector<1x8x8xf32>
    %233 = vector.shape_cast %232 : vector<1x8x8xf32> to vector<8x8xf32>
    %cst_129 = arith.constant dense<0.000000e+00> : vector<8x256xf32>
    %234 = tpu.matmul %233, %231, %cst_129 {dimension_numbers = #tpu.dot_dimension_numbers<[1], [0], [0], [1], [0, 0, 1, 1], [], []>} : vector<8x8xf32>, vector<8x256xf32>, vector<8x256xf32> -> vector<8x256xf32>
    %235 = arith.addf %224, %234 : vector<8x256xf32>
    %c0_130 = arith.constant 0 : index
    %c82 = arith.constant 82 : index
    %236 = vector.load %arg6[%c0_130, %c82] : memref<8x402xf32, #tpu.memory_space<vmem>>, vector<8x256xf32>
    %c7_i32_131 = arith.constant 7 : i32
    %237 = vector.broadcast %c7_i32_131 : i32 to vector<1x256xi32>
    %238 = arith.cmpi slt, %7, %237 : vector<1x256xi32>
    %c7_i32_132 = arith.constant 7 : i32
    %239 = vector.broadcast %c7_i32_132 : i32 to vector<1x256xi32>
    %240 = arith.cmpi slt, %8, %239 : vector<1x256xi32>
    %241 = arith.andi %238, %240 : vector<1x256xi1>
    %cst_133 = arith.constant 0.000000e+00 : f32
    %242 = vector.shape_cast %241 : vector<1x256xi1> to vector<1x256xi1>
    %243 = vector.broadcast %242 : vector<1x256xi1> to vector<8x256xi1>
    %244 = vector.broadcast %cst_133 : f32 to vector<8x256xf32>
    %245 = arith.select %243, %236, %244 : vector<8x256xi1>, vector<8x256xf32>
    %c17_134 = arith.constant 17 : index
    %c0_135 = arith.constant 0 : index
    %c0_136 = arith.constant 0 : index
    %246 = vector.load %arg3[%c17_134, %c0_135, %c0_136] : memref<27x8x8xf32, #tpu.memory_space<vmem>>, vector<1x8x8xf32>
    %247 = vector.shape_cast %246 : vector<1x8x8xf32> to vector<8x8xf32>
    %cst_137 = arith.constant dense<0.000000e+00> : vector<8x256xf32>
    %248 = tpu.matmul %247, %245, %cst_137 {dimension_numbers = #tpu.dot_dimension_numbers<[1], [0], [0], [1], [0, 0, 1, 1], [], []>} : vector<8x8xf32>, vector<8x256xf32>, vector<8x256xf32> -> vector<8x256xf32>
    %249 = arith.addf %235, %248 : vector<8x256xf32>
    %c0_138 = arith.constant 0 : index
    %c128 = arith.constant 128 : index
    %250 = vector.load %arg6[%c0_138, %c128] : memref<8x402xf32, #tpu.memory_space<vmem>>, vector<8x256xf32>
    %c3_i32 = arith.constant 3 : i32
    %251 = vector.broadcast %c3_i32 : i32 to vector<1x256xi32>
    %252 = arith.cmpi slt, %6, %251 : vector<1x256xi32>
    %c1_i32_139 = arith.constant 1 : i32
    %253 = vector.broadcast %c1_i32_139 : i32 to vector<1x256xi32>
    %254 = arith.cmpi sge, %7, %253 : vector<1x256xi32>
    %c1_i32_140 = arith.constant 1 : i32
    %255 = vector.broadcast %c1_i32_140 : i32 to vector<1x256xi32>
    %256 = arith.cmpi sge, %8, %255 : vector<1x256xi32>
    %257 = arith.andi %252, %254 : vector<1x256xi1>
    %258 = arith.andi %257, %256 : vector<1x256xi1>
    %cst_141 = arith.constant 0.000000e+00 : f32
    %259 = vector.shape_cast %258 : vector<1x256xi1> to vector<1x256xi1>
    %260 = vector.broadcast %259 : vector<1x256xi1> to vector<8x256xi1>
    %261 = vector.broadcast %cst_141 : f32 to vector<8x256xf32>
    %262 = arith.select %260, %250, %261 : vector<8x256xi1>, vector<8x256xf32>
    %c18_142 = arith.constant 18 : index
    %c0_143 = arith.constant 0 : index
    %c0_144 = arith.constant 0 : index
    %263 = vector.load %arg3[%c18_142, %c0_143, %c0_144] : memref<27x8x8xf32, #tpu.memory_space<vmem>>, vector<1x8x8xf32>
    %264 = vector.shape_cast %263 : vector<1x8x8xf32> to vector<8x8xf32>
    %cst_145 = arith.constant dense<0.000000e+00> : vector<8x256xf32>
    %265 = tpu.matmul %264, %262, %cst_145 {dimension_numbers = #tpu.dot_dimension_numbers<[1], [0], [0], [1], [0, 0, 1, 1], [], []>} : vector<8x8xf32>, vector<8x256xf32>, vector<8x256xf32> -> vector<8x256xf32>
    %266 = arith.addf %249, %265 : vector<8x256xf32>
    %c0_146 = arith.constant 0 : index
    %c129 = arith.constant 129 : index
    %267 = vector.load %arg6[%c0_146, %c129] : memref<8x402xf32, #tpu.memory_space<vmem>>, vector<8x256xf32>
    %c3_i32_147 = arith.constant 3 : i32
    %268 = vector.broadcast %c3_i32_147 : i32 to vector<1x256xi32>
    %269 = arith.cmpi slt, %6, %268 : vector<1x256xi32>
    %c1_i32_148 = arith.constant 1 : i32
    %270 = vector.broadcast %c1_i32_148 : i32 to vector<1x256xi32>
    %271 = arith.cmpi sge, %7, %270 : vector<1x256xi32>
    %272 = arith.andi %269, %271 : vector<1x256xi1>
    %cst_149 = arith.constant 0.000000e+00 : f32
    %273 = vector.shape_cast %272 : vector<1x256xi1> to vector<1x256xi1>
    %274 = vector.broadcast %273 : vector<1x256xi1> to vector<8x256xi1>
    %275 = vector.broadcast %cst_149 : f32 to vector<8x256xf32>
    %276 = arith.select %274, %267, %275 : vector<8x256xi1>, vector<8x256xf32>
    %c19 = arith.constant 19 : index
    %c0_150 = arith.constant 0 : index
    %c0_151 = arith.constant 0 : index
    %277 = vector.load %arg3[%c19, %c0_150, %c0_151] : memref<27x8x8xf32, #tpu.memory_space<vmem>>, vector<1x8x8xf32>
    %278 = vector.shape_cast %277 : vector<1x8x8xf32> to vector<8x8xf32>
    %cst_152 = arith.constant dense<0.000000e+00> : vector<8x256xf32>
    %279 = tpu.matmul %278, %276, %cst_152 {dimension_numbers = #tpu.dot_dimension_numbers<[1], [0], [0], [1], [0, 0, 1, 1], [], []>} : vector<8x8xf32>, vector<8x256xf32>, vector<8x256xf32> -> vector<8x256xf32>
    %280 = arith.addf %266, %279 : vector<8x256xf32>
    %c0_153 = arith.constant 0 : index
    %c130 = arith.constant 130 : index
    %281 = vector.load %arg6[%c0_153, %c130] : memref<8x402xf32, #tpu.memory_space<vmem>>, vector<8x256xf32>
    %c3_i32_154 = arith.constant 3 : i32
    %282 = vector.broadcast %c3_i32_154 : i32 to vector<1x256xi32>
    %283 = arith.cmpi slt, %6, %282 : vector<1x256xi32>
    %c1_i32_155 = arith.constant 1 : i32
    %284 = vector.broadcast %c1_i32_155 : i32 to vector<1x256xi32>
    %285 = arith.cmpi sge, %7, %284 : vector<1x256xi32>
    %c7_i32_156 = arith.constant 7 : i32
    %286 = vector.broadcast %c7_i32_156 : i32 to vector<1x256xi32>
    %287 = arith.cmpi slt, %8, %286 : vector<1x256xi32>
    %288 = arith.andi %283, %285 : vector<1x256xi1>
    %289 = arith.andi %288, %287 : vector<1x256xi1>
    %cst_157 = arith.constant 0.000000e+00 : f32
    %290 = vector.shape_cast %289 : vector<1x256xi1> to vector<1x256xi1>
    %291 = vector.broadcast %290 : vector<1x256xi1> to vector<8x256xi1>
    %292 = vector.broadcast %cst_157 : f32 to vector<8x256xf32>
    %293 = arith.select %291, %281, %292 : vector<8x256xi1>, vector<8x256xf32>
    %c20 = arith.constant 20 : index
    %c0_158 = arith.constant 0 : index
    %c0_159 = arith.constant 0 : index
    %294 = vector.load %arg3[%c20, %c0_158, %c0_159] : memref<27x8x8xf32, #tpu.memory_space<vmem>>, vector<1x8x8xf32>
    %295 = vector.shape_cast %294 : vector<1x8x8xf32> to vector<8x8xf32>
    %cst_160 = arith.constant dense<0.000000e+00> : vector<8x256xf32>
    %296 = tpu.matmul %295, %293, %cst_160 {dimension_numbers = #tpu.dot_dimension_numbers<[1], [0], [0], [1], [0, 0, 1, 1], [], []>} : vector<8x8xf32>, vector<8x256xf32>, vector<8x256xf32> -> vector<8x256xf32>
    %297 = arith.addf %280, %296 : vector<8x256xf32>
    %c0_161 = arith.constant 0 : index
    %c136 = arith.constant 136 : index
    %298 = vector.load %arg6[%c0_161, %c136] : memref<8x402xf32, #tpu.memory_space<vmem>>, vector<8x256xf32>
    %c3_i32_162 = arith.constant 3 : i32
    %299 = vector.broadcast %c3_i32_162 : i32 to vector<1x256xi32>
    %300 = arith.cmpi slt, %6, %299 : vector<1x256xi32>
    %c1_i32_163 = arith.constant 1 : i32
    %301 = vector.broadcast %c1_i32_163 : i32 to vector<1x256xi32>
    %302 = arith.cmpi sge, %8, %301 : vector<1x256xi32>
    %303 = arith.andi %300, %302 : vector<1x256xi1>
    %cst_164 = arith.constant 0.000000e+00 : f32
    %304 = vector.shape_cast %303 : vector<1x256xi1> to vector<1x256xi1>
    %305 = vector.broadcast %304 : vector<1x256xi1> to vector<8x256xi1>
    %306 = vector.broadcast %cst_164 : f32 to vector<8x256xf32>
    %307 = arith.select %305, %298, %306 : vector<8x256xi1>, vector<8x256xf32>
    %c21 = arith.constant 21 : index
    %c0_165 = arith.constant 0 : index
    %c0_166 = arith.constant 0 : index
    %308 = vector.load %arg3[%c21, %c0_165, %c0_166] : memref<27x8x8xf32, #tpu.memory_space<vmem>>, vector<1x8x8xf32>
    %309 = vector.shape_cast %308 : vector<1x8x8xf32> to vector<8x8xf32>
    %cst_167 = arith.constant dense<0.000000e+00> : vector<8x256xf32>
    %310 = tpu.matmul %309, %307, %cst_167 {dimension_numbers = #tpu.dot_dimension_numbers<[1], [0], [0], [1], [0, 0, 1, 1], [], []>} : vector<8x8xf32>, vector<8x256xf32>, vector<8x256xf32> -> vector<8x256xf32>
    %311 = arith.addf %297, %310 : vector<8x256xf32>
    %c0_168 = arith.constant 0 : index
    %c137 = arith.constant 137 : index
    %312 = vector.load %arg6[%c0_168, %c137] : memref<8x402xf32, #tpu.memory_space<vmem>>, vector<8x256xf32>
    %c3_i32_169 = arith.constant 3 : i32
    %313 = vector.broadcast %c3_i32_169 : i32 to vector<1x256xi32>
    %314 = arith.cmpi slt, %6, %313 : vector<1x256xi32>
    %cst_170 = arith.constant 0.000000e+00 : f32
    %315 = vector.shape_cast %314 : vector<1x256xi1> to vector<1x256xi1>
    %316 = vector.broadcast %315 : vector<1x256xi1> to vector<8x256xi1>
    %317 = vector.broadcast %cst_170 : f32 to vector<8x256xf32>
    %318 = arith.select %316, %312, %317 : vector<8x256xi1>, vector<8x256xf32>
    %c22 = arith.constant 22 : index
    %c0_171 = arith.constant 0 : index
    %c0_172 = arith.constant 0 : index
    %319 = vector.load %arg3[%c22, %c0_171, %c0_172] : memref<27x8x8xf32, #tpu.memory_space<vmem>>, vector<1x8x8xf32>
    %320 = vector.shape_cast %319 : vector<1x8x8xf32> to vector<8x8xf32>
    %cst_173 = arith.constant dense<0.000000e+00> : vector<8x256xf32>
    %321 = tpu.matmul %320, %318, %cst_173 {dimension_numbers = #tpu.dot_dimension_numbers<[1], [0], [0], [1], [0, 0, 1, 1], [], []>} : vector<8x8xf32>, vector<8x256xf32>, vector<8x256xf32> -> vector<8x256xf32>
    %322 = arith.addf %311, %321 : vector<8x256xf32>
    %c0_174 = arith.constant 0 : index
    %c138 = arith.constant 138 : index
    %323 = vector.load %arg6[%c0_174, %c138] : memref<8x402xf32, #tpu.memory_space<vmem>>, vector<8x256xf32>
    %c3_i32_175 = arith.constant 3 : i32
    %324 = vector.broadcast %c3_i32_175 : i32 to vector<1x256xi32>
    %325 = arith.cmpi slt, %6, %324 : vector<1x256xi32>
    %c7_i32_176 = arith.constant 7 : i32
    %326 = vector.broadcast %c7_i32_176 : i32 to vector<1x256xi32>
    %327 = arith.cmpi slt, %8, %326 : vector<1x256xi32>
    %328 = arith.andi %325, %327 : vector<1x256xi1>
    %cst_177 = arith.constant 0.000000e+00 : f32
    %329 = vector.shape_cast %328 : vector<1x256xi1> to vector<1x256xi1>
    %330 = vector.broadcast %329 : vector<1x256xi1> to vector<8x256xi1>
    %331 = vector.broadcast %cst_177 : f32 to vector<8x256xf32>
    %332 = arith.select %330, %323, %331 : vector<8x256xi1>, vector<8x256xf32>
    %c23 = arith.constant 23 : index
    %c0_178 = arith.constant 0 : index
    %c0_179 = arith.constant 0 : index
    %333 = vector.load %arg3[%c23, %c0_178, %c0_179] : memref<27x8x8xf32, #tpu.memory_space<vmem>>, vector<1x8x8xf32>
    %334 = vector.shape_cast %333 : vector<1x8x8xf32> to vector<8x8xf32>
    %cst_180 = arith.constant dense<0.000000e+00> : vector<8x256xf32>
    %335 = tpu.matmul %334, %332, %cst_180 {dimension_numbers = #tpu.dot_dimension_numbers<[1], [0], [0], [1], [0, 0, 1, 1], [], []>} : vector<8x8xf32>, vector<8x256xf32>, vector<8x256xf32> -> vector<8x256xf32>
    %336 = arith.addf %322, %335 : vector<8x256xf32>
    %c0_181 = arith.constant 0 : index
    %c144 = arith.constant 144 : index
    %337 = vector.load %arg6[%c0_181, %c144] : memref<8x402xf32, #tpu.memory_space<vmem>>, vector<8x256xf32>
    %c3_i32_182 = arith.constant 3 : i32
    %338 = vector.broadcast %c3_i32_182 : i32 to vector<1x256xi32>
    %339 = arith.cmpi slt, %6, %338 : vector<1x256xi32>
    %c7_i32_183 = arith.constant 7 : i32
    %340 = vector.broadcast %c7_i32_183 : i32 to vector<1x256xi32>
    %341 = arith.cmpi slt, %7, %340 : vector<1x256xi32>
    %c1_i32_184 = arith.constant 1 : i32
    %342 = vector.broadcast %c1_i32_184 : i32 to vector<1x256xi32>
    %343 = arith.cmpi sge, %8, %342 : vector<1x256xi32>
    %344 = arith.andi %339, %341 : vector<1x256xi1>
    %345 = arith.andi %344, %343 : vector<1x256xi1>
    %cst_185 = arith.constant 0.000000e+00 : f32
    %346 = vector.shape_cast %345 : vector<1x256xi1> to vector<1x256xi1>
    %347 = vector.broadcast %346 : vector<1x256xi1> to vector<8x256xi1>
    %348 = vector.broadcast %cst_185 : f32 to vector<8x256xf32>
    %349 = arith.select %347, %337, %348 : vector<8x256xi1>, vector<8x256xf32>
    %c24 = arith.constant 24 : index
    %c0_186 = arith.constant 0 : index
    %c0_187 = arith.constant 0 : index
    %350 = vector.load %arg3[%c24, %c0_186, %c0_187] : memref<27x8x8xf32, #tpu.memory_space<vmem>>, vector<1x8x8xf32>
    %351 = vector.shape_cast %350 : vector<1x8x8xf32> to vector<8x8xf32>
    %cst_188 = arith.constant dense<0.000000e+00> : vector<8x256xf32>
    %352 = tpu.matmul %351, %349, %cst_188 {dimension_numbers = #tpu.dot_dimension_numbers<[1], [0], [0], [1], [0, 0, 1, 1], [], []>} : vector<8x8xf32>, vector<8x256xf32>, vector<8x256xf32> -> vector<8x256xf32>
    %353 = arith.addf %336, %352 : vector<8x256xf32>
    %c0_189 = arith.constant 0 : index
    %c145 = arith.constant 145 : index
    %354 = vector.load %arg6[%c0_189, %c145] : memref<8x402xf32, #tpu.memory_space<vmem>>, vector<8x256xf32>
    %c3_i32_190 = arith.constant 3 : i32
    %355 = vector.broadcast %c3_i32_190 : i32 to vector<1x256xi32>
    %356 = arith.cmpi slt, %6, %355 : vector<1x256xi32>
    %c7_i32_191 = arith.constant 7 : i32
    %357 = vector.broadcast %c7_i32_191 : i32 to vector<1x256xi32>
    %358 = arith.cmpi slt, %7, %357 : vector<1x256xi32>
    %359 = arith.andi %356, %358 : vector<1x256xi1>
    %cst_192 = arith.constant 0.000000e+00 : f32
    %360 = vector.shape_cast %359 : vector<1x256xi1> to vector<1x256xi1>
    %361 = vector.broadcast %360 : vector<1x256xi1> to vector<8x256xi1>
    %362 = vector.broadcast %cst_192 : f32 to vector<8x256xf32>
    %363 = arith.select %361, %354, %362 : vector<8x256xi1>, vector<8x256xf32>
    %c25 = arith.constant 25 : index
    %c0_193 = arith.constant 0 : index
    %c0_194 = arith.constant 0 : index
    %364 = vector.load %arg3[%c25, %c0_193, %c0_194] : memref<27x8x8xf32, #tpu.memory_space<vmem>>, vector<1x8x8xf32>
    %365 = vector.shape_cast %364 : vector<1x8x8xf32> to vector<8x8xf32>
    %cst_195 = arith.constant dense<0.000000e+00> : vector<8x256xf32>
    %366 = tpu.matmul %365, %363, %cst_195 {dimension_numbers = #tpu.dot_dimension_numbers<[1], [0], [0], [1], [0, 0, 1, 1], [], []>} : vector<8x8xf32>, vector<8x256xf32>, vector<8x256xf32> -> vector<8x256xf32>
    %367 = arith.addf %353, %366 : vector<8x256xf32>
    %c0_196 = arith.constant 0 : index
    %c146 = arith.constant 146 : index
    %368 = vector.load %arg6[%c0_196, %c146] : memref<8x402xf32, #tpu.memory_space<vmem>>, vector<8x256xf32>
    %c3_i32_197 = arith.constant 3 : i32
    %369 = vector.broadcast %c3_i32_197 : i32 to vector<1x256xi32>
    %370 = arith.cmpi slt, %6, %369 : vector<1x256xi32>
    %c7_i32_198 = arith.constant 7 : i32
    %371 = vector.broadcast %c7_i32_198 : i32 to vector<1x256xi32>
    %372 = arith.cmpi slt, %7, %371 : vector<1x256xi32>
    %c7_i32_199 = arith.constant 7 : i32
    %373 = vector.broadcast %c7_i32_199 : i32 to vector<1x256xi32>
    %374 = arith.cmpi slt, %8, %373 : vector<1x256xi32>
    %375 = arith.andi %370, %372 : vector<1x256xi1>
    %376 = arith.andi %375, %374 : vector<1x256xi1>
    %cst_200 = arith.constant 0.000000e+00 : f32
    %377 = vector.shape_cast %376 : vector<1x256xi1> to vector<1x256xi1>
    %378 = vector.broadcast %377 : vector<1x256xi1> to vector<8x256xi1>
    %379 = vector.broadcast %cst_200 : f32 to vector<8x256xf32>
    %380 = arith.select %378, %368, %379 : vector<8x256xi1>, vector<8x256xf32>
    %c26 = arith.constant 26 : index
    %c0_201 = arith.constant 0 : index
    %c0_202 = arith.constant 0 : index
    %381 = vector.load %arg3[%c26, %c0_201, %c0_202] : memref<27x8x8xf32, #tpu.memory_space<vmem>>, vector<1x8x8xf32>
    %382 = vector.shape_cast %381 : vector<1x8x8xf32> to vector<8x8xf32>
    %cst_203 = arith.constant dense<0.000000e+00> : vector<8x256xf32>
    %383 = tpu.matmul %382, %380, %cst_203 {dimension_numbers = #tpu.dot_dimension_numbers<[1], [0], [0], [1], [0, 0, 1, 1], [], []>} : vector<8x8xf32>, vector<8x256xf32>, vector<8x256xf32> -> vector<8x256xf32>
    %384 = arith.addf %367, %383 : vector<8x256xf32>
    %c0_204 = arith.constant 0 : index
    %c0_205 = arith.constant 0 : index
    %385 = vector.load %arg4[%c0_204, %c0_205] : memref<8x1xf32, #tpu.memory_space<vmem>>, vector<8x1xf32>
    %386 = vector.broadcast %385 : vector<8x1xf32> to vector<8x256xf32>
    %387 = arith.addf %384, %386 : vector<8x256xf32>
    %cst_206 = arith.constant dense<0.000000e+00> : vector<8xf32>
    %388 = vector.multi_reduction <add>, %387, %cst_206 [1] : vector<8x256xf32> to vector<8xf32>
    %389 = vector.shape_cast %388 : vector<8xf32> to vector<8x1xf32>
    %cst_207 = arith.constant 3.906250e-03 : f32
    %390 = vector.broadcast %cst_207 : f32 to vector<8x1xf32>
    %391 = arith.mulf %389, %390 : vector<8x1xf32>
    %392 = vector.broadcast %391 : vector<8x1xf32> to vector<8x256xf32>
    %393 = arith.subf %387, %392 : vector<8x256xf32>
    %394 = arith.mulf %393, %393 : vector<8x256xf32>
    %cst_208 = arith.constant dense<0.000000e+00> : vector<8xf32>
    %395 = vector.multi_reduction <add>, %394, %cst_208 [1] : vector<8x256xf32> to vector<8xf32>
    %396 = vector.shape_cast %395 : vector<8xf32> to vector<8x1xf32>
    %cst_209 = arith.constant 3.906250e-03 : f32
    %397 = vector.broadcast %cst_209 : f32 to vector<8x1xf32>
    %398 = arith.mulf %396, %397 : vector<8x1xf32>
    %cst_210 = arith.constant 9.99999974E-6 : f32
    %399 = vector.broadcast %cst_210 : f32 to vector<8x1xf32>
    %400 = arith.addf %398, %399 : vector<8x1xf32>
    %401 = math.rsqrt %400 : vector<8x1xf32>
    %402 = vector.broadcast %401 : vector<8x1xf32> to vector<8x256xf32>
    %403 = arith.mulf %393, %402 : vector<8x256xf32>
    %cst_211 = arith.constant 0.000000e+00 : f32
    %404 = vector.broadcast %cst_211 : f32 to vector<8x256xf32>
    %405 = arith.maximumf %403, %404 : vector<8x256xf32>
    %c0_212 = arith.constant 0 : index
    %c0_213 = arith.constant 0 : index
    %c0_214 = arith.constant 0 : index
    %406 = vector.load %arg5[%c0_212, %c0_213, %c0_214] : memref<1x8x256xf32, #tpu.memory_space<vmem>>, vector<1x8x256xf32>
    %407 = vector.shape_cast %406 : vector<1x8x256xf32> to vector<8x256xf32>
    %408 = vector.shape_cast %405 : vector<8x256xf32> to vector<1x8x256xf32>
    tpu.vector_store %arg5[%c0_212, %c0_213, %c0_214], %408 {strides = array<i32>} : memref<1x8x256xf32, #tpu.memory_space<vmem>>, vector<1x8x256xf32>,
    return
  }
  func.func @transform_0(%arg0: i32) -> (i32, i32, i32) {
    %c0_i32 = arith.constant 0 : i32
    %c0_i32_0 = arith.constant 0 : i32
    %c0_i32_1 = arith.constant 0 : i32
    return %arg0, %c0_i32, %c0_i32_0 : i32, i32, i32
  }
  func.func @transform_1(%arg0: i32) -> (i32, i32) {
    %c0_i32 = arith.constant 0 : i32
    %c0_i32_0 = arith.constant 0 : i32
    %c0_i32_1 = arith.constant 0 : i32
    return %c0_i32, %c0_i32_0 : i32, i32
  }
  func.func @transform_2(%arg0: i32) -> (i32, i32, i32) {
    %c0_i32 = arith.constant 0 : i32
    %c0_i32_0 = arith.constant 0 : i32
    %c0_i32_1 = arith.constant 0 : i32
    %c0_i32_2 = arith.constant 0 : i32
    return %c0_i32, %c0_i32_0, %c0_i32_1 : i32, i32, i32
  }
  func.func @transform_3(%arg0: i32) -> (i32, i32) {
    %c0_i32 = arith.constant 0 : i32
    %c0_i32_0 = arith.constant 0 : i32
    %c0_i32_1 = arith.constant 0 : i32
    return %c0_i32, %c0_i32_0 : i32, i32
  }
  func.func @transform_4(%arg0: i32) -> (i32, i32, i32) {
    %c0_i32 = arith.constant 0 : i32
    %c0_i32_0 = arith.constant 0 : i32
    %c0_i32_1 = arith.constant 0 : i32
    return %arg0, %c0_i32, %c0_i32_0 : i32, i32, i32
  }
}

module attributes {stable_mosaic.version = 11 : i64} {
  func.func @_fused_conv_kernel(%arg0: i32, %arg1: memref<1x4x256xf32, #tpu.memory_space<vmem>>, %arg2: memref<3x256xi32, #tpu.memory_space<vmem>>, %arg3: memref<27x8x4xf32, #tpu.memory_space<vmem>>, %arg4: memref<8x1xf32, #tpu.memory_space<vmem>>, %arg5: memref<1x8x256xf32, #tpu.memory_space<vmem>>, %arg6: memref<1x8x256xf32, #tpu.memory_space<vmem>>, %arg7: memref<4x402xf32, #tpu.memory_space<vmem>>) attributes {dimension_semantics = [#tpu.dimension_semantics<parallel>], iteration_bounds = array<i64: 2>, scalar_prefetch = 0 : i64, scratch_operands = 1 : i64, tpu.core_type = #tpu.core_type<tc>, window_params = [{transform_indices = @transform_0, window_bounds = array<i64: 1, 4, 256>}, {pipeline_mode = #tpu.pipeline_mode<synchronous>, transform_indices = @transform_1, window_bounds = array<i64: 3, 256>}, {pipeline_mode = #tpu.pipeline_mode<synchronous>, transform_indices = @transform_2, window_bounds = array<i64: 27, 8, 4>}, {pipeline_mode = #tpu.pipeline_mode<synchronous>, transform_indices = @transform_3, window_bounds = array<i64: 8, 1>}, {transform_indices = @transform_4, window_bounds = array<i64: 1, 8, 256>}, {transform_indices = @transform_5, window_bounds = array<i64: 1, 8, 256>}]} {
    %cst = arith.constant 0.000000e+00 : f32
    %0 = vector.broadcast %cst : f32 to vector<4x402xf32>
    %c0 = arith.constant 0 : index
    %c0_0 = arith.constant 0 : index
    %1 = vector.load %arg7[%c0, %c0_0] : memref<4x402xf32, #tpu.memory_space<vmem>>, vector<4x402xf32>
    tpu.vector_store %arg7[%c0, %c0_0], %0 {strides = array<i32>} : memref<4x402xf32, #tpu.memory_space<vmem>>, vector<4x402xf32>,
    %c0_1 = arith.constant 0 : index
    %c0_2 = arith.constant 0 : index
    %c0_3 = arith.constant 0 : index
    %2 = vector.load %arg1[%c0_1, %c0_2, %c0_3] : memref<1x4x256xf32, #tpu.memory_space<vmem>>, vector<1x4x256xf32>
    %3 = vector.shape_cast %2 : vector<1x4x256xf32> to vector<4x256xf32>
    %c0_4 = arith.constant 0 : index
    %c73 = arith.constant 73 : index
    %4 = vector.load %arg7[%c0_4, %c73] : memref<4x402xf32, #tpu.memory_space<vmem>>, vector<4x256xf32>
    tpu.vector_store %arg7[%c0_4, %c73], %3 {strides = array<i32>} : memref<4x402xf32, #tpu.memory_space<vmem>>, vector<4x256xf32>,
    %c0_5 = arith.constant 0 : index
    %c0_6 = arith.constant 0 : index
    %5 = vector.load %arg2[%c0_5, %c0_6] : memref<3x256xi32, #tpu.memory_space<vmem>>, vector<3x256xi32>
    %6 = vector.extract_strided_slice %5 {offsets = [0, 0], sizes = [1, 256], strides = [1, 1]} : vector<3x256xi32> to vector<1x256xi32>
    %7 = vector.extract_strided_slice %5 {offsets = [1, 0], sizes = [1, 256], strides = [1, 1]} : vector<3x256xi32> to vector<1x256xi32>
    %8 = vector.extract_strided_slice %5 {offsets = [2, 0], sizes = [1, 256], strides = [1, 1]} : vector<3x256xi32> to vector<1x256xi32>
    %cst_7 = arith.constant 0.000000e+00 : f32
    %9 = vector.broadcast %cst_7 : f32 to vector<8x256xf32>
    %c0_8 = arith.constant 0 : index
    %c0_9 = arith.constant 0 : index
    %10 = vector.load %arg7[%c0_8, %c0_9] : memref<4x402xf32, #tpu.memory_space<vmem>>, vector<4x256xf32>
    %c1_i32 = arith.constant 1 : i32
    %11 = vector.broadcast %c1_i32 : i32 to vector<1x256xi32>
    %12 = arith.cmpi sge, %6, %11 : vector<1x256xi32>
    %c1_i32_10 = arith.constant 1 : i32
    %13 = vector.broadcast %c1_i32_10 : i32 to vector<1x256xi32>
    %14 = arith.cmpi sge, %7, %13 : vector<1x256xi32>
    %c1_i32_11 = arith.constant 1 : i32
    %15 = vector.broadcast %c1_i32_11 : i32 to vector<1x256xi32>
    %16 = arith.cmpi sge, %8, %15 : vector<1x256xi32>
    %17 = arith.andi %12, %14 : vector<1x256xi1>
    %18 = arith.andi %17, %16 : vector<1x256xi1>
    %cst_12 = arith.constant 0.000000e+00 : f32
    %19 = vector.shape_cast %18 : vector<1x256xi1> to vector<1x256xi1>
    %20 = vector.broadcast %19 : vector<1x256xi1> to vector<4x256xi1>
    %21 = vector.broadcast %cst_12 : f32 to vector<4x256xf32>
    %22 = arith.select %20, %10, %21 : vector<4x256xi1>, vector<4x256xf32>
    %c0_13 = arith.constant 0 : index
    %c0_14 = arith.constant 0 : index
    %c0_15 = arith.constant 0 : index
    %23 = vector.load %arg3[%c0_13, %c0_14, %c0_15] : memref<27x8x4xf32, #tpu.memory_space<vmem>>, vector<1x8x4xf32>
    %24 = vector.shape_cast %23 : vector<1x8x4xf32> to vector<8x4xf32>
    %cst_16 = arith.constant dense<0.000000e+00> : vector<8x256xf32>
    %25 = tpu.matmul %24, %22, %cst_16 {dimension_numbers = #tpu.dot_dimension_numbers<[1], [0], [0], [1], [0, 0, 1, 1], [], []>} : vector<8x4xf32>, vector<4x256xf32>, vector<8x256xf32> -> vector<8x256xf32>
    %26 = arith.addf %9, %25 : vector<8x256xf32>
    %c0_17 = arith.constant 0 : index
    %c1 = arith.constant 1 : index
    %27 = vector.load %arg7[%c0_17, %c1] : memref<4x402xf32, #tpu.memory_space<vmem>>, vector<4x256xf32>
    %c1_i32_18 = arith.constant 1 : i32
    %28 = vector.broadcast %c1_i32_18 : i32 to vector<1x256xi32>
    %29 = arith.cmpi sge, %6, %28 : vector<1x256xi32>
    %c1_i32_19 = arith.constant 1 : i32
    %30 = vector.broadcast %c1_i32_19 : i32 to vector<1x256xi32>
    %31 = arith.cmpi sge, %7, %30 : vector<1x256xi32>
    %32 = arith.andi %29, %31 : vector<1x256xi1>
    %cst_20 = arith.constant 0.000000e+00 : f32
    %33 = vector.shape_cast %32 : vector<1x256xi1> to vector<1x256xi1>
    %34 = vector.broadcast %33 : vector<1x256xi1> to vector<4x256xi1>
    %35 = vector.broadcast %cst_20 : f32 to vector<4x256xf32>
    %36 = arith.select %34, %27, %35 : vector<4x256xi1>, vector<4x256xf32>
    %c1_21 = arith.constant 1 : index
    %c0_22 = arith.constant 0 : index
    %c0_23 = arith.constant 0 : index
    %37 = vector.load %arg3[%c1_21, %c0_22, %c0_23] : memref<27x8x4xf32, #tpu.memory_space<vmem>>, vector<1x8x4xf32>
    %38 = vector.shape_cast %37 : vector<1x8x4xf32> to vector<8x4xf32>
    %cst_24 = arith.constant dense<0.000000e+00> : vector<8x256xf32>
    %39 = tpu.matmul %38, %36, %cst_24 {dimension_numbers = #tpu.dot_dimension_numbers<[1], [0], [0], [1], [0, 0, 1, 1], [], []>} : vector<8x4xf32>, vector<4x256xf32>, vector<8x256xf32> -> vector<8x256xf32>
    %40 = arith.addf %26, %39 : vector<8x256xf32>
    %c0_25 = arith.constant 0 : index
    %c2 = arith.constant 2 : index
    %41 = vector.load %arg7[%c0_25, %c2] : memref<4x402xf32, #tpu.memory_space<vmem>>, vector<4x256xf32>
    %c1_i32_26 = arith.constant 1 : i32
    %42 = vector.broadcast %c1_i32_26 : i32 to vector<1x256xi32>
    %43 = arith.cmpi sge, %6, %42 : vector<1x256xi32>
    %c1_i32_27 = arith.constant 1 : i32
    %44 = vector.broadcast %c1_i32_27 : i32 to vector<1x256xi32>
    %45 = arith.cmpi sge, %7, %44 : vector<1x256xi32>
    %c7_i32 = arith.constant 7 : i32
    %46 = vector.broadcast %c7_i32 : i32 to vector<1x256xi32>
    %47 = arith.cmpi slt, %8, %46 : vector<1x256xi32>
    %48 = arith.andi %43, %45 : vector<1x256xi1>
    %49 = arith.andi %48, %47 : vector<1x256xi1>
    %cst_28 = arith.constant 0.000000e+00 : f32
    %50 = vector.shape_cast %49 : vector<1x256xi1> to vector<1x256xi1>
    %51 = vector.broadcast %50 : vector<1x256xi1> to vector<4x256xi1>
    %52 = vector.broadcast %cst_28 : f32 to vector<4x256xf32>
    %53 = arith.select %51, %41, %52 : vector<4x256xi1>, vector<4x256xf32>
    %c2_29 = arith.constant 2 : index
    %c0_30 = arith.constant 0 : index
    %c0_31 = arith.constant 0 : index
    %54 = vector.load %arg3[%c2_29, %c0_30, %c0_31] : memref<27x8x4xf32, #tpu.memory_space<vmem>>, vector<1x8x4xf32>
    %55 = vector.shape_cast %54 : vector<1x8x4xf32> to vector<8x4xf32>
    %cst_32 = arith.constant dense<0.000000e+00> : vector<8x256xf32>
    %56 = tpu.matmul %55, %53, %cst_32 {dimension_numbers = #tpu.dot_dimension_numbers<[1], [0], [0], [1], [0, 0, 1, 1], [], []>} : vector<8x4xf32>, vector<4x256xf32>, vector<8x256xf32> -> vector<8x256xf32>
    %57 = arith.addf %40, %56 : vector<8x256xf32>
    %c0_33 = arith.constant 0 : index
    %c8 = arith.constant 8 : index
    %58 = vector.load %arg7[%c0_33, %c8] : memref<4x402xf32, #tpu.memory_space<vmem>>, vector<4x256xf32>
    %c1_i32_34 = arith.constant 1 : i32
    %59 = vector.broadcast %c1_i32_34 : i32 to vector<1x256xi32>
    %60 = arith.cmpi sge, %6, %59 : vector<1x256xi32>
    %c1_i32_35 = arith.constant 1 : i32
    %61 = vector.broadcast %c1_i32_35 : i32 to vector<1x256xi32>
    %62 = arith.cmpi sge, %8, %61 : vector<1x256xi32>
    %63 = arith.andi %60, %62 : vector<1x256xi1>
    %cst_36 = arith.constant 0.000000e+00 : f32
    %64 = vector.shape_cast %63 : vector<1x256xi1> to vector<1x256xi1>
    %65 = vector.broadcast %64 : vector<1x256xi1> to vector<4x256xi1>
    %66 = vector.broadcast %cst_36 : f32 to vector<4x256xf32>
    %67 = arith.select %65, %58, %66 : vector<4x256xi1>, vector<4x256xf32>
    %c3 = arith.constant 3 : index
    %c0_37 = arith.constant 0 : index
    %c0_38 = arith.constant 0 : index
    %68 = vector.load %arg3[%c3, %c0_37, %c0_38] : memref<27x8x4xf32, #tpu.memory_space<vmem>>, vector<1x8x4xf32>
    %69 = vector.shape_cast %68 : vector<1x8x4xf32> to vector<8x4xf32>
    %cst_39 = arith.constant dense<0.000000e+00> : vector<8x256xf32>
    %70 = tpu.matmul %69, %67, %cst_39 {dimension_numbers = #tpu.dot_dimension_numbers<[1], [0], [0], [1], [0, 0, 1, 1], [], []>} : vector<8x4xf32>, vector<4x256xf32>, vector<8x256xf32> -> vector<8x256xf32>
    %71 = arith.addf %57, %70 : vector<8x256xf32>
    %c0_40 = arith.constant 0 : index
    %c9 = arith.constant 9 : index
    %72 = vector.load %arg7[%c0_40, %c9] : memref<4x402xf32, #tpu.memory_space<vmem>>, vector<4x256xf32>
    %c1_i32_41 = arith.constant 1 : i32
    %73 = vector.broadcast %c1_i32_41 : i32 to vector<1x256xi32>
    %74 = arith.cmpi sge, %6, %73 : vector<1x256xi32>
    %cst_42 = arith.constant 0.000000e+00 : f32
    %75 = vector.shape_cast %74 : vector<1x256xi1> to vector<1x256xi1>
    %76 = vector.broadcast %75 : vector<1x256xi1> to vector<4x256xi1>
    %77 = vector.broadcast %cst_42 : f32 to vector<4x256xf32>
    %78 = arith.select %76, %72, %77 : vector<4x256xi1>, vector<4x256xf32>
    %c4 = arith.constant 4 : index
    %c0_43 = arith.constant 0 : index
    %c0_44 = arith.constant 0 : index
    %79 = vector.load %arg3[%c4, %c0_43, %c0_44] : memref<27x8x4xf32, #tpu.memory_space<vmem>>, vector<1x8x4xf32>
    %80 = vector.shape_cast %79 : vector<1x8x4xf32> to vector<8x4xf32>
    %cst_45 = arith.constant dense<0.000000e+00> : vector<8x256xf32>
    %81 = tpu.matmul %80, %78, %cst_45 {dimension_numbers = #tpu.dot_dimension_numbers<[1], [0], [0], [1], [0, 0, 1, 1], [], []>} : vector<8x4xf32>, vector<4x256xf32>, vector<8x256xf32> -> vector<8x256xf32>
    %82 = arith.addf %71, %81 : vector<8x256xf32>
    %c0_46 = arith.constant 0 : index
    %c10 = arith.constant 10 : index
    %83 = vector.load %arg7[%c0_46, %c10] : memref<4x402xf32, #tpu.memory_space<vmem>>, vector<4x256xf32>
    %c1_i32_47 = arith.constant 1 : i32
    %84 = vector.broadcast %c1_i32_47 : i32 to vector<1x256xi32>
    %85 = arith.cmpi sge, %6, %84 : vector<1x256xi32>
    %c7_i32_48 = arith.constant 7 : i32
    %86 = vector.broadcast %c7_i32_48 : i32 to vector<1x256xi32>
    %87 = arith.cmpi slt, %8, %86 : vector<1x256xi32>
    %88 = arith.andi %85, %87 : vector<1x256xi1>
    %cst_49 = arith.constant 0.000000e+00 : f32
    %89 = vector.shape_cast %88 : vector<1x256xi1> to vector<1x256xi1>
    %90 = vector.broadcast %89 : vector<1x256xi1> to vector<4x256xi1>
    %91 = vector.broadcast %cst_49 : f32 to vector<4x256xf32>
    %92 = arith.select %90, %83, %91 : vector<4x256xi1>, vector<4x256xf32>
    %c5 = arith.constant 5 : index
    %c0_50 = arith.constant 0 : index
    %c0_51 = arith.constant 0 : index
    %93 = vector.load %arg3[%c5, %c0_50, %c0_51] : memref<27x8x4xf32, #tpu.memory_space<vmem>>, vector<1x8x4xf32>
    %94 = vector.shape_cast %93 : vector<1x8x4xf32> to vector<8x4xf32>
    %cst_52 = arith.constant dense<0.000000e+00> : vector<8x256xf32>
    %95 = tpu.matmul %94, %92, %cst_52 {dimension_numbers = #tpu.dot_dimension_numbers<[1], [0], [0], [1], [0, 0, 1, 1], [], []>} : vector<8x4xf32>, vector<4x256xf32>, vector<8x256xf32> -> vector<8x256xf32>
    %96 = arith.addf %82, %95 : vector<8x256xf32>
    %c0_53 = arith.constant 0 : index
    %c16 = arith.constant 16 : index
    %97 = vector.load %arg7[%c0_53, %c16] : memref<4x402xf32, #tpu.memory_space<vmem>>, vector<4x256xf32>
    %c1_i32_54 = arith.constant 1 : i32
    %98 = vector.broadcast %c1_i32_54 : i32 to vector<1x256xi32>
    %99 = arith.cmpi sge, %6, %98 : vector<1x256xi32>
    %c7_i32_55 = arith.constant 7 : i32
    %100 = vector.broadcast %c7_i32_55 : i32 to vector<1x256xi32>
    %101 = arith.cmpi slt, %7, %100 : vector<1x256xi32>
    %c1_i32_56 = arith.constant 1 : i32
    %102 = vector.broadcast %c1_i32_56 : i32 to vector<1x256xi32>
    %103 = arith.cmpi sge, %8, %102 : vector<1x256xi32>
    %104 = arith.andi %99, %101 : vector<1x256xi1>
    %105 = arith.andi %104, %103 : vector<1x256xi1>
    %cst_57 = arith.constant 0.000000e+00 : f32
    %106 = vector.shape_cast %105 : vector<1x256xi1> to vector<1x256xi1>
    %107 = vector.broadcast %106 : vector<1x256xi1> to vector<4x256xi1>
    %108 = vector.broadcast %cst_57 : f32 to vector<4x256xf32>
    %109 = arith.select %107, %97, %108 : vector<4x256xi1>, vector<4x256xf32>
    %c6 = arith.constant 6 : index
    %c0_58 = arith.constant 0 : index
    %c0_59 = arith.constant 0 : index
    %110 = vector.load %arg3[%c6, %c0_58, %c0_59] : memref<27x8x4xf32, #tpu.memory_space<vmem>>, vector<1x8x4xf32>
    %111 = vector.shape_cast %110 : vector<1x8x4xf32> to vector<8x4xf32>
    %cst_60 = arith.constant dense<0.000000e+00> : vector<8x256xf32>
    %112 = tpu.matmul %111, %109, %cst_60 {dimension_numbers = #tpu.dot_dimension_numbers<[1], [0], [0], [1], [0, 0, 1, 1], [], []>} : vector<8x4xf32>, vector<4x256xf32>, vector<8x256xf32> -> vector<8x256xf32>
    %113 = arith.addf %96, %112 : vector<8x256xf32>
    %c0_61 = arith.constant 0 : index
    %c17 = arith.constant 17 : index
    %114 = vector.load %arg7[%c0_61, %c17] : memref<4x402xf32, #tpu.memory_space<vmem>>, vector<4x256xf32>
    %c1_i32_62 = arith.constant 1 : i32
    %115 = vector.broadcast %c1_i32_62 : i32 to vector<1x256xi32>
    %116 = arith.cmpi sge, %6, %115 : vector<1x256xi32>
    %c7_i32_63 = arith.constant 7 : i32
    %117 = vector.broadcast %c7_i32_63 : i32 to vector<1x256xi32>
    %118 = arith.cmpi slt, %7, %117 : vector<1x256xi32>
    %119 = arith.andi %116, %118 : vector<1x256xi1>
    %cst_64 = arith.constant 0.000000e+00 : f32
    %120 = vector.shape_cast %119 : vector<1x256xi1> to vector<1x256xi1>
    %121 = vector.broadcast %120 : vector<1x256xi1> to vector<4x256xi1>
    %122 = vector.broadcast %cst_64 : f32 to vector<4x256xf32>
    %123 = arith.select %121, %114, %122 : vector<4x256xi1>, vector<4x256xf32>
    %c7 = arith.constant 7 : index
    %c0_65 = arith.constant 0 : index
    %c0_66 = arith.constant 0 : index
    %124 = vector.load %arg3[%c7, %c0_65, %c0_66] : memref<27x8x4xf32, #tpu.memory_space<vmem>>, vector<1x8x4xf32>
    %125 = vector.shape_cast %124 : vector<1x8x4xf32> to vector<8x4xf32>
    %cst_67 = arith.constant dense<0.000000e+00> : vector<8x256xf32>
    %126 = tpu.matmul %125, %123, %cst_67 {dimension_numbers = #tpu.dot_dimension_numbers<[1], [0], [0], [1], [0, 0, 1, 1], [], []>} : vector<8x4xf32>, vector<4x256xf32>, vector<8x256xf32> -> vector<8x256xf32>
    %127 = arith.addf %113, %126 : vector<8x256xf32>
    %c0_68 = arith.constant 0 : index
    %c18 = arith.constant 18 : index
    %128 = vector.load %arg7[%c0_68, %c18] : memref<4x402xf32, #tpu.memory_space<vmem>>, vector<4x256xf32>
    %c1_i32_69 = arith.constant 1 : i32
    %129 = vector.broadcast %c1_i32_69 : i32 to vector<1x256xi32>
    %130 = arith.cmpi sge, %6, %129 : vector<1x256xi32>
    %c7_i32_70 = arith.constant 7 : i32
    %131 = vector.broadcast %c7_i32_70 : i32 to vector<1x256xi32>
    %132 = arith.cmpi slt, %7, %131 : vector<1x256xi32>
    %c7_i32_71 = arith.constant 7 : i32
    %133 = vector.broadcast %c7_i32_71 : i32 to vector<1x256xi32>
    %134 = arith.cmpi slt, %8, %133 : vector<1x256xi32>
    %135 = arith.andi %130, %132 : vector<1x256xi1>
    %136 = arith.andi %135, %134 : vector<1x256xi1>
    %cst_72 = arith.constant 0.000000e+00 : f32
    %137 = vector.shape_cast %136 : vector<1x256xi1> to vector<1x256xi1>
    %138 = vector.broadcast %137 : vector<1x256xi1> to vector<4x256xi1>
    %139 = vector.broadcast %cst_72 : f32 to vector<4x256xf32>
    %140 = arith.select %138, %128, %139 : vector<4x256xi1>, vector<4x256xf32>
    %c8_73 = arith.constant 8 : index
    %c0_74 = arith.constant 0 : index
    %c0_75 = arith.constant 0 : index
    %141 = vector.load %arg3[%c8_73, %c0_74, %c0_75] : memref<27x8x4xf32, #tpu.memory_space<vmem>>, vector<1x8x4xf32>
    %142 = vector.shape_cast %141 : vector<1x8x4xf32> to vector<8x4xf32>
    %cst_76 = arith.constant dense<0.000000e+00> : vector<8x256xf32>
    %143 = tpu.matmul %142, %140, %cst_76 {dimension_numbers = #tpu.dot_dimension_numbers<[1], [0], [0], [1], [0, 0, 1, 1], [], []>} : vector<8x4xf32>, vector<4x256xf32>, vector<8x256xf32> -> vector<8x256xf32>
    %144 = arith.addf %127, %143 : vector<8x256xf32>
    %c0_77 = arith.constant 0 : index
    %c64 = arith.constant 64 : index
    %145 = vector.load %arg7[%c0_77, %c64] : memref<4x402xf32, #tpu.memory_space<vmem>>, vector<4x256xf32>
    %c1_i32_78 = arith.constant 1 : i32
    %146 = vector.broadcast %c1_i32_78 : i32 to vector<1x256xi32>
    %147 = arith.cmpi sge, %7, %146 : vector<1x256xi32>
    %c1_i32_79 = arith.constant 1 : i32
    %148 = vector.broadcast %c1_i32_79 : i32 to vector<1x256xi32>
    %149 = arith.cmpi sge, %8, %148 : vector<1x256xi32>
    %150 = arith.andi %147, %149 : vector<1x256xi1>
    %cst_80 = arith.constant 0.000000e+00 : f32
    %151 = vector.shape_cast %150 : vector<1x256xi1> to vector<1x256xi1>
    %152 = vector.broadcast %151 : vector<1x256xi1> to vector<4x256xi1>
    %153 = vector.broadcast %cst_80 : f32 to vector<4x256xf32>
    %154 = arith.select %152, %145, %153 : vector<4x256xi1>, vector<4x256xf32>
    %c9_81 = arith.constant 9 : index
    %c0_82 = arith.constant 0 : index
    %c0_83 = arith.constant 0 : index
    %155 = vector.load %arg3[%c9_81, %c0_82, %c0_83] : memref<27x8x4xf32, #tpu.memory_space<vmem>>, vector<1x8x4xf32>
    %156 = vector.shape_cast %155 : vector<1x8x4xf32> to vector<8x4xf32>
    %cst_84 = arith.constant dense<0.000000e+00> : vector<8x256xf32>
    %157 = tpu.matmul %156, %154, %cst_84 {dimension_numbers = #tpu.dot_dimension_numbers<[1], [0], [0], [1], [0, 0, 1, 1], [], []>} : vector<8x4xf32>, vector<4x256xf32>, vector<8x256xf32> -> vector<8x256xf32>
    %158 = arith.addf %144, %157 : vector<8x256xf32>
    %c0_85 = arith.constant 0 : index
    %c65 = arith.constant 65 : index
    %159 = vector.load %arg7[%c0_85, %c65] : memref<4x402xf32, #tpu.memory_space<vmem>>, vector<4x256xf32>
    %c1_i32_86 = arith.constant 1 : i32
    %160 = vector.broadcast %c1_i32_86 : i32 to vector<1x256xi32>
    %161 = arith.cmpi sge, %7, %160 : vector<1x256xi32>
    %cst_87 = arith.constant 0.000000e+00 : f32
    %162 = vector.shape_cast %161 : vector<1x256xi1> to vector<1x256xi1>
    %163 = vector.broadcast %162 : vector<1x256xi1> to vector<4x256xi1>
    %164 = vector.broadcast %cst_87 : f32 to vector<4x256xf32>
    %165 = arith.select %163, %159, %164 : vector<4x256xi1>, vector<4x256xf32>
    %c10_88 = arith.constant 10 : index
    %c0_89 = arith.constant 0 : index
    %c0_90 = arith.constant 0 : index
    %166 = vector.load %arg3[%c10_88, %c0_89, %c0_90] : memref<27x8x4xf32, #tpu.memory_space<vmem>>, vector<1x8x4xf32>
    %167 = vector.shape_cast %166 : vector<1x8x4xf32> to vector<8x4xf32>
    %cst_91 = arith.constant dense<0.000000e+00> : vector<8x256xf32>
    %168 = tpu.matmul %167, %165, %cst_91 {dimension_numbers = #tpu.dot_dimension_numbers<[1], [0], [0], [1], [0, 0, 1, 1], [], []>} : vector<8x4xf32>, vector<4x256xf32>, vector<8x256xf32> -> vector<8x256xf32>
    %169 = arith.addf %158, %168 : vector<8x256xf32>
    %c0_92 = arith.constant 0 : index
    %c66 = arith.constant 66 : index
    %170 = vector.load %arg7[%c0_92, %c66] : memref<4x402xf32, #tpu.memory_space<vmem>>, vector<4x256xf32>
    %c1_i32_93 = arith.constant 1 : i32
    %171 = vector.broadcast %c1_i32_93 : i32 to vector<1x256xi32>
    %172 = arith.cmpi sge, %7, %171 : vector<1x256xi32>
    %c7_i32_94 = arith.constant 7 : i32
    %173 = vector.broadcast %c7_i32_94 : i32 to vector<1x256xi32>
    %174 = arith.cmpi slt, %8, %173 : vector<1x256xi32>
    %175 = arith.andi %172, %174 : vector<1x256xi1>
    %cst_95 = arith.constant 0.000000e+00 : f32
    %176 = vector.shape_cast %175 : vector<1x256xi1> to vector<1x256xi1>
    %177 = vector.broadcast %176 : vector<1x256xi1> to vector<4x256xi1>
    %178 = vector.broadcast %cst_95 : f32 to vector<4x256xf32>
    %179 = arith.select %177, %170, %178 : vector<4x256xi1>, vector<4x256xf32>
    %c11 = arith.constant 11 : index
    %c0_96 = arith.constant 0 : index
    %c0_97 = arith.constant 0 : index
    %180 = vector.load %arg3[%c11, %c0_96, %c0_97] : memref<27x8x4xf32, #tpu.memory_space<vmem>>, vector<1x8x4xf32>
    %181 = vector.shape_cast %180 : vector<1x8x4xf32> to vector<8x4xf32>
    %cst_98 = arith.constant dense<0.000000e+00> : vector<8x256xf32>
    %182 = tpu.matmul %181, %179, %cst_98 {dimension_numbers = #tpu.dot_dimension_numbers<[1], [0], [0], [1], [0, 0, 1, 1], [], []>} : vector<8x4xf32>, vector<4x256xf32>, vector<8x256xf32> -> vector<8x256xf32>
    %183 = arith.addf %169, %182 : vector<8x256xf32>
    %c0_99 = arith.constant 0 : index
    %c72 = arith.constant 72 : index
    %184 = vector.load %arg7[%c0_99, %c72] : memref<4x402xf32, #tpu.memory_space<vmem>>, vector<4x256xf32>
    %c1_i32_100 = arith.constant 1 : i32
    %185 = vector.broadcast %c1_i32_100 : i32 to vector<1x256xi32>
    %186 = arith.cmpi sge, %8, %185 : vector<1x256xi32>
    %cst_101 = arith.constant 0.000000e+00 : f32
    %187 = vector.shape_cast %186 : vector<1x256xi1> to vector<1x256xi1>
    %188 = vector.broadcast %187 : vector<1x256xi1> to vector<4x256xi1>
    %189 = vector.broadcast %cst_101 : f32 to vector<4x256xf32>
    %190 = arith.select %188, %184, %189 : vector<4x256xi1>, vector<4x256xf32>
    %c12 = arith.constant 12 : index
    %c0_102 = arith.constant 0 : index
    %c0_103 = arith.constant 0 : index
    %191 = vector.load %arg3[%c12, %c0_102, %c0_103] : memref<27x8x4xf32, #tpu.memory_space<vmem>>, vector<1x8x4xf32>
    %192 = vector.shape_cast %191 : vector<1x8x4xf32> to vector<8x4xf32>
    %cst_104 = arith.constant dense<0.000000e+00> : vector<8x256xf32>
    %193 = tpu.matmul %192, %190, %cst_104 {dimension_numbers = #tpu.dot_dimension_numbers<[1], [0], [0], [1], [0, 0, 1, 1], [], []>} : vector<8x4xf32>, vector<4x256xf32>, vector<8x256xf32> -> vector<8x256xf32>
    %194 = arith.addf %183, %193 : vector<8x256xf32>
    %c0_105 = arith.constant 0 : index
    %c73_106 = arith.constant 73 : index
    %195 = vector.load %arg7[%c0_105, %c73_106] : memref<4x402xf32, #tpu.memory_space<vmem>>, vector<4x256xf32>
    %c13 = arith.constant 13 : index
    %c0_107 = arith.constant 0 : index
    %c0_108 = arith.constant 0 : index
    %196 = vector.load %arg3[%c13, %c0_107, %c0_108] : memref<27x8x4xf32, #tpu.memory_space<vmem>>, vector<1x8x4xf32>
    %197 = vector.shape_cast %196 : vector<1x8x4xf32> to vector<8x4xf32>
    %cst_109 = arith.constant dense<0.000000e+00> : vector<8x256xf32>
    %198 = tpu.matmul %197, %195, %cst_109 {dimension_numbers = #tpu.dot_dimension_numbers<[1], [0], [0], [1], [0, 0, 1, 1], [], []>} : vector<8x4xf32>, vector<4x256xf32>, vector<8x256xf32> -> vector<8x256xf32>
    %199 = arith.addf %194, %198 : vector<8x256xf32>
    %c0_110 = arith.constant 0 : index
    %c74 = arith.constant 74 : index
    %200 = vector.load %arg7[%c0_110, %c74] : memref<4x402xf32, #tpu.memory_space<vmem>>, vector<4x256xf32>
    %c7_i32_111 = arith.constant 7 : i32
    %201 = vector.broadcast %c7_i32_111 : i32 to vector<1x256xi32>
    %202 = arith.cmpi slt, %8, %201 : vector<1x256xi32>
    %cst_112 = arith.constant 0.000000e+00 : f32
    %203 = vector.shape_cast %202 : vector<1x256xi1> to vector<1x256xi1>
    %204 = vector.broadcast %203 : vector<1x256xi1> to vector<4x256xi1>
    %205 = vector.broadcast %cst_112 : f32 to vector<4x256xf32>
    %206 = arith.select %204, %200, %205 : vector<4x256xi1>, vector<4x256xf32>
    %c14 = arith.constant 14 : index
    %c0_113 = arith.constant 0 : index
    %c0_114 = arith.constant 0 : index
    %207 = vector.load %arg3[%c14, %c0_113, %c0_114] : memref<27x8x4xf32, #tpu.memory_space<vmem>>, vector<1x8x4xf32>
    %208 = vector.shape_cast %207 : vector<1x8x4xf32> to vector<8x4xf32>
    %cst_115 = arith.constant dense<0.000000e+00> : vector<8x256xf32>
    %209 = tpu.matmul %208, %206, %cst_115 {dimension_numbers = #tpu.dot_dimension_numbers<[1], [0], [0], [1], [0, 0, 1, 1], [], []>} : vector<8x4xf32>, vector<4x256xf32>, vector<8x256xf32> -> vector<8x256xf32>
    %210 = arith.addf %199, %209 : vector<8x256xf32>
    %c0_116 = arith.constant 0 : index
    %c80 = arith.constant 80 : index
    %211 = vector.load %arg7[%c0_116, %c80] : memref<4x402xf32, #tpu.memory_space<vmem>>, vector<4x256xf32>
    %c7_i32_117 = arith.constant 7 : i32
    %212 = vector.broadcast %c7_i32_117 : i32 to vector<1x256xi32>
    %213 = arith.cmpi slt, %7, %212 : vector<1x256xi32>
    %c1_i32_118 = arith.constant 1 : i32
    %214 = vector.broadcast %c1_i32_118 : i32 to vector<1x256xi32>
    %215 = arith.cmpi sge, %8, %214 : vector<1x256xi32>
    %216 = arith.andi %213, %215 : vector<1x256xi1>
    %cst_119 = arith.constant 0.000000e+00 : f32
    %217 = vector.shape_cast %216 : vector<1x256xi1> to vector<1x256xi1>
    %218 = vector.broadcast %217 : vector<1x256xi1> to vector<4x256xi1>
    %219 = vector.broadcast %cst_119 : f32 to vector<4x256xf32>
    %220 = arith.select %218, %211, %219 : vector<4x256xi1>, vector<4x256xf32>
    %c15 = arith.constant 15 : index
    %c0_120 = arith.constant 0 : index
    %c0_121 = arith.constant 0 : index
    %221 = vector.load %arg3[%c15, %c0_120, %c0_121] : memref<27x8x4xf32, #tpu.memory_space<vmem>>, vector<1x8x4xf32>
    %222 = vector.shape_cast %221 : vector<1x8x4xf32> to vector<8x4xf32>
    %cst_122 = arith.constant dense<0.000000e+00> : vector<8x256xf32>
    %223 = tpu.matmul %222, %220, %cst_122 {dimension_numbers = #tpu.dot_dimension_numbers<[1], [0], [0], [1], [0, 0, 1, 1], [], []>} : vector<8x4xf32>, vector<4x256xf32>, vector<8x256xf32> -> vector<8x256xf32>
    %224 = arith.addf %210, %223 : vector<8x256xf32>
    %c0_123 = arith.constant 0 : index
    %c81 = arith.constant 81 : index
    %225 = vector.load %arg7[%c0_123, %c81] : memref<4x402xf32, #tpu.memory_space<vmem>>, vector<4x256xf32>
    %c7_i32_124 = arith.constant 7 : i32
    %226 = vector.broadcast %c7_i32_124 : i32 to vector<1x256xi32>
    %227 = arith.cmpi slt, %7, %226 : vector<1x256xi32>
    %cst_125 = arith.constant 0.000000e+00 : f32
    %228 = vector.shape_cast %227 : vector<1x256xi1> to vector<1x256xi1>
    %229 = vector.broadcast %228 : vector<1x256xi1> to vector<4x256xi1>
    %230 = vector.broadcast %cst_125 : f32 to vector<4x256xf32>
    %231 = arith.select %229, %225, %230 : vector<4x256xi1>, vector<4x256xf32>
    %c16_126 = arith.constant 16 : index
    %c0_127 = arith.constant 0 : index
    %c0_128 = arith.constant 0 : index
    %232 = vector.load %arg3[%c16_126, %c0_127, %c0_128] : memref<27x8x4xf32, #tpu.memory_space<vmem>>, vector<1x8x4xf32>
    %233 = vector.shape_cast %232 : vector<1x8x4xf32> to vector<8x4xf32>
    %cst_129 = arith.constant dense<0.000000e+00> : vector<8x256xf32>
    %234 = tpu.matmul %233, %231, %cst_129 {dimension_numbers = #tpu.dot_dimension_numbers<[1], [0], [0], [1], [0, 0, 1, 1], [], []>} : vector<8x4xf32>, vector<4x256xf32>, vector<8x256xf32> -> vector<8x256xf32>
    %235 = arith.addf %224, %234 : vector<8x256xf32>
    %c0_130 = arith.constant 0 : index
    %c82 = arith.constant 82 : index
    %236 = vector.load %arg7[%c0_130, %c82] : memref<4x402xf32, #tpu.memory_space<vmem>>, vector<4x256xf32>
    %c7_i32_131 = arith.constant 7 : i32
    %237 = vector.broadcast %c7_i32_131 : i32 to vector<1x256xi32>
    %238 = arith.cmpi slt, %7, %237 : vector<1x256xi32>
    %c7_i32_132 = arith.constant 7 : i32
    %239 = vector.broadcast %c7_i32_132 : i32 to vector<1x256xi32>
    %240 = arith.cmpi slt, %8, %239 : vector<1x256xi32>
    %241 = arith.andi %238, %240 : vector<1x256xi1>
    %cst_133 = arith.constant 0.000000e+00 : f32
    %242 = vector.shape_cast %241 : vector<1x256xi1> to vector<1x256xi1>
    %243 = vector.broadcast %242 : vector<1x256xi1> to vector<4x256xi1>
    %244 = vector.broadcast %cst_133 : f32 to vector<4x256xf32>
    %245 = arith.select %243, %236, %244 : vector<4x256xi1>, vector<4x256xf32>
    %c17_134 = arith.constant 17 : index
    %c0_135 = arith.constant 0 : index
    %c0_136 = arith.constant 0 : index
    %246 = vector.load %arg3[%c17_134, %c0_135, %c0_136] : memref<27x8x4xf32, #tpu.memory_space<vmem>>, vector<1x8x4xf32>
    %247 = vector.shape_cast %246 : vector<1x8x4xf32> to vector<8x4xf32>
    %cst_137 = arith.constant dense<0.000000e+00> : vector<8x256xf32>
    %248 = tpu.matmul %247, %245, %cst_137 {dimension_numbers = #tpu.dot_dimension_numbers<[1], [0], [0], [1], [0, 0, 1, 1], [], []>} : vector<8x4xf32>, vector<4x256xf32>, vector<8x256xf32> -> vector<8x256xf32>
    %249 = arith.addf %235, %248 : vector<8x256xf32>
    %c0_138 = arith.constant 0 : index
    %c128 = arith.constant 128 : index
    %250 = vector.load %arg7[%c0_138, %c128] : memref<4x402xf32, #tpu.memory_space<vmem>>, vector<4x256xf32>
    %c3_i32 = arith.constant 3 : i32
    %251 = vector.broadcast %c3_i32 : i32 to vector<1x256xi32>
    %252 = arith.cmpi slt, %6, %251 : vector<1x256xi32>
    %c1_i32_139 = arith.constant 1 : i32
    %253 = vector.broadcast %c1_i32_139 : i32 to vector<1x256xi32>
    %254 = arith.cmpi sge, %7, %253 : vector<1x256xi32>
    %c1_i32_140 = arith.constant 1 : i32
    %255 = vector.broadcast %c1_i32_140 : i32 to vector<1x256xi32>
    %256 = arith.cmpi sge, %8, %255 : vector<1x256xi32>
    %257 = arith.andi %252, %254 : vector<1x256xi1>
    %258 = arith.andi %257, %256 : vector<1x256xi1>
    %cst_141 = arith.constant 0.000000e+00 : f32
    %259 = vector.shape_cast %258 : vector<1x256xi1> to vector<1x256xi1>
    %260 = vector.broadcast %259 : vector<1x256xi1> to vector<4x256xi1>
    %261 = vector.broadcast %cst_141 : f32 to vector<4x256xf32>
    %262 = arith.select %260, %250, %261 : vector<4x256xi1>, vector<4x256xf32>
    %c18_142 = arith.constant 18 : index
    %c0_143 = arith.constant 0 : index
    %c0_144 = arith.constant 0 : index
    %263 = vector.load %arg3[%c18_142, %c0_143, %c0_144] : memref<27x8x4xf32, #tpu.memory_space<vmem>>, vector<1x8x4xf32>
    %264 = vector.shape_cast %263 : vector<1x8x4xf32> to vector<8x4xf32>
    %cst_145 = arith.constant dense<0.000000e+00> : vector<8x256xf32>
    %265 = tpu.matmul %264, %262, %cst_145 {dimension_numbers = #tpu.dot_dimension_numbers<[1], [0], [0], [1], [0, 0, 1, 1], [], []>} : vector<8x4xf32>, vector<4x256xf32>, vector<8x256xf32> -> vector<8x256xf32>
    %266 = arith.addf %249, %265 : vector<8x256xf32>
    %c0_146 = arith.constant 0 : index
    %c129 = arith.constant 129 : index
    %267 = vector.load %arg7[%c0_146, %c129] : memref<4x402xf32, #tpu.memory_space<vmem>>, vector<4x256xf32>
    %c3_i32_147 = arith.constant 3 : i32
    %268 = vector.broadcast %c3_i32_147 : i32 to vector<1x256xi32>
    %269 = arith.cmpi slt, %6, %268 : vector<1x256xi32>
    %c1_i32_148 = arith.constant 1 : i32
    %270 = vector.broadcast %c1_i32_148 : i32 to vector<1x256xi32>
    %271 = arith.cmpi sge, %7, %270 : vector<1x256xi32>
    %272 = arith.andi %269, %271 : vector<1x256xi1>
    %cst_149 = arith.constant 0.000000e+00 : f32
    %273 = vector.shape_cast %272 : vector<1x256xi1> to vector<1x256xi1>
    %274 = vector.broadcast %273 : vector<1x256xi1> to vector<4x256xi1>
    %275 = vector.broadcast %cst_149 : f32 to vector<4x256xf32>
    %276 = arith.select %274, %267, %275 : vector<4x256xi1>, vector<4x256xf32>
    %c19 = arith.constant 19 : index
    %c0_150 = arith.constant 0 : index
    %c0_151 = arith.constant 0 : index
    %277 = vector.load %arg3[%c19, %c0_150, %c0_151] : memref<27x8x4xf32, #tpu.memory_space<vmem>>, vector<1x8x4xf32>
    %278 = vector.shape_cast %277 : vector<1x8x4xf32> to vector<8x4xf32>
    %cst_152 = arith.constant dense<0.000000e+00> : vector<8x256xf32>
    %279 = tpu.matmul %278, %276, %cst_152 {dimension_numbers = #tpu.dot_dimension_numbers<[1], [0], [0], [1], [0, 0, 1, 1], [], []>} : vector<8x4xf32>, vector<4x256xf32>, vector<8x256xf32> -> vector<8x256xf32>
    %280 = arith.addf %266, %279 : vector<8x256xf32>
    %c0_153 = arith.constant 0 : index
    %c130 = arith.constant 130 : index
    %281 = vector.load %arg7[%c0_153, %c130] : memref<4x402xf32, #tpu.memory_space<vmem>>, vector<4x256xf32>
    %c3_i32_154 = arith.constant 3 : i32
    %282 = vector.broadcast %c3_i32_154 : i32 to vector<1x256xi32>
    %283 = arith.cmpi slt, %6, %282 : vector<1x256xi32>
    %c1_i32_155 = arith.constant 1 : i32
    %284 = vector.broadcast %c1_i32_155 : i32 to vector<1x256xi32>
    %285 = arith.cmpi sge, %7, %284 : vector<1x256xi32>
    %c7_i32_156 = arith.constant 7 : i32
    %286 = vector.broadcast %c7_i32_156 : i32 to vector<1x256xi32>
    %287 = arith.cmpi slt, %8, %286 : vector<1x256xi32>
    %288 = arith.andi %283, %285 : vector<1x256xi1>
    %289 = arith.andi %288, %287 : vector<1x256xi1>
    %cst_157 = arith.constant 0.000000e+00 : f32
    %290 = vector.shape_cast %289 : vector<1x256xi1> to vector<1x256xi1>
    %291 = vector.broadcast %290 : vector<1x256xi1> to vector<4x256xi1>
    %292 = vector.broadcast %cst_157 : f32 to vector<4x256xf32>
    %293 = arith.select %291, %281, %292 : vector<4x256xi1>, vector<4x256xf32>
    %c20 = arith.constant 20 : index
    %c0_158 = arith.constant 0 : index
    %c0_159 = arith.constant 0 : index
    %294 = vector.load %arg3[%c20, %c0_158, %c0_159] : memref<27x8x4xf32, #tpu.memory_space<vmem>>, vector<1x8x4xf32>
    %295 = vector.shape_cast %294 : vector<1x8x4xf32> to vector<8x4xf32>
    %cst_160 = arith.constant dense<0.000000e+00> : vector<8x256xf32>
    %296 = tpu.matmul %295, %293, %cst_160 {dimension_numbers = #tpu.dot_dimension_numbers<[1], [0], [0], [1], [0, 0, 1, 1], [], []>} : vector<8x4xf32>, vector<4x256xf32>, vector<8x256xf32> -> vector<8x256xf32>
    %297 = arith.addf %280, %296 : vector<8x256xf32>
    %c0_161 = arith.constant 0 : index
    %c136 = arith.constant 136 : index
    %298 = vector.load %arg7[%c0_161, %c136] : memref<4x402xf32, #tpu.memory_space<vmem>>, vector<4x256xf32>
    %c3_i32_162 = arith.constant 3 : i32
    %299 = vector.broadcast %c3_i32_162 : i32 to vector<1x256xi32>
    %300 = arith.cmpi slt, %6, %299 : vector<1x256xi32>
    %c1_i32_163 = arith.constant 1 : i32
    %301 = vector.broadcast %c1_i32_163 : i32 to vector<1x256xi32>
    %302 = arith.cmpi sge, %8, %301 : vector<1x256xi32>
    %303 = arith.andi %300, %302 : vector<1x256xi1>
    %cst_164 = arith.constant 0.000000e+00 : f32
    %304 = vector.shape_cast %303 : vector<1x256xi1> to vector<1x256xi1>
    %305 = vector.broadcast %304 : vector<1x256xi1> to vector<4x256xi1>
    %306 = vector.broadcast %cst_164 : f32 to vector<4x256xf32>
    %307 = arith.select %305, %298, %306 : vector<4x256xi1>, vector<4x256xf32>
    %c21 = arith.constant 21 : index
    %c0_165 = arith.constant 0 : index
    %c0_166 = arith.constant 0 : index
    %308 = vector.load %arg3[%c21, %c0_165, %c0_166] : memref<27x8x4xf32, #tpu.memory_space<vmem>>, vector<1x8x4xf32>
    %309 = vector.shape_cast %308 : vector<1x8x4xf32> to vector<8x4xf32>
    %cst_167 = arith.constant dense<0.000000e+00> : vector<8x256xf32>
    %310 = tpu.matmul %309, %307, %cst_167 {dimension_numbers = #tpu.dot_dimension_numbers<[1], [0], [0], [1], [0, 0, 1, 1], [], []>} : vector<8x4xf32>, vector<4x256xf32>, vector<8x256xf32> -> vector<8x256xf32>
    %311 = arith.addf %297, %310 : vector<8x256xf32>
    %c0_168 = arith.constant 0 : index
    %c137 = arith.constant 137 : index
    %312 = vector.load %arg7[%c0_168, %c137] : memref<4x402xf32, #tpu.memory_space<vmem>>, vector<4x256xf32>
    %c3_i32_169 = arith.constant 3 : i32
    %313 = vector.broadcast %c3_i32_169 : i32 to vector<1x256xi32>
    %314 = arith.cmpi slt, %6, %313 : vector<1x256xi32>
    %cst_170 = arith.constant 0.000000e+00 : f32
    %315 = vector.shape_cast %314 : vector<1x256xi1> to vector<1x256xi1>
    %316 = vector.broadcast %315 : vector<1x256xi1> to vector<4x256xi1>
    %317 = vector.broadcast %cst_170 : f32 to vector<4x256xf32>
    %318 = arith.select %316, %312, %317 : vector<4x256xi1>, vector<4x256xf32>
    %c22 = arith.constant 22 : index
    %c0_171 = arith.constant 0 : index
    %c0_172 = arith.constant 0 : index
    %319 = vector.load %arg3[%c22, %c0_171, %c0_172] : memref<27x8x4xf32, #tpu.memory_space<vmem>>, vector<1x8x4xf32>
    %320 = vector.shape_cast %319 : vector<1x8x4xf32> to vector<8x4xf32>
    %cst_173 = arith.constant dense<0.000000e+00> : vector<8x256xf32>
    %321 = tpu.matmul %320, %318, %cst_173 {dimension_numbers = #tpu.dot_dimension_numbers<[1], [0], [0], [1], [0, 0, 1, 1], [], []>} : vector<8x4xf32>, vector<4x256xf32>, vector<8x256xf32> -> vector<8x256xf32>
    %322 = arith.addf %311, %321 : vector<8x256xf32>
    %c0_174 = arith.constant 0 : index
    %c138 = arith.constant 138 : index
    %323 = vector.load %arg7[%c0_174, %c138] : memref<4x402xf32, #tpu.memory_space<vmem>>, vector<4x256xf32>
    %c3_i32_175 = arith.constant 3 : i32
    %324 = vector.broadcast %c3_i32_175 : i32 to vector<1x256xi32>
    %325 = arith.cmpi slt, %6, %324 : vector<1x256xi32>
    %c7_i32_176 = arith.constant 7 : i32
    %326 = vector.broadcast %c7_i32_176 : i32 to vector<1x256xi32>
    %327 = arith.cmpi slt, %8, %326 : vector<1x256xi32>
    %328 = arith.andi %325, %327 : vector<1x256xi1>
    %cst_177 = arith.constant 0.000000e+00 : f32
    %329 = vector.shape_cast %328 : vector<1x256xi1> to vector<1x256xi1>
    %330 = vector.broadcast %329 : vector<1x256xi1> to vector<4x256xi1>
    %331 = vector.broadcast %cst_177 : f32 to vector<4x256xf32>
    %332 = arith.select %330, %323, %331 : vector<4x256xi1>, vector<4x256xf32>
    %c23 = arith.constant 23 : index
    %c0_178 = arith.constant 0 : index
    %c0_179 = arith.constant 0 : index
    %333 = vector.load %arg3[%c23, %c0_178, %c0_179] : memref<27x8x4xf32, #tpu.memory_space<vmem>>, vector<1x8x4xf32>
    %334 = vector.shape_cast %333 : vector<1x8x4xf32> to vector<8x4xf32>
    %cst_180 = arith.constant dense<0.000000e+00> : vector<8x256xf32>
    %335 = tpu.matmul %334, %332, %cst_180 {dimension_numbers = #tpu.dot_dimension_numbers<[1], [0], [0], [1], [0, 0, 1, 1], [], []>} : vector<8x4xf32>, vector<4x256xf32>, vector<8x256xf32> -> vector<8x256xf32>
    %336 = arith.addf %322, %335 : vector<8x256xf32>
    %c0_181 = arith.constant 0 : index
    %c144 = arith.constant 144 : index
    %337 = vector.load %arg7[%c0_181, %c144] : memref<4x402xf32, #tpu.memory_space<vmem>>, vector<4x256xf32>
    %c3_i32_182 = arith.constant 3 : i32
    %338 = vector.broadcast %c3_i32_182 : i32 to vector<1x256xi32>
    %339 = arith.cmpi slt, %6, %338 : vector<1x256xi32>
    %c7_i32_183 = arith.constant 7 : i32
    %340 = vector.broadcast %c7_i32_183 : i32 to vector<1x256xi32>
    %341 = arith.cmpi slt, %7, %340 : vector<1x256xi32>
    %c1_i32_184 = arith.constant 1 : i32
    %342 = vector.broadcast %c1_i32_184 : i32 to vector<1x256xi32>
    %343 = arith.cmpi sge, %8, %342 : vector<1x256xi32>
    %344 = arith.andi %339, %341 : vector<1x256xi1>
    %345 = arith.andi %344, %343 : vector<1x256xi1>
    %cst_185 = arith.constant 0.000000e+00 : f32
    %346 = vector.shape_cast %345 : vector<1x256xi1> to vector<1x256xi1>
    %347 = vector.broadcast %346 : vector<1x256xi1> to vector<4x256xi1>
    %348 = vector.broadcast %cst_185 : f32 to vector<4x256xf32>
    %349 = arith.select %347, %337, %348 : vector<4x256xi1>, vector<4x256xf32>
    %c24 = arith.constant 24 : index
    %c0_186 = arith.constant 0 : index
    %c0_187 = arith.constant 0 : index
    %350 = vector.load %arg3[%c24, %c0_186, %c0_187] : memref<27x8x4xf32, #tpu.memory_space<vmem>>, vector<1x8x4xf32>
    %351 = vector.shape_cast %350 : vector<1x8x4xf32> to vector<8x4xf32>
    %cst_188 = arith.constant dense<0.000000e+00> : vector<8x256xf32>
    %352 = tpu.matmul %351, %349, %cst_188 {dimension_numbers = #tpu.dot_dimension_numbers<[1], [0], [0], [1], [0, 0, 1, 1], [], []>} : vector<8x4xf32>, vector<4x256xf32>, vector<8x256xf32> -> vector<8x256xf32>
    %353 = arith.addf %336, %352 : vector<8x256xf32>
    %c0_189 = arith.constant 0 : index
    %c145 = arith.constant 145 : index
    %354 = vector.load %arg7[%c0_189, %c145] : memref<4x402xf32, #tpu.memory_space<vmem>>, vector<4x256xf32>
    %c3_i32_190 = arith.constant 3 : i32
    %355 = vector.broadcast %c3_i32_190 : i32 to vector<1x256xi32>
    %356 = arith.cmpi slt, %6, %355 : vector<1x256xi32>
    %c7_i32_191 = arith.constant 7 : i32
    %357 = vector.broadcast %c7_i32_191 : i32 to vector<1x256xi32>
    %358 = arith.cmpi slt, %7, %357 : vector<1x256xi32>
    %359 = arith.andi %356, %358 : vector<1x256xi1>
    %cst_192 = arith.constant 0.000000e+00 : f32
    %360 = vector.shape_cast %359 : vector<1x256xi1> to vector<1x256xi1>
    %361 = vector.broadcast %360 : vector<1x256xi1> to vector<4x256xi1>
    %362 = vector.broadcast %cst_192 : f32 to vector<4x256xf32>
    %363 = arith.select %361, %354, %362 : vector<4x256xi1>, vector<4x256xf32>
    %c25 = arith.constant 25 : index
    %c0_193 = arith.constant 0 : index
    %c0_194 = arith.constant 0 : index
    %364 = vector.load %arg3[%c25, %c0_193, %c0_194] : memref<27x8x4xf32, #tpu.memory_space<vmem>>, vector<1x8x4xf32>
    %365 = vector.shape_cast %364 : vector<1x8x4xf32> to vector<8x4xf32>
    %cst_195 = arith.constant dense<0.000000e+00> : vector<8x256xf32>
    %366 = tpu.matmul %365, %363, %cst_195 {dimension_numbers = #tpu.dot_dimension_numbers<[1], [0], [0], [1], [0, 0, 1, 1], [], []>} : vector<8x4xf32>, vector<4x256xf32>, vector<8x256xf32> -> vector<8x256xf32>
    %367 = arith.addf %353, %366 : vector<8x256xf32>
    %c0_196 = arith.constant 0 : index
    %c146 = arith.constant 146 : index
    %368 = vector.load %arg7[%c0_196, %c146] : memref<4x402xf32, #tpu.memory_space<vmem>>, vector<4x256xf32>
    %c3_i32_197 = arith.constant 3 : i32
    %369 = vector.broadcast %c3_i32_197 : i32 to vector<1x256xi32>
    %370 = arith.cmpi slt, %6, %369 : vector<1x256xi32>
    %c7_i32_198 = arith.constant 7 : i32
    %371 = vector.broadcast %c7_i32_198 : i32 to vector<1x256xi32>
    %372 = arith.cmpi slt, %7, %371 : vector<1x256xi32>
    %c7_i32_199 = arith.constant 7 : i32
    %373 = vector.broadcast %c7_i32_199 : i32 to vector<1x256xi32>
    %374 = arith.cmpi slt, %8, %373 : vector<1x256xi32>
    %375 = arith.andi %370, %372 : vector<1x256xi1>
    %376 = arith.andi %375, %374 : vector<1x256xi1>
    %cst_200 = arith.constant 0.000000e+00 : f32
    %377 = vector.shape_cast %376 : vector<1x256xi1> to vector<1x256xi1>
    %378 = vector.broadcast %377 : vector<1x256xi1> to vector<4x256xi1>
    %379 = vector.broadcast %cst_200 : f32 to vector<4x256xf32>
    %380 = arith.select %378, %368, %379 : vector<4x256xi1>, vector<4x256xf32>
    %c26 = arith.constant 26 : index
    %c0_201 = arith.constant 0 : index
    %c0_202 = arith.constant 0 : index
    %381 = vector.load %arg3[%c26, %c0_201, %c0_202] : memref<27x8x4xf32, #tpu.memory_space<vmem>>, vector<1x8x4xf32>
    %382 = vector.shape_cast %381 : vector<1x8x4xf32> to vector<8x4xf32>
    %cst_203 = arith.constant dense<0.000000e+00> : vector<8x256xf32>
    %383 = tpu.matmul %382, %380, %cst_203 {dimension_numbers = #tpu.dot_dimension_numbers<[1], [0], [0], [1], [0, 0, 1, 1], [], []>} : vector<8x4xf32>, vector<4x256xf32>, vector<8x256xf32> -> vector<8x256xf32>
    %384 = arith.addf %367, %383 : vector<8x256xf32>
    %c0_204 = arith.constant 0 : index
    %c0_205 = arith.constant 0 : index
    %385 = vector.load %arg4[%c0_204, %c0_205] : memref<8x1xf32, #tpu.memory_space<vmem>>, vector<8x1xf32>
    %386 = vector.broadcast %385 : vector<8x1xf32> to vector<8x256xf32>
    %387 = arith.addf %384, %386 : vector<8x256xf32>
    %cst_206 = arith.constant dense<0.000000e+00> : vector<8xf32>
    %388 = vector.multi_reduction <add>, %387, %cst_206 [1] : vector<8x256xf32> to vector<8xf32>
    %389 = vector.shape_cast %388 : vector<8xf32> to vector<8x1xf32>
    %cst_207 = arith.constant 3.906250e-03 : f32
    %390 = vector.broadcast %cst_207 : f32 to vector<8x1xf32>
    %391 = arith.mulf %389, %390 : vector<8x1xf32>
    %392 = vector.broadcast %391 : vector<8x1xf32> to vector<8x256xf32>
    %393 = arith.subf %387, %392 : vector<8x256xf32>
    %394 = arith.mulf %393, %393 : vector<8x256xf32>
    %cst_208 = arith.constant dense<0.000000e+00> : vector<8xf32>
    %395 = vector.multi_reduction <add>, %394, %cst_208 [1] : vector<8x256xf32> to vector<8xf32>
    %396 = vector.shape_cast %395 : vector<8xf32> to vector<8x1xf32>
    %cst_209 = arith.constant 3.906250e-03 : f32
    %397 = vector.broadcast %cst_209 : f32 to vector<8x1xf32>
    %398 = arith.mulf %396, %397 : vector<8x1xf32>
    %cst_210 = arith.constant 9.99999974E-6 : f32
    %399 = vector.broadcast %cst_210 : f32 to vector<8x1xf32>
    %400 = arith.addf %398, %399 : vector<8x1xf32>
    %401 = math.rsqrt %400 : vector<8x1xf32>
    %402 = vector.broadcast %401 : vector<8x1xf32> to vector<8x256xf32>
    %403 = arith.mulf %393, %402 : vector<8x256xf32>
    %cst_211 = arith.constant 0.000000e+00 : f32
    %404 = vector.broadcast %cst_211 : f32 to vector<8x256xf32>
    %405 = arith.maximumf %403, %404 : vector<8x256xf32>
    %c0_212 = arith.constant 0 : index
    %c0_213 = arith.constant 0 : index
    %c0_214 = arith.constant 0 : index
    %406 = vector.load %arg5[%c0_212, %c0_213, %c0_214] : memref<1x8x256xf32, #tpu.memory_space<vmem>>, vector<1x8x256xf32>
    %407 = vector.shape_cast %406 : vector<1x8x256xf32> to vector<8x256xf32>
    %408 = vector.shape_cast %387 : vector<8x256xf32> to vector<1x8x256xf32>
    tpu.vector_store %arg5[%c0_212, %c0_213, %c0_214], %408 {strides = array<i32>} : memref<1x8x256xf32, #tpu.memory_space<vmem>>, vector<1x8x256xf32>,
    %c0_215 = arith.constant 0 : index
    %c0_216 = arith.constant 0 : index
    %c0_217 = arith.constant 0 : index
    %409 = vector.load %arg6[%c0_215, %c0_216, %c0_217] : memref<1x8x256xf32, #tpu.memory_space<vmem>>, vector<1x8x256xf32>
    %410 = vector.shape_cast %409 : vector<1x8x256xf32> to vector<8x256xf32>
    %411 = vector.shape_cast %405 : vector<8x256xf32> to vector<1x8x256xf32>
    tpu.vector_store %arg6[%c0_215, %c0_216, %c0_217], %411 {strides = array<i32>} : memref<1x8x256xf32, #tpu.memory_space<vmem>>, vector<1x8x256xf32>,
    return
  }
  func.func @transform_0(%arg0: i32) -> (i32, i32, i32) {
    %c0_i32 = arith.constant 0 : i32
    %c0_i32_0 = arith.constant 0 : i32
    %c0_i32_1 = arith.constant 0 : i32
    return %arg0, %c0_i32, %c0_i32_0 : i32, i32, i32
  }
  func.func @transform_1(%arg0: i32) -> (i32, i32) {
    %c0_i32 = arith.constant 0 : i32
    %c0_i32_0 = arith.constant 0 : i32
    %c0_i32_1 = arith.constant 0 : i32
    return %c0_i32, %c0_i32_0 : i32, i32
  }
  func.func @transform_2(%arg0: i32) -> (i32, i32, i32) {
    %c0_i32 = arith.constant 0 : i32
    %c0_i32_0 = arith.constant 0 : i32
    %c0_i32_1 = arith.constant 0 : i32
    %c0_i32_2 = arith.constant 0 : i32
    return %c0_i32, %c0_i32_0, %c0_i32_1 : i32, i32, i32
  }
  func.func @transform_3(%arg0: i32) -> (i32, i32) {
    %c0_i32 = arith.constant 0 : i32
    %c0_i32_0 = arith.constant 0 : i32
    %c0_i32_1 = arith.constant 0 : i32
    return %c0_i32, %c0_i32_0 : i32, i32
  }
  func.func @transform_4(%arg0: i32) -> (i32, i32, i32) {
    %c0_i32 = arith.constant 0 : i32
    %c0_i32_0 = arith.constant 0 : i32
    %c0_i32_1 = arith.constant 0 : i32
    return %arg0, %c0_i32, %c0_i32_0 : i32, i32, i32
  }
  func.func @transform_5(%arg0: i32) -> (i32, i32, i32) {
    %c0_i32 = arith.constant 0 : i32
    %c0_i32_0 = arith.constant 0 : i32
    %c0_i32_1 = arith.constant 0 : i32
    return %arg0, %c0_i32, %c0_i32_0 : i32, i32, i32
  }
}

module attributes {stable_mosaic.version = 11 : i64} {
  func.func @_fused_conv_kernel(%arg0: i32, %arg1: memref<1x8x256xf32, #tpu.memory_space<vmem>>, %arg2: memref<3x256xi32, #tpu.memory_space<vmem>>, %arg3: memref<27x8x8xf32, #tpu.memory_space<vmem>>, %arg4: memref<8x1xf32, #tpu.memory_space<vmem>>, %arg5: memref<1x8x256xf32, #tpu.memory_space<vmem>>, %arg6: memref<1x8x256xf32, #tpu.memory_space<vmem>>, %arg7: memref<8x402xf32, #tpu.memory_space<vmem>>) attributes {dimension_semantics = [#tpu.dimension_semantics<parallel>], iteration_bounds = array<i64: 2>, scalar_prefetch = 0 : i64, scratch_operands = 1 : i64, tpu.core_type = #tpu.core_type<tc>, window_params = [{transform_indices = @transform_0, window_bounds = array<i64: 1, 8, 256>}, {pipeline_mode = #tpu.pipeline_mode<synchronous>, transform_indices = @transform_1, window_bounds = array<i64: 3, 256>}, {pipeline_mode = #tpu.pipeline_mode<synchronous>, transform_indices = @transform_2, window_bounds = array<i64: 27, 8, 8>}, {pipeline_mode = #tpu.pipeline_mode<synchronous>, transform_indices = @transform_3, window_bounds = array<i64: 8, 1>}, {transform_indices = @transform_4, window_bounds = array<i64: 1, 8, 256>}, {transform_indices = @transform_5, window_bounds = array<i64: 1, 8, 256>}]} {
    %cst = arith.constant 0.000000e+00 : f32
    %0 = vector.broadcast %cst : f32 to vector<8x402xf32>
    %c0 = arith.constant 0 : index
    %c0_0 = arith.constant 0 : index
    %1 = vector.load %arg7[%c0, %c0_0] : memref<8x402xf32, #tpu.memory_space<vmem>>, vector<8x402xf32>
    tpu.vector_store %arg7[%c0, %c0_0], %0 {strides = array<i32>} : memref<8x402xf32, #tpu.memory_space<vmem>>, vector<8x402xf32>,
    %c0_1 = arith.constant 0 : index
    %c0_2 = arith.constant 0 : index
    %c0_3 = arith.constant 0 : index
    %2 = vector.load %arg1[%c0_1, %c0_2, %c0_3] : memref<1x8x256xf32, #tpu.memory_space<vmem>>, vector<1x8x256xf32>
    %3 = vector.shape_cast %2 : vector<1x8x256xf32> to vector<8x256xf32>
    %c0_4 = arith.constant 0 : index
    %c73 = arith.constant 73 : index
    %4 = vector.load %arg7[%c0_4, %c73] : memref<8x402xf32, #tpu.memory_space<vmem>>, vector<8x256xf32>
    tpu.vector_store %arg7[%c0_4, %c73], %3 {strides = array<i32>} : memref<8x402xf32, #tpu.memory_space<vmem>>, vector<8x256xf32>,
    %c0_5 = arith.constant 0 : index
    %c0_6 = arith.constant 0 : index
    %5 = vector.load %arg2[%c0_5, %c0_6] : memref<3x256xi32, #tpu.memory_space<vmem>>, vector<3x256xi32>
    %6 = vector.extract_strided_slice %5 {offsets = [0, 0], sizes = [1, 256], strides = [1, 1]} : vector<3x256xi32> to vector<1x256xi32>
    %7 = vector.extract_strided_slice %5 {offsets = [1, 0], sizes = [1, 256], strides = [1, 1]} : vector<3x256xi32> to vector<1x256xi32>
    %8 = vector.extract_strided_slice %5 {offsets = [2, 0], sizes = [1, 256], strides = [1, 1]} : vector<3x256xi32> to vector<1x256xi32>
    %cst_7 = arith.constant 0.000000e+00 : f32
    %9 = vector.broadcast %cst_7 : f32 to vector<8x256xf32>
    %c0_8 = arith.constant 0 : index
    %c0_9 = arith.constant 0 : index
    %10 = vector.load %arg7[%c0_8, %c0_9] : memref<8x402xf32, #tpu.memory_space<vmem>>, vector<8x256xf32>
    %c1_i32 = arith.constant 1 : i32
    %11 = vector.broadcast %c1_i32 : i32 to vector<1x256xi32>
    %12 = arith.cmpi sge, %6, %11 : vector<1x256xi32>
    %c1_i32_10 = arith.constant 1 : i32
    %13 = vector.broadcast %c1_i32_10 : i32 to vector<1x256xi32>
    %14 = arith.cmpi sge, %7, %13 : vector<1x256xi32>
    %c1_i32_11 = arith.constant 1 : i32
    %15 = vector.broadcast %c1_i32_11 : i32 to vector<1x256xi32>
    %16 = arith.cmpi sge, %8, %15 : vector<1x256xi32>
    %17 = arith.andi %12, %14 : vector<1x256xi1>
    %18 = arith.andi %17, %16 : vector<1x256xi1>
    %cst_12 = arith.constant 0.000000e+00 : f32
    %19 = vector.shape_cast %18 : vector<1x256xi1> to vector<1x256xi1>
    %20 = vector.broadcast %19 : vector<1x256xi1> to vector<8x256xi1>
    %21 = vector.broadcast %cst_12 : f32 to vector<8x256xf32>
    %22 = arith.select %20, %10, %21 : vector<8x256xi1>, vector<8x256xf32>
    %c0_13 = arith.constant 0 : index
    %c0_14 = arith.constant 0 : index
    %c0_15 = arith.constant 0 : index
    %23 = vector.load %arg3[%c0_13, %c0_14, %c0_15] : memref<27x8x8xf32, #tpu.memory_space<vmem>>, vector<1x8x8xf32>
    %24 = vector.shape_cast %23 : vector<1x8x8xf32> to vector<8x8xf32>
    %cst_16 = arith.constant dense<0.000000e+00> : vector<8x256xf32>
    %25 = tpu.matmul %24, %22, %cst_16 {dimension_numbers = #tpu.dot_dimension_numbers<[1], [0], [0], [1], [0, 0, 1, 1], [], []>} : vector<8x8xf32>, vector<8x256xf32>, vector<8x256xf32> -> vector<8x256xf32>
    %26 = arith.addf %9, %25 : vector<8x256xf32>
    %c0_17 = arith.constant 0 : index
    %c1 = arith.constant 1 : index
    %27 = vector.load %arg7[%c0_17, %c1] : memref<8x402xf32, #tpu.memory_space<vmem>>, vector<8x256xf32>
    %c1_i32_18 = arith.constant 1 : i32
    %28 = vector.broadcast %c1_i32_18 : i32 to vector<1x256xi32>
    %29 = arith.cmpi sge, %6, %28 : vector<1x256xi32>
    %c1_i32_19 = arith.constant 1 : i32
    %30 = vector.broadcast %c1_i32_19 : i32 to vector<1x256xi32>
    %31 = arith.cmpi sge, %7, %30 : vector<1x256xi32>
    %32 = arith.andi %29, %31 : vector<1x256xi1>
    %cst_20 = arith.constant 0.000000e+00 : f32
    %33 = vector.shape_cast %32 : vector<1x256xi1> to vector<1x256xi1>
    %34 = vector.broadcast %33 : vector<1x256xi1> to vector<8x256xi1>
    %35 = vector.broadcast %cst_20 : f32 to vector<8x256xf32>
    %36 = arith.select %34, %27, %35 : vector<8x256xi1>, vector<8x256xf32>
    %c1_21 = arith.constant 1 : index
    %c0_22 = arith.constant 0 : index
    %c0_23 = arith.constant 0 : index
    %37 = vector.load %arg3[%c1_21, %c0_22, %c0_23] : memref<27x8x8xf32, #tpu.memory_space<vmem>>, vector<1x8x8xf32>
    %38 = vector.shape_cast %37 : vector<1x8x8xf32> to vector<8x8xf32>
    %cst_24 = arith.constant dense<0.000000e+00> : vector<8x256xf32>
    %39 = tpu.matmul %38, %36, %cst_24 {dimension_numbers = #tpu.dot_dimension_numbers<[1], [0], [0], [1], [0, 0, 1, 1], [], []>} : vector<8x8xf32>, vector<8x256xf32>, vector<8x256xf32> -> vector<8x256xf32>
    %40 = arith.addf %26, %39 : vector<8x256xf32>
    %c0_25 = arith.constant 0 : index
    %c2 = arith.constant 2 : index
    %41 = vector.load %arg7[%c0_25, %c2] : memref<8x402xf32, #tpu.memory_space<vmem>>, vector<8x256xf32>
    %c1_i32_26 = arith.constant 1 : i32
    %42 = vector.broadcast %c1_i32_26 : i32 to vector<1x256xi32>
    %43 = arith.cmpi sge, %6, %42 : vector<1x256xi32>
    %c1_i32_27 = arith.constant 1 : i32
    %44 = vector.broadcast %c1_i32_27 : i32 to vector<1x256xi32>
    %45 = arith.cmpi sge, %7, %44 : vector<1x256xi32>
    %c7_i32 = arith.constant 7 : i32
    %46 = vector.broadcast %c7_i32 : i32 to vector<1x256xi32>
    %47 = arith.cmpi slt, %8, %46 : vector<1x256xi32>
    %48 = arith.andi %43, %45 : vector<1x256xi1>
    %49 = arith.andi %48, %47 : vector<1x256xi1>
    %cst_28 = arith.constant 0.000000e+00 : f32
    %50 = vector.shape_cast %49 : vector<1x256xi1> to vector<1x256xi1>
    %51 = vector.broadcast %50 : vector<1x256xi1> to vector<8x256xi1>
    %52 = vector.broadcast %cst_28 : f32 to vector<8x256xf32>
    %53 = arith.select %51, %41, %52 : vector<8x256xi1>, vector<8x256xf32>
    %c2_29 = arith.constant 2 : index
    %c0_30 = arith.constant 0 : index
    %c0_31 = arith.constant 0 : index
    %54 = vector.load %arg3[%c2_29, %c0_30, %c0_31] : memref<27x8x8xf32, #tpu.memory_space<vmem>>, vector<1x8x8xf32>
    %55 = vector.shape_cast %54 : vector<1x8x8xf32> to vector<8x8xf32>
    %cst_32 = arith.constant dense<0.000000e+00> : vector<8x256xf32>
    %56 = tpu.matmul %55, %53, %cst_32 {dimension_numbers = #tpu.dot_dimension_numbers<[1], [0], [0], [1], [0, 0, 1, 1], [], []>} : vector<8x8xf32>, vector<8x256xf32>, vector<8x256xf32> -> vector<8x256xf32>
    %57 = arith.addf %40, %56 : vector<8x256xf32>
    %c0_33 = arith.constant 0 : index
    %c8 = arith.constant 8 : index
    %58 = vector.load %arg7[%c0_33, %c8] : memref<8x402xf32, #tpu.memory_space<vmem>>, vector<8x256xf32>
    %c1_i32_34 = arith.constant 1 : i32
    %59 = vector.broadcast %c1_i32_34 : i32 to vector<1x256xi32>
    %60 = arith.cmpi sge, %6, %59 : vector<1x256xi32>
    %c1_i32_35 = arith.constant 1 : i32
    %61 = vector.broadcast %c1_i32_35 : i32 to vector<1x256xi32>
    %62 = arith.cmpi sge, %8, %61 : vector<1x256xi32>
    %63 = arith.andi %60, %62 : vector<1x256xi1>
    %cst_36 = arith.constant 0.000000e+00 : f32
    %64 = vector.shape_cast %63 : vector<1x256xi1> to vector<1x256xi1>
    %65 = vector.broadcast %64 : vector<1x256xi1> to vector<8x256xi1>
    %66 = vector.broadcast %cst_36 : f32 to vector<8x256xf32>
    %67 = arith.select %65, %58, %66 : vector<8x256xi1>, vector<8x256xf32>
    %c3 = arith.constant 3 : index
    %c0_37 = arith.constant 0 : index
    %c0_38 = arith.constant 0 : index
    %68 = vector.load %arg3[%c3, %c0_37, %c0_38] : memref<27x8x8xf32, #tpu.memory_space<vmem>>, vector<1x8x8xf32>
    %69 = vector.shape_cast %68 : vector<1x8x8xf32> to vector<8x8xf32>
    %cst_39 = arith.constant dense<0.000000e+00> : vector<8x256xf32>
    %70 = tpu.matmul %69, %67, %cst_39 {dimension_numbers = #tpu.dot_dimension_numbers<[1], [0], [0], [1], [0, 0, 1, 1], [], []>} : vector<8x8xf32>, vector<8x256xf32>, vector<8x256xf32> -> vector<8x256xf32>
    %71 = arith.addf %57, %70 : vector<8x256xf32>
    %c0_40 = arith.constant 0 : index
    %c9 = arith.constant 9 : index
    %72 = vector.load %arg7[%c0_40, %c9] : memref<8x402xf32, #tpu.memory_space<vmem>>, vector<8x256xf32>
    %c1_i32_41 = arith.constant 1 : i32
    %73 = vector.broadcast %c1_i32_41 : i32 to vector<1x256xi32>
    %74 = arith.cmpi sge, %6, %73 : vector<1x256xi32>
    %cst_42 = arith.constant 0.000000e+00 : f32
    %75 = vector.shape_cast %74 : vector<1x256xi1> to vector<1x256xi1>
    %76 = vector.broadcast %75 : vector<1x256xi1> to vector<8x256xi1>
    %77 = vector.broadcast %cst_42 : f32 to vector<8x256xf32>
    %78 = arith.select %76, %72, %77 : vector<8x256xi1>, vector<8x256xf32>
    %c4 = arith.constant 4 : index
    %c0_43 = arith.constant 0 : index
    %c0_44 = arith.constant 0 : index
    %79 = vector.load %arg3[%c4, %c0_43, %c0_44] : memref<27x8x8xf32, #tpu.memory_space<vmem>>, vector<1x8x8xf32>
    %80 = vector.shape_cast %79 : vector<1x8x8xf32> to vector<8x8xf32>
    %cst_45 = arith.constant dense<0.000000e+00> : vector<8x256xf32>
    %81 = tpu.matmul %80, %78, %cst_45 {dimension_numbers = #tpu.dot_dimension_numbers<[1], [0], [0], [1], [0, 0, 1, 1], [], []>} : vector<8x8xf32>, vector<8x256xf32>, vector<8x256xf32> -> vector<8x256xf32>
    %82 = arith.addf %71, %81 : vector<8x256xf32>
    %c0_46 = arith.constant 0 : index
    %c10 = arith.constant 10 : index
    %83 = vector.load %arg7[%c0_46, %c10] : memref<8x402xf32, #tpu.memory_space<vmem>>, vector<8x256xf32>
    %c1_i32_47 = arith.constant 1 : i32
    %84 = vector.broadcast %c1_i32_47 : i32 to vector<1x256xi32>
    %85 = arith.cmpi sge, %6, %84 : vector<1x256xi32>
    %c7_i32_48 = arith.constant 7 : i32
    %86 = vector.broadcast %c7_i32_48 : i32 to vector<1x256xi32>
    %87 = arith.cmpi slt, %8, %86 : vector<1x256xi32>
    %88 = arith.andi %85, %87 : vector<1x256xi1>
    %cst_49 = arith.constant 0.000000e+00 : f32
    %89 = vector.shape_cast %88 : vector<1x256xi1> to vector<1x256xi1>
    %90 = vector.broadcast %89 : vector<1x256xi1> to vector<8x256xi1>
    %91 = vector.broadcast %cst_49 : f32 to vector<8x256xf32>
    %92 = arith.select %90, %83, %91 : vector<8x256xi1>, vector<8x256xf32>
    %c5 = arith.constant 5 : index
    %c0_50 = arith.constant 0 : index
    %c0_51 = arith.constant 0 : index
    %93 = vector.load %arg3[%c5, %c0_50, %c0_51] : memref<27x8x8xf32, #tpu.memory_space<vmem>>, vector<1x8x8xf32>
    %94 = vector.shape_cast %93 : vector<1x8x8xf32> to vector<8x8xf32>
    %cst_52 = arith.constant dense<0.000000e+00> : vector<8x256xf32>
    %95 = tpu.matmul %94, %92, %cst_52 {dimension_numbers = #tpu.dot_dimension_numbers<[1], [0], [0], [1], [0, 0, 1, 1], [], []>} : vector<8x8xf32>, vector<8x256xf32>, vector<8x256xf32> -> vector<8x256xf32>
    %96 = arith.addf %82, %95 : vector<8x256xf32>
    %c0_53 = arith.constant 0 : index
    %c16 = arith.constant 16 : index
    %97 = vector.load %arg7[%c0_53, %c16] : memref<8x402xf32, #tpu.memory_space<vmem>>, vector<8x256xf32>
    %c1_i32_54 = arith.constant 1 : i32
    %98 = vector.broadcast %c1_i32_54 : i32 to vector<1x256xi32>
    %99 = arith.cmpi sge, %6, %98 : vector<1x256xi32>
    %c7_i32_55 = arith.constant 7 : i32
    %100 = vector.broadcast %c7_i32_55 : i32 to vector<1x256xi32>
    %101 = arith.cmpi slt, %7, %100 : vector<1x256xi32>
    %c1_i32_56 = arith.constant 1 : i32
    %102 = vector.broadcast %c1_i32_56 : i32 to vector<1x256xi32>
    %103 = arith.cmpi sge, %8, %102 : vector<1x256xi32>
    %104 = arith.andi %99, %101 : vector<1x256xi1>
    %105 = arith.andi %104, %103 : vector<1x256xi1>
    %cst_57 = arith.constant 0.000000e+00 : f32
    %106 = vector.shape_cast %105 : vector<1x256xi1> to vector<1x256xi1>
    %107 = vector.broadcast %106 : vector<1x256xi1> to vector<8x256xi1>
    %108 = vector.broadcast %cst_57 : f32 to vector<8x256xf32>
    %109 = arith.select %107, %97, %108 : vector<8x256xi1>, vector<8x256xf32>
    %c6 = arith.constant 6 : index
    %c0_58 = arith.constant 0 : index
    %c0_59 = arith.constant 0 : index
    %110 = vector.load %arg3[%c6, %c0_58, %c0_59] : memref<27x8x8xf32, #tpu.memory_space<vmem>>, vector<1x8x8xf32>
    %111 = vector.shape_cast %110 : vector<1x8x8xf32> to vector<8x8xf32>
    %cst_60 = arith.constant dense<0.000000e+00> : vector<8x256xf32>
    %112 = tpu.matmul %111, %109, %cst_60 {dimension_numbers = #tpu.dot_dimension_numbers<[1], [0], [0], [1], [0, 0, 1, 1], [], []>} : vector<8x8xf32>, vector<8x256xf32>, vector<8x256xf32> -> vector<8x256xf32>
    %113 = arith.addf %96, %112 : vector<8x256xf32>
    %c0_61 = arith.constant 0 : index
    %c17 = arith.constant 17 : index
    %114 = vector.load %arg7[%c0_61, %c17] : memref<8x402xf32, #tpu.memory_space<vmem>>, vector<8x256xf32>
    %c1_i32_62 = arith.constant 1 : i32
    %115 = vector.broadcast %c1_i32_62 : i32 to vector<1x256xi32>
    %116 = arith.cmpi sge, %6, %115 : vector<1x256xi32>
    %c7_i32_63 = arith.constant 7 : i32
    %117 = vector.broadcast %c7_i32_63 : i32 to vector<1x256xi32>
    %118 = arith.cmpi slt, %7, %117 : vector<1x256xi32>
    %119 = arith.andi %116, %118 : vector<1x256xi1>
    %cst_64 = arith.constant 0.000000e+00 : f32
    %120 = vector.shape_cast %119 : vector<1x256xi1> to vector<1x256xi1>
    %121 = vector.broadcast %120 : vector<1x256xi1> to vector<8x256xi1>
    %122 = vector.broadcast %cst_64 : f32 to vector<8x256xf32>
    %123 = arith.select %121, %114, %122 : vector<8x256xi1>, vector<8x256xf32>
    %c7 = arith.constant 7 : index
    %c0_65 = arith.constant 0 : index
    %c0_66 = arith.constant 0 : index
    %124 = vector.load %arg3[%c7, %c0_65, %c0_66] : memref<27x8x8xf32, #tpu.memory_space<vmem>>, vector<1x8x8xf32>
    %125 = vector.shape_cast %124 : vector<1x8x8xf32> to vector<8x8xf32>
    %cst_67 = arith.constant dense<0.000000e+00> : vector<8x256xf32>
    %126 = tpu.matmul %125, %123, %cst_67 {dimension_numbers = #tpu.dot_dimension_numbers<[1], [0], [0], [1], [0, 0, 1, 1], [], []>} : vector<8x8xf32>, vector<8x256xf32>, vector<8x256xf32> -> vector<8x256xf32>
    %127 = arith.addf %113, %126 : vector<8x256xf32>
    %c0_68 = arith.constant 0 : index
    %c18 = arith.constant 18 : index
    %128 = vector.load %arg7[%c0_68, %c18] : memref<8x402xf32, #tpu.memory_space<vmem>>, vector<8x256xf32>
    %c1_i32_69 = arith.constant 1 : i32
    %129 = vector.broadcast %c1_i32_69 : i32 to vector<1x256xi32>
    %130 = arith.cmpi sge, %6, %129 : vector<1x256xi32>
    %c7_i32_70 = arith.constant 7 : i32
    %131 = vector.broadcast %c7_i32_70 : i32 to vector<1x256xi32>
    %132 = arith.cmpi slt, %7, %131 : vector<1x256xi32>
    %c7_i32_71 = arith.constant 7 : i32
    %133 = vector.broadcast %c7_i32_71 : i32 to vector<1x256xi32>
    %134 = arith.cmpi slt, %8, %133 : vector<1x256xi32>
    %135 = arith.andi %130, %132 : vector<1x256xi1>
    %136 = arith.andi %135, %134 : vector<1x256xi1>
    %cst_72 = arith.constant 0.000000e+00 : f32
    %137 = vector.shape_cast %136 : vector<1x256xi1> to vector<1x256xi1>
    %138 = vector.broadcast %137 : vector<1x256xi1> to vector<8x256xi1>
    %139 = vector.broadcast %cst_72 : f32 to vector<8x256xf32>
    %140 = arith.select %138, %128, %139 : vector<8x256xi1>, vector<8x256xf32>
    %c8_73 = arith.constant 8 : index
    %c0_74 = arith.constant 0 : index
    %c0_75 = arith.constant 0 : index
    %141 = vector.load %arg3[%c8_73, %c0_74, %c0_75] : memref<27x8x8xf32, #tpu.memory_space<vmem>>, vector<1x8x8xf32>
    %142 = vector.shape_cast %141 : vector<1x8x8xf32> to vector<8x8xf32>
    %cst_76 = arith.constant dense<0.000000e+00> : vector<8x256xf32>
    %143 = tpu.matmul %142, %140, %cst_76 {dimension_numbers = #tpu.dot_dimension_numbers<[1], [0], [0], [1], [0, 0, 1, 1], [], []>} : vector<8x8xf32>, vector<8x256xf32>, vector<8x256xf32> -> vector<8x256xf32>
    %144 = arith.addf %127, %143 : vector<8x256xf32>
    %c0_77 = arith.constant 0 : index
    %c64 = arith.constant 64 : index
    %145 = vector.load %arg7[%c0_77, %c64] : memref<8x402xf32, #tpu.memory_space<vmem>>, vector<8x256xf32>
    %c1_i32_78 = arith.constant 1 : i32
    %146 = vector.broadcast %c1_i32_78 : i32 to vector<1x256xi32>
    %147 = arith.cmpi sge, %7, %146 : vector<1x256xi32>
    %c1_i32_79 = arith.constant 1 : i32
    %148 = vector.broadcast %c1_i32_79 : i32 to vector<1x256xi32>
    %149 = arith.cmpi sge, %8, %148 : vector<1x256xi32>
    %150 = arith.andi %147, %149 : vector<1x256xi1>
    %cst_80 = arith.constant 0.000000e+00 : f32
    %151 = vector.shape_cast %150 : vector<1x256xi1> to vector<1x256xi1>
    %152 = vector.broadcast %151 : vector<1x256xi1> to vector<8x256xi1>
    %153 = vector.broadcast %cst_80 : f32 to vector<8x256xf32>
    %154 = arith.select %152, %145, %153 : vector<8x256xi1>, vector<8x256xf32>
    %c9_81 = arith.constant 9 : index
    %c0_82 = arith.constant 0 : index
    %c0_83 = arith.constant 0 : index
    %155 = vector.load %arg3[%c9_81, %c0_82, %c0_83] : memref<27x8x8xf32, #tpu.memory_space<vmem>>, vector<1x8x8xf32>
    %156 = vector.shape_cast %155 : vector<1x8x8xf32> to vector<8x8xf32>
    %cst_84 = arith.constant dense<0.000000e+00> : vector<8x256xf32>
    %157 = tpu.matmul %156, %154, %cst_84 {dimension_numbers = #tpu.dot_dimension_numbers<[1], [0], [0], [1], [0, 0, 1, 1], [], []>} : vector<8x8xf32>, vector<8x256xf32>, vector<8x256xf32> -> vector<8x256xf32>
    %158 = arith.addf %144, %157 : vector<8x256xf32>
    %c0_85 = arith.constant 0 : index
    %c65 = arith.constant 65 : index
    %159 = vector.load %arg7[%c0_85, %c65] : memref<8x402xf32, #tpu.memory_space<vmem>>, vector<8x256xf32>
    %c1_i32_86 = arith.constant 1 : i32
    %160 = vector.broadcast %c1_i32_86 : i32 to vector<1x256xi32>
    %161 = arith.cmpi sge, %7, %160 : vector<1x256xi32>
    %cst_87 = arith.constant 0.000000e+00 : f32
    %162 = vector.shape_cast %161 : vector<1x256xi1> to vector<1x256xi1>
    %163 = vector.broadcast %162 : vector<1x256xi1> to vector<8x256xi1>
    %164 = vector.broadcast %cst_87 : f32 to vector<8x256xf32>
    %165 = arith.select %163, %159, %164 : vector<8x256xi1>, vector<8x256xf32>
    %c10_88 = arith.constant 10 : index
    %c0_89 = arith.constant 0 : index
    %c0_90 = arith.constant 0 : index
    %166 = vector.load %arg3[%c10_88, %c0_89, %c0_90] : memref<27x8x8xf32, #tpu.memory_space<vmem>>, vector<1x8x8xf32>
    %167 = vector.shape_cast %166 : vector<1x8x8xf32> to vector<8x8xf32>
    %cst_91 = arith.constant dense<0.000000e+00> : vector<8x256xf32>
    %168 = tpu.matmul %167, %165, %cst_91 {dimension_numbers = #tpu.dot_dimension_numbers<[1], [0], [0], [1], [0, 0, 1, 1], [], []>} : vector<8x8xf32>, vector<8x256xf32>, vector<8x256xf32> -> vector<8x256xf32>
    %169 = arith.addf %158, %168 : vector<8x256xf32>
    %c0_92 = arith.constant 0 : index
    %c66 = arith.constant 66 : index
    %170 = vector.load %arg7[%c0_92, %c66] : memref<8x402xf32, #tpu.memory_space<vmem>>, vector<8x256xf32>
    %c1_i32_93 = arith.constant 1 : i32
    %171 = vector.broadcast %c1_i32_93 : i32 to vector<1x256xi32>
    %172 = arith.cmpi sge, %7, %171 : vector<1x256xi32>
    %c7_i32_94 = arith.constant 7 : i32
    %173 = vector.broadcast %c7_i32_94 : i32 to vector<1x256xi32>
    %174 = arith.cmpi slt, %8, %173 : vector<1x256xi32>
    %175 = arith.andi %172, %174 : vector<1x256xi1>
    %cst_95 = arith.constant 0.000000e+00 : f32
    %176 = vector.shape_cast %175 : vector<1x256xi1> to vector<1x256xi1>
    %177 = vector.broadcast %176 : vector<1x256xi1> to vector<8x256xi1>
    %178 = vector.broadcast %cst_95 : f32 to vector<8x256xf32>
    %179 = arith.select %177, %170, %178 : vector<8x256xi1>, vector<8x256xf32>
    %c11 = arith.constant 11 : index
    %c0_96 = arith.constant 0 : index
    %c0_97 = arith.constant 0 : index
    %180 = vector.load %arg3[%c11, %c0_96, %c0_97] : memref<27x8x8xf32, #tpu.memory_space<vmem>>, vector<1x8x8xf32>
    %181 = vector.shape_cast %180 : vector<1x8x8xf32> to vector<8x8xf32>
    %cst_98 = arith.constant dense<0.000000e+00> : vector<8x256xf32>
    %182 = tpu.matmul %181, %179, %cst_98 {dimension_numbers = #tpu.dot_dimension_numbers<[1], [0], [0], [1], [0, 0, 1, 1], [], []>} : vector<8x8xf32>, vector<8x256xf32>, vector<8x256xf32> -> vector<8x256xf32>
    %183 = arith.addf %169, %182 : vector<8x256xf32>
    %c0_99 = arith.constant 0 : index
    %c72 = arith.constant 72 : index
    %184 = vector.load %arg7[%c0_99, %c72] : memref<8x402xf32, #tpu.memory_space<vmem>>, vector<8x256xf32>
    %c1_i32_100 = arith.constant 1 : i32
    %185 = vector.broadcast %c1_i32_100 : i32 to vector<1x256xi32>
    %186 = arith.cmpi sge, %8, %185 : vector<1x256xi32>
    %cst_101 = arith.constant 0.000000e+00 : f32
    %187 = vector.shape_cast %186 : vector<1x256xi1> to vector<1x256xi1>
    %188 = vector.broadcast %187 : vector<1x256xi1> to vector<8x256xi1>
    %189 = vector.broadcast %cst_101 : f32 to vector<8x256xf32>
    %190 = arith.select %188, %184, %189 : vector<8x256xi1>, vector<8x256xf32>
    %c12 = arith.constant 12 : index
    %c0_102 = arith.constant 0 : index
    %c0_103 = arith.constant 0 : index
    %191 = vector.load %arg3[%c12, %c0_102, %c0_103] : memref<27x8x8xf32, #tpu.memory_space<vmem>>, vector<1x8x8xf32>
    %192 = vector.shape_cast %191 : vector<1x8x8xf32> to vector<8x8xf32>
    %cst_104 = arith.constant dense<0.000000e+00> : vector<8x256xf32>
    %193 = tpu.matmul %192, %190, %cst_104 {dimension_numbers = #tpu.dot_dimension_numbers<[1], [0], [0], [1], [0, 0, 1, 1], [], []>} : vector<8x8xf32>, vector<8x256xf32>, vector<8x256xf32> -> vector<8x256xf32>
    %194 = arith.addf %183, %193 : vector<8x256xf32>
    %c0_105 = arith.constant 0 : index
    %c73_106 = arith.constant 73 : index
    %195 = vector.load %arg7[%c0_105, %c73_106] : memref<8x402xf32, #tpu.memory_space<vmem>>, vector<8x256xf32>
    %c13 = arith.constant 13 : index
    %c0_107 = arith.constant 0 : index
    %c0_108 = arith.constant 0 : index
    %196 = vector.load %arg3[%c13, %c0_107, %c0_108] : memref<27x8x8xf32, #tpu.memory_space<vmem>>, vector<1x8x8xf32>
    %197 = vector.shape_cast %196 : vector<1x8x8xf32> to vector<8x8xf32>
    %cst_109 = arith.constant dense<0.000000e+00> : vector<8x256xf32>
    %198 = tpu.matmul %197, %195, %cst_109 {dimension_numbers = #tpu.dot_dimension_numbers<[1], [0], [0], [1], [0, 0, 1, 1], [], []>} : vector<8x8xf32>, vector<8x256xf32>, vector<8x256xf32> -> vector<8x256xf32>
    %199 = arith.addf %194, %198 : vector<8x256xf32>
    %c0_110 = arith.constant 0 : index
    %c74 = arith.constant 74 : index
    %200 = vector.load %arg7[%c0_110, %c74] : memref<8x402xf32, #tpu.memory_space<vmem>>, vector<8x256xf32>
    %c7_i32_111 = arith.constant 7 : i32
    %201 = vector.broadcast %c7_i32_111 : i32 to vector<1x256xi32>
    %202 = arith.cmpi slt, %8, %201 : vector<1x256xi32>
    %cst_112 = arith.constant 0.000000e+00 : f32
    %203 = vector.shape_cast %202 : vector<1x256xi1> to vector<1x256xi1>
    %204 = vector.broadcast %203 : vector<1x256xi1> to vector<8x256xi1>
    %205 = vector.broadcast %cst_112 : f32 to vector<8x256xf32>
    %206 = arith.select %204, %200, %205 : vector<8x256xi1>, vector<8x256xf32>
    %c14 = arith.constant 14 : index
    %c0_113 = arith.constant 0 : index
    %c0_114 = arith.constant 0 : index
    %207 = vector.load %arg3[%c14, %c0_113, %c0_114] : memref<27x8x8xf32, #tpu.memory_space<vmem>>, vector<1x8x8xf32>
    %208 = vector.shape_cast %207 : vector<1x8x8xf32> to vector<8x8xf32>
    %cst_115 = arith.constant dense<0.000000e+00> : vector<8x256xf32>
    %209 = tpu.matmul %208, %206, %cst_115 {dimension_numbers = #tpu.dot_dimension_numbers<[1], [0], [0], [1], [0, 0, 1, 1], [], []>} : vector<8x8xf32>, vector<8x256xf32>, vector<8x256xf32> -> vector<8x256xf32>
    %210 = arith.addf %199, %209 : vector<8x256xf32>
    %c0_116 = arith.constant 0 : index
    %c80 = arith.constant 80 : index
    %211 = vector.load %arg7[%c0_116, %c80] : memref<8x402xf32, #tpu.memory_space<vmem>>, vector<8x256xf32>
    %c7_i32_117 = arith.constant 7 : i32
    %212 = vector.broadcast %c7_i32_117 : i32 to vector<1x256xi32>
    %213 = arith.cmpi slt, %7, %212 : vector<1x256xi32>
    %c1_i32_118 = arith.constant 1 : i32
    %214 = vector.broadcast %c1_i32_118 : i32 to vector<1x256xi32>
    %215 = arith.cmpi sge, %8, %214 : vector<1x256xi32>
    %216 = arith.andi %213, %215 : vector<1x256xi1>
    %cst_119 = arith.constant 0.000000e+00 : f32
    %217 = vector.shape_cast %216 : vector<1x256xi1> to vector<1x256xi1>
    %218 = vector.broadcast %217 : vector<1x256xi1> to vector<8x256xi1>
    %219 = vector.broadcast %cst_119 : f32 to vector<8x256xf32>
    %220 = arith.select %218, %211, %219 : vector<8x256xi1>, vector<8x256xf32>
    %c15 = arith.constant 15 : index
    %c0_120 = arith.constant 0 : index
    %c0_121 = arith.constant 0 : index
    %221 = vector.load %arg3[%c15, %c0_120, %c0_121] : memref<27x8x8xf32, #tpu.memory_space<vmem>>, vector<1x8x8xf32>
    %222 = vector.shape_cast %221 : vector<1x8x8xf32> to vector<8x8xf32>
    %cst_122 = arith.constant dense<0.000000e+00> : vector<8x256xf32>
    %223 = tpu.matmul %222, %220, %cst_122 {dimension_numbers = #tpu.dot_dimension_numbers<[1], [0], [0], [1], [0, 0, 1, 1], [], []>} : vector<8x8xf32>, vector<8x256xf32>, vector<8x256xf32> -> vector<8x256xf32>
    %224 = arith.addf %210, %223 : vector<8x256xf32>
    %c0_123 = arith.constant 0 : index
    %c81 = arith.constant 81 : index
    %225 = vector.load %arg7[%c0_123, %c81] : memref<8x402xf32, #tpu.memory_space<vmem>>, vector<8x256xf32>
    %c7_i32_124 = arith.constant 7 : i32
    %226 = vector.broadcast %c7_i32_124 : i32 to vector<1x256xi32>
    %227 = arith.cmpi slt, %7, %226 : vector<1x256xi32>
    %cst_125 = arith.constant 0.000000e+00 : f32
    %228 = vector.shape_cast %227 : vector<1x256xi1> to vector<1x256xi1>
    %229 = vector.broadcast %228 : vector<1x256xi1> to vector<8x256xi1>
    %230 = vector.broadcast %cst_125 : f32 to vector<8x256xf32>
    %231 = arith.select %229, %225, %230 : vector<8x256xi1>, vector<8x256xf32>
    %c16_126 = arith.constant 16 : index
    %c0_127 = arith.constant 0 : index
    %c0_128 = arith.constant 0 : index
    %232 = vector.load %arg3[%c16_126, %c0_127, %c0_128] : memref<27x8x8xf32, #tpu.memory_space<vmem>>, vector<1x8x8xf32>
    %233 = vector.shape_cast %232 : vector<1x8x8xf32> to vector<8x8xf32>
    %cst_129 = arith.constant dense<0.000000e+00> : vector<8x256xf32>
    %234 = tpu.matmul %233, %231, %cst_129 {dimension_numbers = #tpu.dot_dimension_numbers<[1], [0], [0], [1], [0, 0, 1, 1], [], []>} : vector<8x8xf32>, vector<8x256xf32>, vector<8x256xf32> -> vector<8x256xf32>
    %235 = arith.addf %224, %234 : vector<8x256xf32>
    %c0_130 = arith.constant 0 : index
    %c82 = arith.constant 82 : index
    %236 = vector.load %arg7[%c0_130, %c82] : memref<8x402xf32, #tpu.memory_space<vmem>>, vector<8x256xf32>
    %c7_i32_131 = arith.constant 7 : i32
    %237 = vector.broadcast %c7_i32_131 : i32 to vector<1x256xi32>
    %238 = arith.cmpi slt, %7, %237 : vector<1x256xi32>
    %c7_i32_132 = arith.constant 7 : i32
    %239 = vector.broadcast %c7_i32_132 : i32 to vector<1x256xi32>
    %240 = arith.cmpi slt, %8, %239 : vector<1x256xi32>
    %241 = arith.andi %238, %240 : vector<1x256xi1>
    %cst_133 = arith.constant 0.000000e+00 : f32
    %242 = vector.shape_cast %241 : vector<1x256xi1> to vector<1x256xi1>
    %243 = vector.broadcast %242 : vector<1x256xi1> to vector<8x256xi1>
    %244 = vector.broadcast %cst_133 : f32 to vector<8x256xf32>
    %245 = arith.select %243, %236, %244 : vector<8x256xi1>, vector<8x256xf32>
    %c17_134 = arith.constant 17 : index
    %c0_135 = arith.constant 0 : index
    %c0_136 = arith.constant 0 : index
    %246 = vector.load %arg3[%c17_134, %c0_135, %c0_136] : memref<27x8x8xf32, #tpu.memory_space<vmem>>, vector<1x8x8xf32>
    %247 = vector.shape_cast %246 : vector<1x8x8xf32> to vector<8x8xf32>
    %cst_137 = arith.constant dense<0.000000e+00> : vector<8x256xf32>
    %248 = tpu.matmul %247, %245, %cst_137 {dimension_numbers = #tpu.dot_dimension_numbers<[1], [0], [0], [1], [0, 0, 1, 1], [], []>} : vector<8x8xf32>, vector<8x256xf32>, vector<8x256xf32> -> vector<8x256xf32>
    %249 = arith.addf %235, %248 : vector<8x256xf32>
    %c0_138 = arith.constant 0 : index
    %c128 = arith.constant 128 : index
    %250 = vector.load %arg7[%c0_138, %c128] : memref<8x402xf32, #tpu.memory_space<vmem>>, vector<8x256xf32>
    %c3_i32 = arith.constant 3 : i32
    %251 = vector.broadcast %c3_i32 : i32 to vector<1x256xi32>
    %252 = arith.cmpi slt, %6, %251 : vector<1x256xi32>
    %c1_i32_139 = arith.constant 1 : i32
    %253 = vector.broadcast %c1_i32_139 : i32 to vector<1x256xi32>
    %254 = arith.cmpi sge, %7, %253 : vector<1x256xi32>
    %c1_i32_140 = arith.constant 1 : i32
    %255 = vector.broadcast %c1_i32_140 : i32 to vector<1x256xi32>
    %256 = arith.cmpi sge, %8, %255 : vector<1x256xi32>
    %257 = arith.andi %252, %254 : vector<1x256xi1>
    %258 = arith.andi %257, %256 : vector<1x256xi1>
    %cst_141 = arith.constant 0.000000e+00 : f32
    %259 = vector.shape_cast %258 : vector<1x256xi1> to vector<1x256xi1>
    %260 = vector.broadcast %259 : vector<1x256xi1> to vector<8x256xi1>
    %261 = vector.broadcast %cst_141 : f32 to vector<8x256xf32>
    %262 = arith.select %260, %250, %261 : vector<8x256xi1>, vector<8x256xf32>
    %c18_142 = arith.constant 18 : index
    %c0_143 = arith.constant 0 : index
    %c0_144 = arith.constant 0 : index
    %263 = vector.load %arg3[%c18_142, %c0_143, %c0_144] : memref<27x8x8xf32, #tpu.memory_space<vmem>>, vector<1x8x8xf32>
    %264 = vector.shape_cast %263 : vector<1x8x8xf32> to vector<8x8xf32>
    %cst_145 = arith.constant dense<0.000000e+00> : vector<8x256xf32>
    %265 = tpu.matmul %264, %262, %cst_145 {dimension_numbers = #tpu.dot_dimension_numbers<[1], [0], [0], [1], [0, 0, 1, 1], [], []>} : vector<8x8xf32>, vector<8x256xf32>, vector<8x256xf32> -> vector<8x256xf32>
    %266 = arith.addf %249, %265 : vector<8x256xf32>
    %c0_146 = arith.constant 0 : index
    %c129 = arith.constant 129 : index
    %267 = vector.load %arg7[%c0_146, %c129] : memref<8x402xf32, #tpu.memory_space<vmem>>, vector<8x256xf32>
    %c3_i32_147 = arith.constant 3 : i32
    %268 = vector.broadcast %c3_i32_147 : i32 to vector<1x256xi32>
    %269 = arith.cmpi slt, %6, %268 : vector<1x256xi32>
    %c1_i32_148 = arith.constant 1 : i32
    %270 = vector.broadcast %c1_i32_148 : i32 to vector<1x256xi32>
    %271 = arith.cmpi sge, %7, %270 : vector<1x256xi32>
    %272 = arith.andi %269, %271 : vector<1x256xi1>
    %cst_149 = arith.constant 0.000000e+00 : f32
    %273 = vector.shape_cast %272 : vector<1x256xi1> to vector<1x256xi1>
    %274 = vector.broadcast %273 : vector<1x256xi1> to vector<8x256xi1>
    %275 = vector.broadcast %cst_149 : f32 to vector<8x256xf32>
    %276 = arith.select %274, %267, %275 : vector<8x256xi1>, vector<8x256xf32>
    %c19 = arith.constant 19 : index
    %c0_150 = arith.constant 0 : index
    %c0_151 = arith.constant 0 : index
    %277 = vector.load %arg3[%c19, %c0_150, %c0_151] : memref<27x8x8xf32, #tpu.memory_space<vmem>>, vector<1x8x8xf32>
    %278 = vector.shape_cast %277 : vector<1x8x8xf32> to vector<8x8xf32>
    %cst_152 = arith.constant dense<0.000000e+00> : vector<8x256xf32>
    %279 = tpu.matmul %278, %276, %cst_152 {dimension_numbers = #tpu.dot_dimension_numbers<[1], [0], [0], [1], [0, 0, 1, 1], [], []>} : vector<8x8xf32>, vector<8x256xf32>, vector<8x256xf32> -> vector<8x256xf32>
    %280 = arith.addf %266, %279 : vector<8x256xf32>
    %c0_153 = arith.constant 0 : index
    %c130 = arith.constant 130 : index
    %281 = vector.load %arg7[%c0_153, %c130] : memref<8x402xf32, #tpu.memory_space<vmem>>, vector<8x256xf32>
    %c3_i32_154 = arith.constant 3 : i32
    %282 = vector.broadcast %c3_i32_154 : i32 to vector<1x256xi32>
    %283 = arith.cmpi slt, %6, %282 : vector<1x256xi32>
    %c1_i32_155 = arith.constant 1 : i32
    %284 = vector.broadcast %c1_i32_155 : i32 to vector<1x256xi32>
    %285 = arith.cmpi sge, %7, %284 : vector<1x256xi32>
    %c7_i32_156 = arith.constant 7 : i32
    %286 = vector.broadcast %c7_i32_156 : i32 to vector<1x256xi32>
    %287 = arith.cmpi slt, %8, %286 : vector<1x256xi32>
    %288 = arith.andi %283, %285 : vector<1x256xi1>
    %289 = arith.andi %288, %287 : vector<1x256xi1>
    %cst_157 = arith.constant 0.000000e+00 : f32
    %290 = vector.shape_cast %289 : vector<1x256xi1> to vector<1x256xi1>
    %291 = vector.broadcast %290 : vector<1x256xi1> to vector<8x256xi1>
    %292 = vector.broadcast %cst_157 : f32 to vector<8x256xf32>
    %293 = arith.select %291, %281, %292 : vector<8x256xi1>, vector<8x256xf32>
    %c20 = arith.constant 20 : index
    %c0_158 = arith.constant 0 : index
    %c0_159 = arith.constant 0 : index
    %294 = vector.load %arg3[%c20, %c0_158, %c0_159] : memref<27x8x8xf32, #tpu.memory_space<vmem>>, vector<1x8x8xf32>
    %295 = vector.shape_cast %294 : vector<1x8x8xf32> to vector<8x8xf32>
    %cst_160 = arith.constant dense<0.000000e+00> : vector<8x256xf32>
    %296 = tpu.matmul %295, %293, %cst_160 {dimension_numbers = #tpu.dot_dimension_numbers<[1], [0], [0], [1], [0, 0, 1, 1], [], []>} : vector<8x8xf32>, vector<8x256xf32>, vector<8x256xf32> -> vector<8x256xf32>
    %297 = arith.addf %280, %296 : vector<8x256xf32>
    %c0_161 = arith.constant 0 : index
    %c136 = arith.constant 136 : index
    %298 = vector.load %arg7[%c0_161, %c136] : memref<8x402xf32, #tpu.memory_space<vmem>>, vector<8x256xf32>
    %c3_i32_162 = arith.constant 3 : i32
    %299 = vector.broadcast %c3_i32_162 : i32 to vector<1x256xi32>
    %300 = arith.cmpi slt, %6, %299 : vector<1x256xi32>
    %c1_i32_163 = arith.constant 1 : i32
    %301 = vector.broadcast %c1_i32_163 : i32 to vector<1x256xi32>
    %302 = arith.cmpi sge, %8, %301 : vector<1x256xi32>
    %303 = arith.andi %300, %302 : vector<1x256xi1>
    %cst_164 = arith.constant 0.000000e+00 : f32
    %304 = vector.shape_cast %303 : vector<1x256xi1> to vector<1x256xi1>
    %305 = vector.broadcast %304 : vector<1x256xi1> to vector<8x256xi1>
    %306 = vector.broadcast %cst_164 : f32 to vector<8x256xf32>
    %307 = arith.select %305, %298, %306 : vector<8x256xi1>, vector<8x256xf32>
    %c21 = arith.constant 21 : index
    %c0_165 = arith.constant 0 : index
    %c0_166 = arith.constant 0 : index
    %308 = vector.load %arg3[%c21, %c0_165, %c0_166] : memref<27x8x8xf32, #tpu.memory_space<vmem>>, vector<1x8x8xf32>
    %309 = vector.shape_cast %308 : vector<1x8x8xf32> to vector<8x8xf32>
    %cst_167 = arith.constant dense<0.000000e+00> : vector<8x256xf32>
    %310 = tpu.matmul %309, %307, %cst_167 {dimension_numbers = #tpu.dot_dimension_numbers<[1], [0], [0], [1], [0, 0, 1, 1], [], []>} : vector<8x8xf32>, vector<8x256xf32>, vector<8x256xf32> -> vector<8x256xf32>
    %311 = arith.addf %297, %310 : vector<8x256xf32>
    %c0_168 = arith.constant 0 : index
    %c137 = arith.constant 137 : index
    %312 = vector.load %arg7[%c0_168, %c137] : memref<8x402xf32, #tpu.memory_space<vmem>>, vector<8x256xf32>
    %c3_i32_169 = arith.constant 3 : i32
    %313 = vector.broadcast %c3_i32_169 : i32 to vector<1x256xi32>
    %314 = arith.cmpi slt, %6, %313 : vector<1x256xi32>
    %cst_170 = arith.constant 0.000000e+00 : f32
    %315 = vector.shape_cast %314 : vector<1x256xi1> to vector<1x256xi1>
    %316 = vector.broadcast %315 : vector<1x256xi1> to vector<8x256xi1>
    %317 = vector.broadcast %cst_170 : f32 to vector<8x256xf32>
    %318 = arith.select %316, %312, %317 : vector<8x256xi1>, vector<8x256xf32>
    %c22 = arith.constant 22 : index
    %c0_171 = arith.constant 0 : index
    %c0_172 = arith.constant 0 : index
    %319 = vector.load %arg3[%c22, %c0_171, %c0_172] : memref<27x8x8xf32, #tpu.memory_space<vmem>>, vector<1x8x8xf32>
    %320 = vector.shape_cast %319 : vector<1x8x8xf32> to vector<8x8xf32>
    %cst_173 = arith.constant dense<0.000000e+00> : vector<8x256xf32>
    %321 = tpu.matmul %320, %318, %cst_173 {dimension_numbers = #tpu.dot_dimension_numbers<[1], [0], [0], [1], [0, 0, 1, 1], [], []>} : vector<8x8xf32>, vector<8x256xf32>, vector<8x256xf32> -> vector<8x256xf32>
    %322 = arith.addf %311, %321 : vector<8x256xf32>
    %c0_174 = arith.constant 0 : index
    %c138 = arith.constant 138 : index
    %323 = vector.load %arg7[%c0_174, %c138] : memref<8x402xf32, #tpu.memory_space<vmem>>, vector<8x256xf32>
    %c3_i32_175 = arith.constant 3 : i32
    %324 = vector.broadcast %c3_i32_175 : i32 to vector<1x256xi32>
    %325 = arith.cmpi slt, %6, %324 : vector<1x256xi32>
    %c7_i32_176 = arith.constant 7 : i32
    %326 = vector.broadcast %c7_i32_176 : i32 to vector<1x256xi32>
    %327 = arith.cmpi slt, %8, %326 : vector<1x256xi32>
    %328 = arith.andi %325, %327 : vector<1x256xi1>
    %cst_177 = arith.constant 0.000000e+00 : f32
    %329 = vector.shape_cast %328 : vector<1x256xi1> to vector<1x256xi1>
    %330 = vector.broadcast %329 : vector<1x256xi1> to vector<8x256xi1>
    %331 = vector.broadcast %cst_177 : f32 to vector<8x256xf32>
    %332 = arith.select %330, %323, %331 : vector<8x256xi1>, vector<8x256xf32>
    %c23 = arith.constant 23 : index
    %c0_178 = arith.constant 0 : index
    %c0_179 = arith.constant 0 : index
    %333 = vector.load %arg3[%c23, %c0_178, %c0_179] : memref<27x8x8xf32, #tpu.memory_space<vmem>>, vector<1x8x8xf32>
    %334 = vector.shape_cast %333 : vector<1x8x8xf32> to vector<8x8xf32>
    %cst_180 = arith.constant dense<0.000000e+00> : vector<8x256xf32>
    %335 = tpu.matmul %334, %332, %cst_180 {dimension_numbers = #tpu.dot_dimension_numbers<[1], [0], [0], [1], [0, 0, 1, 1], [], []>} : vector<8x8xf32>, vector<8x256xf32>, vector<8x256xf32> -> vector<8x256xf32>
    %336 = arith.addf %322, %335 : vector<8x256xf32>
    %c0_181 = arith.constant 0 : index
    %c144 = arith.constant 144 : index
    %337 = vector.load %arg7[%c0_181, %c144] : memref<8x402xf32, #tpu.memory_space<vmem>>, vector<8x256xf32>
    %c3_i32_182 = arith.constant 3 : i32
    %338 = vector.broadcast %c3_i32_182 : i32 to vector<1x256xi32>
    %339 = arith.cmpi slt, %6, %338 : vector<1x256xi32>
    %c7_i32_183 = arith.constant 7 : i32
    %340 = vector.broadcast %c7_i32_183 : i32 to vector<1x256xi32>
    %341 = arith.cmpi slt, %7, %340 : vector<1x256xi32>
    %c1_i32_184 = arith.constant 1 : i32
    %342 = vector.broadcast %c1_i32_184 : i32 to vector<1x256xi32>
    %343 = arith.cmpi sge, %8, %342 : vector<1x256xi32>
    %344 = arith.andi %339, %341 : vector<1x256xi1>
    %345 = arith.andi %344, %343 : vector<1x256xi1>
    %cst_185 = arith.constant 0.000000e+00 : f32
    %346 = vector.shape_cast %345 : vector<1x256xi1> to vector<1x256xi1>
    %347 = vector.broadcast %346 : vector<1x256xi1> to vector<8x256xi1>
    %348 = vector.broadcast %cst_185 : f32 to vector<8x256xf32>
    %349 = arith.select %347, %337, %348 : vector<8x256xi1>, vector<8x256xf32>
    %c24 = arith.constant 24 : index
    %c0_186 = arith.constant 0 : index
    %c0_187 = arith.constant 0 : index
    %350 = vector.load %arg3[%c24, %c0_186, %c0_187] : memref<27x8x8xf32, #tpu.memory_space<vmem>>, vector<1x8x8xf32>
    %351 = vector.shape_cast %350 : vector<1x8x8xf32> to vector<8x8xf32>
    %cst_188 = arith.constant dense<0.000000e+00> : vector<8x256xf32>
    %352 = tpu.matmul %351, %349, %cst_188 {dimension_numbers = #tpu.dot_dimension_numbers<[1], [0], [0], [1], [0, 0, 1, 1], [], []>} : vector<8x8xf32>, vector<8x256xf32>, vector<8x256xf32> -> vector<8x256xf32>
    %353 = arith.addf %336, %352 : vector<8x256xf32>
    %c0_189 = arith.constant 0 : index
    %c145 = arith.constant 145 : index
    %354 = vector.load %arg7[%c0_189, %c145] : memref<8x402xf32, #tpu.memory_space<vmem>>, vector<8x256xf32>
    %c3_i32_190 = arith.constant 3 : i32
    %355 = vector.broadcast %c3_i32_190 : i32 to vector<1x256xi32>
    %356 = arith.cmpi slt, %6, %355 : vector<1x256xi32>
    %c7_i32_191 = arith.constant 7 : i32
    %357 = vector.broadcast %c7_i32_191 : i32 to vector<1x256xi32>
    %358 = arith.cmpi slt, %7, %357 : vector<1x256xi32>
    %359 = arith.andi %356, %358 : vector<1x256xi1>
    %cst_192 = arith.constant 0.000000e+00 : f32
    %360 = vector.shape_cast %359 : vector<1x256xi1> to vector<1x256xi1>
    %361 = vector.broadcast %360 : vector<1x256xi1> to vector<8x256xi1>
    %362 = vector.broadcast %cst_192 : f32 to vector<8x256xf32>
    %363 = arith.select %361, %354, %362 : vector<8x256xi1>, vector<8x256xf32>
    %c25 = arith.constant 25 : index
    %c0_193 = arith.constant 0 : index
    %c0_194 = arith.constant 0 : index
    %364 = vector.load %arg3[%c25, %c0_193, %c0_194] : memref<27x8x8xf32, #tpu.memory_space<vmem>>, vector<1x8x8xf32>
    %365 = vector.shape_cast %364 : vector<1x8x8xf32> to vector<8x8xf32>
    %cst_195 = arith.constant dense<0.000000e+00> : vector<8x256xf32>
    %366 = tpu.matmul %365, %363, %cst_195 {dimension_numbers = #tpu.dot_dimension_numbers<[1], [0], [0], [1], [0, 0, 1, 1], [], []>} : vector<8x8xf32>, vector<8x256xf32>, vector<8x256xf32> -> vector<8x256xf32>
    %367 = arith.addf %353, %366 : vector<8x256xf32>
    %c0_196 = arith.constant 0 : index
    %c146 = arith.constant 146 : index
    %368 = vector.load %arg7[%c0_196, %c146] : memref<8x402xf32, #tpu.memory_space<vmem>>, vector<8x256xf32>
    %c3_i32_197 = arith.constant 3 : i32
    %369 = vector.broadcast %c3_i32_197 : i32 to vector<1x256xi32>
    %370 = arith.cmpi slt, %6, %369 : vector<1x256xi32>
    %c7_i32_198 = arith.constant 7 : i32
    %371 = vector.broadcast %c7_i32_198 : i32 to vector<1x256xi32>
    %372 = arith.cmpi slt, %7, %371 : vector<1x256xi32>
    %c7_i32_199 = arith.constant 7 : i32
    %373 = vector.broadcast %c7_i32_199 : i32 to vector<1x256xi32>
    %374 = arith.cmpi slt, %8, %373 : vector<1x256xi32>
    %375 = arith.andi %370, %372 : vector<1x256xi1>
    %376 = arith.andi %375, %374 : vector<1x256xi1>
    %cst_200 = arith.constant 0.000000e+00 : f32
    %377 = vector.shape_cast %376 : vector<1x256xi1> to vector<1x256xi1>
    %378 = vector.broadcast %377 : vector<1x256xi1> to vector<8x256xi1>
    %379 = vector.broadcast %cst_200 : f32 to vector<8x256xf32>
    %380 = arith.select %378, %368, %379 : vector<8x256xi1>, vector<8x256xf32>
    %c26 = arith.constant 26 : index
    %c0_201 = arith.constant 0 : index
    %c0_202 = arith.constant 0 : index
    %381 = vector.load %arg3[%c26, %c0_201, %c0_202] : memref<27x8x8xf32, #tpu.memory_space<vmem>>, vector<1x8x8xf32>
    %382 = vector.shape_cast %381 : vector<1x8x8xf32> to vector<8x8xf32>
    %cst_203 = arith.constant dense<0.000000e+00> : vector<8x256xf32>
    %383 = tpu.matmul %382, %380, %cst_203 {dimension_numbers = #tpu.dot_dimension_numbers<[1], [0], [0], [1], [0, 0, 1, 1], [], []>} : vector<8x8xf32>, vector<8x256xf32>, vector<8x256xf32> -> vector<8x256xf32>
    %384 = arith.addf %367, %383 : vector<8x256xf32>
    %c0_204 = arith.constant 0 : index
    %c0_205 = arith.constant 0 : index
    %385 = vector.load %arg4[%c0_204, %c0_205] : memref<8x1xf32, #tpu.memory_space<vmem>>, vector<8x1xf32>
    %386 = vector.broadcast %385 : vector<8x1xf32> to vector<8x256xf32>
    %387 = arith.addf %384, %386 : vector<8x256xf32>
    %cst_206 = arith.constant dense<0.000000e+00> : vector<8xf32>
    %388 = vector.multi_reduction <add>, %387, %cst_206 [1] : vector<8x256xf32> to vector<8xf32>
    %389 = vector.shape_cast %388 : vector<8xf32> to vector<8x1xf32>
    %cst_207 = arith.constant 3.906250e-03 : f32
    %390 = vector.broadcast %cst_207 : f32 to vector<8x1xf32>
    %391 = arith.mulf %389, %390 : vector<8x1xf32>
    %392 = vector.broadcast %391 : vector<8x1xf32> to vector<8x256xf32>
    %393 = arith.subf %387, %392 : vector<8x256xf32>
    %394 = arith.mulf %393, %393 : vector<8x256xf32>
    %cst_208 = arith.constant dense<0.000000e+00> : vector<8xf32>
    %395 = vector.multi_reduction <add>, %394, %cst_208 [1] : vector<8x256xf32> to vector<8xf32>
    %396 = vector.shape_cast %395 : vector<8xf32> to vector<8x1xf32>
    %cst_209 = arith.constant 3.906250e-03 : f32
    %397 = vector.broadcast %cst_209 : f32 to vector<8x1xf32>
    %398 = arith.mulf %396, %397 : vector<8x1xf32>
    %cst_210 = arith.constant 9.99999974E-6 : f32
    %399 = vector.broadcast %cst_210 : f32 to vector<8x1xf32>
    %400 = arith.addf %398, %399 : vector<8x1xf32>
    %401 = math.rsqrt %400 : vector<8x1xf32>
    %402 = vector.broadcast %401 : vector<8x1xf32> to vector<8x256xf32>
    %403 = arith.mulf %393, %402 : vector<8x256xf32>
    %c0_211 = arith.constant 0 : index
    %c0_212 = arith.constant 0 : index
    %c0_213 = arith.constant 0 : index
    %404 = vector.load %arg5[%c0_211, %c0_212, %c0_213] : memref<1x8x256xf32, #tpu.memory_space<vmem>>, vector<1x8x256xf32>
    %405 = vector.shape_cast %404 : vector<1x8x256xf32> to vector<8x256xf32>
    %406 = arith.addf %403, %405 : vector<8x256xf32>
    %cst_214 = arith.constant 0.000000e+00 : f32
    %407 = vector.broadcast %cst_214 : f32 to vector<8x256xf32>
    %408 = arith.maximumf %406, %407 : vector<8x256xf32>
    %c0_215 = arith.constant 0 : index
    %c0_216 = arith.constant 0 : index
    %c0_217 = arith.constant 0 : index
    %409 = vector.load %arg6[%c0_215, %c0_216, %c0_217] : memref<1x8x256xf32, #tpu.memory_space<vmem>>, vector<1x8x256xf32>
    %410 = vector.shape_cast %409 : vector<1x8x256xf32> to vector<8x256xf32>
    %411 = vector.shape_cast %408 : vector<8x256xf32> to vector<1x8x256xf32>
    tpu.vector_store %arg6[%c0_215, %c0_216, %c0_217], %411 {strides = array<i32>} : memref<1x8x256xf32, #tpu.memory_space<vmem>>, vector<1x8x256xf32>,
    return
  }
  func.func @transform_0(%arg0: i32) -> (i32, i32, i32) {
    %c0_i32 = arith.constant 0 : i32
    %c0_i32_0 = arith.constant 0 : i32
    %c0_i32_1 = arith.constant 0 : i32
    return %arg0, %c0_i32, %c0_i32_0 : i32, i32, i32
  }
  func.func @transform_1(%arg0: i32) -> (i32, i32) {
    %c0_i32 = arith.constant 0 : i32
    %c0_i32_0 = arith.constant 0 : i32
    %c0_i32_1 = arith.constant 0 : i32
    return %c0_i32, %c0_i32_0 : i32, i32
  }
  func.func @transform_2(%arg0: i32) -> (i32, i32, i32) {
    %c0_i32 = arith.constant 0 : i32
    %c0_i32_0 = arith.constant 0 : i32
    %c0_i32_1 = arith.constant 0 : i32
    %c0_i32_2 = arith.constant 0 : i32
    return %c0_i32, %c0_i32_0, %c0_i32_1 : i32, i32, i32
  }
  func.func @transform_3(%arg0: i32) -> (i32, i32) {
    %c0_i32 = arith.constant 0 : i32
    %c0_i32_0 = arith.constant 0 : i32
    %c0_i32_1 = arith.constant 0 : i32
    return %c0_i32, %c0_i32_0 : i32, i32
  }
  func.func @transform_4(%arg0: i32) -> (i32, i32, i32) {
    %c0_i32 = arith.constant 0 : i32
    %c0_i32_0 = arith.constant 0 : i32
    %c0_i32_1 = arith.constant 0 : i32
    return %arg0, %c0_i32, %c0_i32_0 : i32, i32, i32
  }
  func.func @transform_5(%arg0: i32) -> (i32, i32, i32) {
    %c0_i32 = arith.constant 0 : i32
    %c0_i32_0 = arith.constant 0 : i32
    %c0_i32_1 = arith.constant 0 : i32
    return %arg0, %c0_i32, %c0_i32_0 : i32, i32, i32
  }
}

</mosaic_0001>

<bundles_post_ra>
// kernel: down_forward.4
= control target key start
LH: loop header
LB: loop body
LE: loop exit
PB: predicated region body
PF: predicated region fallthrough
CT: control target
= control target key end

     0   :  { %s1033_s6 = smov 0   ;;  %s1522_s0 = inlined_call_operand.vmem [shape: f32[32,2,8,2,8,2], index: 0, kind: input, shape index: {}]   ;;  %s1523_s1 = inlined_call_operand.vmem [shape: f32[32,8,8], index: 1, kind: output, shape index: {}]  }
   0x1 LB: > { %s994_s7 = sadd.s32 4294967295, %s1021_s6   ;;  %p998_p0 = scmp.ge.s32.totalorder %s1021_s6, 1  ;;  %s1021_s6 = sphi %s1033_s6, %s11_s6  }
   0x2   : > { %p89_p1 = scmp.lt.s32.totalorder %s1021_s6, 9 }
   0x4   : > { %p90_p2 = pnand %p998_p0, %p89_p1 }
   0x5   : > { %s999_s8 = sshll.u32 (!%p90_p2), %s994_s7, 2  ;;  %vm251_vm0 = vcmask (!%p90_p2), 15360   ;;  %vm894_vm1 = vcmask (!%p90_p2), 1041409   ;;  %vm896_vm2 = vcmask (!%p90_p2), 1042434   ;;  %vm898_vm3 = vcmask (!%p90_p2), 1043459  }
   0x6   : > { %93 = sbr.rel (%p90_p2) target bundleno = 420 (0x1a4), region = 24  ;;  %p111_p3 = scmp.lt.s32.totalorder (!%p90_p2), %s999_s8, 31  ;;  %vm900_vm4 = vcmask (!%p90_p2), 1044484   ;;  %vm902_vm5 = vcmask (!%p90_p2), 1045509   ;;  %vm904_vm6 = vcmask (!%p90_p2), 1046534   ;;  %vm906_vm7 = vcmask (!%p90_p2), 1047559  }
   0x7   : > { %vm933_vm8 = vcmask (!%p90_p2), 64512  }
   0xd   : > { %s1525_s8 = smov (!%p111_p3, %s999_s8), 31 }
   0xe   : > { %s1006_s9 = sshll.u32 %s1525_s8, 8  ;;  %s1003_s13 = sshll.u32 %s1525_s8, 3 }
   0xf   : > { %s1047_s12 = scalar_lea.vmem %s1522_s0, %s1006_s9  ;;  %s1337_s16 = scalar_lea.vmem %s1523_s1, %s1003_s13 }
  0x10   : > { %v125_v0 = vld [vmem:[%s1047_s12 + $0x10] sm:$0xff]  ;;  %v123_v1 = vld [vmem:[%s1047_s12] sm:$0xff]  ;;  %v126_v2 = vld [vmem:[%s1047_s12 + $0x18] sm:$0xff] }
  0x11   : > { %v258_v3 = vsel %vm251_vm0, %v125_v0, -inf  ;;  %v252_v4 = vsel %vm251_vm0, %v123_v1, -inf  ;;  %v124_v5 = vld [vmem:[%s1047_s12 + $0x8] sm:$0xff]  ;;  %v261_v6 = vsel %vm251_vm0, %v126_v2, -inf  ;;  %v127_v9 = vld [vmem:[%s1047_s12 + $0x20] sm:$0xff]  ;;  %v130_v12 = vld [vmem:[%s1047_s12 + $0x38] sm:$0xff] }
  0x12   : > { %259 = vmax.xlane.f32.xlu1 %v258_v3  ;;  %253 = vmax.xlane.f32.xlu0 %v252_v4  ;;  %v255_v7 = vsel %vm251_vm0, %v124_v5, -inf  ;;  %v128_v8 = vld [vmem:[%s1047_s12 + $0x28] sm:$0xff]  ;;  %v264_v11 = vsel %vm251_vm0, %v127_v9, -inf  ;;  %v129_v13 = vld [vmem:[%s1047_s12 + $0x30] sm:$0xff]  ;;  %v273_v14 = vsel %vm251_vm0, %v130_v12, -inf  ;;  %v131_v17 = vld [vmem:[%s1047_s12 + $0x40] sm:$0xff] }
  0x13   : > { %v267_v10 = vsel %vm251_vm0, %v128_v8, -inf  ;;  %v270_v15 = vsel %vm251_vm0, %v129_v13, -inf  ;;  %v132_v16 = vld [vmem:[%s1047_s12 + $0x48] sm:$0xff]  ;;  %v276_v19 = vsel %vm251_vm0, %v131_v17, -inf  ;;  %v134_v20 = vld [vmem:[%s1047_s12 + $0x58] sm:$0xff]  ;;  %v133_v21 = vld [vmem:[%s1047_s12 + $0x50] sm:$0xff] }
  0x14   : > { %v279_v18 = vsel %vm251_vm0, %v132_v16, -inf  ;;  %v285_v22 = vsel %vm251_vm0, %v134_v20, -inf  ;;  %v282_v23 = vsel %vm251_vm0, %v133_v21, -inf  ;;  %v136_v24 = vld [vmem:[%s1047_s12 + $0x68] sm:$0xff]  ;;  %v135_v25 = vld [vmem:[%s1047_s12 + $0x60] sm:$0xff]  ;;  %v138_v28 = vld [vmem:[%s1047_s12 + $0x78] sm:$0xff] }
  0x15   : > { %v291_v26 = vsel %vm251_vm0, %v136_v24, -inf  ;;  %v288_v27 = vsel %vm251_vm0, %v135_v25, -inf  ;;  %v137_v29 = vld [vmem:[%s1047_s12 + $0x70] sm:$0xff]  ;;  %v297_v30 = vsel %vm251_vm0, %v138_v28, -inf  ;;  %v140_v32 = vld [vmem:[%s1047_s12 + $0x88] sm:$0xff]  ;;  %v139_v33 = vld [vmem:[%s1047_s12 + $0x80] sm:$0xff] }
  0x16   : > { %262 = vmax.xlane.f32.xlu1 %v261_v6  ;;  %256 = vmax.xlane.f32.xlu0 %v255_v7  ;;  %v294_v31 = vsel %vm251_vm0, %v137_v29, -inf  ;;  %v303_v34 = vsel %vm251_vm0, %v140_v32, -inf  ;;  %v300_v35 = vsel %vm251_vm0, %v139_v33, -inf  ;;  %v142_v36 = vld [vmem:[%s1047_s12 + $0x98] sm:$0xff]  ;;  %v141_v37 = vld [vmem:[%s1047_s12 + $0x90] sm:$0xff]  ;;  %v144_v40 = vld [vmem:[%s1047_s12 + $0xa8] sm:$0xff] }
  0x17   : > { %v309_v38 = vsel %vm251_vm0, %v142_v36, -inf  ;;  %v306_v39 = vsel %vm251_vm0, %v141_v37, -inf  ;;  %v143_v41 = vld [vmem:[%s1047_s12 + $0xa0] sm:$0xff]  ;;  %v315_v42 = vsel %vm251_vm0, %v144_v40, -inf  ;;  %v146_v44 = vld [vmem:[%s1047_s12 + $0xb8] sm:$0xff]  ;;  %v145_v45 = vld [vmem:[%s1047_s12 + $0xb0] sm:$0xff] }
  0x18   : > { %v312_v43 = vsel %vm251_vm0, %v143_v41, -inf  ;;  %v321_v46 = vsel %vm251_vm0, %v146_v44, -inf  ;;  %v318_v47 = vsel %vm251_vm0, %v145_v45, -inf  ;;  %v148_v48 = vld [vmem:[%s1047_s12 + $0xc8] sm:$0xff]  ;;  %v147_v49 = vld [vmem:[%s1047_s12 + $0xc0] sm:$0xff]  ;;  %v150_v52 = vld [vmem:[%s1047_s12 + $0xd8] sm:$0xff] }
  0x19   : > { %v327_v50 = vsel %vm251_vm0, %v148_v48, -inf  ;;  %v324_v51 = vsel %vm251_vm0, %v147_v49, -inf  ;;  %v149_v53 = vld [vmem:[%s1047_s12 + $0xd0] sm:$0xff]  ;;  %v333_v54 = vsel %vm251_vm0, %v150_v52, -inf  ;;  %v152_v56 = vld [vmem:[%s1047_s12 + $0xe8] sm:$0xff]  ;;  %v151_v57 = vld [vmem:[%s1047_s12 + $0xe0] sm:$0xff] }
  0x1a   : > { %268 = vmax.xlane.f32.xlu1 %v267_v10  ;;  %265 = vmax.xlane.f32.xlu0 %v264_v11  ;;  %v330_v55 = vsel %vm251_vm0, %v149_v53, -inf  ;;  %v339_v58 = vsel %vm251_vm0, %v152_v56, -inf  ;;  %v336_v59 = vsel %vm251_vm0, %v151_v57, -inf  ;;  %v154_v60 = vld [vmem:[%s1047_s12 + $0xf8] sm:$0xff]  ;;  %v153_v61 = vld [vmem:[%s1047_s12 + $0xf0] sm:$0xff]  ;;  %v156_v0 = vld [vmem:[%s1047_s12 + $0x108] sm:$0xff] }
  0x1b   : > { %v345_v62 = vsel %vm251_vm0, %v154_v60, -inf  ;;  %v342_v63 = vsel %vm251_vm0, %v153_v61, -inf  ;;  %v155_v1 = vld [vmem:[%s1047_s12 + $0x100] sm:$0xff]  ;;  %v351_v2 = vsel %vm251_vm0, %v156_v0, -inf  ;;  %v158_v4 = vld [vmem:[%s1047_s12 + $0x118] sm:$0xff]  ;;  %v157_v5 = vld [vmem:[%s1047_s12 + $0x110] sm:$0xff] }
  0x1c   : > { %v348_v3 = vsel %vm251_vm0, %v155_v1, -inf  ;;  %v357_v6 = vsel %vm251_vm0, %v158_v4, -inf  ;;  %v354_v7 = vsel %vm251_vm0, %v157_v5, -inf  ;;  %v160_v8 = vld [vmem:[%s1047_s12 + $0x128] sm:$0xff]  ;;  %v159_v9 = vld [vmem:[%s1047_s12 + $0x120] sm:$0xff]  ;;  %v162_v12 = vld [vmem:[%s1047_s12 + $0x138] sm:$0xff] }
  0x1d   : > { %v363_v10 = vsel %vm251_vm0, %v160_v8, -inf  ;;  %v360_v11 = vsel %vm251_vm0, %v159_v9, -inf  ;;  %v161_v13 = vld [vmem:[%s1047_s12 + $0x130] sm:$0xff]  ;;  %v164_v16 = vld [vmem:[%s1047_s12 + $0x148] sm:$0xff]  ;;  %v163_v17 = vld [vmem:[%s1047_s12 + $0x140] sm:$0xff] }
  0x1e   : > { %274 = vmax.xlane.f32.xlu1 %v273_v14  ;;  %271 = vmax.xlane.f32.xlu0 %v270_v15  ;;  %v369_v14 = vsel %vm251_vm0, %v162_v12, -inf  ;;  %v366_v15 = vsel %vm251_vm0, %v161_v13, -inf  ;;  %v166_v20 = vld [vmem:[%s1047_s12 + $0x158] sm:$0xff]  ;;  %v165_v21 = vld [vmem:[%s1047_s12 + $0x150] sm:$0xff]  ;;  %v168_v24 = vld [vmem:[%s1047_s12 + $0x168] sm:$0xff] }
  0x1f   : > { %v167_v25 = vld [vmem:[%s1047_s12 + $0x160] sm:$0xff]  ;;  %v170_v28 = vld [vmem:[%s1047_s12 + $0x178] sm:$0xff]  ;;  %v169_v29 = vld [vmem:[%s1047_s12 + $0x170] sm:$0xff] }
  0x20   : > { %v172_v32 = vld [vmem:[%s1047_s12 + $0x188] sm:$0xff]  ;;  %v171_v33 = vld [vmem:[%s1047_s12 + $0x180] sm:$0xff]  ;;  %v174_v36 = vld [vmem:[%s1047_s12 + $0x198] sm:$0xff] }
  0x21   : > { %v173_v37 = vld [vmem:[%s1047_s12 + $0x190] sm:$0xff]  ;;  %v176_v40 = vld [vmem:[%s1047_s12 + $0x1a8] sm:$0xff]  ;;  %v175_v41 = vld [vmem:[%s1047_s12 + $0x1a0] sm:$0xff] }
  0x22   : > { %280 = vmax.xlane.f32.xlu1 %v279_v18  ;;  %277 = vmax.xlane.f32.xlu0 %v276_v19  ;;  %v375_v18 = vsel %vm251_vm0, %v164_v16, -inf  ;;  %v372_v19 = vsel %vm251_vm0, %v163_v17, -inf  ;;  %v178_v44 = vld [vmem:[%s1047_s12 + $0x1b8] sm:$0xff]  ;;  %v177_v45 = vld [vmem:[%s1047_s12 + $0x1b0] sm:$0xff]  ;;  %v180_v48 = vld [vmem:[%s1047_s12 + $0x1c8] sm:$0xff] }
  0x23   : > { %v179_v49 = vld [vmem:[%s1047_s12 + $0x1c0] sm:$0xff]  ;;  %v182_v52 = vld [vmem:[%s1047_s12 + $0x1d8] sm:$0xff]  ;;  %v181_v53 = vld [vmem:[%s1047_s12 + $0x1d0] sm:$0xff] }
  0x24   : > { %v184_v56 = vld [vmem:[%s1047_s12 + $0x1e8] sm:$0xff]  ;;  %v183_v57 = vld [vmem:[%s1047_s12 + $0x1e0] sm:$0xff]  ;;  %v186_v60 = vld [vmem:[%s1047_s12 + $0x1f8] sm:$0xff] }
  0x25   : > { %v185_v61 = vld [vmem:[%s1047_s12 + $0x1f0] sm:$0xff]  ;;  %v188_v0 = vld [vmem:[%s1047_s12 + $0x208] sm:$0xff]  ;;  %v187_v1 = vld [vmem:[%s1047_s12 + $0x200] sm:$0xff] }
  0x26   : > { %286 = vmax.xlane.f32.xlu1 %v285_v22  ;;  %283 = vmax.xlane.f32.xlu0 %v282_v23  ;;  %v381_v22 = vsel %vm251_vm0, %v166_v20, -inf  ;;  %v378_v23 = vsel %vm251_vm0, %v165_v21, -inf  ;;  %v190_v4 = vld [vmem:[%s1047_s12 + $0x218] sm:$0xff]  ;;  %v189_v5 = vld [vmem:[%s1047_s12 + $0x210] sm:$0xff]  ;;  %v192_v8 = vld [vmem:[%s1047_s12 + $0x228] sm:$0xff] }
  0x27   : > { %v191_v9 = vld [vmem:[%s1047_s12 + $0x220] sm:$0xff]  ;;  %v194_v12 = vld [vmem:[%s1047_s12 + $0x238] sm:$0xff]  ;;  %v193_v13 = vld [vmem:[%s1047_s12 + $0x230] sm:$0xff] }
  0x28   : > { %v196_v16 = vld [vmem:[%s1047_s12 + $0x248] sm:$0xff]  ;;  %v195_v17 = vld [vmem:[%s1047_s12 + $0x240] sm:$0xff] }
  0x29   : > { %v471_v20 = vsel %vm251_vm0, %v196_v16, -inf  ;;  %v468_v21 = vsel %vm251_vm0, %v195_v17, -inf }
  0x2a   : > { %292 = vmax.xlane.f32.xlu1 %v291_v26  ;;  %289 = vmax.xlane.f32.xlu0 %v288_v27  ;;  %v387_v26 = vsel %vm251_vm0, %v168_v24, -inf  ;;  %v384_v27 = vsel %vm251_vm0, %v167_v25, -inf }
  0x2e   : > { %298 = vmax.xlane.f32.xlu1 %v297_v30  ;;  %295 = vmax.xlane.f32.xlu0 %v294_v31  ;;  %v393_v30 = vsel %vm251_vm0, %v170_v28, -inf  ;;  %v390_v31 = vsel %vm251_vm0, %v169_v29, -inf  ;;  %v200_v28 = vld [vmem:[%s1047_s12 + $0x268] sm:$0xff]  ;;  %v199_v29 = vld [vmem:[%s1047_s12 + $0x260] sm:$0xff] }
  0x32   : > { %304 = vmax.xlane.f32.xlu1 %v303_v34  ;;  %301 = vmax.xlane.f32.xlu0 %v300_v35  ;;  %v399_v34 = vsel %vm251_vm0, %v172_v32, -inf  ;;  %v396_v35 = vsel %vm251_vm0, %v171_v33, -inf  ;;  %v483_v32 = vsel %vm251_vm0, %v200_v28, -inf  ;;  %v480_v33 = vsel %vm251_vm0, %v199_v29, -inf  ;;  %v240_v28 = vld [vmem:[%s1047_s12 + $0x3a8] sm:$0xff]  ;;  %v239_v29 = vld [vmem:[%s1047_s12 + $0x3a0] sm:$0xff] }
  0x36   : > { %310 = vmax.xlane.f32.xlu1 %v309_v38  ;;  %307 = vmax.xlane.f32.xlu0 %v306_v39  ;;  %v405_v38 = vsel %vm251_vm0, %v174_v36, -inf  ;;  %v402_v39 = vsel %vm251_vm0, %v173_v37, -inf }
  0x3a   : > { %316 = vmax.xlane.f32.xlu1 %v315_v42  ;;  %313 = vmax.xlane.f32.xlu0 %v312_v43  ;;  %v411_v42 = vsel %vm251_vm0, %v176_v40, -inf  ;;  %v408_v43 = vsel %vm251_vm0, %v175_v41, -inf  ;;  %v204_v40 = vld [vmem:[%s1047_s12 + $0x288] sm:$0xff]  ;;  %v203_v41 = vld [vmem:[%s1047_s12 + $0x280] sm:$0xff] }
  0x3e   : > { %322 = vmax.xlane.f32.xlu1 %v321_v46  ;;  %319 = vmax.xlane.f32.xlu0 %v318_v47  ;;  %v417_v46 = vsel %vm251_vm0, %v178_v44, -inf  ;;  %v414_v47 = vsel %vm251_vm0, %v177_v45, -inf  ;;  %v495_v44 = vsel %vm251_vm0, %v204_v40, -inf  ;;  %v492_v45 = vsel %vm251_vm0, %v203_v41, -inf  ;;  %v210_v40 = vld [vmem:[%s1047_s12 + $0x2b8] sm:$0xff]  ;;  %v209_v41 = vld [vmem:[%s1047_s12 + $0x2b0] sm:$0xff] }
  0x42   : > { %328 = vmax.xlane.f32.xlu1 %v327_v50  ;;  %325 = vmax.xlane.f32.xlu0 %v324_v51  ;;  %v423_v50 = vsel %vm251_vm0, %v180_v48, -inf  ;;  %v420_v51 = vsel %vm251_vm0, %v179_v49, -inf }
  0x46   : > { %334 = vmax.xlane.f32.xlu1 %v333_v54  ;;  %331 = vmax.xlane.f32.xlu0 %v330_v55  ;;  %v429_v54 = vsel %vm251_vm0, %v182_v52, -inf  ;;  %v426_v55 = vsel %vm251_vm0, %v181_v53, -inf  ;;  %v208_v52 = vld [vmem:[%s1047_s12 + $0x2a8] sm:$0xff]  ;;  %v207_v53 = vld [vmem:[%s1047_s12 + $0x2a0] sm:$0xff] }
  0x4a   : > { %340 = vmax.xlane.f32.xlu1 %v339_v58  ;;  %337 = vmax.xlane.f32.xlu0 %v336_v59  ;;  %v435_v58 = vsel %vm251_vm0, %v184_v56, -inf  ;;  %v432_v59 = vsel %vm251_vm0, %v183_v57, -inf  ;;  %v507_v56 = vsel %vm251_vm0, %v208_v52, -inf  ;;  %v504_v57 = vsel %vm251_vm0, %v207_v53, -inf }
  0x4e   : > { %346 = vmax.xlane.f32.xlu1 %v345_v62  ;;  %343 = vmax.xlane.f32.xlu0 %v342_v63  ;;  %v441_v62 = vsel %vm251_vm0, %v186_v60, -inf  ;;  %v438_v63 = vsel %vm251_vm0, %v185_v61, -inf }
  0x52   : > { %352 = vmax.xlane.f32.xlu1 %v351_v2  ;;  %349 = vmax.xlane.f32.xlu0 %v348_v3  ;;  %v447_v2 = vsel %vm251_vm0, %v188_v0, -inf  ;;  %v444_v3 = vsel %vm251_vm0, %v187_v1, -inf  ;;  %v222_v0 = vld [vmem:[%s1047_s12 + $0x318] sm:$0xff]  ;;  %v221_v1 = vld [vmem:[%s1047_s12 + $0x310] sm:$0xff] }
  0x56   : > { %358 = vmax.xlane.f32.xlu1 %v357_v6  ;;  %355 = vmax.xlane.f32.xlu0 %v354_v7  ;;  %v453_v6 = vsel %vm251_vm0, %v190_v4, -inf  ;;  %v450_v7 = vsel %vm251_vm0, %v189_v5, -inf  ;;  %v549_v4 = vsel %vm251_vm0, %v222_v0, -inf  ;;  %v546_v5 = vsel %vm251_vm0, %v221_v1, -inf  ;;  %v226_v0 = vld [vmem:[%s1047_s12 + $0x338] sm:$0xff]  ;;  %v225_v1 = vld [vmem:[%s1047_s12 + $0x330] sm:$0xff] }
  0x5a   : > { %364 = vmax.xlane.f32.xlu1 %v363_v10  ;;  %361 = vmax.xlane.f32.xlu0 %v360_v11  ;;  %v459_v10 = vsel %vm251_vm0, %v192_v8, -inf  ;;  %v456_v11 = vsel %vm251_vm0, %v191_v9, -inf }
  0x5e   : > { %370 = vmax.xlane.f32.xlu1 %v369_v14  ;;  %367 = vmax.xlane.f32.xlu0 %v366_v15  ;;  %v465_v14 = vsel %vm251_vm0, %v194_v12, -inf  ;;  %v462_v15 = vsel %vm251_vm0, %v193_v13, -inf  ;;  %v238_v12 = vld [vmem:[%s1047_s12 + $0x398] sm:$0xff]  ;;  %v237_v13 = vld [vmem:[%s1047_s12 + $0x390] sm:$0xff] }
  0x5f   : > { %v597_v16 = vsel %vm251_vm0, %v238_v12, -inf  ;;  %v594_v17 = vsel %vm251_vm0, %v237_v13, -inf }
  0x62   : > { %376 = vmax.xlane.f32.xlu1 %v375_v18  ;;  %373 = vmax.xlane.f32.xlu0 %v372_v19 }
  0x66   : > { %382 = vmax.xlane.f32.xlu1 %v381_v22  ;;  %379 = vmax.xlane.f32.xlu0 %v378_v23  ;;  %v198_v22 = vld [vmem:[%s1047_s12 + $0x258] sm:$0xff]  ;;  %v197_v23 = vld [vmem:[%s1047_s12 + $0x250] sm:$0xff] }
  0x6a   : > { %388 = vmax.xlane.f32.xlu1 %v387_v26  ;;  %385 = vmax.xlane.f32.xlu0 %v384_v27  ;;  %v477_v26 = vsel %vm251_vm0, %v198_v22, -inf  ;;  %v474_v27 = vsel %vm251_vm0, %v197_v23, -inf }
  0x6e   : > { %394 = vmax.xlane.f32.xlu1 %v393_v30  ;;  %391 = vmax.xlane.f32.xlu0 %v390_v31 }
  0x72   : > { %400 = vmax.xlane.f32.xlu1 %v399_v34  ;;  %397 = vmax.xlane.f32.xlu0 %v396_v35  ;;  %v202_v34 = vld [vmem:[%s1047_s12 + $0x278] sm:$0xff]  ;;  %v201_v35 = vld [vmem:[%s1047_s12 + $0x270] sm:$0xff] }
  0x76   : > { %406 = vmax.xlane.f32.xlu1 %v405_v38  ;;  %403 = vmax.xlane.f32.xlu0 %v402_v39  ;;  %v489_v38 = vsel %vm251_vm0, %v202_v34, -inf  ;;  %v486_v39 = vsel %vm251_vm0, %v201_v35, -inf  ;;  %v603_v35 = vsel %vm251_vm0, %v240_v28, -inf }
  0x7a   : > { %412 = vmax.xlane.f32.xlu1 %v411_v42  ;;  %409 = vmax.xlane.f32.xlu0 %v408_v43 }
  0x7e   : > { %418 = vmax.xlane.f32.xlu1 %v417_v46  ;;  %415 = vmax.xlane.f32.xlu0 %v414_v47  ;;  %v206_v46 = vld [vmem:[%s1047_s12 + $0x298] sm:$0xff]  ;;  %v205_v47 = vld [vmem:[%s1047_s12 + $0x290] sm:$0xff] }
  0x82   : > { %424 = vmax.xlane.f32.xlu1 %v423_v50  ;;  %421 = vmax.xlane.f32.xlu0 %v420_v51  ;;  %v501_v50 = vsel %vm251_vm0, %v206_v46, -inf  ;;  %v498_v51 = vsel %vm251_vm0, %v205_v47, -inf }
  0x86   : > { %430 = vmax.xlane.f32.xlu1 %v429_v54  ;;  %427 = vmax.xlane.f32.xlu0 %v426_v55 }
  0x8a   : > { %436 = vmax.xlane.f32.xlu1 %v435_v58  ;;  %433 = vmax.xlane.f32.xlu0 %v432_v59  ;;  %v220_v58 = vld [vmem:[%s1047_s12 + $0x308] sm:$0xff]  ;;  %v219_v59 = vld [vmem:[%s1047_s12 + $0x300] sm:$0xff] }
  0x8e   : > { %442 = vmax.xlane.f32.xlu1 %v441_v62  ;;  %439 = vmax.xlane.f32.xlu0 %v438_v63  ;;  %v543_v62 = vsel %vm251_vm0, %v220_v58, -inf  ;;  %v540_v63 = vsel %vm251_vm0, %v219_v59, -inf  ;;  %v513_v58 = vsel %vm251_vm0, %v210_v40, -inf  ;;  %v510_v59 = vsel %vm251_vm0, %v209_v41, -inf  ;;  %v227_v40 = vld [vmem:[%s1047_s12 + $0x340] sm:$0xff] }
  0x92   : > { %448 = vmax.xlane.f32.xlu1 %v447_v2  ;;  %445 = vmax.xlane.f32.xlu0 %v444_v3 }
  0x96   : > { %454 = vmax.xlane.f32.xlu1 %v453_v6  ;;  %451 = vmax.xlane.f32.xlu0 %v450_v7  ;;  %v236_v6 = vld [vmem:[%s1047_s12 + $0x388] sm:$0xff]  ;;  %v235_v7 = vld [vmem:[%s1047_s12 + $0x380] sm:$0xff] }
  0x9a   : > { %460 = vmax.xlane.f32.xlu1 %v459_v10  ;;  %457 = vmax.xlane.f32.xlu0 %v456_v11  ;;  %v591_v10 = vsel %vm251_vm0, %v236_v6, -inf  ;;  %v588_v11 = vsel %vm251_vm0, %v235_v7, -inf  ;;  %v558_v6 = vsel %vm251_vm0, %v225_v1, -inf  ;;  %v230_v1 = vld [vmem:[%s1047_s12 + $0x358] sm:$0xff] }
  0x9e   : > { %466 = vmax.xlane.f32.xlu1 %v465_v14  ;;  %463 = vmax.xlane.f32.xlu0 %v462_v15 }
  0x9f   : > { %v1195_v18 = vpop.xlane.xlu1 %259  ;;  %v1197_v19 = vpop.xlane.xlu0 %253 }
  0xa2   : > { %472 = vmax.xlane.f32.xlu1 %v471_v20  ;;  %469 = vmax.xlane.f32.xlu0 %v468_v21  ;;  %v224_v20 = vld [vmem:[%s1047_s12 + $0x328] sm:$0xff]  ;;  %v223_v21 = vld [vmem:[%s1047_s12 + $0x320] sm:$0xff] }
  0xa3   : > { %v1203_v24 = vpop.xlane.xlu1 %262  ;;  %v1205_v25 = vpop.xlane.xlu0 %256 }
  0xa4   : > { %v637_v47 = vmax.f32 %v1195_v18, %v1203_v24  ;;  %v636_v18 = vmax.f32 %v1197_v19, %v1205_v25 }
  0xa6   : > { %478 = vmax.xlane.f32.xlu1 %v477_v26  ;;  %475 = vmax.xlane.f32.xlu0 %v474_v27  ;;  %v555_v26 = vsel %vm251_vm0, %v224_v20, -inf  ;;  %v552_v27 = vsel %vm251_vm0, %v223_v21, -inf }
  0xa7   : > { %v1211_v30 = vpop.xlane.xlu1 %268  ;;  %v1213_v31 = vpop.xlane.xlu0 %265 }
  0xa8   : > { %v638_v52 = vmax.f32 %v1213_v31, %v1211_v30 }
  0xaa   : > { %484 = vmax.xlane.f32.xlu1 %v483_v32  ;;  %481 = vmax.xlane.f32.xlu0 %v480_v33  ;;  %v764_v32 = vlaneseq }
  0xab   : > { %v1219_v36 = vpop.xlane.xlu1 %274  ;;  %v1221_v37 = vpop.xlane.xlu0 %271 }
  0xac   : > { %v639_v24 = vmax.f32 %v1221_v37, %v1219_v36 }
  0xae   : > { %490 = vmax.xlane.f32.xlu1 %v489_v38  ;;  %487 = vmax.xlane.f32.xlu0 %v486_v39  ;;  %v600_v38 = vsel %vm251_vm0, %v239_v29, -inf }
  0xaf   : > { %v1227_v42 = vpop.xlane.xlu1 %280  ;;  %v1229_v43 = vpop.xlane.xlu0 %277 }
  0xb0   : > { %v640_v30 = vmax.f32 %v1229_v43, %v1227_v42 }
  0xb2   : > { %496 = vmax.xlane.f32.xlu1 %v495_v44  ;;  %493 = vmax.xlane.f32.xlu0 %v492_v45  ;;  %v765_v44 = vand.u32 127, %v764_v32  ;;  %v767_v45 = vshrl.u32 %v764_v32, 7 }
  0xb3   : > { %v1235_v48 = vpop.xlane.xlu1 %286  ;;  %v1237_v49 = vpop.xlane.xlu0 %283 }
  0xb4   : > { %v1299_v31 = vsub.s32 %v765_v44, %v767_v45 }
  0xb6   : > { %502 = vmax.xlane.f32.xlu1 %v501_v50  ;;  %499 = vmax.xlane.f32.xlu0 %v498_v51 }
  0xb7   : > { %v1243_v54 = vpop.xlane.xlu1 %292  ;;  %v1245_v55 = vpop.xlane.xlu0 %289 }
  0xb8   : > { %v642_v42 = vmax.f32 %v1245_v55, %v1243_v54 }
  0xba   : > { %508 = vmax.xlane.f32.xlu1 %v507_v56  ;;  %505 = vmax.xlane.f32.xlu0 %v504_v57 }
  0xbb   : > { %v1251_v60 = vpop.xlane.xlu1 %298  ;;  %v1253_v61 = vpop.xlane.xlu0 %295 }
  0xbe   : > { %544 = vmax.xlane.f32.xlu1 %v543_v62  ;;  %541 = vmax.xlane.f32.xlu0 %v540_v63 }
  0xbf   : > { %v1259_v2 = vpop.xlane.xlu1 %304  ;;  %v1261_v3 = vpop.xlane.xlu0 %301 }
  0xc0   : > { %v644_v50 = vmax.f32 %v1261_v3, %v1259_v2  ;;  %v641_v3 = vmax.f32 %v1237_v49, %v1235_v48  ;;  %v241_v48 = vld [vmem:[%s1047_s12 + $0x3b0] sm:$0xff] }
  0xc2   : > { %550 = vmax.xlane.f32.xlu1 %v549_v4  ;;  %547 = vmax.xlane.f32.xlu0 %v546_v5  ;;  %v700_v4 = vmax.f32 %v636_v18, %v644_v50  ;;  %v561_v5 = vsel %vm251_vm0, %v226_v0, -inf  ;;  %v564_v50 = vsel %vm251_vm0, %v227_v40, -inf  ;;  %v213_v18 = vld [vmem:[%s1047_s12 + $0x2d0] sm:$0xff]  ;;  %v250_v40 = vld [vmem:[%s1047_s12 + $0x3f8] sm:$0xff] }
  0xc3   : > { %v311_v8 = vpop.xlane.xlu1 %310  ;;  %v308_v9 = vpop.xlane.xlu0 %307  ;;  %v522_v0 = vsel %vm251_vm0, %v213_v18, -inf }
  0xc4   : > { %v645_v39 = vmax.f32 %v308_v9, %v311_v8  ;;  %v242_v9 = vld [vmem:[%s1047_s12 + $0x3b8] sm:$0xff] }
  0xc6   : > { %592 = vmax.xlane.f32.xlu1 %v591_v10  ;;  %589 = vmax.xlane.f32.xlu0 %v588_v11  ;;  %v701_v62 = vmax.f32 %v637_v47, %v645_v39  ;;  %v769_v10 = vrot.slane %v700_v4, %v1299_v31  ;;  %v228_v39 = vld [vmem:[%s1047_s12 + $0x348] sm:$0xff]  ;;  %v573_v4 = vsel %vm251_vm0, %v230_v1, -inf }
  0xc7   : > { %v317_v14 = vpop.xlane.xlu1 %316  ;;  %v314_v15 = vpop.xlane.xlu0 %313  ;;  %v567_v47 = vsel %vm251_vm0, %v228_v39, -inf }
  0xc8   : > { %v646_v46 = vmax.f32 %v314_v15, %v317_v14  ;;  %v773_v43 = vrot.slane %v701_v62, %v1299_v31  ;;  %v609_v14 = vsel %vm251_vm0, %v242_v9, -inf  ;;  %v606_v15 = vsel %vm251_vm0, %v241_v48, -inf }
  0xca   : > { %598 = vmax.xlane.f32.xlu1 %v597_v16  ;;  %595 = vmax.xlane.f32.xlu0 %v594_v17  ;;  %v702_v2 = vmax.f32 %v638_v52, %v646_v46  ;;  %v643_v16 = vmax.f32 %v1253_v61, %v1251_v60  ;;  %v895_v17 = vsel %vm894_vm1, %v773_v43, %v769_v10  ;;  %v243_v52 = vld [vmem:[%s1047_s12 + $0x3c0] sm:$0xff]  ;;  %v216_v43 = vld [vmem:[%s1047_s12 + $0x2e8] sm:$0xff] }
  0xcb   : > { %v323_v22 = vpop.xlane.xlu1 %322  ;;  %v320_v23 = vpop.xlane.xlu0 %319  ;;  %v531_v48 = vsel %vm251_vm0, %v216_v43, -inf  ;;  %v232_v10 = vld [vmem:[%s1047_s12 + $0x368] sm:$0xff] }
  0xcc   : > { %v647_v51 = vmax.f32 %v320_v23, %v323_v22  ;;  %v777_v49 = vrot.slane %v702_v2, %v1299_v31  ;;  %v212_v22 = vld [vmem:[%s1047_s12 + $0x2c8] sm:$0xff]  ;;  %v211_v23 = vld [vmem:[%s1047_s12 + $0x2c0] sm:$0xff] }
  0xce   : > { %556 = vmax.xlane.f32.xlu1 %v555_v26  ;;  %553 = vmax.xlane.f32.xlu0 %v552_v27  ;;  %v703_v19 = vmax.f32 %v639_v24, %v647_v51  ;;  %v897_v26 = vsel %vm896_vm2, %v777_v49, %v895_v17  ;;  %v244_v51 = vld [vmem:[%s1047_s12 + $0x3c8] sm:$0xff] }
  0xcf   : > { %v329_v33 = vpop.xlane.xlu1 %328  ;;  %v326_v34 = vpop.xlane.xlu0 %325 }
  0xd0   : > { %v648_v53 = vmax.f32 %v326_v34, %v329_v33  ;;  %v781_v11 = vrot.slane %v703_v19, %v1299_v31  ;;  %v519_v33 = vsel %vm251_vm0, %v212_v22, -inf  ;;  %v516_v34 = vsel %vm251_vm0, %v211_v23, -inf  ;;  %v218_v22 = vld [vmem:[%s1047_s12 + $0x2f8] sm:$0xff]  ;;  %v217_v23 = vld [vmem:[%s1047_s12 + $0x2f0] sm:$0xff] }
  0xd2   : > { %604 = vmax.xlane.f32.xlu1 %v603_v35  ;;  %601 = vmax.xlane.f32.xlu0 %v600_v38  ;;  %v704_v25 = vmax.f32 %v640_v30, %v648_v53  ;;  %v899_v28 = vsel %vm898_vm3, %v781_v11, %v897_v26  ;;  %v229_v30 = vld [vmem:[%s1047_s12 + $0x350] sm:$0xff]  ;;  %v231_v11 = vld [vmem:[%s1047_s12 + $0x360] sm:$0xff] }
  0xd3   : > { %v335_v56 = vpop.xlane.xlu1 %334  ;;  %v332_v57 = vpop.xlane.xlu0 %331  ;;  %v570_v19 = vsel %vm251_vm0, %v229_v30, -inf }
  0xd4   : > { %v649_v63 = vmax.f32 %v332_v57, %v335_v56  ;;  %v785_v54 = vrot.slane %v704_v25, %v1299_v31  ;;  %v615_v57 = vsel %vm251_vm0, %v244_v51, -inf  ;;  %v246_v25 = vld [vmem:[%s1047_s12 + $0x3d8] sm:$0xff] }
  0xd6   : > { %514 = vmax.xlane.f32.xlu1 %v513_v58  ;;  %511 = vmax.xlane.f32.xlu0 %v510_v59  ;;  %v705_v7 = vmax.f32 %v641_v3, %v649_v63  ;;  %v901_v60 = vsel %vm900_vm4, %v785_v54, %v899_v28  ;;  %v612_v58 = vsel %vm251_vm0, %v243_v52, -inf  ;;  %v214_v59 = vld [vmem:[%s1047_s12 + $0x2d8] sm:$0xff]  ;;  %v537_v28 = vsel %vm251_vm0, %v218_v22, -inf }
  0xd7   : > { %v341_v36 = vpop.xlane.xlu1 %340  ;;  %v338_v37 = vpop.xlane.xlu0 %337  ;;  %v525_v63 = vsel %vm251_vm0, %v214_v59, -inf }
  0xd8   : > { %v650_v8 = vmax.f32 %v338_v37, %v341_v36  ;;  %v789_v20 = vrot.slane %v705_v7, %v1299_v31  ;;  %v245_v36 = vld [vmem:[%s1047_s12 + $0x3d0] sm:$0xff]  ;;  %v215_v7 = vld [vmem:[%s1047_s12 + $0x2e0] sm:$0xff] }
  0xd9   : > { %v528_v49 = vsel %vm251_vm0, %v215_v7, -inf }
  0xda   : > { %v706_v12 = vmax.f32 %v642_v42, %v650_v8  ;;  %562 = vmax.xlane.f32.xlu1 %v561_v5  ;;  %559 = vmax.xlane.f32.xlu0 %v558_v6  ;;  %v903_v35 = vsel %vm902_vm5, %v789_v20, %v901_v60  ;;  %v621_v6 = vsel %vm251_vm0, %v246_v25, -inf  ;;  %v618_v42 = vsel %vm251_vm0, %v245_v36, -inf  ;;  %v234_v60 = vld [vmem:[%s1047_s12 + $0x378] sm:$0xff] }
  0xdb   : > { %v347_v55 = vpop.xlane.xlu1 %346  ;;  %v344_v13 = vpop.xlane.xlu0 %343 }
  0xdc   : > { %v651_v21 = vmax.f32 %v344_v13, %v347_v55  ;;  %v793_v27 = vrot.slane %v706_v12, %v1299_v31  ;;  %v579_v55 = vsel %vm251_vm0, %v232_v10, -inf  ;;  %v576_v13 = vsel %vm251_vm0, %v231_v11, -inf }
  0xde   : > { %v707_v29 = vmax.f32 %v643_v16, %v651_v21  ;;  %610 = vmax.xlane.f32.xlu1 %v609_v14  ;;  %607 = vmax.xlane.f32.xlu0 %v606_v15  ;;  %v905_v41 = vsel %vm904_vm6, %v793_v27, %v903_v35  ;;  %v248_v14 = vld [vmem:[%s1047_s12 + $0x3e8] sm:$0xff]  ;;  %v247_v15 = vld [vmem:[%s1047_s12 + $0x3e0] sm:$0xff] }
  0xdf   : > { %v1327_v61 = vpop.xlane.xlu1 %352  ;;  %v1329_v32 = vpop.xlane.xlu0 %349  ;;  %v627_v20 = vsel %vm251_vm0, %v248_v14, -inf  ;;  %v624_v21 = vsel %vm251_vm0, %v247_v15, -inf }
  0xe0   : > { %v797_v38 = vrot.slane %v707_v29, %v1299_v31  ;;  %v534_v29 = vsel %vm251_vm0, %v217_v23, -inf  ;;  %v652_v25 = vmax.f32 %v1329_v32, %v1327_v61 }
  0xe2   : > { %v907_v44 = vsel %vm906_vm7, %v797_v38, %v905_v41  ;;  %520 = vmax.xlane.f32.xlu1 %v519_v33  ;;  %517 = vmax.xlane.f32.xlu0 %v516_v34  ;;  %v233_v33 = vld [vmem:[%s1047_s12 + $0x370] sm:$0xff]  ;;  %v585_v38 = vsel %vm251_vm0, %v234_v60, -inf }
  0xe3   : > { %934 = vst.msk [vmem:[%s1337_s16] sm:$0xff] %vm933_vm8, %v907_v44  ;;  %v1346_v45 = vpop.xlane.xlu1 %358  ;;  %v1348_v46 = vpop.xlane.xlu0 %355  ;;  %v582_v39 = vsel %vm251_vm0, %v233_v33, -inf  ;;  %v249_v41 = vld [vmem:[%s1047_s12 + $0x3f0] sm:$0xff] }
  0xe4   : > { %v630_v51 = vsel %vm251_vm0, %v249_v41, -inf  ;;  %v653_v18 = vmax.f32 %v1348_v46, %v1346_v45 }
  0xe6   : > { %568 = vmax.xlane.f32.xlu1 %v567_v47  ;;  %565 = vmax.xlane.f32.xlu0 %v564_v50  ;;  %v633_v50 = vsel %vm251_vm0, %v250_v40, -inf }
  0xe7   : > { %v1354_v53 = vpop.xlane.xlu1 %364  ;;  %v1356_v56 = vpop.xlane.xlu0 %361 }
  0xe8   : > { %v654_v1 = vmax.f32 %v1356_v56, %v1354_v53 }
  0xea   : > { %616 = vmax.xlane.f32.xlu1 %v615_v57  ;;  %613 = vmax.xlane.f32.xlu0 %v612_v58 }
  0xeb   : > { %v1362_v24 = vpop.xlane.xlu1 %370  ;;  %v1364_v62 = vpop.xlane.xlu0 %367 }
  0xec   : > { %v655_v36 = vmax.f32 %v1364_v62, %v1362_v24 }
  0xee   : > { %526 = vmax.xlane.f32.xlu1 %v525_v63  ;;  %523 = vmax.xlane.f32.xlu0 %v522_v0 }
  0xef   : > { %v1370_v2 = vpop.xlane.xlu1 %376  ;;  %v1372_v3 = vpop.xlane.xlu0 %373 }
  0xf0   : > { %v656_v43 = vmax.f32 %v1372_v3, %v1370_v2 }
  0xf2   : > { %574 = vmax.xlane.f32.xlu1 %v573_v4  ;;  %571 = vmax.xlane.f32.xlu0 %v570_v19 }
  0xf3   : > { %v1378_v37 = vpop.xlane.xlu1 %382  ;;  %v1380_v5 = vpop.xlane.xlu0 %379 }
  0xf4   : > { %v657_v46 = vmax.f32 %v1380_v5, %v1378_v37 }
  0xf6   : > { %622 = vmax.xlane.f32.xlu1 %v621_v6  ;;  %619 = vmax.xlane.f32.xlu0 %v618_v42 }
  0xf7   : > { %v1386_v8 = vpop.xlane.xlu1 %388  ;;  %v1388_v9 = vpop.xlane.xlu0 %385 }
  0xf8   : > { %v658_v61 = vmax.f32 %v1388_v9, %v1386_v8 }
  0xfa   : > { %532 = vmax.xlane.f32.xlu1 %v531_v48  ;;  %529 = vmax.xlane.f32.xlu0 %v528_v49 }
  0xfb   : > { %v1394_v12 = vpop.xlane.xlu1 %394  ;;  %v1396_v54 = vpop.xlane.xlu0 %391 }
  0xfe   : > { %580 = vmax.xlane.f32.xlu1 %v579_v55  ;;  %577 = vmax.xlane.f32.xlu0 %v576_v13  ;;  %v659_v13 = vmax.f32 %v1396_v54, %v1394_v12 }
  0xff   : > { %v401_v16 = vpop.xlane.xlu1 %400  ;;  %v398_v17 = vpop.xlane.xlu0 %397 }
 0x100   : > { %v660_v63 = vmax.f32 %v398_v17, %v401_v16 }
 0x102   : > { %628 = vmax.xlane.f32.xlu1 %v627_v20  ;;  %625 = vmax.xlane.f32.xlu0 %v624_v21  ;;  %v708_v7 = vmax.f32 %v652_v25, %v660_v63 }
 0x103   : > { %v407_v26 = vpop.xlane.xlu1 %406  ;;  %v404_v27 = vpop.xlane.xlu0 %403 }
 0x104   : > { %v661_v58 = vmax.f32 %v404_v27, %v407_v26  ;;  %v801_v2 = vrot.slane %v708_v7, %v1299_v31 }
 0x106   : > { %538 = vmax.xlane.f32.xlu1 %v537_v28  ;;  %535 = vmax.xlane.f32.xlu0 %v534_v29  ;;  %v709_v6 = vmax.f32 %v653_v18, %v661_v58 }
 0x107   : > { %v413_v34 = vpop.xlane.xlu1 %412  ;;  %v410_v35 = vpop.xlane.xlu0 %409 }
 0x108   : > { %v662_v59 = vmax.f32 %v410_v35, %v413_v34  ;;  %v805_v32 = vrot.slane %v709_v6, %v1299_v31 }
 0x10a   : > { %586 = vmax.xlane.f32.xlu1 %v585_v38  ;;  %583 = vmax.xlane.f32.xlu0 %v582_v39  ;;  %v710_v45 = vmax.f32 %v654_v1, %v662_v59  ;;  %v908_v8 = vsel %vm894_vm1, %v805_v32, %v801_v2 }
 0x10b   : > { %v419_v44 = vpop.xlane.xlu1 %418  ;;  %v416_v47 = vpop.xlane.xlu0 %415 }
 0x10c   : > { %v663_v0 = vmax.f32 %v416_v47, %v419_v44  ;;  %v809_v10 = vrot.slane %v710_v45, %v1299_v31 }
 0x10e   : > { %634 = vmax.xlane.f32.xlu1 %v633_v50  ;;  %631 = vmax.xlane.f32.xlu0 %v630_v51  ;;  %v711_v53 = vmax.f32 %v655_v36, %v663_v0  ;;  %v909_v15 = vsel %vm896_vm2, %v809_v10, %v908_v8 }
 0x10f   : > { %v425_v52 = vpop.xlane.xlu1 %424  ;;  %v422_v57 = vpop.xlane.xlu0 %421 }
 0x110   : > { %v664_v30 = vmax.f32 %v422_v57, %v425_v52  ;;  %v813_v3 = vrot.slane %v711_v53, %v1299_v31 }
 0x112   : > { %v712_v56 = vmax.f32 %v656_v43, %v664_v30  ;;  %v910_v17 = vsel %vm898_vm3, %v813_v3, %v909_v15 }
 0x113   : > { %v431_v4 = vpop.xlane.xlu1 %430  ;;  %v428_v19 = vpop.xlane.xlu0 %427 }
 0x114   : > { %v665_v42 = vmax.f32 %v428_v19, %v431_v4  ;;  %v817_v37 = vrot.slane %v712_v56, %v1299_v31 }
 0x116   : > { %v713_v24 = vmax.f32 %v657_v46, %v665_v42  ;;  %v911_v21 = vsel %vm900_vm4, %v817_v37, %v910_v17 }
 0x117   : > { %v437_v48 = vpop.xlane.xlu1 %436  ;;  %v434_v49 = vpop.xlane.xlu0 %433 }
 0x118   : > { %v666_v62 = vmax.f32 %v434_v49, %v437_v48  ;;  %v821_v9 = vrot.slane %v713_v24, %v1299_v31 }
 0x11a   : > { %v714_v11 = vmax.f32 %v658_v61, %v666_v62  ;;  %v912_v26 = vsel %vm902_vm5, %v821_v9, %v911_v21 }
 0x11b   : > { %v443_v5 = vpop.xlane.xlu1 %442  ;;  %v440_v55 = vpop.xlane.xlu0 %439 }
 0x11c   : > { %v667_v14 = vmax.f32 %v440_v55, %v443_v5  ;;  %v825_v16 = vrot.slane %v714_v11, %v1299_v31 }
 0x11e   : > { %v715_v20 = vmax.f32 %v659_v13, %v667_v14  ;;  %v913_v27 = vsel %vm904_vm6, %v825_v16, %v912_v26 }
 0x11f   : > { %v449_v22 = vpop.xlane.xlu1 %448  ;;  %v446_v23 = vpop.xlane.xlu0 %445 }
 0x120   : > { %v829_v12 = vrot.slane %v715_v20, %v1299_v31  ;;  %v668_v54 = vmax.f32 %v446_v23, %v449_v22 }
 0x122   : > { %v914_v28 = vsel %vm906_vm7, %v829_v12, %v913_v27 }
 0x123   : > { %935 = vst.msk [vmem:[%s1337_s16 + $0x8] sm:$0xff] %vm933_vm8, %v914_v28  ;;  %v455_v29 = vpop.xlane.xlu1 %454  ;;  %v452_v60 = vpop.xlane.xlu0 %451 }
 0x124   : > { %v669_v33 = vmax.f32 %v452_v60, %v455_v29 }
 0x127   : > { %v461_v34 = vpop.xlane.xlu1 %460  ;;  %v458_v35 = vpop.xlane.xlu0 %457 }
 0x128   : > { %v670_v38 = vmax.f32 %v458_v35, %v461_v34 }
 0x12b   : > { %v467_v39 = vpop.xlane.xlu1 %466  ;;  %v464_v40 = vpop.xlane.xlu0 %463 }
 0x12c   : > { %v671_v41 = vmax.f32 %v464_v40, %v467_v39 }
 0x12f   : > { %v1449_v44 = vpop.xlane.xlu1 %472  ;;  %v1451_v47 = vpop.xlane.xlu0 %469 }
 0x130   : > { %v672_v50 = vmax.f32 %v1451_v47, %v1449_v44 }
 0x133   : > { %v1455_v51 = vpop.xlane.xlu1 %478  ;;  %v1457_v52 = vpop.xlane.xlu0 %475 }
 0x134   : > { %v673_v57 = vmax.f32 %v1457_v52, %v1455_v51 }
 0x137   : > { %v1461_v58 = vpop.xlane.xlu1 %484  ;;  %v1463_v59 = vpop.xlane.xlu0 %481 }
 0x138   : > { %v674_v18 = vmax.f32 %v1463_v59, %v1461_v58 }
 0x13b   : > { %v1467_v63 = vpop.xlane.xlu1 %490  ;;  %v1469_v0 = vpop.xlane.xlu0 %487 }
 0x13c   : > { %v675_v1 = vmax.f32 %v1469_v0, %v1467_v63 }
 0x13f   : > { %v497_v30 = vpop.xlane.xlu1 %496  ;;  %v494_v4 = vpop.xlane.xlu0 %493 }
 0x140   : > { %v676_v19 = vmax.f32 %v494_v4, %v497_v30 }
 0x142   : > { %v716_v25 = vmax.f32 %v668_v54, %v676_v19 }
 0x143   : > { %v503_v36 = vpop.xlane.xlu1 %502  ;;  %v500_v6 = vpop.xlane.xlu0 %499 }
 0x144   : > { %v677_v42 = vmax.f32 %v500_v6, %v503_v36  ;;  %v833_v7 = vrot.slane %v716_v25, %v1299_v31 }
 0x146   : > { %v717_v43 = vmax.f32 %v669_v33, %v677_v42 }
 0x147   : > { %v509_v45 = vpop.xlane.xlu1 %508  ;;  %v506_v46 = vpop.xlane.xlu0 %505 }
 0x148   : > { %v837_v53 = vrot.slane %v717_v43, %v1299_v31  ;;  %v678_v56 = vmax.f32 %v506_v46, %v509_v45 }
 0x14a   : > { %v915_v48 = vsel %vm894_vm1, %v837_v53, %v833_v7  ;;  %v718_v49 = vmax.f32 %v670_v38, %v678_v56 }
 0x14b   : > { %v545_v61 = vpop.xlane.xlu1 %544  ;;  %v542_v32 = vpop.xlane.xlu0 %541 }
 0x14c   : > { %v841_v24 = vrot.slane %v718_v49, %v1299_v31  ;;  %v684_v62 = vmax.f32 %v542_v32, %v545_v61 }
 0x14e   : > { %v916_v10 = vsel %vm896_vm2, %v841_v24, %v915_v48 }
 0x14f   : > { %v551_v2 = vpop.xlane.xlu1 %550  ;;  %v548_v3 = vpop.xlane.xlu0 %547 }
 0x150   : > { %v685_v11 = vmax.f32 %v548_v3, %v551_v2 }
 0x153   : > { %v593_v37 = vpop.xlane.xlu1 %592  ;;  %v590_v5 = vpop.xlane.xlu0 %589 }
 0x154   : > { %v692_v55 = vmax.f32 %v590_v5, %v593_v37 }
 0x156   : > { %v724_v13 = vmax.f32 %v684_v62, %v692_v55 }
 0x157   : > { %v599_v8 = vpop.xlane.xlu1 %598  ;;  %v596_v9 = vpop.xlane.xlu0 %595 }
 0x158   : > { %v693_v14 = vmax.f32 %v596_v9, %v599_v8  ;;  %v865_v20 = vrot.slane %v724_v13, %v1299_v31 }
 0x15a   : > { %v725_v15 = vmax.f32 %v685_v11, %v693_v14 }
 0x15b   : > { %v557_v16 = vpop.xlane.xlu1 %556  ;;  %v554_v17 = vpop.xlane.xlu0 %553 }
 0x15c   : > { %v869_v21 = vrot.slane %v725_v15, %v1299_v31  ;;  %v686_v37 = vmax.f32 %v554_v17, %v557_v16 }
 0x15e   : > { %v1481_v22 = vsel %vm894_vm1, %v869_v21, %v865_v20 }
 0x15f   : > { %v605_v23 = vpop.xlane.xlu1 %604  ;;  %v602_v26 = vpop.xlane.xlu0 %601 }
 0x160   : > { %v694_v3 = vmax.f32 %v602_v26, %v605_v23 }
 0x162   : > { %v726_v15 = vmax.f32 %v686_v37, %v694_v3 }
 0x163   : > { %v515_v12 = vpop.xlane.xlu1 %514  ;;  %v512_v54 = vpop.xlane.xlu0 %511 }
 0x164   : > { %v679_v27 = vmax.f32 %v512_v54, %v515_v12 }
 0x166   : > { %v719_v28 = vmax.f32 %v671_v41, %v679_v27  ;;  %v873_v27 = vrot.slane %v726_v15, %v1299_v31 }
 0x167   : > { %v563_v29 = vpop.xlane.xlu1 %562  ;;  %v560_v60 = vpop.xlane.xlu0 %559 }
 0x168   : > { %v845_v33 = vrot.slane %v719_v28, %v1299_v31  ;;  %v687_v8 = vmax.f32 %v560_v60, %v563_v29 }
 0x16a   : > { %v917_v34 = vsel %vm898_vm3, %v845_v33, %v916_v10 }
 0x16b   : > { %v611_v35 = vpop.xlane.xlu1 %610  ;;  %v608_v38 = vpop.xlane.xlu0 %607 }
 0x16c   : > { %v695_v11 = vmax.f32 %v608_v38, %v611_v35  ;;  %v923_v38 = vsel %vm896_vm2, %v873_v27, %v1481_v22 }
 0x16f   : > { %v521_v39 = vpop.xlane.xlu1 %520  ;;  %v518_v40 = vpop.xlane.xlu0 %517 }
 0x170   : > { %v680_v44 = vmax.f32 %v518_v40, %v521_v39 }
 0x172   : > { %v720_v47 = vmax.f32 %v672_v50, %v680_v44 }
 0x173   : > { %v569_v30 = vpop.xlane.xlu1 %568  ;;  %v566_v4 = vpop.xlane.xlu0 %565 }
 0x174   : > { %v849_v19 = vrot.slane %v720_v47, %v1299_v31  ;;  %v688_v58 = vmax.f32 %v566_v4, %v569_v30 }
 0x176   : > { %v918_v25 = vsel %vm900_vm4, %v849_v19, %v917_v34 }
 0x177   : > { %v617_v36 = vpop.xlane.xlu1 %616  ;;  %v614_v41 = vpop.xlane.xlu0 %613 }
 0x178   : > { %v696_v5 = vmax.f32 %v614_v41, %v617_v36 }
 0x17a   : > { %v728_v12 = vmax.f32 %v688_v58, %v696_v5 }
 0x17b   : > { %v527_v6 = vpop.xlane.xlu1 %526  ;;  %v524_v42 = vpop.xlane.xlu0 %523 }
 0x17c   : > { %v681_v43 = vmax.f32 %v524_v42, %v527_v6  ;;  %v881_v33 = vrot.slane %v728_v12, %v1299_v31 }
 0x17e   : > { %v721_v45 = vmax.f32 %v673_v57, %v681_v43 }
 0x17f   : > { %v575_v46 = vpop.xlane.xlu1 %574  ;;  %v572_v7 = vpop.xlane.xlu0 %571 }
 0x180   : > { %v853_v53 = vrot.slane %v721_v45, %v1299_v31  ;;  %v689_v20 = vmax.f32 %v572_v7, %v575_v46 }
 0x182   : > { %v919_v50 = vsel %vm902_vm5, %v853_v53, %v918_v25 }
 0x183   : > { %v623_v56 = vpop.xlane.xlu1 %622  ;;  %v620_v48 = vpop.xlane.xlu0 %619 }
 0x184   : > { %v697_v9 = vmax.f32 %v620_v48, %v623_v56 }
 0x186   : > { %v729_v17 = vmax.f32 %v689_v20, %v697_v9 }
 0x187   : > { %v533_v49 = vpop.xlane.xlu1 %532  ;;  %v530_v61 = vpop.xlane.xlu0 %529 }
 0x188   : > { %v682_v32 = vmax.f32 %v530_v61, %v533_v49 }
 0x18a   : > { %v722_v24 = vmax.f32 %v674_v18, %v682_v32  ;;  %v727_v18 = vmax.f32 %v687_v8, %v695_v11 }
 0x18b   : > { %v581_v62 = vpop.xlane.xlu1 %580  ;;  %v578_v10 = vpop.xlane.xlu0 %577 }
 0x18c   : > { %v857_v51 = vrot.slane %v722_v24, %v1299_v31  ;;  %v690_v23 = vmax.f32 %v578_v10, %v581_v62  ;;  %v877_v29 = vrot.slane %v727_v18, %v1299_v31 }
 0x18e   : > { %v920_v52 = vsel %vm904_vm6, %v857_v51, %v919_v50  ;;  %v924_v40 = vsel %vm898_vm3, %v877_v29, %v923_v38 }
 0x18f   : > { %v629_v57 = vpop.xlane.xlu1 %628  ;;  %v626_v2 = vpop.xlane.xlu0 %625  ;;  %v925_v47 = vsel %vm900_vm4, %v881_v33, %v924_v40 }
 0x190   : > { %v698_v59 = vmax.f32 %v626_v2, %v629_v57 }
 0x192   : > { %v730_v28 = vmax.f32 %v690_v23, %v698_v59 }
 0x193   : > { %v539_v55 = vpop.xlane.xlu1 %538  ;;  %v536_v13 = vpop.xlane.xlu0 %535 }
 0x194   : > { %v683_v14 = vmax.f32 %v536_v13, %v539_v55  ;;  %v889_v39 = vrot.slane %v730_v28, %v1299_v31 }
 0x196   : > { %v723_v21 = vmax.f32 %v675_v1, %v683_v14  ;;  %v885_v1 = vrot.slane %v729_v17, %v1299_v31 }
 0x197   : > { %v587_v26 = vpop.xlane.xlu1 %586  ;;  %v584_v16 = vpop.xlane.xlu0 %583 }
 0x198   : > { %v861_v54 = vrot.slane %v723_v21, %v1299_v31  ;;  %v691_v34 = vmax.f32 %v584_v16, %v587_v26  ;;  %v926_v30 = vsel %vm902_vm5, %v885_v1, %v925_v47 }
 0x199   : > { %v927_v19 = vsel %vm904_vm6, %v889_v39, %v926_v30 }
 0x19a   : > { %v921_v60 = vsel %vm906_vm7, %v861_v54, %v920_v52 }
 0x19b   : > { %936 = vst.msk [vmem:[%s1337_s16 + $0x10] sm:$0xff] %vm933_vm8, %v921_v60  ;;  %v635_v63 = vpop.xlane.xlu1 %634  ;;  %v632_v0 = vpop.xlane.xlu0 %631 }
 0x19c   : > { %v699_v35 = vmax.f32 %v632_v0, %v635_v63 }
 0x19e   : > { %v731_v44 = vmax.f32 %v691_v34, %v699_v35 }
 0x1a0   : > { %v893_v4 = vrot.slane %v731_v44, %v1299_v31 }
 0x1a2   : > { %v928_v25 = vsel %vm906_vm7, %v893_v4, %v927_v19 }
 0x1a3   : > { %937 = vst.msk [vmem:[%s1337_s16 + $0x18] sm:$0xff] %vm933_vm8, %v928_v25 }
 0x1a4 PF: > { %s11_s6 = sadd.s32 1, %s1021_s6  }
 0x1a5   : > { %p8_p4 = scmp.ge.s32.totalorder %s11_s6, 10  }
 0x1a7   :  { %10 = sbr.rel (!%p8_p4) target bundleno = 1 (0x1), region = 54 }

// kernel: down_forward.6
= control target key start
LH: loop header
LB: loop body
LE: loop exit
PB: predicated region body
PF: predicated region fallthrough
CT: control target
= control target key end

     0   :  { %s3518_s15 = smov 0   ;;  %s4326_s0 = inlined_call_operand.vmem [shape: f32[2,8,256], index: 0, kind: input, shape index: {}]   ;;  %s4327_s1 = inlined_call_operand.vmem [shape: s32[3,256], index: 1, kind: input, shape index: {}]   ;;  %s4328_s2 = inlined_call_operand.vmem [shape: f32[27,8,8], index: 2, kind: input, shape index: {}]   ;;  %s4329_s3 = inlined_call_operand.vmem [shape: f32[8,1], index: 3, kind: input, shape index: {}]   ;;  %s4330_s4 = inlined_call_operand.vmem [shape: f32[2,8,256], index: 4, kind: output, shape index: {}]  }
   0x1 LB: > { %s3259_s16 = sadd.s32 4294967295, %s3471_s15   ;;  %p3263_p0 = scmp.ge.s32.totalorder %s3471_s15, 1  ;;  %s3471_s15 = sphi %s3518_s15, %s14_s15  }
   0x2   : > { %p162_p1 = scmp.lt.s32.totalorder %s3471_s15, 3 }
   0x4   : > { %p163_p2 = pnand %p3263_p0, %p162_p1 }
   0x5   : > { %p188_p3 = scmp.lt.s32.totalorder (!%p163_p2), %s3259_s16, 1  ;;  %v3473_v0 = vmov (!%p163_p2), 0.0   ;;  %s3474_s21 = smov (!%p163_p2), 73   ;;  %vm201_vm0 = vcmask (!%p163_p2), 146432   ;;  %vm216_vm1 = vcmask (!%p163_p2), 1048136   ;;  %vm211_vm2 = vcmask (!%p163_p2), 596992  }
   0x6   : > { %166 = sbr.rel (%p163_p2) target bundleno = 940 (0x3ac), region = 36  ;;  %198 = vst [vmem:[#allocation2] sm:$0xff] (!%p163_p2), %v3473_v0  ;;  %200 = vst [vmem:[#allocation2 + $0x10] sm:$0xff] (!%p163_p2), %v3473_v0  ;;  %1741 = vmatprep.mubr.f32.mxu0 (!%p163_p2), %v3473_v0  ;;  %361 = vmatprep.mubr.f32.mxu1 (!%p163_p2), %v3473_v0  ;;  %s3475_s22 = smov (!%p163_p2), 55   ;;  %v3482_v8 = vmov (!%p163_p2), 0   ;;  %v234_v26 = vlaneseq (!%p163_p2)  ;;  %v3176_v47 = vld [vmem:[%s4329_s3] sm:$0xff] (!%p163_p2) }
   0x7   : > { %202 = vst.msk [vmem:[#allocation2 + $0x18] sm:$0xff] (!%p163_p2), %vm201_vm0, %v3473_v0  ;;  %s3476_s23 = smov (!%p163_p2), 127   ;;  %s3477_s24 = smov (!%p163_p2), 54   ;;  %3461 = vset.pattern.permute.xlu1 (!%p163_p2), %v3482_v8  ;;  %3462 = vset.pattern.permute.xlu0 (!%p163_p2), %v3482_v8  ;;  %v3690_v19 = vld [vmem:[%s4327_s1] sm:$0x77] (!%p163_p2)  ;;  %vm1669_vm11 = vcmask (!%p163_p2), 449536  }
   0x8   : > { %s3478_s25 = smov (!%p163_p2), 48   ;;  %s3479_s26 = smov (!%p163_p2), 126   ;;  %vm223_vm3 = vcmp.ge.s32.totalorder (!%p163_p2), %v3690_v19, 1  ;;  %vm442_vm4 = vcmp.lt.s32.totalorder (!%p163_p2), %v3690_v19, 7  ;;  %v3731_v31 = vshrl.u32 (!%p163_p2), %v234_v26, 7  ;;  %vm293_vm12 = vcmask (!%p163_p2), 64512  }
   0x9   : > { %s3480_s27 = smov (!%p163_p2), 47   ;;  %s3481_s28 = smov (!%p163_p2), 120   ;;  %v3707_v22 = vsel (!%p163_p2), %vm223_vm3, 1, %v3482_v8  ;;  %v3736_v32 = vsel (!%p163_p2), %vm442_vm4, 1, %v3482_v8  ;;  %v3323_v63 = vld [vmem:[%s4328_s2 + $0x68] sm:$0xff] (!%p163_p2)  ;;  %vm284_vm14 = vcmask (!%p163_p2), 1039360  }
   0xa   : > { %s3483_s29 = smov (!%p163_p2), 119   ;;  %s3484_s30 = smov (!%p163_p2), 118   ;;  %v3268_v25 = vrot.slane (!%p163_p2), %v3707_v22, 9  ;;  %v3269_v29 = vrot.slane (!%p163_p2), %v3707_v22, 10  ;;  %v3277_v37 = vrot.slane (!%p163_p2), %v3736_v32, 10  ;;  %v3758_v38 = vsub.s32 (!%p163_p2), 4, %v3731_v31 }
   0xb   : > { %s3485_s5 = smov (!%p163_p2), 46   ;;  %s3486_s6 = smov (!%p163_p2), 112   ;;  %v3769_v41 = vsub.s32 (!%p163_p2), 0, %v3731_v31  ;;  %v1558_v46 = vsub.s32 (!%p163_p2), 6, %v3731_v31  ;;  %v3796_v51 = vsub.s32 (!%p163_p2), 2, %v3731_v31  ;;  %v3840_v35 = vsub.s32 (!%p163_p2), 1, %v3731_v31 }
   0xc   : > { %s3487_s7 = smov (!%p163_p2), 111   ;;  %s3488_s8 = smov (!%p163_p2), 110   ;;  %vm3723_vm5 = vcmp.ne.s32.totalorder (!%p163_p2), %v3268_v25, 0  ;;  %vm3750_vm7 = vcmp.ne.s32.totalorder (!%p163_p2), %v3269_v29, 0  ;;  %vm3779_vm9 = vcmp.ne.s32.totalorder (!%p163_p2), %v3277_v37, 0 }
   0xd   : > { %s4362_s16 = smov (!%p188_p3, %s3259_s16), 1  ;;  %s3489_s9 = smov 64   ;;  %vm3746_vm6 = vmand %vm223_vm3, %vm3723_vm5  ;;  %v1757_v55 = vrot.slane %v3736_v32, %v1558_v46  ;;  %v1753_v59 = vrot.slane %v3736_v32, %v3796_v51 }
   0xe   : > { %s3379_s17 = sshll.u32 %s4362_s16, 4  ;;  %v3580_v9 = vld [vmem:[#allocation2 + $0x18] sm:$0xff]  ;;  %s3490_s10 = smov 63   ;;  %vm232_vm8 = vmand %vm3746_vm6, %vm3750_vm7  ;;  %v3774_v42 = vsel %vm3746_vm6, 1, %v3482_v8 }
   0xf   : > { %s192_s20 = scalar_lea.vmem %s4326_s0, %s3379_s17  ;;  %s3491_s11 = smov 62   ;;  %v233_v43 = vsel %vm232_vm8, 1, %v3482_v8  ;;  %v264_v45 = vrot.slane %v3774_v42, %v3758_v38  ;;  %v260_v50 = vrot.slane %v3774_v42, %v3769_v41  ;;  %vm447_vm10 = vmand %vm3746_vm6, %vm3779_vm9  ;;  %v1761_v29 = vrot.slane %v1753_v59, %v3796_v51 }
  0x10   : > { %v203_v1 = vld [vmem:[%s192_s20] sm:$0xff]  ;;  %v204_v2 = vld [vmem:[%s192_s20 + $0x8] sm:$0xff]  ;;  %s3492_s14 = smov 56   ;;  %v241_v52 = vrot.slane %v233_v43, %v3758_v38  ;;  %v237_v53 = vrot.slane %v233_v43, %v3769_v41  ;;  %v448_v60 = vsel %vm447_vm10, 1, %v3482_v8  ;;  %vm3824_vm13 = vmand %vm442_vm4, %vm3723_vm5  ;;  %vm1774_vm6 = vcmask 441344  }
  0x11   : > { %207 = vrot.lane.b32.xlu0 %v203_v1, %s3474_s21  ;;  %v272_v54 = vrot.slane %v264_v45, %v3769_v41  ;;  %v268_v58 = vrot.slane %v260_v50, %v3769_v41  ;;  %v1860_v37 = vsel %vm3824_vm13, 1, %v3482_v8  ;;  %vm4332_vm13 = vcmp.lt.s32.totalorder %v3690_v19, 3 }
  0x12   : > { %v249_v1 = vrot.slane %v241_v52, %v3769_v41 }
  0x13   : > { %vm274_vm15 = vcmp.eq.s32.totalorder %v272_v54, 1  ;;  %vm273_vm0 = vcmp.eq.s32.totalorder %v268_v58, 1  ;;  %v1864_v58 = vrot.slane %v1860_v37, %v3840_v35 }
  0x15   : > { %209 = vrot.lane.b32.xlu0 %v204_v2, %s3474_s21  ;;  %v1872_v30 = vrot.slane %v1864_v58, %v3840_v35 }
  0x83   : > { %v208_v3 = vpop.permute.xlu0 %207 }
  0x84   : > { %217 = vst.msk [vmem:[#allocation2] sm:$0xff] %vm216_vm1, %v208_v3  ;;  %vm251_vm1 = vcmp.eq.s32.totalorder %v249_v1, 1 }
  0x87   : > { %v210_v4 = vpop.permute.xlu0 %209 }
  0x88   : > { %v3539_v5 = vsel %vm211_vm2, %v208_v3, %v210_v4  ;;  %219 = vst.msk [vmem:[#allocation2 + $0x10] sm:$0xff] %vm211_vm2, %v210_v4  ;;  %v245_v3 = vrot.slane %v237_v53, %v3769_v41  ;;  %v3294_v4 = vrot.slane %v3736_v32, 9  ;;  %vm3857_vm2 = vmand %vm223_vm3, %vm3750_vm7 }
  0x89   : > { %v559_v59 = vsel %vm3857_vm2, 1, %v3482_v8  ;;  %vm3907_vm2 = vmand %vm4332_vm13, %vm3723_vm5 }
  0x8a   : > { %vm250_vm8 = vcmp.eq.s32.totalorder %v245_v3, 1  ;;  %vm3863_vm10 = vcmp.ne.s32.totalorder %v3294_v4, 0  ;;  %v567_v2 = vrot.slane %v559_v59, %v3758_v38  ;;  %vm2192_vm5 = vmand %vm3907_vm2, %vm3750_vm7 }
  0x8b   : > { %v3541_v6 = vld [vmem:[#allocation2] sm:$0xff] }
  0x8c   : > { %1663 = vrot.lane.b32.xlu0 %v3541_v6, %s3475_s22 }
  0x8f   : > { %v3545_v7 = vld [vmem:[#allocation2 + $0x10] sm:$0xff] }
  0x90   : > { %282 = vrot.lane.b32.xlu0 %v3545_v7, %s3476_s23  ;;  %1667 = vrot.lane.b32.xlu1 %v3545_v7, %s3475_s22 }
  0x94   : > { %1772 = vrot.lane.b32.xlu0 %v3545_v7, %s3477_s24  ;;  %278 = vrot.lane.b32.xlu1 %v3541_v6, %s3476_s23 }
  0x98   : > { %1768 = vrot.lane.b32.xlu0 %v3541_v6, %s3477_s24  ;;  %1879 = vrot.lane.b32.xlu1 %v3541_v6, %s3478_s25 }
  0x9c   : > { %1883 = vrot.lane.b32.xlu0 %v3545_v7, %s3478_s25  ;;  %471 = vrot.lane.b32.xlu1 %v3545_v7, %s3479_s26 }
  0xa0   : > { %467 = vrot.lane.b32.xlu0 %v3541_v6, %s3479_s26  ;;  %1992 = vrot.lane.b32.xlu1 %v3545_v7, %s3480_s27 }
  0xa4   : > { %578 = vrot.lane.b32.xlu0 %v3541_v6, %s3481_s28  ;;  %1988 = vrot.lane.b32.xlu1 %v3541_v6, %s3480_s27 }
  0xa8   : > { %687 = vrot.lane.b32.xlu0 %v3541_v6, %s3483_s29  ;;  %582 = vrot.lane.b32.xlu1 %v3545_v7, %s3481_s28 }
  0xac   : > { %802 = vrot.lane.b32.xlu0 %v3545_v7, %s3484_s30  ;;  %2103 = vrot.lane.b32.xlu1 %v3545_v7, %s3485_s5 }
  0xb0   : > { %2321 = vrot.lane.b32.xlu0 %v3580_v9, %s3476_s23  ;;  %2099 = vrot.lane.b32.xlu1 %v3541_v6, %s3485_s5 }
  0xb4   : > { %917 = vrot.lane.b32.xlu0 %v3545_v7, %s3486_s6  ;;  %691 = vrot.lane.b32.xlu1 %v3545_v7, %s3483_s29 }
  0xb8   : > { %2431 = vrot.lane.b32.xlu0 %v3580_v9, %s3479_s26  ;;  %1665 = vrot.lane.b32.xlu1 %v3539_v5, %s3475_s22 }
  0xbc   : > { %1027 = vrot.lane.b32.xlu0 %v3545_v7, %s3487_s7  ;;  %280 = vrot.lane.b32.xlu1 %v3539_v5, %s3476_s23 }
  0xc0   : > { %2541 = vrot.lane.b32.xlu0 %v3580_v9, %s3481_s28  ;;  %1770 = vrot.lane.b32.xlu1 %v3539_v5, %s3477_s24 }
  0xc4   : > { %469 = vrot.lane.b32.xlu0 %v3539_v5, %s3479_s26  ;;  %2319 = vrot.lane.b32.xlu1 %v3545_v7, %s3476_s23 }
  0xc8   : > { %1990 = vrot.lane.b32.xlu0 %v3539_v5, %s3480_s27  ;;  %1881 = vrot.lane.b32.xlu1 %v3539_v5, %s3478_s25 }
  0xcc   : > { %580 = vrot.lane.b32.xlu0 %v3539_v5, %s3481_s28  ;;  %798 = vrot.lane.b32.xlu1 %v3541_v6, %s3484_s30 }
  0xd0   : > { %2101 = vrot.lane.b32.xlu0 %v3539_v5, %s3485_s5  ;;  %2429 = vrot.lane.b32.xlu1 %v3545_v7, %s3479_s26 }
  0xd4   : > { %1138 = vrot.lane.b32.xlu0 %v3545_v7, %s3488_s8  ;;  %913 = vrot.lane.b32.xlu1 %v3541_v6, %s3486_s6 }
  0xd8   : > { %689 = vrot.lane.b32.xlu0 %v3539_v5, %s3483_s29  ;;  %2539 = vrot.lane.b32.xlu1 %v3545_v7, %s3481_s28 }
  0xdc   : > { %2650 = vrot.lane.b32.xlu0 %v3580_v9, %s3483_s29  ;;  %1023 = vrot.lane.b32.xlu1 %v3541_v6, %s3487_s7 }
  0xe0   : > { %1247 = vrot.lane.b32.xlu0 %v3545_v7, %s3489_s9  ;;  %2648 = vrot.lane.b32.xlu1 %v3545_v7, %s3483_s29 }
  0xe4   : > { %2317 = vrot.lane.b32.xlu0 %v3539_v5, %s3476_s23  ;;  %1134 = vrot.lane.b32.xlu1 %v3541_v6, %s3488_s8 }
  0xe8   : > { %2760 = vrot.lane.b32.xlu0 %v3580_v9, %s3484_s30  ;;  %800 = vrot.lane.b32.xlu1 %v3539_v5, %s3484_s30 }
  0xec   : > { %2427 = vrot.lane.b32.xlu0 %v3539_v5, %s3479_s26  ;;  %2758 = vrot.lane.b32.xlu1 %v3545_v7, %s3484_s30 }
  0xf0   : > { %1356 = vrot.lane.b32.xlu0 %v3545_v7, %s3490_s10  ;;  %915 = vrot.lane.b32.xlu1 %v3539_v5, %s3486_s6 }
  0xf4   : > { %2537 = vrot.lane.b32.xlu0 %v3539_v5, %s3481_s28  ;;  %1243 = vrot.lane.b32.xlu1 %v3541_v6, %s3489_s9 }
  0xf8   : > { %2871 = vrot.lane.b32.xlu0 %v3580_v9, %s3486_s6  ;;  %1025 = vrot.lane.b32.xlu1 %v3539_v5, %s3487_s7 }
  0xfc   : > { %2646 = vrot.lane.b32.xlu0 %v3539_v5, %s3483_s29  ;;  %2869 = vrot.lane.b32.xlu1 %v3545_v7, %s3486_s6 }
  0xfe   : > { %v3657_v10 = vpop.permute.xlu0 %1663 }
 0x100   : > { %2756 = vrot.lane.b32.xlu0 %v3539_v5, %s3484_s30  ;;  %1136 = vrot.lane.b32.xlu1 %v3539_v5, %s3488_s8  ;;  %s197_s30 = scalar_lea.vmem %s4330_s4, %s3379_s17 }
 0x102   : > { %v3663_v11 = vpop.permute.xlu1 %1667  ;;  %v3665_v12 = vpop.permute.xlu0 %282 }
 0x104   : > { %2867 = vrot.lane.b32.xlu0 %v3539_v5, %s3486_s6  ;;  %1352 = vrot.lane.b32.xlu1 %v3541_v6, %s3490_s10 }
 0x106   : > { %v3670_v13 = vpop.permute.xlu1 %278  ;;  %v3672_v14 = vpop.permute.xlu0 %1772 }
 0x108   : > { %1465 = vrot.lane.b32.xlu0 %v3545_v7, %s3491_s11  ;;  %1245 = vrot.lane.b32.xlu1 %v3539_v5, %s3489_s9 }
 0x10a   : > { %v3676_v15 = vpop.permute.xlu1 %1879  ;;  %v3678_v16 = vpop.permute.xlu0 %1768 }
 0x10c   : > { %2980 = vrot.lane.b32.xlu0 %v3580_v9, %s3487_s7  ;;  %1354 = vrot.lane.b32.xlu1 %v3539_v5, %s3490_s10 }
 0x10e   : > { %v3683_v17 = vpop.permute.xlu1 %471  ;;  %v3685_v18 = vpop.permute.xlu0 %1883 }
 0x110   : > { %2976 = vrot.lane.b32.xlu0 %v3539_v5, %s3487_s7  ;;  %1463 = vrot.lane.b32.xlu1 %v3539_v5, %s3491_s11 }
 0x112   : > { %v3696_v20 = vpop.permute.xlu1 %1992  ;;  %v3698_v21 = vpop.permute.xlu0 %467 }
 0x114   : > { %1574 = vrot.lane.b32.xlu0 %v3545_v7, %s3492_s14  ;;  %2978 = vrot.lane.b32.xlu1 %v3545_v7, %s3487_s7 }
 0x116   : > { %v3709_v23 = vpop.permute.xlu1 %1988  ;;  %v3711_v24 = vpop.permute.xlu0 %578 }
 0x118   : > { %3090 = vrot.lane.b32.xlu0 %v3580_v9, %s3488_s8  ;;  %1461 = vrot.lane.b32.xlu1 %v3541_v6, %s3491_s11  ;;  %v1765_v9 = vrot.slane %v1757_v55, %v3796_v51 }
 0x11a   : > { %v3717_v27 = vpop.permute.xlu1 %582  ;;  %v3719_v28 = vpop.permute.xlu0 %687 }
 0x11c   : > { %3086 = vrot.lane.b32.xlu0 %v3539_v5, %s3488_s8  ;;  %1572 = vrot.lane.b32.xlu1 %v3539_v5, %s3492_s14 }
 0x11e   : > { %v3738_v33 = vpop.permute.xlu1 %2103  ;;  %v3740_v34 = vpop.permute.xlu0 %802 }
 0x120   : > { %3088 = vrot.lane.b32.xlu1 %v3545_v7, %s3488_s8 }
 0x122   : > { %v3764_v39 = vpop.permute.xlu1 %2099  ;;  %v3766_v40 = vpop.permute.xlu0 %2321 }
 0x124   : > { %1570 = vrot.lane.b32.xlu1 %v3541_v6, %s3492_s14 }
 0x126   : > { %v3789_v48 = vpop.permute.xlu1 %691  ;;  %v3791_v49 = vpop.permute.xlu0 %917 }
 0x128   : > { %3179 = vperm.xlu1 %3461, %v3176_v47   ;;  %v3270_v47 = vld [vmem:[%s4328_s2 + $0x8] sm:$0xff] }
 0x12a   : > { %v1666_v56 = vpop.permute.xlu1 %1665  ;;  %v3808_v57 = vpop.permute.xlu0 %2431 }
 0x12b   : > { %v1671_v61 = vsel %vm1669_vm11, %v1666_v56, %v3663_v11  ;;  %v1670_v62 = vsel %vm1669_vm11, %v3657_v10, %v1666_v56  ;;  %v456_v10 = vrot.slane %v448_v60, %v3758_v38  ;;  %v3833_v11 = vsub.s32 5, %v3731_v31 }
 0x12c   : > { %1677 = vmatprep.subr.mxu0 %v1671_v61  ;;  %vm3867_vm11 = vcmp.eq.s32.totalorder %v1765_v9, 1 }
 0x12d   : > { %1678 = vmatpush1.msra.mxu0 %v1670_v62  ;;  %v464_v53 = vrot.slane %v456_v10, %v3769_v41  ;;  %v1868_v55 = vrot.slane %v1860_v37, %v3833_v11  ;;  %v3325_v62 = vld [vmem:[%s4328_s2 + $0x70] sm:$0xff]  ;;  %v254_v10 = vld [vmem:[%s4328_s2] sm:$0xff]  ;;  %v575_v37 = vrot.slane %v567_v2, %v3769_v41  ;;  %v672_v2 = vrot.slane %v3707_v22, %v3769_v41 }
 0x12e   : > { %v281_v25 = vpop.permute.xlu1 %280  ;;  %3324 = vmatmul.mubr.msk.f32.vlgmr.msra.gmra.mrb[0].mxu0 %vm293_vm12, %v3323_v63  ;;  %v3836_v26 = vpop.permute.xlu0 %1027  ;;  %v1977_v63 = vrot.slane %v3736_v32, %v3833_v11 }
 0x12f   : > { %v286_v43 = vsel %vm284_vm14, %v281_v25, %v3665_v12  ;;  %v285_v45 = vsel %vm284_vm14, %v3670_v13, %v281_v25  ;;  %1850 = vmatprep.mubr.f32.mxu0 %v3473_v0  ;;  %v452_v12 = vrot.slane %v448_v60, %v3769_v41  ;;  %v1876_v1 = vrot.slane %v1868_v55, %v3840_v35  ;;  %v3329_v55 = vld [vmem:[%s4328_s2 + $0x78] sm:$0xff] }
 0x130   : > { %3271 = vmatprep.subr.msk.mxu1 %vm274_vm15, %v286_v43  ;;  %vm1766_vm15 = vcmp.eq.s32.totalorder %v1761_v29, 1  ;;  %v1985_v25 = vrot.slane %v1977_v63, %v3840_v35 }
 0x131   : > { %3272 = vmatpush1.msk.msra.mxu1 %vm273_vm0, %v285_v45  ;;  %vm2079_vm0 = vmand %vm442_vm4, %vm3863_vm10  ;;  %vm466_vm4 = vcmp.eq.s32.totalorder %v464_v53, 1 }
 0x132   : > { %v1771_v54 = vpop.permute.xlu1 %1770  ;;  %3273 = vmatmul.mubr.msk.f32.vlgmr.msra.gmra.mrb[0].mxu1 %vm293_vm12, %v3270_v47  ;;  %3274 = vmatprep.subr.msk.mxu1 %vm251_vm1, %v3539_v5  ;;  %v3876_v56 = vpop.permute.xlu0 %2541  ;;  %vm4331_vm1 = vcmask 1031168   ;;  %v2080_v4 = vsel %vm2079_vm0, 1, %v3482_v8  ;;  %vm1877_vm0 = vcmp.eq.s32.totalorder %v1872_v30, 1 }
 0x133   : > { %v1775_v60 = vsel %vm1774_vm6, %v3678_v16, %v1771_v54  ;;  %v1776_v61 = vsel %vm1774_vm6, %v1771_v54, %v3672_v14  ;;  %3275 = vmatpush1.msk.msra.mxu1 %vm250_vm8, %v3541_v6  ;;  %435 = vmatprep.mubr.f32.mxu1 %v3473_v0  ;;  %v460_v6 = vrot.slane %v452_v12, %v3769_v41  ;;  %vm1885_vm6 = vcmask 392192   ;;  %v3337_v16 = vld [vmem:[%s4328_s2 + $0x88] sm:$0xff] }
 0x134   : > { %3326 = vmatprep.subr.msk.mxu0 %vm3867_vm11, %v1776_v61  ;;  %v1973_v14 = vrot.slane %v3736_v32, %v3840_v35  ;;  %vm1878_vm11 = vcmp.eq.s32.totalorder %v1876_v1, 1  ;;  %v2088_v43 = vrot.slane %v2080_v4, %v3833_v11  ;;  %v2193_v12 = vsel %vm2192_vm5, 1, %v3482_v8 }
 0x135   : > { %3327 = vmatpush1.msk.msra.mxu0 %vm1766_vm15, %v1775_v60  ;;  %vm465_vm8 = vcmp.eq.s32.totalorder %v460_v6, 1  ;;  %vm1994_vm15 = vcmask 384000   ;;  %v2084_v54 = vrot.slane %v2080_v4, %v3840_v35  ;;  %vm577_vm5 = vcmp.eq.s32.totalorder %v575_v37, 1  ;;  %v3282_v37 = vld [vmem:[%s4328_s2 + $0x18] sm:$0xff] }
 0x136   : > { %v3914_v3 = vpop.permute.xlu1 %2319  ;;  %3328 = vmatmul.mubr.msk.f32.vlgmr.msra.gmra.mrb[0].mxu0 %vm293_vm12, %v3325_v62  ;;  %v470_v32 = vpop.permute.xlu0 %469  ;;  %v1981_v29 = vrot.slane %v1973_v14, %v3840_v35  ;;  %v2201_v58 = vrot.slane %v2193_v12, %v3758_v38  ;;  %v676_v6 = vrot.slane %v3707_v22, %v3758_v38  ;;  %v2197_v4 = vrot.slane %v2193_v12, %v3769_v41 }
 0x137   : > { %v475_v9 = vsel %vm4331_vm1, %v470_v32, %v3683_v17  ;;  %1961 = vmatprep.mubr.f32.mxu0 %v3473_v0  ;;  %v563_v17 = vrot.slane %v559_v59, %v3769_v41  ;;  %v474_v45 = vsel %vm4331_vm1, %v3698_v21, %v470_v32  ;;  %vm584_vm1 = vcmask 982016  }
 0x138   : > { %3279 = vmatprep.subr.msk.mxu1 %vm466_vm4, %v475_v9  ;;  %vm1987_vm4 = vcmp.eq.s32.totalorder %v1985_v25, 1  ;;  %vm1986_vm13 = vcmp.eq.s32.totalorder %v1981_v29, 1  ;;  %v2209_v63 = vrot.slane %v2201_v58, %v3769_v41  ;;  %v2295_v32 = vsel %vm3907_vm2, 1, %v3482_v8 }
 0x139   : > { %v571_v21 = vrot.slane %v563_v17, %v3769_v41  ;;  %v684_v9 = vrot.slane %v676_v6, %v3769_v41  ;;  %v680_v17 = vrot.slane %v672_v2, %v3769_v41 }
 0x13a   : > { %v1882_v47 = vpop.permute.xlu1 %1881  ;;  %3276 = vmatmul.mubr.msk.f32.vlgmr.msra.gmra.mrb[0].mxu1 %vm293_vm12, %v254_v10  ;;  %v1991_v50 = vpop.permute.xlu0 %1990  ;;  %v2303_v10 = vrot.slane %v2295_v32, %v3758_v38 }
 0x13b   : > { %v1886_v52 = vsel %vm1885_vm6, %v3676_v15, %v1882_v47  ;;  %v1887_v53 = vsel %vm1885_vm6, %v1882_v47, %v3685_v18  ;;  %3280 = vmatpush1.msk.msra.mxu1 %vm465_vm8, %v474_v45  ;;  %549 = vmatprep.mubr.f32.mxu1 %v3473_v0  ;;  %v1996_v15 = vsel %vm1994_vm15, %v1991_v50, %v3696_v20  ;;  %v3278_v20 = vld [vmem:[%s4328_s2 + $0x10] sm:$0xff]  ;;  %vm576_vm6 = vcmp.eq.s32.totalorder %v571_v21, 1 }
 0x13c   : > { %3330 = vmatprep.subr.msk.mxu0 %vm1878_vm11, %v1887_v53  ;;  %v2096_v18 = vrot.slane %v2088_v43, %v3840_v35  ;;  %v1995_v59 = vsel %vm1994_vm15, %v3709_v23, %v1991_v50  ;;  %vm2105_vm8 = vcmask 375808   ;;  %v2092_v23 = vrot.slane %v2084_v54, %v3840_v35  ;;  %v3286_v54 = vld [vmem:[%s4328_s2 + $0x20] sm:$0xff] }
 0x13d   : > { %3331 = vmatpush1.msk.msra.mxu0 %vm1877_vm0, %v1886_v52  ;;  %vm2211_vm15 = vcmp.eq.s32.totalorder %v2209_v63, 1  ;;  %vm693_vm0 = vcmask 973824   ;;  %v2311_v43 = vrot.slane %v2303_v10, %v3769_v41  ;;  %v2324_v21 = vsel %vm284_vm14, %v3914_v3, %v3766_v40 }
 0x13e   : > { %v3952_v60 = vpop.permute.xlu1 %798  ;;  %3332 = vmatmul.mubr.msk.f32.vlgmr.msra.gmra.mrb[0].mxu0 %vm293_vm12, %v3329_v55  ;;  %3334 = vmatprep.subr.msk.mxu0 %vm1987_vm4, %v1996_v15  ;;  %v581_v61 = vpop.permute.xlu0 %580  ;;  %vm2098_vm11 = vcmp.eq.s32.totalorder %v2096_v18, 1  ;;  %vm2407_vm4 = vmand %vm3907_vm2, %vm3779_vm9 }
 0x13f   : > { %v586_v62 = vsel %vm584_vm1, %v581_v61, %v3717_v27  ;;  %3335 = vmatpush1.msk.msra.mxu0 %vm1986_vm13, %v1995_v59  ;;  %2070 = vmatprep.mubr.f32.mxu0 %v3473_v0  ;;  %v585_v27 = vsel %vm584_vm1, %v3711_v24, %v581_v61  ;;  %v3333_v24 = vld [vmem:[%s4328_s2 + $0x80] sm:$0xff]  ;;  %vm2097_vm13 = vcmp.eq.s32.totalorder %v2092_v23, 1  ;;  %v2408_v12 = vsel %vm2407_vm4, 1, %v3482_v8  ;;  %vm778_vm2 = vmand %vm223_vm3, %vm3779_vm9 }
 0x140   : > { %3283 = vmatprep.subr.msk.mxu1 %vm577_vm5, %v586_v62  ;;  %vm686_vm5 = vcmp.eq.s32.totalorder %v684_v9, 1  ;;  %v2416_v53 = vrot.slane %v2408_v12, %v3758_v38  ;;  %v779_v55 = vsel %vm778_vm2, 1, %v3482_v8  ;;  %vm4043_vm4 = vmand %vm223_vm3, %vm3863_vm10  ;;  %v3341_v62 = vld [vmem:[%s4328_s2 + $0x90] sm:$0xff]  ;;  %v2412_v23 = vrot.slane %v2408_v12, %v3769_v41 }
 0x141   : > { %v787_v15 = vrot.slane %v779_v55, %v3758_v38  ;;  %v783_v61 = vrot.slane %v779_v55, %v3769_v41  ;;  %vm893_vm3 = vmand %vm4043_vm4, %vm3750_vm7  ;;  %vm4354_vm2 = vcmask 1031168  }
 0x142   : > { %v3967_v14 = vpop.permute.xlu1 %2429  ;;  %3281 = vmatmul.mubr.msk.f32.vlgmr.msra.gmra.mrb[0].mxu1 %vm293_vm12, %v3278_v20  ;;  %v2102_v1 = vpop.permute.xlu0 %2101  ;;  %v2424_v59 = vrot.slane %v2416_v53, %v3769_v41 }
 0x143   : > { %3284 = vmatpush1.msk.msra.mxu1 %vm576_vm6, %v585_v27  ;;  %v2107_v30 = vsel %vm2105_vm8, %v2102_v1, %v3738_v33  ;;  %660 = vmatprep.mubr.f32.mxu1 %v3473_v0  ;;  %v2106_v25 = vsel %vm2105_vm8, %v3764_v39, %v2102_v1  ;;  %v2205_v39 = vrot.slane %v2197_v4, %v3769_v41  ;;  %vm685_vm6 = vcmp.eq.s32.totalorder %v680_v17, 1 }
 0x144   : > { %3338 = vmatprep.subr.msk.mxu0 %vm2098_vm11, %v2107_v30  ;;  %vm2313_vm11 = vcmp.eq.s32.totalorder %v2311_v43, 1  ;;  %v795_v63 = vrot.slane %v787_v15, %v3769_v41  ;;  %v791_v1 = vrot.slane %v783_v61, %v3769_v41  ;;  %v2420_v4 = vrot.slane %v2412_v23, %v3769_v41  ;;  %v3290_v43 = vld [vmem:[%s4328_s2 + $0x28] sm:$0xff] }
 0x145   : > { %vm2210_vm8 = vcmp.eq.s32.totalorder %v2205_v39, 1  ;;  %v3345_v39 = vld [vmem:[%s4328_s2 + $0x98] sm:$0xff] }
 0x146   : > { %v3986_v29 = vpop.permute.xlu1 %913  ;;  %3336 = vmatmul.mubr.msk.f32.vlgmr.msra.gmra.mrb[0].mxu0 %vm293_vm12, %v3333_v24  ;;  %v3989_v33 = vpop.permute.xlu0 %1138  ;;  %v2434_v24 = vsel %vm4354_vm2, %v3967_v14, %v3808_v57 }
 0x147   : > { %3339 = vmatpush1.msk.msra.mxu0 %vm2097_vm13, %v2106_v25  ;;  %2181 = vmatprep.mubr.f32.mxu0 %v3473_v0  ;;  %vm4351_vm13 = vcmp.lt.s32.totalorder %v3690_v19, 3 }
 0x148   : > { %3342 = vmatprep.subr.msk.mxu0 %vm2211_vm15, %v3545_v7  ;;  %vm2517_vm15 = vmand %vm4351_vm13, %vm3750_vm7  ;;  %vm796_vm13 = vcmp.eq.s32.totalorder %v791_v1, 1 }
 0x149   : > { %v2518_v20 = vsel %vm2517_vm15, 1, %v3482_v8  ;;  %vm2425_vm15 = vcmp.eq.s32.totalorder %v2420_v4, 1 }
 0x14a   : > { %v4003_v45 = vpop.permute.xlu1 %2539  ;;  %v690_v47 = vpop.permute.xlu0 %689  ;;  %3285 = vmatmul.mubr.msk.f32.vlgmr.msra.gmra.mrb[0].mxu1 %vm293_vm12, %v3282_v37  ;;  %v2526_v2 = vrot.slane %v2518_v20, %v3758_v38 }
 0x14b   : > { %v694_v7 = vsel %vm693_vm0, %v3719_v28, %v690_v47  ;;  %v695_v50 = vsel %vm693_vm0, %v690_v47, %v3789_v48  ;;  %769 = vmatprep.mubr.f32.mxu1 %v3473_v0  ;;  %v2299_v28 = vrot.slane %v2295_v32, %v3769_v41  ;;  %v894_v32 = vsel %vm893_vm3, 1, %v3482_v8 }
 0x14c   : > { %3287 = vmatprep.subr.msk.mxu1 %vm686_vm5, %v695_v50  ;;  %v902_v9 = vrot.slane %v894_v32, %v3758_v38  ;;  %v898_v17 = vrot.slane %v894_v32, %v3769_v41  ;;  %v2544_v55 = vsel %vm584_vm1, %v4003_v45, %v3876_v56 }
 0x14d   : > { %3288 = vmatpush1.msk.msra.mxu1 %vm685_vm6, %v694_v7  ;;  %vm2426_vm6 = vcmp.eq.s32.totalorder %v2424_v59, 1 }
 0x14e   : > { %v4020_v48 = vpop.permute.xlu1 %1023  ;;  %3340 = vmatmul.mubr.msk.f32.vlgmr.msra.gmra.mrb[0].mxu0 %vm293_vm12, %v3337_v16  ;;  %v4023_v52 = vpop.permute.xlu0 %2650  ;;  %v910_v7 = vrot.slane %v902_v9, %v3769_v41  ;;  %v906_v16 = vrot.slane %v898_v17, %v3769_v41  ;;  %v3353_v17 = vld [vmem:[%s4328_s2 + $0xa8] sm:$0xff] }
 0x14f   : > { %3343 = vmatpush1.msk.msra.mxu0 %vm2210_vm8, %v3539_v5  ;;  %2283 = vmatprep.mubr.f32.mxu0 %v3473_v0  ;;  %v2307_v5 = vrot.slane %v2299_v28, %v3769_v41  ;;  %vm804_vm8 = vcmask 965632   ;;  %v4109_v28 = vsel %vm4043_vm4, 1, %v3482_v8 }
 0x150   : > { %3346 = vmatprep.subr.msk.mxu0 %vm2313_vm11, %v2324_v21  ;;  %vm797_vm11 = vcmp.eq.s32.totalorder %v795_v63, 1  ;;  %v1008_v15 = vrot.slane %v4109_v28, %v3769_v41 }
 0x151   : > { %vm2312_vm5 = vcmp.eq.s32.totalorder %v2307_v5, 1 }
 0x152   : > { %v4049_v18 = vpop.permute.xlu1 %2648  ;;  %v4051_v58 = vpop.permute.xlu0 %1247  ;;  %3289 = vmatmul.mubr.msk.f32.vlgmr.msra.gmra.mrb[0].mxu1 %vm293_vm12, %v3286_v54 }
 0x153   : > { %880 = vmatprep.mubr.f32.mxu1 %v3473_v0  ;;  %v2653_v32 = vsel %vm693_vm0, %v4049_v18, %v4023_v52 }
 0x156   : > { %v4067_v6 = vpop.permute.xlu1 %1134  ;;  %3344 = vmatmul.mubr.msk.f32.vlgmr.msra.gmra.mrb[0].mxu0 %vm293_vm12, %v3341_v62  ;;  %v2318_v27 = vpop.permute.xlu0 %2317  ;;  %v3349_v62 = vld [vmem:[%s4328_s2 + $0xa0] sm:$0xff] }
 0x157   : > { %v2323_v30 = vsel %vm284_vm14, %v2318_v27, %v3914_v3  ;;  %2398 = vmatprep.mubr.f32.mxu0 %v3473_v0  ;;  %v2534_v3 = vrot.slane %v2526_v2, %v3769_v41  ;;  %vm4355_vm14 = vcmp.lt.s32.totalorder %v3690_v19, 3  ;;  %v1016_v19 = vrot.slane %v1008_v15, %v3769_v41 }
 0x158   : > { %3347 = vmatpush1.msk.msra.mxu0 %vm2312_vm5, %v2323_v30  ;;  %v2627_v47 = vsel %vm4355_vm14, 1, %v3482_v8  ;;  %vm4356_vm5 = vmmov %vm4354_vm2 }
 0x159   : > { %3350 = vmatprep.subr.msk.mxu0 %vm2426_vm6, %v2434_v24  ;;  %vm2536_vm3 = vcmp.eq.s32.totalorder %v2534_v3, 1  ;;  %v2635_v12 = vrot.slane %v2627_v47, %v3758_v38  ;;  %vm919_vm6 = vcmask 916480   ;;  %vm4357_vm2 = vmmov %vm4355_vm14  ;;  %vm911_vm14 = vcmp.eq.s32.totalorder %v906_v16, 1 }
 0x15a   : > { %v801_v10 = vpop.permute.xlu1 %800  ;;  %v4081_v25 = vpop.permute.xlu0 %2760 }
 0x15b   : > { %v805_v37 = vsel %vm804_vm8, %v3952_v60, %v801_v10  ;;  %v806_v57 = vsel %vm804_vm8, %v801_v10, %v3740_v34  ;;  %v2522_v60 = vrot.slane %v2518_v20, %v3769_v41  ;;  %v2643_v56 = vrot.slane %v2635_v12, %v3769_v41  ;;  %v3295_v20 = vld [vmem:[%s4328_s2 + $0x30] sm:$0xff] }
 0x15c   : > { %3291 = vmatprep.subr.msk.mxu1 %vm797_vm11, %v806_v57  ;;  %vm2736_vm11 = vmand %vm4357_vm2, %vm3779_vm9  ;;  %v1232_v12 = vrot.slane %v3774_v42, %v3833_v11 }
 0x15d   : > { %3292 = vmatpush1.msk.msra.mxu1 %vm796_vm13, %v805_v37  ;;  %vm912_vm13 = vcmp.eq.s32.totalorder %v910_v7, 1  ;;  %v2530_v21 = vrot.slane %v2522_v60, %v3769_v41  ;;  %v2737_v23 = vsel %vm2736_vm11, 1, %v3482_v8  ;;  %vm1029_vm11 = vcmask 908288   ;;  %v3299_v37 = vld [vmem:[%s4328_s2 + $0x38] sm:$0xff] }
 0x15e   : > { %v4100_v34 = vpop.permute.xlu1 %2758  ;;  %3348 = vmatmul.mubr.msk.f32.vlgmr.msra.gmra.mrb[0].mxu0 %vm293_vm12, %v3345_v39  ;;  %v2428_v50 = vpop.permute.xlu0 %2427  ;;  %3293 = vmatmul.mubr.msk.f32.vlgmr.msra.gmra.mrb[0].mxu1 %vm293_vm12, %v3290_v43  ;;  %v2745_v13 = vrot.slane %v2737_v23, %v3758_v38  ;;  %v2741_v57 = vrot.slane %v2737_v23, %v3769_v41 }
 0x15f   : > { %v2433_v53 = vsel %vm4356_vm5, %v2428_v50, %v3967_v14  ;;  %2508 = vmatprep.mubr.f32.mxu0 %v3473_v0  ;;  %995 = vmatprep.mubr.f32.mxu1 %v3473_v0  ;;  %v1012_v14 = vrot.slane %v4109_v28, %v3758_v38  ;;  %v2763_v7 = vsel %vm804_vm8, %v4100_v34, %v4081_v25 }
 0x160   : > { %3351 = vmatpush1.msk.msra.mxu0 %vm2425_vm15, %v2433_v53  ;;  %vm1114_vm15 = vmand %vm4043_vm4, %vm3779_vm9  ;;  %vm2645_vm4 = vcmp.eq.s32.totalorder %v2643_v56, 1  ;;  %v2753_v36 = vrot.slane %v2745_v13, %v3769_v41  ;;  %v2749_v50 = vrot.slane %v2741_v57, %v3769_v41  ;;  %v3365_v57 = vld [vmem:[%s4328_s2 + $0xc0] sm:$0xff] }
 0x161   : > { %3354 = vmatprep.subr.msk.mxu0 %vm2536_vm3, %v2544_v55  ;;  %vm4358_vm3 = vmmov %vm4357_vm2  ;;  %vm2535_vm2 = vcmp.eq.s32.totalorder %v2530_v21, 1  ;;  %v1020_v63 = vrot.slane %v1012_v14, %v3769_v41  ;;  %v1115_v1 = vsel %vm1114_vm15, 1, %v3482_v8  ;;  %vm1140_vm15 = vcmask 900096   ;;  %v3357_v14 = vld [vmem:[%s4328_s2 + $0xb0] sm:$0xff] }
 0x162   : > { %v916_v54 = vpop.permute.xlu1 %915  ;;  %v4125_v5 = vpop.permute.xlu0 %1356  ;;  %vm4149_vm5 = vmand %vm4358_vm3, %vm3863_vm10  ;;  %v1123_v30 = vrot.slane %v1115_v1, %v3758_v38  ;;  %v1119_v9 = vrot.slane %v1115_v1, %v3769_v41  ;;  %v1228_v55 = vrot.slane %v3774_v42, %v3840_v35  ;;  %v1240_v42 = vrot.slane %v1232_v12, %v3840_v35 }
 0x163   : > { %v920_v59 = vsel %vm919_vm6, %v3986_v29, %v916_v54  ;;  %v921_v61 = vsel %vm919_vm6, %v916_v54, %v3791_v49  ;;  %v2631_v29 = vrot.slane %v2627_v47, %v3769_v41  ;;  %vm2847_vm10 = vmand %vm4149_vm5, %vm3750_vm7  ;;  %v3303_v54 = vld [vmem:[%s4328_s2 + $0x40] sm:$0xff]  ;;  %v2957_v13 = vsel %vm4149_vm5, 1, %v3482_v8 }
 0x164   : > { %3296 = vmatprep.subr.msk.mxu1 %vm912_vm13, %v921_v61  ;;  %vm1022_vm13 = vcmp.eq.s32.totalorder %v1020_v63, 1  ;;  %v2848_v10 = vsel %vm2847_vm10, 1, %v3482_v8  ;;  %v1131_v39 = vrot.slane %v1123_v30, %v3769_v41  ;;  %v1127_v47 = vrot.slane %v1119_v9, %v3769_v41 }
 0x165   : > { %3297 = vmatpush1.msk.msra.mxu1 %vm911_vm14, %v920_v59  ;;  %vm2755_vm14 = vcmp.eq.s32.totalorder %v2753_v36, 1  ;;  %v2852_v56 = vrot.slane %v2848_v10, %v3769_v41  ;;  %v1236_v61 = vrot.slane %v1228_v55, %v3840_v35  ;;  %vm1249_vm10 = vcmask 523264  }
 0x166   : > { %v4155_v27 = vpop.permute.xlu1 %1243  ;;  %3352 = vmatmul.mubr.msk.f32.vlgmr.msra.gmra.mrb[0].mxu0 %vm293_vm12, %v3349_v62  ;;  %v2538_v40 = vpop.permute.xlu0 %2537  ;;  %3298 = vmatmul.mubr.msk.f32.vlgmr.msra.gmra.mrb[0].mxu1 %vm293_vm12, %v3295_v20  ;;  %vm1133_vm3 = vcmp.eq.s32.totalorder %v1131_v39, 1  ;;  %v1337_v62 = vrot.slane %v3707_v22, %v3840_v35  ;;  %v2965_v30 = vrot.slane %v2957_v13, %v3758_v38  ;;  %v3311_v39 = vld [vmem:[%s4328_s2 + $0x50] sm:$0xff] }
 0x167   : > { %v2543_v2 = vsel %vm584_vm1, %v2538_v40, %v4003_v45  ;;  %2618 = vmatprep.mubr.f32.mxu0 %v3473_v0  ;;  %1105 = vmatprep.mubr.f32.mxu1 %v3473_v0  ;;  %v2639_v45 = vrot.slane %v2631_v29, %v3769_v41  ;;  %vm1021_vm1 = vcmp.eq.s32.totalorder %v1016_v19, 1  ;;  %v1450_v29 = vrot.slane %v4109_v28, %v3833_v11 }
 0x168   : > { %3355 = vmatpush1.msk.msra.mxu0 %vm2535_vm2, %v2543_v2  ;;  %vm2754_vm2 = vcmp.eq.s32.totalorder %v2749_v50, 1  ;;  %v1345_v19 = vrot.slane %v1337_v62, %v3840_v35  ;;  %v3315_v50 = vld [vmem:[%s4328_s2 + $0x58] sm:$0xff] }
 0x169   : > { %3358 = vmatprep.subr.msk.mxu0 %vm2645_vm4, %v2653_v32  ;;  %vm2644_vm7 = vcmp.eq.s32.totalorder %v2639_v45, 1  ;;  %v3361_v32 = vld [vmem:[%s4328_s2 + $0xb8] sm:$0xff]  ;;  %v1458_v45 = vrot.slane %v1450_v29, %v3840_v35 }
 0x16a   : > { %v1026_v24 = vpop.permute.xlu1 %1025  ;;  %v2872_v4 = vpop.permute.xlu0 %2871 }
 0x16b   : > { %v1030_v52 = vsel %vm1029_vm11, %v4020_v48, %v1026_v24  ;;  %v1031_v3 = vsel %vm1029_vm11, %v1026_v24, %v3836_v26  ;;  %v2856_v48 = vrot.slane %v2848_v10, %v3758_v38  ;;  %v2973_v10 = vrot.slane %v2965_v30, %v3769_v41 }
 0x16c   : > { %3300 = vmatprep.subr.msk.mxu1 %vm1022_vm13, %v1031_v3  ;;  %vm1241_vm13 = vcmp.eq.s32.totalorder %v1236_v61, 1 }
 0x16d   : > { %3301 = vmatpush1.msk.msra.mxu1 %vm1021_vm1, %v1030_v52  ;;  %v2864_v16 = vrot.slane %v2856_v48, %v3769_v41  ;;  %vm1358_vm1 = vcmask 515072   ;;  %v1446_v52 = vrot.slane %v4109_v28, %v3840_v35  ;;  %v1559_v48 = vrot.slane %v3707_v22, %v1558_v46 }
 0x16e   : > { %v4192_v43 = vpop.permute.xlu1 %2869  ;;  %3356 = vmatmul.mubr.msk.f32.vlgmr.msra.gmra.mrb[0].mxu0 %vm293_vm12, %v3353_v17  ;;  %v2647_v26 = vpop.permute.xlu0 %2646  ;;  %3302 = vmatmul.mubr.msk.f32.vlgmr.msra.gmra.mrb[0].mxu1 %vm293_vm12, %v3299_v37 }
 0x16f   : > { %v2652_v60 = vsel %vm693_vm0, %v2647_v26, %v4049_v18  ;;  %2727 = vmatprep.mubr.f32.mxu0 %v3473_v0  ;;  %1216 = vmatprep.mubr.f32.mxu1 %v3473_v0  ;;  %vm1132_vm0 = vcmp.eq.s32.totalorder %v1127_v47, 1  ;;  %vm2866_vm4 = vcmp.eq.s32.totalorder %v2864_v16, 1  ;;  %v2874_v20 = vsel %vm919_vm6, %v4192_v43, %v2872_v4 }
 0x170   : > { %3359 = vmatpush1.msk.msra.mxu0 %vm2644_vm7, %v2652_v60  ;;  %v2961_v4 = vrot.slane %v2957_v13, %v3769_v41  ;;  %v1454_v28 = vrot.slane %v1446_v52, %v3840_v35  ;;  %v1567_v31 = vrot.slane %v1559_v48, %v3796_v51 }
 0x171   : > { %3362 = vmatprep.subr.msk.mxu0 %vm2755_vm14, %v2763_v7  ;;  %v3369_v7 = vld [vmem:[%s4328_s2 + $0xc8] sm:$0xff] }
 0x172   : > { %v1137_v18 = vpop.permute.xlu1 %1136  ;;  %v2757_v53 = vpop.permute.xlu0 %2756  ;;  %v2969_v37 = vrot.slane %v2961_v4, %v3769_v41 }
 0x173   : > { %v1141_v25 = vsel %vm1140_vm15, %v4067_v6, %v1137_v18  ;;  %v1142_v21 = vsel %vm1140_vm15, %v1137_v18, %v3989_v33  ;;  %v1341_v6 = vrot.slane %v3707_v22, %v3833_v11  ;;  %v2762_v33 = vsel %vm804_vm8, %v2757_v53, %v4100_v34  ;;  %v3307_v11 = vld [vmem:[%s4328_s2 + $0x48] sm:$0xff] }
 0x174   : > { %3304 = vmatprep.subr.msk.mxu1 %vm1133_vm3, %v1142_v21  ;;  %v2860_v34 = vrot.slane %v2852_v56, %v3769_v41  ;;  %vm1242_vm8 = vcmp.eq.s32.totalorder %v1240_v42, 1  ;;  %vm1350_vm3 = vcmp.eq.s32.totalorder %v1345_v19, 1 }
 0x175   : > { %3305 = vmatpush1.msk.msra.mxu1 %vm1132_vm0, %v1141_v25  ;;  %v1349_v23 = vrot.slane %v1341_v6, %v3840_v35  ;;  %vm1467_vm0 = vcmask 506880  }
 0x176   : > { %v1353_v15 = vpop.permute.xlu1 %1352  ;;  %3360 = vmatmul.mubr.msk.f32.vlgmr.msra.gmra.mrb[0].mxu0 %vm293_vm12, %v3357_v14  ;;  %v2868_v59 = vpop.permute.xlu0 %2867  ;;  %3306 = vmatmul.mubr.msk.f32.vlgmr.msra.gmra.mrb[0].mxu1 %vm293_vm12, %v3303_v54  ;;  %vm2865_vm7 = vcmp.eq.s32.totalorder %v2860_v34, 1 }
 0x177   : > { %3363 = vmatpush1.msk.msra.mxu0 %vm2754_vm2, %v2762_v33  ;;  %2837 = vmatprep.mubr.f32.mxu0 %v3473_v0  ;;  %vm1351_vm14 = vcmp.eq.s32.totalorder %v1349_v23, 1  ;;  %vm3066_vm2 = vmand %vm4149_vm5, %vm3779_vm9  ;;  %vm1459_vm9 = vcmp.eq.s32.totalorder %v1454_v28, 1  ;;  %vm1576_vm5 = vcmask 457728  }
 0x178   : > { %3366 = vmatprep.subr.msk.mxu0 %vm2866_vm4, %v2874_v20  ;;  %1325 = vmatprep.mubr.f32.mxu1 %v3473_v0  ;;  %vm2975_vm4 = vcmp.eq.s32.totalorder %v2973_v10, 1  ;;  %v3067_v44 = vsel %vm3066_vm2, 1, %v3482_v8 }
 0x179   : > { %v3075_v46 = vrot.slane %v3067_v44, %v3758_v38  ;;  %v3071_v60 = vrot.slane %v3067_v44, %v3769_v41  ;;  %v1555_v38 = vrot.slane %v3707_v22, %v3796_v51 }
 0x17a   : > { %v1246_v63 = vpop.permute.xlu1 %1245  ;;  %v1466_v40 = vpop.permute.xlu0 %1465 }
 0x17b   : > { %v1250_v1 = vsel %vm1249_vm10, %v4155_v27, %v1246_v63  ;;  %v1251_v2 = vsel %vm1249_vm10, %v1246_v63, %v4051_v58  ;;  %v2873_v58 = vsel %vm919_vm6, %v2868_v59, %v4192_v43  ;;  %vm1460_vm6 = vcmp.eq.s32.totalorder %v1458_v45, 1 }
 0x17c   : > { %3308 = vmatprep.subr.msk.mxu1 %vm1242_vm8, %v1251_v2  ;;  %vm2974_vm10 = vcmp.eq.s32.totalorder %v2969_v37, 1  ;;  %v3083_v12 = vrot.slane %v3075_v46, %v3769_v41  ;;  %v3079_v53 = vrot.slane %v3071_v60, %v3769_v41  ;;  %v1563_v25 = vrot.slane %v1555_v38, %v3796_v51  ;;  %v3373_v41 = vld [vmem:[%s4328_s2 + $0xd0] sm:$0xff] }
 0x17d   : > { %3309 = vmatpush1.msk.msra.mxu1 %vm1241_vm13, %v1250_v1 }
 0x17e   : > { %v1355_v27 = vpop.permute.xlu1 %1354  ;;  %3364 = vmatmul.mubr.msk.f32.vlgmr.msra.gmra.mrb[0].mxu0 %vm293_vm12, %v3361_v32  ;;  %v2981_v24 = vpop.permute.xlu0 %2980  ;;  %3310 = vmatmul.mubr.msk.f32.vlgmr.msra.gmra.mrb[0].mxu1 %vm293_vm12, %v3307_v11  ;;  %vm3085_vm8 = vcmp.eq.s32.totalorder %v3083_v12, 1  ;;  %vm3084_vm13 = vcmp.eq.s32.totalorder %v3079_v53, 1 }
 0x17f   : > { %v1359_v36 = vsel %vm1358_vm1, %v1353_v15, %v1355_v27  ;;  %v1360_v9 = vsel %vm1358_vm1, %v1355_v27, %v4125_v5  ;;  %3367 = vmatpush1.msk.msra.mxu0 %vm2865_vm7, %v2873_v58  ;;  %2948 = vmatprep.mubr.f32.mxu0 %v3473_v0  ;;  %vm1568_vm1 = vcmp.eq.s32.totalorder %v1563_v25, 1 }
 0x180   : > { %3312 = vmatprep.subr.msk.mxu1 %vm1351_vm14, %v1360_v9  ;;  %1434 = vmatprep.mubr.f32.mxu1 %v3473_v0 }
 0x181   : > { %3313 = vmatpush1.msk.msra.mxu1 %vm1350_vm3, %v1359_v36 }
 0x182   : > { %v1464_v3 = vpop.permute.xlu1 %1463  ;;  %v2977_v17 = vpop.permute.xlu0 %2976 }
 0x183   : > { %v1469_v5 = vsel %vm1467_vm0, %v1464_v3, %v1466_v40 }
 0x184   : > { %3316 = vmatprep.subr.msk.mxu1 %vm1460_vm6, %v1469_v5 }
 0x186   : > { %v2979_v43 = vpop.permute.xlu1 %2978  ;;  %3368 = vmatmul.mubr.msk.f32.vlgmr.msra.gmra.mrb[0].mxu0 %vm293_vm12, %v3365_v57  ;;  %v1575_v26 = vpop.permute.xlu0 %1574  ;;  %3314 = vmatmul.mubr.msk.f32.vlgmr.msra.gmra.mrb[0].mxu1 %vm293_vm12, %v3311_v39 }
 0x187   : > { %v2982_v49 = vsel %vm1029_vm11, %v2977_v17, %v2979_v43  ;;  %v2983_v47 = vsel %vm1029_vm11, %v2979_v43, %v2981_v24  ;;  %3057 = vmatprep.mubr.f32.mxu0 %v3473_v0  ;;  %1543 = vmatprep.mubr.f32.mxu1 %v3473_v0  ;;  %vm1569_vm11 = vcmp.eq.s32.totalorder %v1567_v31, 1 }
 0x188   : > { %3370 = vmatprep.subr.msk.mxu0 %vm2975_vm4, %v2983_v47 }
 0x189   : > { %3371 = vmatpush1.msk.msra.mxu0 %vm2974_vm10, %v2982_v49 }
 0x18a   : > { %v1462_v35 = vpop.permute.xlu1 %1461  ;;  %v3091_v16 = vpop.permute.xlu0 %3090 }
 0x18b   : > { %v1468_v8 = vsel %vm1467_vm0, %v1462_v35, %v1464_v3 }
 0x18c   : > { %3317 = vmatpush1.msk.msra.mxu1 %vm1459_vm9, %v1468_v8 }
 0x18e   : > { %v1573_v18 = vpop.permute.xlu1 %1572  ;;  %3372 = vmatmul.mubr.msk.f32.vlgmr.msra.gmra.mrb[0].mxu0 %vm293_vm12, %v3369_v7  ;;  %3318 = vmatmul.mubr.msk.f32.vlgmr.msra.gmra.mrb[0].mxu1 %vm293_vm12, %v3315_v50  ;;  %v3087_v21 = vpop.permute.xlu0 %3086 }
 0x18f   : > { %v1578_v55 = vsel %vm1576_vm5, %v1573_v18, %v1575_v26  ;;  %3167 = vmatprep.mubr.f32.mxu0 %v3473_v0  ;;  %1652 = vmatprep.mubr.f32.mxu1 %v3473_v0  ;;  %v3319_v0 = vld [vmem:[%s4328_s2 + $0x60] sm:$0xff] }
 0x190   : > { %3320 = vmatprep.subr.msk.mxu1 %vm1569_vm11, %v1578_v55 }
 0x192   : > { %v3089_v14 = vpop.permute.xlu1 %3088 }
 0x193   : > { %v3092_v22 = vsel %vm1140_vm15, %v3087_v21, %v3089_v14  ;;  %v3093_v54 = vsel %vm1140_vm15, %v3089_v14, %v3091_v16 }
 0x194   : > { %3374 = vmatprep.subr.msk.mxu0 %vm3085_vm8, %v3093_v54 }
 0x195   : > { %3375 = vmatpush1.msk.msra.mxu0 %vm3084_vm13, %v3092_v22 }
 0x196   : > { %v1571_v56 = vpop.permute.xlu1 %1570  ;;  %3376 = vmatmul.mubr.msk.f32.vlgmr.msra.gmra.mrb[0].mxu0 %vm293_vm12, %v3373_v41 }
 0x197   : > { %v1577_v51 = vsel %vm1576_vm5, %v1571_v56, %v1573_v18 }
 0x198   : > { %3321 = vmatpush1.msk.msra.mxu1 %vm1568_vm1, %v1577_v51 }
 0x199   : > { %3322 = vmatmul.mubr.msk.f32.vlgmr.msra.gmra.mrb[0].mxu1 %vm293_vm12, %v3319_v0 }
 0x1a7   : > { %v3180_v15 = vpop.permute.xlu1 %3179 }
 0x269   : > { %v3169_v42 = vpop.f32.mrb[0].mxu0 }
 0x26a   : > { %v3171_v6 = vpop.f32.mrb[1].mxu0 }
 0x26c   : > { %v1654_v33 = vpop.f32.mrb[0].mxu1 }
 0x26d   : > { %v3381_v59 = vadd.f32 %v3169_v42, %v1654_v33  ;;  %v1656_v61 = vpop.f32.mrb[1].mxu1 }
 0x26e   : > { %v3382_v62 = vadd.f32 %v3171_v6, %v1656_v61 }
 0x26f   : > { %v3182_v20 = vadd.f32 %v3381_v59, %v3180_v15 }
 0x270   : > { %v3183_v34 = vadd.f32 %v3382_v62, %v3180_v15 }
 0x272   : > { %v3184_v23 = vadd.f32 %v3183_v34, %v3182_v20 }
 0x274   : > { %3185 = vadd.xlane.f32.xlu0 %v3184_v23 }
 0x301   : > { %v3186_v29 = vpop.xlane.xlu0 %3185 }
 0x302   : > { %v3187_v63 = vmul.f32 0.00390625, %v3186_v29 }
 0x304   : > { %v3188_v40 = vsub.f32 %v3182_v20, %v3187_v63  ;;  %v3189_v19 = vsub.f32 %v3183_v34, %v3187_v63 }
 0x306   : > { %v3190_v13 = vmul.f32 %v3188_v40, %v3188_v40  ;;  %v3191_v1 = vmul.f32 %v3189_v19, %v3189_v19 }
 0x308   : > { %v3192_v2 = vadd.f32 %v3191_v1, %v3190_v13 }
 0x30a   : > { %3193 = vadd.xlane.f32.xlu1 %v3192_v2 }
 0x397   : > { %v3194_v32 = vpop.xlane.xlu1 %3193 }
 0x398   : > { %v3195_v11 = vmul.f32 0.00390625, %v3194_v32 }
 0x39a   : > { %v3196_v45 = vadd.f32 1e-05, %v3195_v11 }
 0x39c   : > { %3463 = vrsqrt.f32 %v3196_v45 }
 0x3a6   : > { %v3464_v30 = vpop.eup %3463 }
 0x3a7   : > { %v3198_v58 = vmul.f32 %v3464_v30, %v3188_v40  ;;  %v3199_v27 = vmul.f32 %v3464_v30, %v3189_v19 }
 0x3a9   : > { %v3200_v24 = vmax.f32 %v3198_v58, 0.0  ;;  %v3201_v4 = vmax.f32 %v3199_v27, 0.0 }
 0x3ab   : > { %3202 = vst [vmem:[%s197_s30] sm:$0xff] %v3200_v24  ;;  %3203 = vst [vmem:[%s197_s30 + $0x8] sm:$0xff] %v3201_v4 }
 0x3ac PF: > { %s14_s15 = sadd.s32 1, %s3471_s15  }
 0x3ad   : > { %p11_p4 = scmp.ge.s32.totalorder %s14_s15, 4  }
 0x3af   :  { %13 = sbr.rel (!%p11_p4) target bundleno = 1 (0x1), region = 92 }

// kernel: down_forward.5
= control target key start
LH: loop header
LB: loop body
LE: loop exit
PB: predicated region body
PF: predicated region fallthrough
CT: control target
= control target key end

     0   :  { %s3878_s18 = smov 0   ;;  %s4717_s0 = inlined_call_operand.vmem [shape: f32[2,4,256], index: 0, kind: input, shape index: {}]   ;;  %s4718_s1 = inlined_call_operand.vmem [shape: s32[3,256], index: 1, kind: input, shape index: {}]   ;;  %s4719_s2 = inlined_call_operand.vmem [shape: f32[27,8,4], index: 2, kind: input, shape index: {}]   ;;  %s4720_s3 = inlined_call_operand.vmem [shape: f32[8,1], index: 3, kind: input, shape index: {}]   ;;  %s4721_s4 = inlined_call_operand.vmem [shape: f32[2,8,256], index: 4, kind: output, shape index: {0}]   ;;  %s4722_s5 = inlined_call_operand.vmem [shape: f32[2,8,256], index: 5, kind: output, shape index: {1}]  }
   0x1 LB: > { %s3608_s19 = sadd.s32 4294967295, %s3826_s18   ;;  %p3612_p0 = scmp.ge.s32.totalorder %s3826_s18, 1  ;;  %s3826_s18 = sphi %s3878_s18, %s16_s18  }
   0x2   : > { %p190_p1 = scmp.lt.s32.totalorder %s3826_s18, 3 }
   0x4   : > { %p191_p2 = pnand %p3612_p0, %p190_p1 }
   0x5   : > { %p223_p3 = scmp.lt.s32.totalorder (!%p191_p2), %s3608_s19, 1  ;;  %vm239_vm0 = vcmask (!%p191_p2), 1043456   ;;  %vm240_vm1 = vcmask (!%p191_p2), 146436   ;;  %v3828_v0 = vmov (!%p191_p2), 0.0   ;;  %v3829_v1 = vmov (!%p191_p2), 0   ;;  %s3830_s24 = smov (!%p191_p2), 73  }
   0x6   : > { %194 = sbr.rel (%p191_p2) target bundleno = 936 (0x3a8), region = 36  ;;  %238 = vst [vmem:[#allocation2] sm:$0xff] (!%p191_p2), %v3828_v0  ;;  %vm241_vm2 = vmor (!%p191_p2), %vm240_vm1, %vm239_vm0  ;;  %1919 = vmatprep.mubr.f32.mxu0 (!%p191_p2), %v3828_v0  ;;  %405 = vmatprep.mubr.f32.mxu1 (!%p191_p2), %v3828_v0  ;;  %s3831_s25 = smov (!%p191_p2), 127   ;;  %vm252_vm3 = vcmask (!%p191_p2), 1044040   ;;  %vm253_vm4 = vcmask (!%p191_p2), 1047556   ;;  %vm248_vm5 = vcmask (!%p191_p2), 596992   ;;  %v271_v49 = vlaneseq (!%p191_p2) }
   0x7   : > { %242 = vst.msk [vmem:[#allocation2 + $0x8] sm:$0xff] (!%p191_p2), %vm241_vm2, %v3828_v0  ;;  %3815 = vset.pattern.permute.xlu0 (!%p191_p2), %v3829_v1  ;;  %vm256_vm6 = vcmask (!%p191_p2), 592896   ;;  %vm254_vm7 = vmor (!%p191_p2), %vm253_vm4, %vm252_vm3  ;;  %s3832_s26 = smov (!%p191_p2), 55   ;;  %s3833_s27 = smov (!%p191_p2), 126   ;;  %v4025_v36 = vld [vmem:[%s4718_s1] sm:$0x77] (!%p191_p2) }
   0x8   : > { %s3834_s28 = smov (!%p191_p2), 47   ;;  %s3835_s29 = smov (!%p191_p2), 120   ;;  %vm260_vm8 = vcmp.ge.s32.totalorder (!%p191_p2), %v4025_v36, 1  ;;  %v4073_v56 = vshrl.u32 (!%p191_p2), %v271_v49, 7  ;;  %vm494_vm13 = vcmp.lt.s32.totalorder (!%p191_p2), %v4025_v36, 7  ;;  %vm1845_vm14 = vcmask (!%p191_p2), 449536  }
   0x9   : > { %s3836_s30 = smov (!%p191_p2), 54   ;;  %s3837_s6 = smov (!%p191_p2), 46   ;;  %v4040_v43 = vsel (!%p191_p2), %vm260_vm8, 1, %v3829_v1  ;;  %vm331_vm15 = vcmask (!%p191_p2), 31744   ;;  %vm4723_vm2 = vcmask (!%p191_p2), 1039360   ;;  %v3710_v54 = vld [vmem:[%s4719_s2 + $0xb0] sm:$0xff] (!%p191_p2) }
   0xa   : > { %s3838_s7 = smov (!%p191_p2), 48   ;;  %s3839_s8 = smov (!%p191_p2), 119   ;;  %v3619_v44 = vrot.slane (!%p191_p2), %v4040_v43, 9  ;;  %v3620_v47 = vrot.slane (!%p191_p2), %v4040_v43, 10  ;;  %v4092_v60 = vsub.s32 (!%p191_p2), 0, %v4073_v56  ;;  %v4099_v63 = vsub.s32 (!%p191_p2), 4, %v4073_v56 }
   0xb   : > { %s3840_s9 = smov (!%p191_p2), 118   ;;  %s3841_s10 = smov (!%p191_p2), 112  }
   0xc   : > { %s3842_s11 = smov (!%p191_p2), 111   ;;  %s3843_s12 = smov (!%p191_p2), 110   ;;  %vm4054_vm9 = vcmp.ne.s32.totalorder (!%p191_p2), %v3619_v44, 0  ;;  %vm4069_vm11 = vcmp.ne.s32.totalorder (!%p191_p2), %v3620_v47, 0 }
   0xd   : > { %s4758_s19 = smov (!%p223_p3, %s3608_s19), 1  ;;  %s3844_s13 = smov 64   ;;  %vm4065_vm10 = vmand %vm260_vm8, %vm4054_vm9 }
   0xe   : > { %s3732_s20 = sshll.u32 %s4758_s19, 3  ;;  %v2525_v3 = vld [vmem:[#allocation2 + $0xc] sm:$0xf]  ;;  %s3845_s14 = smov 63   ;;  %vm269_vm12 = vmand %vm4065_vm10, %vm4069_vm11  ;;  %v4089_v59 = vsel %vm4065_vm10, 1, %v3829_v1 }
   0xf   : > { %s227_s23 = scalar_lea.vmem %s4717_s0, %s3732_s20  ;;  %2552 = vrot.lane.b32.xlu1 %v2525_v3, %s3831_s25  ;;  %v2645_v21 = vld [vmem:[#allocation2 + $0xc] sm:$0xf]  ;;  %s3846_s17 = smov 62   ;;  %v304_v3 = vrot.slane %v4089_v59, %v4099_v63  ;;  %vm2050_vm1 = vmand %vm494_vm13, %vm4054_vm9 }
  0x10   : > { %v243_v2 = vld [vmem:[%s227_s23] sm:$0xff]  ;;  %v2766_v23 = vld [vmem:[#allocation2 + $0xc] sm:$0xf]  ;;  %s3847_s20 = smov 56   ;;  %v2051_v49 = vsel %vm2050_vm1, 1, %v3829_v1 }
  0x11   : > { %245 = vrot.lane.b32.xlu0 %v243_v2, %s3830_s24  ;;  %v2887_v26 = vld [vmem:[#allocation2 + $0xc] sm:$0xf]  ;;  %v270_v2 = vsel %vm269_vm12, 1, %v3829_v1 }
  0x12   : > { %v3007_v28 = vld [vmem:[#allocation2 + $0xc] sm:$0xf] }
  0x13   : > { %v3128_v31 = vld [vmem:[#allocation2 + $0xc] sm:$0xf] }
  0x14   : > { %v3250_v40 = vld [vmem:[#allocation2 + $0xc] sm:$0xf] }
  0x15   : > { %v3370_v55 = vld [vmem:[#allocation2 + $0xc] sm:$0xf] }
  0x81   : > { %v4002_v29 = vpop.permute.xlu1 %2552 }
  0x83   : > { %v246_v4 = vpop.permute.xlu0 %245 }
  0x84   : > { %v247_v5 = vrot.slane %v246_v4, 4 }
  0x86   : > { %v249_v6 = vsel %vm248_vm5, %v247_v5, %v246_v4  ;;  %257 = vst.msk [vmem:[#allocation2 + $0x8] sm:$0xf] %vm256_vm6, %v247_v5  ;;  %v300_v4 = vrot.slane %v4089_v59, %v4092_v60  ;;  %v4111_v5 = vsub.s32 2, %v4073_v56 }
  0x87   : > { %255 = vst.msk [vmem:[#allocation2] sm:$0xff] %vm254_vm7, %v249_v6  ;;  %v1720_v6 = vsub.s32 6, %v4073_v56 }
  0x8d   : > { %v1833_v7 = vld [vmem:[#allocation2 + $0x8] sm:$0xf] }
  0x8e   : > { %v493_v8 = vld [vmem:[#allocation2 + $0x8] sm:$0xf]  ;;  %1843 = vrot.lane.b32.xlu1 %v1833_v7, %s3832_s26  ;;  %v3909_v17 = vld [vmem:[#allocation2] sm:$0xff] }
  0x8f   : > { %526 = vrot.lane.b32.xlu0 %v493_v8, %s3833_s27  ;;  %v2171_v9 = vld [vmem:[#allocation2 + $0x8] sm:$0xf]  ;;  %v3929_v18 = vcombine.high %v3909_v17, %v3909_v17  ;;  %v3490_v7 = vld [vmem:[%s4720_s3] sm:$0xff]  ;;  %v274_v8 = vrot.slane %v270_v2, %v4092_v60 }
  0x90   : > { %v295_v10 = vld [vmem:[#allocation2 + $0x8] sm:$0xf] }
  0x91   : > { %v620_v11 = vld [vmem:[#allocation2 + $0x8] sm:$0xf] }
  0x92   : > { %320 = vrot.lane.b32.xlu1 %v295_v10, %s3831_s25  ;;  %v1929_v12 = vld [vmem:[#allocation2 + $0x8] sm:$0xf] }
  0x93   : > { %2197 = vrot.lane.b32.xlu0 %v2171_v9, %s3834_s28  ;;  %v2291_v13 = vld [vmem:[#allocation2 + $0x8] sm:$0xf] }
  0x94   : > { %v2049_v14 = vld [vmem:[#allocation2 + $0x8] sm:$0xf] }
  0x95   : > { %v742_v15 = vld [vmem:[#allocation2 + $0x8] sm:$0xf] }
  0x96   : > { %1955 = vrot.lane.b32.xlu1 %v1929_v12, %s3836_s30  ;;  %v862_v16 = vld [vmem:[#allocation2 + $0x8] sm:$0xf]  ;;  %v278_v12 = vrot.slane %v270_v2, %v4099_v63 }
  0x97   : > { %648 = vrot.lane.b32.xlu0 %v620_v11, %s3835_s29  ;;  %v3935_v19 = vld [vmem:[#allocation2 + $0x4] sm:$0xff]  ;;  %v4125_v11 = vsel %vm494_vm13, 1, %v3829_v1 }
  0x98   : > { %v984_v20 = vld [vmem:[#allocation2 + $0x8] sm:$0xf]  ;;  %v3975_v24 = vcombine.high %v3935_v19, %v3935_v19 }
  0x99   : > { %v1110_v22 = vld [vmem:[#allocation2 + $0x8] sm:$0xf] }
  0x9a   : > { %2077 = vrot.lane.b32.xlu1 %v2049_v14, %s3838_s7  ;;  %v1231_v25 = vld [vmem:[#allocation2 + $0x8] sm:$0xf]  ;;  %v308_v14 = vrot.slane %v300_v4, %v4092_v60 }
  0x9b   : > { %2319 = vrot.lane.b32.xlu0 %v2291_v13, %s3837_s6  ;;  %v1353_v27 = vld [vmem:[#allocation2 + $0x8] sm:$0xf]  ;;  %v312_v13 = vrot.slane %v304_v3, %v4092_v60 }
  0x9c   : > { %v1473_v30 = vld [vmem:[#allocation2 + $0x8] sm:$0xf]  ;;  %vm313_vm4 = vcmp.eq.s32.totalorder %v308_v14, 1 }
  0x9d   : > { %v1593_v39 = vld [vmem:[#allocation2 + $0x8] sm:$0xf]  ;;  %vm314_vm3 = vcmp.eq.s32.totalorder %v312_v13, 1 }
  0x9e   : > { %890 = vrot.lane.b32.xlu1 %v862_v16, %s3840_s9  ;;  %v1713_v52 = vld [vmem:[#allocation2 + $0x8] sm:$0xf]  ;;  %v1933_v16 = vrot.slane %v4125_v11, %v4111_v5 }
  0x9f   : > { %768 = vrot.lane.b32.xlu0 %v742_v15, %s3839_s8  ;;  %v3628_v15 = vrot.slane %v4125_v11, 10 }
  0xa1   : > { %vm4149_vm5 = vcmp.ne.s32.totalorder %v3628_v15, 0 }
  0xa2   : > { %1839 = vrot.lane.b32.xlu1 %v3909_v17, %s3832_s26  ;;  %vm499_vm7 = vmand %vm4065_vm10, %vm4149_vm5  ;;  %vm2413_vm10 = vcmp.lt.s32.totalorder %v4025_v36, 3 }
  0xa3   : > { %316 = vrot.lane.b32.xlu0 %v3909_v17, %s3831_s25 }
  0xa6   : > { %1951 = vrot.lane.b32.xlu1 %v3909_v17, %s3836_s30 }
  0xa7   : > { %2073 = vrot.lane.b32.xlu0 %v3909_v17, %s3838_s7 }
  0xaa   : > { %522 = vrot.lane.b32.xlu1 %v3909_v17, %s3833_s27 }
  0xab   : > { %2193 = vrot.lane.b32.xlu0 %v3909_v17, %s3834_s28 }
  0xae   : > { %644 = vrot.lane.b32.xlu1 %v3909_v17, %s3835_s29 }
  0xaf   : > { %2315 = vrot.lane.b32.xlu0 %v3909_v17, %s3837_s6 }
  0xb2   : > { %764 = vrot.lane.b32.xlu1 %v3909_v17, %s3839_s8 }
  0xb3   : > { %1841 = vrot.lane.b32.xlu0 %v3929_v18, %s3832_s26 }
  0xb6   : > { %2548 = vrot.lane.b32.xlu1 %v3935_v19, %s3831_s25 }
  0xb7   : > { %318 = vrot.lane.b32.xlu0 %v3929_v18, %s3831_s25 }
  0xba   : > { %1016 = vrot.lane.b32.xlu1 %v984_v20, %s3841_s10  ;;  %v1937_v20 = vrot.slane %v4125_v11, %v1720_v6 }
  0xbb   : > { %1953 = vrot.lane.b32.xlu0 %v3929_v18, %s3836_s30 }
  0xbe   : > { %2673 = vrot.lane.b32.xlu1 %v2645_v21, %s3833_s27  ;;  %v282_v21 = vrot.slane %v274_v8, %v4092_v60 }
  0xbf   : > { %886 = vrot.lane.b32.xlu0 %v3909_v17, %s3840_s9 }
  0xc0   : > { %vm287_vm12 = vcmp.eq.s32.totalorder %v282_v21, 1 }
  0xc1   : > { %v292_v13 = vsel %vm287_vm12, %v3909_v17, 0.0  ;;  %vm4240_vm12 = vmand %vm2413_vm10, %vm4054_vm9 }
  0xc2   : > { %2669 = vrot.lane.b32.xlu1 %v3935_v19, %s3833_s27 }
  0xc3   : > { %2075 = vrot.lane.b32.xlu0 %v3929_v18, %s3838_s7 }
  0xc6   : > { %524 = vrot.lane.b32.xlu1 %v3929_v18, %s3833_s27 }
  0xc7   : > { %1012 = vrot.lane.b32.xlu0 %v3909_v17, %s3841_s10 }
  0xca   : > { %2195 = vrot.lane.b32.xlu1 %v3929_v18, %s3834_s28 }
  0xcb   : > { %1133 = vrot.lane.b32.xlu0 %v3909_v17, %s3842_s11 }
  0xce   : > { %646 = vrot.lane.b32.xlu1 %v3929_v18, %s3835_s29 }
  0xcf   : > { %1255 = vrot.lane.b32.xlu0 %v3909_v17, %s3843_s12 }
  0xd2   : > { %2317 = vrot.lane.b32.xlu1 %v3929_v18, %s3837_s6  ;;  %s3733_s6 = sshll.u32 %s4758_s19, 4 }
  0xd3   : > { %1375 = vrot.lane.b32.xlu0 %v3909_v17, %s3844_s13 }
  0xd6   : > { %1137 = vrot.lane.b32.xlu1 %v1110_v22, %s3842_s11 }
  0xd7   : > { %1495 = vrot.lane.b32.xlu0 %v3909_v17, %s3845_s14 }
  0xda   : > { %766 = vrot.lane.b32.xlu1 %v3929_v18, %s3839_s8 }
  0xdb   : > { %888 = vrot.lane.b32.xlu0 %v3929_v18, %s3840_s9 }
  0xde   : > { %2794 = vrot.lane.b32.xlu1 %v2766_v23, %s3835_s29 }
  0xdf   : > { %2550 = vrot.lane.b32.xlu0 %v3975_v24, %s3831_s25 }
  0xe2   : > { %2790 = vrot.lane.b32.xlu1 %v3935_v19, %s3835_s29 }
  0xe3   : > { %1014 = vrot.lane.b32.xlu0 %v3929_v18, %s3841_s10 }
  0xe6   : > { %1259 = vrot.lane.b32.xlu1 %v1231_v25, %s3843_s12 }
  0xe7   : > { %2671 = vrot.lane.b32.xlu0 %v3975_v24, %s3833_s27 }
  0xea   : > { %2914 = vrot.lane.b32.xlu1 %v2887_v26, %s3839_s8 }
  0xeb   : > { %1135 = vrot.lane.b32.xlu0 %v3929_v18, %s3842_s11 }
  0xee   : > { %2910 = vrot.lane.b32.xlu1 %v3935_v19, %s3839_s8 }
  0xef   : > { %2792 = vrot.lane.b32.xlu0 %v3975_v24, %s3835_s29 }
  0xf2   : > { %1379 = vrot.lane.b32.xlu1 %v1353_v27, %s3844_s13  ;;  %v3674_v27 = vld [vmem:[%s4719_s2 + $0x68] sm:$0xff] }
  0xf3   : > { %1257 = vrot.lane.b32.xlu0 %v3929_v18, %s3843_s12 }
  0xf6   : > { %3035 = vrot.lane.b32.xlu1 %v3007_v28, %s3840_s9  ;;  %v286_v28 = vrot.slane %v278_v12, %v4092_v60  ;;  %v500_v12 = vsel %vm499_vm7, 1, %v3829_v1 }
  0xf7   : > { %2912 = vrot.lane.b32.xlu0 %v3975_v24, %s3839_s8  ;;  %v504_v21 = vrot.slane %v500_v12, %v4092_v60 }
  0xf8   : > { %vm288_vm6 = vcmp.eq.s32.totalorder %v286_v28, 1 }
  0xf9   : > { %v293_v8 = vsel %vm288_vm6, %v3929_v18, 0.0 }
  0xfa   : > { %3031 = vrot.lane.b32.xlu1 %v3935_v19, %s3840_s9 }
  0xfb   : > { %1377 = vrot.lane.b32.xlu0 %v3929_v18, %s3844_s13 }
  0xfe   : > { %1499 = vrot.lane.b32.xlu1 %v1473_v30, %s3845_s14  ;;  %v1721_v30 = vrot.slane %v4040_v43, %v1720_v6 }
  0xff   : > { %3033 = vrot.lane.b32.xlu0 %v3975_v24, %s3840_s9  ;;  %s232_s9 = scalar_lea.vmem %s4721_s4, %s3733_s6 }
 0x100   : > { %v4007_v32 = vpop.permute.xlu1 %1843 }
 0x101   : > { %v4009_v33 = vpop.permute.xlu0 %526 }
 0x102   : > { %3157 = vrot.lane.b32.xlu1 %v3128_v31, %s3841_s10  ;;  %v1941_v31 = vrot.slane %v1933_v16, %v4111_v5 }
 0x103   : > { %1497 = vrot.lane.b32.xlu0 %v3929_v18, %s3845_s14 }
 0x104   : > { %v4016_v35 = vpop.permute.xlu1 %320  ;;  %vm1946_vm1 = vcmp.eq.s32.totalorder %v1941_v31, 1 }
 0x105   : > { %v4014_v34 = vpop.permute.xlu0 %2197 }
 0x106   : > { %3153 = vrot.lane.b32.xlu1 %v3935_v19, %s3841_s10 }
 0x107   : > { %3155 = vrot.lane.b32.xlu0 %v3975_v24, %s3841_s10 }
 0x108   : > { %v4029_v38 = vpop.permute.xlu1 %1955 }
 0x109   : > { %v4027_v37 = vpop.permute.xlu0 %648 }
 0x10a   : > { %1619 = vrot.lane.b32.xlu1 %v1593_v39, %s3846_s17  ;;  %v4157_v39 = vsub.s32 1, %v4073_v56 }
 0x10b   : > { %1617 = vrot.lane.b32.xlu0 %v3929_v18, %s3846_s17 }
 0x10c   : > { %v4035_v42 = vpop.permute.xlu1 %2077  ;;  %v2055_v53 = vrot.slane %v2051_v49, %v4157_v39  ;;  %v2175_v28 = vrot.slane %v4125_v11, %v4157_v39 }
 0x10d   : > { %v4033_v41 = vpop.permute.xlu0 %2319 }
 0x10e   : > { %3277 = vrot.lane.b32.xlu1 %v3250_v40, %s3842_s11  ;;  %v4160_v40 = vsub.s32 5, %v4073_v56  ;;  %v1729_v56 = vrot.slane %v1721_v30, %v4111_v5 }
 0x10f   : > { %3275 = vrot.lane.b32.xlu0 %v3975_v24, %s3842_s11 }
 0x110   : > { %v4048_v46 = vpop.permute.xlu1 %890  ;;  %v2059_v3 = vrot.slane %v2051_v49, %v4160_v40  ;;  %v2179_v31 = vrot.slane %v4125_v11, %v4160_v40 }
 0x111   : > { %v4046_v45 = vpop.permute.xlu0 %768 }
 0x112   : > { %3273 = vrot.lane.b32.xlu1 %v3935_v19, %s3842_s11 }
 0x113   : > { %1615 = vrot.lane.b32.xlu0 %v3909_v17, %s3846_s17 }
 0x114   : > { %v1840_v50 = vpop.permute.xlu1 %1839 }
 0x115   : > { %v4058_v51 = vpop.permute.xlu0 %316 }
 0x116   : > { %1739 = vrot.lane.b32.xlu1 %v1713_v52, %s3847_s20 }
 0x117   : > { %1737 = vrot.lane.b32.xlu0 %v3929_v18, %s3847_s20  ;;  %v3678_v18 = vld [vmem:[%s4719_s2 + $0x70] sm:$0xff] }
 0x118   : > { %v4075_v57 = vpop.permute.xlu1 %1951 }
 0x119   : > { %v4077_v58 = vpop.permute.xlu0 %2073 }
 0x11a   : > { %3398 = vrot.lane.b32.xlu1 %v3370_v55, %s3843_s12 }
 0x11b   : > { %3396 = vrot.lane.b32.xlu0 %v3975_v24, %s3843_s12 }
 0x11c   : > { %v4094_v61 = vpop.permute.xlu1 %522 }
 0x11d   : > { %v4096_v62 = vpop.permute.xlu0 %2193 }
 0x11e   : > { %3394 = vrot.lane.b32.xlu1 %v3935_v19, %s3843_s12  ;;  %s237_s12 = scalar_lea.vmem %s4722_s5, %s3733_s6 }
 0x11f   : > { %1735 = vrot.lane.b32.xlu0 %v3909_v17, %s3847_s20  ;;  %v3645_v17 = vrot.slane %v4125_v11, 9 }
 0x120   : > { %v4118_v9 = vpop.permute.xlu1 %644 }
 0x121   : > { %v4120_v10 = vpop.permute.xlu0 %2315 }
 0x123   : > { %3493 = vperm.xlu0 %3815, %v3490_v7  }
 0x124   : > { %v4137_v22 = vpop.permute.xlu1 %764 }
 0x125   : > { %v1842_v23 = vpop.permute.xlu0 %1841 }
 0x126   : > { %v1847_v25 = vsel %vm1845_vm14, %v1842_v23, %v4007_v32  ;;  %v1846_v26 = vsel %vm1845_vm14, %v1840_v50, %v1842_v23  ;;  %v1945_v32 = vrot.slane %v1937_v20, %v4111_v5  ;;  %vm1957_vm14 = vcmask 441344  }
 0x127   : > { %3675 = vmatprep.subr.msk.mxu0 %vm239_vm0, %v1847_v25  ;;  %v508_v23 = vrot.slane %v500_v12, %v4099_v63 }
 0x128   : > { %3676 = vmatpush1.msk.msra.mxu0 %vm239_vm0, %v1846_v26  ;;  %v4162_v44 = vpop.permute.xlu1 %2548 }
 0x129   : > { %v319_v47 = vpop.permute.xlu0 %318  ;;  %3677 = vmatmul.mubr.msk.f32.vlgmr.msra.gmra.mrb[0].mxu0 %vm331_vm15, %v3674_v27  ;;  %v294_v27 = vld [vmem:[%s4719_s2] sm:$0xff]  ;;  %v516_v49 = vrot.slane %v508_v23, %v4092_v60 }
 0x12a   : > { %v323_v50 = vsel %vm4723_vm2, %v4058_v51, %v319_v47  ;;  %v324_v52 = vsel %vm4723_vm2, %v319_v47, %v4016_v35  ;;  %2039 = vmatprep.mubr.f32.mxu0 %v3828_v0  ;;  %v3621_v51 = vld [vmem:[%s4719_s2 + $0x8] sm:$0xff]  ;;  %vm4181_vm2 = vcmp.eq.s32.totalorder %v1945_v32, 1  ;;  %v512_v47 = vrot.slane %v504_v21, %v4092_v60 }
 0x12b   : > { %v328_v55 = vsel %vm314_vm3, %v324_v52, 0.0  ;;  %v327_v2 = vsel %vm313_vm4, %v323_v50, 0.0  ;;  %vm2079_vm3 = vcmask 392192   ;;  %vm4230_vm4 = vcmp.ne.s32.totalorder %v3645_v17, 0 }
 0x12c   : > { %3622 = vmatprep.subr.msk.mxu1 %vm239_vm0, %v328_v55  ;;  %v4187_v4 = vpop.permute.xlu1 %1016  ;;  %vm4254_vm9 = vmand %vm494_vm13, %vm4230_vm4 }
 0x12d   : > { %3623 = vmatpush1.msk.msra.mxu1 %vm239_vm0, %v327_v2  ;;  %v1954_v7 = vpop.permute.xlu0 %1953  ;;  %vm2415_vm13 = vmand %vm4240_vm12, %vm4069_vm11 }
 0x12e   : > { %v1958_v14 = vsel %vm1957_vm14, %v4075_v57, %v1954_v7  ;;  %v1959_v15 = vsel %vm1957_vm14, %v1954_v7, %v4029_v38  ;;  %3625 = vmatprep.subr.msk.mxu1 %vm239_vm0, %v293_v8  ;;  %3624 = vmatmul.mubr.msk.f32.vlgmr.msra.gmra.mrb[0].mxu1 %vm331_vm15, %v3621_v51  ;;  %v2063_v38 = vrot.slane %v2055_v53, %v4157_v39  ;;  %vm528_vm14 = vcmask 1031168  }
 0x12f   : > { %v1962_v16 = vsel %vm1946_vm1, %v1958_v14, 0.0  ;;  %v1963_v20 = vsel %vm4181_vm2, %v1959_v15, 0.0  ;;  %3626 = vmatpush1.msk.msra.mxu1 %vm239_vm0, %v292_v13  ;;  %485 = vmatprep.mubr.f32.mxu1 %v3828_v0  ;;  %v2067_v57 = vrot.slane %v2059_v3, %v4157_v39  ;;  %vm621_vm2 = vmand %vm260_vm8, %vm4069_vm11  ;;  %v3682_v3 = vld [vmem:[%s4719_s2 + $0x78] sm:$0xff]  ;;  %vm517_vm1 = vcmp.eq.s32.totalorder %v512_v47, 1 }
 0x130   : > { %3679 = vmatprep.subr.msk.mxu0 %vm239_vm0, %v1963_v20  ;;  %v4211_v25 = vpop.permute.xlu1 %2673  ;;  %vm2068_vm6 = vcmp.eq.s32.totalorder %v2063_v38, 1  ;;  %v622_v55 = vsel %vm621_vm2, 1, %v3829_v1  ;;  %vm518_vm2 = vcmp.eq.s32.totalorder %v516_v49, 1  ;;  %v2293_v14 = vsel %vm4254_vm9, 1, %v3829_v1  ;;  %v3629_v38 = vld [vmem:[%s4719_s2 + $0x10] sm:$0xff] }
 0x131   : > { %3680 = vmatpush1.msk.msra.mxu0 %vm239_vm0, %v1962_v16  ;;  %v4214_v26 = vpop.permute.xlu0 %886  ;;  %vm2069_vm7 = vcmp.eq.s32.totalorder %v2067_v57, 1  ;;  %v626_v7 = vrot.slane %v622_v55, %v4092_v60  ;;  %v630_v8 = vrot.slane %v622_v55, %v4099_v63  ;;  %v2416_v20 = vsel %vm2415_vm13, 1, %v3829_v1  ;;  %vm863_vm13 = vmand %vm260_vm8, %vm4149_vm5 }
 0x132   : > { %3681 = vmatmul.mubr.msk.f32.vlgmr.msra.gmra.mrb[0].mxu0 %vm331_vm15, %v3678_v18  ;;  %v2297_v57 = vrot.slane %v2293_v14, %v4157_v39  ;;  %v2301_v21 = vrot.slane %v2293_v14, %v4160_v40  ;;  %v2420_v49 = vrot.slane %v2416_v20, %v4092_v60  ;;  %vm4724_vm9 = vcmask 982016  }
 0x133   : > { %2161 = vmatprep.mubr.f32.mxu0 %v3828_v0  ;;  %v750_v14 = vrot.slane %v4040_v43, %v4099_v63 }
 0x134   : > { %v4244_v52 = vpop.permute.xlu1 %2669 }
 0x135   : > { %v2076_v11 = vpop.permute.xlu0 %2075 }
 0x136   : > { %v2080_v2 = vsel %vm2079_vm3, %v4077_v58, %v2076_v11  ;;  %v2081_v51 = vsel %vm2079_vm3, %v2076_v11, %v4035_v42  ;;  %3627 = vmatmul.mubr.msk.f32.vlgmr.msra.gmra.mrb[0].mxu1 %vm331_vm15, %v294_v27  ;;  %v2183_v58 = vrot.slane %v2175_v28, %v4157_v39  ;;  %v2187_v42 = vrot.slane %v2179_v31, %v4157_v39 }
 0x137   : > { %v2084_v35 = vsel %vm2068_vm6, %v2080_v2, 0.0  ;;  %v2085_v53 = vsel %vm2069_vm7, %v2081_v51, 0.0  ;;  %610 = vmatprep.mubr.f32.mxu1 %v3828_v0  ;;  %vm2199_vm3 = vcmask 384000   ;;  %v2424_v28 = vrot.slane %v2416_v20, %v4099_v63  ;;  %v3686_v2 = vld [vmem:[%s4719_s2 + $0x80] sm:$0xff] }
 0x138   : > { %3683 = vmatprep.subr.msk.mxu0 %vm239_vm0, %v2085_v53  ;;  %v525_v12 = vpop.permute.xlu1 %524  ;;  %vm2188_vm6 = vcmp.eq.s32.totalorder %v2183_v58, 1  ;;  %vm2189_vm7 = vcmp.eq.s32.totalorder %v2187_v42, 1  ;;  %v2428_v58 = vrot.slane %v2420_v49, %v4092_v60  ;;  %v864_v42 = vsel %vm863_vm13, 1, %v3829_v1 }
 0x139   : > { %3684 = vmatpush1.msk.msra.mxu0 %vm239_vm0, %v2084_v35  ;;  %v4272_v13 = vpop.permute.xlu0 %1012  ;;  %v529_v15 = vsel %vm528_vm14, %v4094_v61, %v525_v12  ;;  %v530_v16 = vsel %vm528_vm14, %v525_v12, %v4009_v33  ;;  %v634_v61 = vrot.slane %v626_v7, %v4092_v60  ;;  %v638_v33 = vrot.slane %v630_v8, %v4092_v60  ;;  %v3633_v12 = vld [vmem:[%s4719_s2 + $0x18] sm:$0xff] }
 0x13a   : > { %3685 = vmatmul.mubr.msk.f32.vlgmr.msra.gmra.mrb[0].mxu0 %vm331_vm15, %v3682_v3  ;;  %v533_v18 = vsel %vm517_vm1, %v529_v15, 0.0  ;;  %v534_v17 = vsel %vm518_vm2, %v530_v16, 0.0  ;;  %v2432_v35 = vrot.slane %v2424_v28, %v4092_v60  ;;  %v868_v20 = vrot.slane %v864_v42, %v4092_v60 }
 0x13b   : > { %2281 = vmatprep.mubr.f32.mxu0 %v3828_v0  ;;  %3630 = vmatprep.subr.msk.mxu1 %vm239_vm0, %v534_v17  ;;  %vm639_vm1 = vcmp.eq.s32.totalorder %v634_v61, 1  ;;  %vm640_vm2 = vcmp.eq.s32.totalorder %v638_v33, 1  ;;  %v2526_v17 = vsel %vm4240_vm12, 1, %v3829_v1 }
 0x13c   : > { %v2196_v23 = vpop.permute.xlu1 %2195  ;;  %3631 = vmatpush1.msk.msra.mxu1 %vm239_vm0, %v533_v18  ;;  %v872_v18 = vrot.slane %v864_v42, %v4099_v63  ;;  %v2534_v28 = vrot.slane %v2526_v17, %v4099_v63 }
 0x13d   : > { %v4292_v27 = vpop.permute.xlu0 %1133  ;;  %v2200_v31 = vsel %vm2199_vm3, %v4096_v62, %v2196_v23  ;;  %v2201_v47 = vsel %vm2199_vm3, %v2196_v23, %v4014_v34  ;;  %v2305_v34 = vrot.slane %v2297_v57, %v4157_v39  ;;  %v2309_v62 = vrot.slane %v2301_v21, %v4157_v39  ;;  %v3690_v21 = vld [vmem:[%s4719_s2 + $0x88] sm:$0xff] }
 0x13e   : > { %3632 = vmatmul.mubr.msk.f32.vlgmr.msra.gmra.mrb[0].mxu1 %vm331_vm15, %v3629_v38  ;;  %v2204_v11 = vsel %vm2188_vm6, %v2200_v31, 0.0  ;;  %v2205_v55 = vsel %vm2189_vm7, %v2201_v47, 0.0  ;;  %vm2321_vm3 = vcmask 375808   ;;  %vm4336_vm6 = vmand %vm260_vm8, %vm4230_vm4  ;;  %vm2434_vm8 = vcmp.eq.s32.totalorder %v2432_v35, 1 }
 0x13f   : > { %732 = vmatprep.mubr.f32.mxu1 %v3828_v0  ;;  %3687 = vmatprep.subr.msk.mxu0 %vm239_vm0, %v2205_v55  ;;  %vm2310_vm7 = vcmp.eq.s32.totalorder %v2305_v34, 1  ;;  %vm2311_vm13 = vcmp.eq.s32.totalorder %v2309_v62, 1  ;;  %v2530_v23 = vrot.slane %v2526_v17, %v4092_v60  ;;  %v2439_v49 = vsel %vm2434_vm8, %v3975_v24, 0.0 }
 0x140   : > { %v647_v51 = vpop.permute.xlu1 %646  ;;  %3688 = vmatpush1.msk.msra.mxu0 %vm239_vm0, %v2204_v11  ;;  %v876_v11 = vrot.slane %v868_v20, %v4092_v60  ;;  %v880_v55 = vrot.slane %v872_v18, %v4092_v60  ;;  %vm4725_vm8 = vcmask 965632   ;;  %v4430_v18 = vsel %vm4336_vm6, 1, %v3829_v1 }
 0x141   : > { %v4316_v48 = vpop.permute.xlu0 %1255  ;;  %v651_v53 = vsel %vm4724_vm9, %v4118_v9, %v647_v51  ;;  %v652_v3 = vsel %vm4724_vm9, %v647_v51, %v4027_v37  ;;  %v746_v9 = vrot.slane %v4040_v43, %v4092_v60  ;;  %v2538_v62 = vrot.slane %v2530_v23, %v4092_v60  ;;  %v3698_v37 = vld [vmem:[%s4719_s2 + $0x98] sm:$0xff] }
 0x142   : > { %3689 = vmatmul.mubr.msk.f32.vlgmr.msra.gmra.mrb[0].mxu0 %vm331_vm15, %v3686_v2  ;;  %v655_v7 = vsel %vm639_vm1, %v651_v53, 0.0  ;;  %v656_v8 = vsel %vm640_vm2, %v652_v3, 0.0  ;;  %vm989_vm1 = vmand %vm4336_vm6, %vm4069_vm11  ;;  %vm2433_vm2 = vcmp.eq.s32.totalorder %v2428_v58, 1  ;;  %v2542_v51 = vrot.slane %v2534_v28, %v4092_v60 }
 0x143   : > { %2403 = vmatprep.mubr.f32.mxu0 %v3828_v0  ;;  %3634 = vmatprep.subr.msk.mxu1 %vm239_vm0, %v656_v8  ;;  %v990_v2 = vsel %vm989_vm1, 1, %v3829_v1  ;;  %v2438_v34 = vsel %vm2433_vm2, %v3935_v19, 0.0  ;;  %vm881_vm2 = vcmp.eq.s32.totalorder %v876_v11, 1  ;;  %vm882_vm9 = vcmp.eq.s32.totalorder %v880_v55, 1 }
 0x144   : > { %v2318_v15 = vpop.permute.xlu1 %2317  ;;  %3635 = vmatpush1.msk.msra.mxu1 %vm239_vm0, %v655_v7  ;;  %v998_v19 = vrot.slane %v990_v2, %v4099_v63  ;;  %v994_v3 = vrot.slane %v990_v2, %v4092_v60  ;;  %v1115_v11 = vrot.slane %v4430_v18, %v4092_v60 }
 0x145   : > { %v4343_v16 = vpop.permute.xlu0 %1375  ;;  %v2322_v38 = vsel %vm2321_vm3, %v4120_v10, %v2318_v15  ;;  %v2323_v61 = vsel %vm2321_vm3, %v2318_v15, %v4033_v41  ;;  %v754_v10 = vrot.slane %v746_v9, %v4092_v60  ;;  %v758_v41 = vrot.slane %v750_v14, %v4092_v60  ;;  %vm2646_vm3 = vmand %vm4240_vm12, %vm4149_vm5  ;;  %v3637_v14 = vld [vmem:[%s4719_s2 + $0x20] sm:$0xff] }
 0x146   : > { %3636 = vmatmul.mubr.msk.f32.vlgmr.msra.gmra.mrb[0].mxu1 %vm331_vm15, %v3633_v12  ;;  %v2326_v33 = vsel %vm2310_vm7, %v2322_v38, 0.0  ;;  %v2327_v57 = vsel %vm2311_vm13, %v2323_v61, 0.0  ;;  %vm770_vm13 = vcmask 973824   ;;  %v2647_v24 = vsel %vm2646_vm3, 1, %v3829_v1 }
 0x147   : > { %852 = vmatprep.mubr.f32.mxu1 %v3828_v0  ;;  %3691 = vmatprep.subr.msk.mxu0 %vm239_vm0, %v2327_v57  ;;  %vm759_vm7 = vcmp.eq.s32.totalorder %v754_v10, 1  ;;  %vm760_vm1 = vcmp.eq.s32.totalorder %v758_v41, 1  ;;  %v2651_v7 = vrot.slane %v2647_v24, %v4092_v60  ;;  %vm2543_vm12 = vcmp.eq.s32.totalorder %v2538_v62, 1 }
 0x148   : > { %v4373_v31 = vpop.permute.xlu1 %1137  ;;  %3692 = vmatpush1.msk.msra.mxu0 %vm239_vm0, %v2326_v33  ;;  %vm2544_vm3 = vcmp.eq.s32.totalorder %v2542_v51, 1  ;;  %v1002_v33 = vrot.slane %v994_v3, %v4092_v60  ;;  %v1119_v10 = vrot.slane %v4430_v18, %v4099_v63 }
 0x149   : > { %v4376_v47 = vpop.permute.xlu0 %1495  ;;  %3695 = vmatprep.subr.msk.mxu0 %vm239_vm0, %v2439_v49 }
 0x14a   : > { %3693 = vmatmul.mubr.msk.f32.vlgmr.msra.gmra.mrb[0].mxu0 %vm331_vm15, %v3690_v21 }
 0x14b   : > { %3696 = vmatpush1.msk.msra.mxu0 %vm239_vm0, %v2438_v34  ;;  %2515 = vmatprep.mubr.f32.mxu0 %v3828_v0  ;;  %v3641_v34 = vld [vmem:[%s4719_s2 + $0x28] sm:$0xff] }
 0x14c   : > { %v767_v35 = vpop.permute.xlu1 %766 }
 0x14d   : > { %v889_v53 = vpop.permute.xlu0 %888  ;;  %v771_v50 = vsel %vm770_vm13, %v4137_v22, %v767_v35  ;;  %v772_v58 = vsel %vm770_vm13, %v767_v35, %v4046_v45  ;;  %v2655_v22 = vrot.slane %v2647_v24, %v4099_v63  ;;  %v3694_v45 = vld [vmem:[%s4719_s2 + $0x90] sm:$0xff] }
 0x14e   : > { %v894_v42 = vsel %vm4725_vm8, %v889_v53, %v4048_v46  ;;  %v775_v8 = vsel %vm759_vm7, %v771_v50, 0.0  ;;  %v776_v12 = vsel %vm760_vm1, %v772_v58, 0.0  ;;  %v893_v9 = vsel %vm4725_vm8, %v4214_v26, %v889_v53 }
 0x14f   : > { %3638 = vmatprep.subr.msk.mxu1 %vm239_vm0, %v776_v12  ;;  %v1006_v46 = vrot.slane %v998_v19, %v4092_v60  ;;  %v898_v15 = vsel %vm882_vm9, %v894_v42, 0.0  ;;  %vm1018_vm7 = vcmask 916480   ;;  %v897_v17 = vsel %vm881_vm2, %v893_v9, 0.0  ;;  %vm2767_vm9 = vmand %vm2413_vm10, %vm4069_vm11 }
 0x150   : > { %v4424_v20 = vpop.permute.xlu1 %2794  ;;  %3639 = vmatpush1.msk.msra.mxu1 %vm239_vm0, %v775_v8  ;;  %vm4745_vm1 = vcmask 1039360   ;;  %v2768_v28 = vsel %vm2767_vm9, 1, %v3829_v1  ;;  %vm1232_vm2 = vmand %vm4336_vm6, %vm4149_vm5  ;;  %v1123_v50 = vrot.slane %v1115_v11, %v4092_v60  ;;  %vm4726_vm6 = vcmask 908288  }
 0x151   : > { %v2551_v26 = vpop.permute.xlu0 %2550  ;;  %vm4746_vm8 = vmmov %vm4745_vm1  ;;  %3640 = vmatmul.mubr.msk.f32.vlgmr.msra.gmra.mrb[0].mxu1 %vm331_vm15, %v3637_v14  ;;  %3642 = vmatprep.subr.msk.mxu1 %vm239_vm0, %v898_v15  ;;  %v2772_v24 = vrot.slane %v2768_v28, %v4092_v60  ;;  %v2776_v62 = vrot.slane %v2768_v28, %v4099_v63  ;;  %v2888_v9 = vsel %vm2413_vm10, 1, %v3829_v1 }
 0x152   : > { %v2554_v38 = vsel %vm4745_vm1, %v4162_v44, %v2551_v26  ;;  %v2555_v61 = vsel %vm4746_vm8, %v2551_v26, %v4002_v29  ;;  %3643 = vmatpush1.msk.msra.mxu1 %vm239_vm0, %v897_v17  ;;  %3697 = vmatmul.mubr.msk.f32.vlgmr.msra.gmra.mrb[0].mxu0 %vm331_vm15, %v3694_v45  ;;  %v2659_v29 = vrot.slane %v2651_v7, %v4092_v60  ;;  %vm1008_vm8 = vcmp.eq.s32.totalorder %v1006_v46, 1  ;;  %v3646_v46 = vld [vmem:[%s4719_s2 + $0x30] sm:$0xff] }
 0x153   : > { %v2558_v57 = vsel %vm2543_vm12, %v2554_v38, 0.0  ;;  %v2559_v21 = vsel %vm2544_vm3, %v2555_v61, 0.0  ;;  %v2663_v44 = vrot.slane %v2655_v22, %v4092_v60  ;;  %974 = vmatprep.mubr.f32.mxu1 %v3828_v0  ;;  %2635 = vmatprep.mubr.f32.mxu0 %v3828_v0  ;;  %vm1007_vm12 = vcmp.eq.s32.totalorder %v1002_v33, 1 }
 0x154   : > { %3699 = vmatprep.subr.msk.mxu0 %vm239_vm0, %v2559_v21  ;;  %v2791_v41 = vpop.permute.xlu1 %2790  ;;  %vm2664_vm3 = vcmp.eq.s32.totalorder %v2659_v29, 1  ;;  %v2892_v17 = vrot.slane %v2888_v9, %v4092_v60 }
 0x155   : > { %3700 = vmatpush1.msk.msra.mxu0 %vm239_vm0, %v2558_v57  ;;  %v1015_v23 = vpop.permute.xlu0 %1014  ;;  %vm2665_vm1 = vcmp.eq.s32.totalorder %v2663_v44, 1 }
 0x156   : > { %v1020_v49 = vsel %vm1018_vm7, %v1015_v23, %v4187_v4  ;;  %v1019_v55 = vsel %vm1018_vm7, %v4272_v13, %v1015_v23  ;;  %v1127_v4 = vrot.slane %v1119_v10, %v4092_v60  ;;  %v1233_v13 = vsel %vm1232_vm2, 1, %v3829_v1 }
 0x157   : > { %v1024_v2 = vsel %vm1008_vm8, %v1020_v49, 0.0  ;;  %v1023_v35 = vsel %vm1007_vm12, %v1019_v55, 0.0  ;;  %v1241_v7 = vrot.slane %v1233_v13, %v4099_v63  ;;  %v1237_v15 = vrot.slane %v1233_v13, %v4092_v60  ;;  %vm4518_vm12 = vmand %vm2413_vm10, %vm4149_vm5 }
 0x158   : > { %3647 = vmatprep.subr.msk.mxu1 %vm239_vm0, %v1024_v2  ;;  %v1260_v51 = vpop.permute.xlu1 %1259  ;;  %vm1129_vm9 = vcmp.eq.s32.totalorder %v1127_v4, 1  ;;  %v2900_v28 = vrot.slane %v2892_v17, %v4092_v60  ;;  %v3009_v49 = vsel %vm4518_vm12, 1, %v3829_v1 }
 0x159   : > { %v2672_v19 = vpop.permute.xlu0 %2671  ;;  %3644 = vmatmul.mubr.msk.f32.vlgmr.msra.gmra.mrb[0].mxu1 %vm331_vm15, %v3641_v34  ;;  %v1249_v26 = vrot.slane %v1241_v7, %v4092_v60  ;;  %v1245_v23 = vrot.slane %v1237_v15, %v4092_v60  ;;  %v1357_v34 = vrot.slane %v4089_v59, %v4157_v39 }
 0x15a   : > { %v2675_v53 = vsel %vm528_vm14, %v4244_v52, %v2672_v19  ;;  %v2676_v3 = vsel %vm528_vm14, %v2672_v19, %v4211_v25  ;;  %3648 = vmatpush1.msk.msra.mxu1 %vm239_vm0, %v1023_v35  ;;  %3701 = vmatmul.mubr.msk.f32.vlgmr.msra.gmra.mrb[0].mxu0 %vm331_vm15, %v3698_v37  ;;  %v2780_v25 = vrot.slane %v2772_v24, %v4092_v60  ;;  %vm1128_vm14 = vcmp.eq.s32.totalorder %v1123_v50, 1  ;;  %v3650_v24 = vld [vmem:[%s4719_s2 + $0x38] sm:$0xff] }
 0x15b   : > { %v2679_v58 = vsel %vm2664_vm3, %v2675_v53, 0.0  ;;  %v2680_v42 = vsel %vm2665_vm1, %v2676_v3, 0.0  ;;  %v2784_v52 = vrot.slane %v2776_v62, %v4092_v60  ;;  %1100 = vmatprep.mubr.f32.mxu1 %v3828_v0  ;;  %2756 = vmatprep.mubr.f32.mxu0 %v3828_v0  ;;  %vm4749_vm3 = vcmask 982016  }
 0x15c   : > { %3703 = vmatprep.subr.msk.mxu0 %vm239_vm0, %v2680_v42  ;;  %v2915_v8 = vpop.permute.xlu1 %2914  ;;  %vm2785_vm8 = vcmp.eq.s32.totalorder %v2780_v25, 1  ;;  %vm4750_vm1 = vmmov %vm4749_vm3  ;;  %v3013_v62 = vrot.slane %v3009_v49, %v4092_v60  ;;  %v1365_v3 = vrot.slane %v1357_v34, %v4157_v39  ;;  %v1481_v25 = vrot.slane %v4040_v43, %v4160_v40 }
 0x15d   : > { %3704 = vmatpush1.msk.msra.mxu0 %vm239_vm0, %v2679_v58  ;;  %v1136_v12 = vpop.permute.xlu0 %1135  ;;  %vm2786_vm2 = vcmp.eq.s32.totalorder %v2784_v52, 1 }
 0x15e   : > { %v1141_v14 = vsel %vm4726_vm6, %v1136_v12, %v4373_v31  ;;  %v1140_v22 = vsel %vm4726_vm6, %v4292_v27, %v1136_v12  ;;  %v3702_v31 = vld [vmem:[%s4719_s2 + $0xa0] sm:$0xff]  ;;  %v2896_v27 = vrot.slane %v2888_v9, %v4099_v63  ;;  %vm1251_vm6 = vcmp.eq.s32.totalorder %v1249_v26, 1 }
 0x15f   : > { %v1145_v45 = vsel %vm1129_vm9, %v1141_v14, 0.0  ;;  %v1144_v57 = vsel %vm1128_vm14, %v1140_v22, 0.0  ;;  %vm1261_vm9 = vcmask 900096   ;;  %vm1250_vm14 = vcmp.eq.s32.totalorder %v1245_v23, 1 }
 0x160   : > { %3651 = vmatprep.subr.msk.mxu1 %vm239_vm0, %v1145_v45  ;;  %v2911_v38 = vpop.permute.xlu1 %2910  ;;  %v3021_v42 = vrot.slane %v3013_v62, %v4092_v60  ;;  %v3654_v45 = vld [vmem:[%s4719_s2 + $0x40] sm:$0xff]  ;;  %v1489_v15 = vrot.slane %v1481_v25, %v4157_v39 }
 0x161   : > { %v2793_v61 = vpop.permute.xlu0 %2792  ;;  %3649 = vmatmul.mubr.msk.f32.vlgmr.msra.gmra.mrb[0].mxu1 %vm331_vm15, %v3646_v46  ;;  %v1477_v46 = vrot.slane %v4040_v43, %v4157_v39 }
 0x162   : > { %v2796_v21 = vsel %vm4749_vm3, %v2791_v41, %v2793_v61  ;;  %v2797_v29 = vsel %vm4750_vm1, %v2793_v61, %v4424_v20  ;;  %3652 = vmatpush1.msk.msra.mxu1 %vm239_vm0, %v1144_v57  ;;  %3705 = vmatmul.mubr.msk.f32.vlgmr.msra.gmra.mrb[0].mxu0 %vm331_vm15, %v3702_v31  ;;  %v2904_v41 = vrot.slane %v2896_v27, %v4092_v60  ;;  %vm3026_vm3 = vcmp.eq.s32.totalorder %v3021_v42, 1 }
 0x163   : > { %v2800_v44 = vsel %vm2785_vm8, %v2796_v21, 0.0  ;;  %v2801_v10 = vsel %vm2786_vm2, %v2797_v29, 0.0  ;;  %1221 = vmatprep.mubr.f32.mxu1 %v3828_v0  ;;  %v1361_v20 = vrot.slane %v4089_v59, %v4160_v40  ;;  %2877 = vmatprep.mubr.f32.mxu0 %v3828_v0  ;;  %vm4554_vm8 = vmand %vm2413_vm10, %vm4230_vm4  ;;  %vm2905_vm2 = vcmp.eq.s32.totalorder %v2900_v28, 1  ;;  %v3706_v59 = vld [vmem:[%s4719_s2 + $0xa8] sm:$0xff] }
 0x164   : > { %3707 = vmatprep.subr.msk.mxu0 %vm239_vm0, %v2801_v10  ;;  %v1380_v11 = vpop.permute.xlu1 %1379  ;;  %vm2906_vm12 = vcmp.eq.s32.totalorder %v2904_v41, 1  ;;  %vm3130_vm10 = vmand %vm4554_vm8, %vm4069_vm11  ;;  %vm1381_vm4 = vcmask 523264   ;;  %vm4753_vm11 = vcmask 965632   ;;  %v1485_v21 = vrot.slane %v1477_v46, %v4157_v39 }
 0x165   : > { %3708 = vmatpush1.msk.msra.mxu0 %vm239_vm0, %v2800_v44  ;;  %v1258_v55 = vpop.permute.xlu0 %1257  ;;  %v3131_v12 = vsel %vm3130_vm10, 1, %v3829_v1  ;;  %v1601_v10 = vrot.slane %v4430_v18, %v4160_v40  ;;  %v3251_v41 = vsel %vm4554_vm8, 1, %v3829_v1  ;;  %v3714_v40 = vld [vmem:[%s4719_s2 + $0xb8] sm:$0xff] }
 0x166   : > { %v1263_v2 = vsel %vm1261_vm9, %v1258_v55, %v1260_v51  ;;  %v1262_v37 = vsel %vm1261_vm9, %v4316_v48, %v1258_v55  ;;  %v1369_v48 = vrot.slane %v1361_v20, %v4157_v39  ;;  %v3017_v51 = vrot.slane %v3009_v49, %v4099_v63  ;;  %v3658_v55 = vld [vmem:[%s4719_s2 + $0x48] sm:$0xff] }
 0x167   : > { %v1267_v4 = vsel %vm1251_vm6, %v1263_v2, 0.0  ;;  %v1266_v35 = vsel %vm1250_vm14, %v1262_v37, 0.0  ;;  %vm1370_vm6 = vcmp.eq.s32.totalorder %v1365_v3, 1  ;;  %v3139_v26 = vrot.slane %v3131_v12, %v4099_v63  ;;  %vm4754_vm14 = vmmov %vm4753_vm11 }
 0x168   : > { %3655 = vmatprep.subr.msk.mxu1 %vm239_vm0, %v1267_v4  ;;  %v3036_v19 = vpop.permute.xlu1 %3035  ;;  %v3025_v7 = vrot.slane %v3017_v51, %v4092_v60  ;;  %vm1490_vm10 = vcmp.eq.s32.totalorder %v1485_v21, 1  ;;  %v1609_v2 = vrot.slane %v1601_v10, %v4157_v39  ;;  %v3259_v34 = vrot.slane %v3251_v41, %v4099_v63 }
 0x169   : > { %v2913_v32 = vpop.permute.xlu0 %2912  ;;  %3653 = vmatmul.mubr.msk.f32.vlgmr.msra.gmra.mrb[0].mxu1 %vm331_vm15, %v3650_v24  ;;  %v3147_v44 = vrot.slane %v3139_v26, %v4092_v60 }
 0x16a   : > { %v2916_v36 = vsel %vm770_vm13, %v2911_v38, %v2913_v32  ;;  %v2917_v53 = vsel %vm770_vm13, %v2913_v32, %v2915_v8  ;;  %3656 = vmatpush1.msk.msra.mxu1 %vm239_vm0, %v1266_v35  ;;  %3709 = vmatmul.mubr.msk.f32.vlgmr.msra.gmra.mrb[0].mxu0 %vm331_vm15, %v3706_v59  ;;  %vm1371_vm13 = vcmp.eq.s32.totalorder %v1369_v48, 1  ;;  %vm3027_vm1 = vcmp.eq.s32.totalorder %v3025_v7, 1 }
 0x16b   : > { %v2920_v50 = vsel %vm2905_vm2, %v2916_v36, 0.0  ;;  %v2921_v58 = vsel %vm2906_vm12, %v2917_v53, 0.0  ;;  %1343 = vmatprep.mubr.f32.mxu1 %v3828_v0  ;;  %2997 = vmatprep.mubr.f32.mxu0 %v3828_v0  ;;  %vm1501_vm2 = vcmask 515072   ;;  %vm1491_vm12 = vcmp.eq.s32.totalorder %v1489_v15, 1 }
 0x16c   : > { %3711 = vmatprep.subr.msk.mxu0 %vm239_vm0, %v2921_v58  ;;  %v3032_v52 = vpop.permute.xlu1 %3031  ;;  %v3267_v51 = vrot.slane %v3259_v34, %v4092_v60  ;;  %v1597_v32 = vrot.slane %v4430_v18, %v4157_v39  ;;  %v3718_v58 = vld [vmem:[%s4719_s2 + $0xc0] sm:$0xff]  ;;  %v1717_v15 = vrot.slane %v4040_v43, %v4111_v5 }
 0x16d   : > { %3712 = vmatpush1.msk.msra.mxu0 %vm239_vm0, %v2920_v50  ;;  %v1378_v8 = vpop.permute.xlu0 %1377  ;;  %v3662_v50 = vld [vmem:[%s4719_s2 + $0x50] sm:$0xff] }
 0x16e   : > { %v1383_v9 = vsel %vm1381_vm4, %v1378_v8, %v1380_v11  ;;  %v1382_v14 = vsel %vm1381_vm4, %v4343_v16, %v1378_v8  ;;  %v3135_v16 = vrot.slane %v3131_v12, %v4092_v60  ;;  %v1605_v42 = vrot.slane %v1597_v32, %v4157_v39 }
 0x16f   : > { %v1387_v22 = vsel %vm1371_vm13, %v1383_v9, 0.0  ;;  %v1386_v27 = vsel %vm1370_vm6, %v1382_v14, 0.0  ;;  %vm3149_vm13 = vcmp.eq.s32.totalorder %v3147_v44, 1  ;;  %vm1621_vm6 = vcmask 506880  }
 0x170   : > { %3659 = vmatprep.subr.msk.mxu1 %vm239_vm0, %v1387_v22  ;;  %v1500_v31 = vpop.permute.xlu1 %1499  ;;  %v3143_v29 = vrot.slane %v3135_v16, %v4092_v60 }
 0x171   : > { %v3034_v17 = vpop.permute.xlu0 %3033  ;;  %3657 = vmatmul.mubr.msk.f32.vlgmr.msra.gmra.mrb[0].mxu1 %vm331_vm15, %v3654_v45  ;;  %v3666_v45 = vld [vmem:[%s4719_s2 + $0x58] sm:$0xff] }
 0x172   : > { %v3037_v38 = vsel %vm4753_vm11, %v3032_v52, %v3034_v17  ;;  %v3038_v61 = vsel %vm4754_vm14, %v3034_v17, %v3036_v19  ;;  %3660 = vmatpush1.msk.msra.mxu1 %vm239_vm0, %v1386_v27  ;;  %3713 = vmatmul.mubr.msk.f32.vlgmr.msra.gmra.mrb[0].mxu0 %vm331_vm15, %v3710_v54  ;;  %vm3148_vm4 = vcmp.eq.s32.totalorder %v3143_v29, 1  ;;  %v3255_v19 = vrot.slane %v3251_v41, %v4092_v60 }
 0x173   : > { %v3041_v33 = vsel %vm3026_vm3, %v3037_v38, 0.0  ;;  %v3042_v57 = vsel %vm3027_vm1, %v3038_v61, 0.0  ;;  %1463 = vmatprep.mubr.f32.mxu1 %v3828_v0  ;;  %3118 = vmatprep.mubr.f32.mxu0 %v3828_v0  ;;  %vm1611_vm3 = vcmp.eq.s32.totalorder %v1609_v2, 1  ;;  %vm3269_vm1 = vcmp.eq.s32.totalorder %v3267_v51, 1 }
 0x174   : > { %3715 = vmatprep.subr.msk.mxu0 %vm239_vm0, %v3042_v57  ;;  %v3158_v23 = vpop.permute.xlu1 %3157  ;;  %v3263_v18 = vrot.slane %v3255_v19, %v4092_v60  ;;  %vm1610_vm11 = vcmp.eq.s32.totalorder %v1605_v42, 1  ;;  %v1725_v38 = vrot.slane %v1717_v15, %v4111_v5  ;;  %v3726_v5 = vld [vmem:[%s4719_s2 + $0xd0] sm:$0xff] }
 0x175   : > { %3716 = vmatpush1.msk.msra.mxu0 %vm239_vm0, %v3041_v33  ;;  %v1498_v28 = vpop.permute.xlu0 %1497 }
 0x176   : > { %v1503_v20 = vsel %vm1501_vm2, %v1498_v28, %v1500_v31  ;;  %v1502_v49 = vsel %vm1501_vm2, %v4376_v47, %v1498_v28  ;;  %vm1741_vm2 = vcmask 457728  }
 0x177   : > { %v1507_v11 = vsel %vm1491_vm12, %v1503_v20, 0.0  ;;  %v1506_v47 = vsel %vm1490_vm10, %v1502_v49, 0.0  ;;  %vm1731_vm12 = vcmp.eq.s32.totalorder %v1729_v56, 1 }
 0x178   : > { %3663 = vmatprep.subr.msk.mxu1 %vm239_vm0, %v1507_v11  ;;  %v3154_v37 = vpop.permute.xlu1 %3153 }
 0x179   : > { %v3156_v4 = vpop.permute.xlu0 %3155  ;;  %3661 = vmatmul.mubr.msk.f32.vlgmr.msra.gmra.mrb[0].mxu1 %vm331_vm15, %v3658_v55 }
 0x17a   : > { %v3159_v24 = vsel %vm1018_vm7, %v3154_v37, %v3156_v4  ;;  %v3160_v62 = vsel %vm1018_vm7, %v3156_v4, %v3158_v23  ;;  %3664 = vmatpush1.msk.msra.mxu1 %vm239_vm0, %v1506_v47  ;;  %3717 = vmatmul.mubr.msk.f32.vlgmr.msra.gmra.mrb[0].mxu0 %vm331_vm15, %v3714_v40  ;;  %vm3371_vm7 = vmand %vm4554_vm8, %vm4149_vm5  ;;  %vm4755_vm5 = vcmask 908288   ;;  %vm3268_vm8 = vcmp.eq.s32.totalorder %v3263_v18, 1 }
 0x17b   : > { %v3163_v59 = vsel %vm3148_vm4, %v3159_v24, 0.0  ;;  %v3164_v48 = vsel %vm3149_vm13, %v3160_v62, 0.0  ;;  %1583 = vmatprep.mubr.f32.mxu1 %v3828_v0  ;;  %3240 = vmatprep.mubr.f32.mxu0 %v3828_v0  ;;  %v3372_v25 = vsel %vm3371_vm7, 1, %v3829_v1  ;;  %vm4756_vm14 = vmmov %vm4755_vm5  ;;  %vm1730_vm13 = vcmp.eq.s32.totalorder %v1725_v38, 1 }
 0x17c   : > { %3719 = vmatprep.subr.msk.mxu0 %vm239_vm0, %v3164_v48  ;;  %v1620_v35 = vpop.permute.xlu1 %1619  ;;  %v3380_v6 = vrot.slane %v3372_v25, %v4099_v63  ;;  %v3722_v63 = vld [vmem:[%s4719_s2 + $0xc8] sm:$0xff]  ;;  %v3376_v54 = vrot.slane %v3372_v25, %v4092_v60 }
 0x17d   : > { %3720 = vmatpush1.msk.msra.mxu0 %vm239_vm0, %v3163_v59  ;;  %v1618_v36 = vpop.permute.xlu0 %1617 }
 0x17e   : > { %v1623_v53 = vsel %vm1621_vm6, %v1618_v36, %v1620_v35  ;;  %v3388_v46 = vrot.slane %v3380_v6, %v4092_v60  ;;  %v3384_v27 = vrot.slane %v3376_v54, %v4092_v60 }
 0x17f   : > { %v1627_v3 = vsel %vm1611_vm3, %v1623_v53, 0.0 }
 0x180   : > { %3667 = vmatprep.subr.msk.mxu1 %vm239_vm0, %v1627_v3  ;;  %v3278_v13 = vpop.permute.xlu1 %3277  ;;  %vm3390_vm10 = vcmp.eq.s32.totalorder %v3388_v46, 1  ;;  %vm3389_vm4 = vcmp.eq.s32.totalorder %v3384_v27, 1 }
 0x181   : > { %v3276_v7 = vpop.permute.xlu0 %3275  ;;  %3665 = vmatmul.mubr.msk.f32.vlgmr.msra.gmra.mrb[0].mxu1 %vm331_vm15, %v3662_v50 }
 0x182   : > { %v3280_v52 = vsel %vm4755_vm5, %v3276_v7, %v3278_v13  ;;  %3721 = vmatmul.mubr.msk.f32.vlgmr.msra.gmra.mrb[0].mxu0 %vm331_vm15, %v3718_v58  ;;  %1703 = vmatprep.mubr.f32.mxu1 %v3828_v0 }
 0x183   : > { %v3284_v8 = vsel %vm3269_vm1, %v3280_v52, 0.0  ;;  %3360 = vmatprep.mubr.f32.mxu0 %v3828_v0 }
 0x184   : > { %3723 = vmatprep.subr.msk.mxu0 %vm239_vm0, %v3284_v8  ;;  %v3274_v1 = vpop.permute.xlu1 %3273 }
 0x185   : > { %v1616_v39 = vpop.permute.xlu0 %1615  ;;  %v3279_v12 = vsel %vm4756_vm14, %v3274_v1, %v3276_v7 }
 0x186   : > { %v1622_v9 = vsel %vm1621_vm6, %v1616_v39, %v1618_v36  ;;  %v3283_v14 = vsel %vm3268_vm8, %v3279_v12, 0.0 }
 0x187   : > { %v1626_v22 = vsel %vm1610_vm11, %v1622_v9, 0.0  ;;  %3724 = vmatpush1.msk.msra.mxu0 %vm239_vm0, %v3283_v14 }
 0x188   : > { %3668 = vmatpush1.msk.msra.mxu1 %vm239_vm0, %v1626_v22  ;;  %v1740_v16 = vpop.permute.xlu1 %1739 }
 0x189   : > { %v1738_v26 = vpop.permute.xlu0 %1737  ;;  %3669 = vmatmul.mubr.msk.f32.vlgmr.msra.gmra.mrb[0].mxu1 %vm331_vm15, %v3666_v45 }
 0x18a   : > { %v1743_v31 = vsel %vm1741_vm2, %v1738_v26, %v1740_v16  ;;  %3725 = vmatmul.mubr.msk.f32.vlgmr.msra.gmra.mrb[0].mxu0 %vm331_vm15, %v3722_v63  ;;  %1823 = vmatprep.mubr.f32.mxu1 %v3828_v0 }
 0x18b   : > { %v1747_v17 = vsel %vm1731_vm12, %v1743_v31, 0.0  ;;  %3481 = vmatprep.mubr.f32.mxu0 %v3828_v0  ;;  %v3670_v0 = vld [vmem:[%s4719_s2 + $0x60] sm:$0xff] }
 0x18c   : > { %3671 = vmatprep.subr.msk.mxu1 %vm239_vm0, %v1747_v17  ;;  %v3399_v43 = vpop.permute.xlu1 %3398 }
 0x18d   : > { %v3397_v61 = vpop.permute.xlu0 %3396 }
 0x18e   : > { %v3401_v33 = vsel %vm1261_vm9, %v3397_v61, %v3399_v43 }
 0x18f   : > { %v3405_v57 = vsel %vm3390_vm10, %v3401_v33, 0.0 }
 0x190   : > { %3727 = vmatprep.subr.msk.mxu0 %vm239_vm0, %v3405_v57  ;;  %v3395_v21 = vpop.permute.xlu1 %3394 }
 0x191   : > { %v1736_v29 = vpop.permute.xlu0 %1735  ;;  %v3400_v44 = vsel %vm1261_vm9, %v3395_v21, %v3397_v61 }
 0x192   : > { %v1742_v60 = vsel %vm1741_vm2, %v1736_v29, %v1738_v26  ;;  %v3404_v10 = vsel %vm3389_vm4, %v3400_v44, 0.0 }
 0x193   : > { %v1746_v23 = vsel %vm1730_vm13, %v1742_v60, 0.0  ;;  %3728 = vmatpush1.msk.msra.mxu0 %vm239_vm0, %v3404_v10 }
 0x194   : > { %3672 = vmatpush1.msk.msra.mxu1 %vm239_vm0, %v1746_v23  ;;  %3729 = vmatmul.mubr.msk.f32.vlgmr.msra.gmra.mrb[0].mxu0 %vm331_vm15, %v3726_v5 }
 0x195   : > { %3673 = vmatmul.mubr.msk.f32.vlgmr.msra.gmra.mrb[0].mxu1 %vm331_vm15, %v3670_v0 }
 0x1a2   : > { %v3494_v28 = vpop.permute.xlu0 %3493 }
 0x267   : > { %v3483_v20 = vpop.f32.mrb[0].mxu0 }
 0x268   : > { %v1825_v41 = vpop.f32.mrb[0].mxu1  ;;  %v3485_v55 = vpop.f32.mrb[1].mxu0 }
 0x269   : > { %v3735_v49 = vadd.f32 %v3483_v20, %v1825_v41  ;;  %v1827_v11 = vpop.f32.mrb[1].mxu1 }
 0x26a   : > { %v3736_v40 = vadd.f32 %v3485_v55, %v1827_v11 }
 0x26b   : > { %v3496_v2 = vadd.f32 %v3735_v49, %v3494_v28 }
 0x26c   : > { %v3497_v34 = vadd.f32 %v3736_v40, %v3494_v28 }
 0x26d   : > { %3516 = vst [vmem:[%s232_s9] sm:$0xff] %v3496_v2 }
 0x26e   : > { %3517 = vst [vmem:[%s232_s9 + $0x8] sm:$0xff] %v3497_v34  ;;  %v3498_v37 = vadd.f32 %v3497_v34, %v3496_v2 }
 0x270   : > { %3499 = vadd.xlane.f32.xlu1 %v3498_v37 }
 0x2fd   : > { %v3500_v4 = vpop.xlane.xlu1 %3499 }
 0x2fe   : > { %v3501_v47 = vmul.f32 0.00390625, %v3500_v4 }
 0x300   : > { %v3502_v24 = vsub.f32 %v3496_v2, %v3501_v47  ;;  %v3503_v62 = vsub.f32 %v3497_v34, %v3501_v47 }
 0x302   : > { %v3504_v59 = vmul.f32 %v3502_v24, %v3502_v24  ;;  %v3505_v48 = vmul.f32 %v3503_v62, %v3503_v62 }
 0x304   : > { %v3506_v51 = vadd.f32 %v3505_v48, %v3504_v59 }
 0x306   : > { %3507 = vadd.xlane.f32.xlu0 %v3506_v51 }
 0x393   : > { %v3508_v19 = vpop.xlane.xlu0 %3507 }
 0x394   : > { %v3509_v32 = vmul.f32 0.00390625, %v3508_v19 }
 0x396   : > { %v3510_v35 = vadd.f32 1e-05, %v3509_v32 }
 0x398   : > { %3818 = vrsqrt.f32 %v3510_v35 }
 0x3a2   : > { %v3819_v36 = vpop.eup %3818 }
 0x3a3   : > { %v3512_v53 = vmul.f32 %v3819_v36, %v3502_v24  ;;  %v3513_v3 = vmul.f32 %v3819_v36, %v3503_v62 }
 0x3a5   : > { %v3514_v50 = vmax.f32 %v3512_v53, 0.0  ;;  %v3515_v18 = vmax.f32 %v3513_v3, 0.0 }
 0x3a7   : > { %3518 = vst [vmem:[%s237_s12] sm:$0xff] %v3514_v50  ;;  %3519 = vst [vmem:[%s237_s12 + $0x8] sm:$0xff] %v3515_v18 }
 0x3a8 PF: > { %s16_s18 = sadd.s32 1, %s3826_s18  }
 0x3a9   : > { %p13_p4 = scmp.ge.s32.totalorder %s16_s18, 4  }
 0x3ab   :  { %15 = sbr.rel (!%p13_p4) target bundleno = 1 (0x1), region = 104 }

// kernel: down_forward.7
= control target key start
LH: loop header
LB: loop body
LE: loop exit
PB: predicated region body
PF: predicated region fallthrough
CT: control target
= control target key end

     0   :  { %s3589_s18 = smov 0   ;;  %s4398_s0 = inlined_call_operand.vmem [shape: f32[2,8,256], index: 0, kind: input, shape index: {}]   ;;  %s4399_s1 = inlined_call_operand.vmem [shape: s32[3,256], index: 1, kind: input, shape index: {}]   ;;  %s4400_s2 = inlined_call_operand.vmem [shape: f32[27,8,8], index: 2, kind: input, shape index: {}]   ;;  %s4401_s3 = inlined_call_operand.vmem [shape: f32[8,1], index: 3, kind: input, shape index: {}]   ;;  %s4402_s4 = inlined_call_operand.vmem [shape: f32[2,8,256], index: 4, kind: input, shape index: {}]   ;;  %s4403_s5 = inlined_call_operand.vmem [shape: f32[2,8,256], index: 5, kind: output, shape index: {}]  }
   0x1 LB: > { %s3322_s19 = sadd.s32 4294967295, %s3537_s18   ;;  %p3326_p0 = scmp.ge.s32.totalorder %s3537_s18, 1  ;;  %s3537_s18 = sphi %s3589_s18, %s15_s18  }
   0x2   : > { %p197_p1 = scmp.lt.s32.totalorder %s3537_s18, 3 }
   0x4   : > { %p198_p2 = pnand %p3326_p0, %p197_p1 }
   0x5   : > { %p230_p3 = scmp.lt.s32.totalorder (!%p198_p2), %s3322_s19, 1  ;;  %v3539_v0 = vmov (!%p198_p2), 0.0   ;;  %s3540_s24 = smov (!%p198_p2), 73   ;;  %vm248_vm0 = vcmask (!%p198_p2), 146432   ;;  %vm263_vm1 = vcmask (!%p198_p2), 1048136   ;;  %vm258_vm2 = vcmask (!%p198_p2), 596992  }
   0x6   : > { %201 = sbr.rel (%p198_p2) target bundleno = 942 (0x3ae), region = 40  ;;  %245 = vst [vmem:[#allocation2] sm:$0xff] (!%p198_p2), %v3539_v0  ;;  %247 = vst [vmem:[#allocation2 + $0x10] sm:$0xff] (!%p198_p2), %v3539_v0  ;;  %1788 = vmatprep.mubr.f32.mxu0 (!%p198_p2), %v3539_v0  ;;  %408 = vmatprep.mubr.f32.mxu1 (!%p198_p2), %v3539_v0  ;;  %s3541_s25 = smov (!%p198_p2), 55   ;;  %v3548_v8 = vmov (!%p198_p2), 0   ;;  %v281_v26 = vlaneseq (!%p198_p2)  ;;  %v3223_v47 = vld [vmem:[%s4401_s3] sm:$0xff] (!%p198_p2) }
   0x7   : > { %249 = vst.msk [vmem:[#allocation2 + $0x18] sm:$0xff] (!%p198_p2), %vm248_vm0, %v3539_v0  ;;  %s3542_s26 = smov (!%p198_p2), 127   ;;  %s3543_s27 = smov (!%p198_p2), 54   ;;  %3527 = vset.pattern.permute.xlu1 (!%p198_p2), %v3548_v8  ;;  %3528 = vset.pattern.permute.xlu0 (!%p198_p2), %v3548_v8  ;;  %v3759_v19 = vld [vmem:[%s4399_s1] sm:$0x77] (!%p198_p2)  ;;  %vm1716_vm11 = vcmask (!%p198_p2), 449536  }
   0x8   : > { %s3544_s28 = smov (!%p198_p2), 48   ;;  %s3545_s29 = smov (!%p198_p2), 126   ;;  %vm270_vm3 = vcmp.ge.s32.totalorder (!%p198_p2), %v3759_v19, 1  ;;  %vm489_vm4 = vcmp.lt.s32.totalorder (!%p198_p2), %v3759_v19, 7  ;;  %v3800_v31 = vshrl.u32 (!%p198_p2), %v281_v26, 7  ;;  %vm340_vm12 = vcmask (!%p198_p2), 64512  }
   0x9   : > { %s3546_s30 = smov (!%p198_p2), 47   ;;  %s3547_s6 = smov (!%p198_p2), 120   ;;  %v3776_v22 = vsel (!%p198_p2), %vm270_vm3, 1, %v3548_v8  ;;  %v3805_v32 = vsel (!%p198_p2), %vm489_vm4, 1, %v3548_v8  ;;  %v3388_v63 = vld [vmem:[%s4400_s2 + $0x68] sm:$0xff] (!%p198_p2)  ;;  %vm331_vm14 = vcmask (!%p198_p2), 1039360  }
   0xa   : > { %s3549_s7 = smov (!%p198_p2), 119   ;;  %s3550_s8 = smov (!%p198_p2), 118   ;;  %v3333_v25 = vrot.slane (!%p198_p2), %v3776_v22, 9  ;;  %v3334_v29 = vrot.slane (!%p198_p2), %v3776_v22, 10  ;;  %v3342_v37 = vrot.slane (!%p198_p2), %v3805_v32, 10  ;;  %v3827_v38 = vsub.s32 (!%p198_p2), 4, %v3800_v31 }
   0xb   : > { %s3551_s9 = smov (!%p198_p2), 46   ;;  %s3552_s10 = smov (!%p198_p2), 112   ;;  %v3838_v41 = vsub.s32 (!%p198_p2), 0, %v3800_v31  ;;  %v1605_v46 = vsub.s32 (!%p198_p2), 6, %v3800_v31  ;;  %v3865_v51 = vsub.s32 (!%p198_p2), 2, %v3800_v31  ;;  %v3909_v35 = vsub.s32 (!%p198_p2), 1, %v3800_v31 }
   0xc   : > { %s3553_s11 = smov (!%p198_p2), 111   ;;  %s3554_s12 = smov (!%p198_p2), 110   ;;  %vm3792_vm5 = vcmp.ne.s32.totalorder (!%p198_p2), %v3333_v25, 0  ;;  %vm3819_vm7 = vcmp.ne.s32.totalorder (!%p198_p2), %v3334_v29, 0  ;;  %vm3848_vm9 = vcmp.ne.s32.totalorder (!%p198_p2), %v3342_v37, 0 }
   0xd   : > { %s4435_s19 = smov (!%p230_p3, %s3322_s19), 1  ;;  %s3555_s13 = smov 64   ;;  %vm3815_vm6 = vmand %vm270_vm3, %vm3792_vm5  ;;  %v1804_v55 = vrot.slane %v3805_v32, %v1605_v46  ;;  %v1800_v59 = vrot.slane %v3805_v32, %v3865_v51 }
   0xe   : > { %s3601_s20 = sshll.u32 %s4435_s19, 4  ;;  %v3649_v9 = vld [vmem:[#allocation2 + $0x18] sm:$0xff]  ;;  %s3556_s14 = smov 63   ;;  %vm279_vm8 = vmand %vm3815_vm6, %vm3819_vm7  ;;  %v3843_v42 = vsel %vm3815_vm6, 1, %v3548_v8 }
   0xf   : > { %s234_s23 = scalar_lea.vmem %s4398_s0, %s3601_s20  ;;  %s3557_s15 = smov 62   ;;  %v280_v43 = vsel %vm279_vm8, 1, %v3548_v8  ;;  %v311_v45 = vrot.slane %v3843_v42, %v3827_v38  ;;  %v307_v50 = vrot.slane %v3843_v42, %v3838_v41  ;;  %vm494_vm10 = vmand %vm3815_vm6, %vm3848_vm9  ;;  %v1808_v29 = vrot.slane %v1800_v59, %v3865_v51 }
  0x10   : > { %v250_v1 = vld [vmem:[%s234_s23] sm:$0xff]  ;;  %v251_v2 = vld [vmem:[%s234_s23 + $0x8] sm:$0xff]  ;;  %s3558_s19 = smov 56   ;;  %v288_v52 = vrot.slane %v280_v43, %v3827_v38  ;;  %v284_v53 = vrot.slane %v280_v43, %v3838_v41  ;;  %v495_v60 = vsel %vm494_vm10, 1, %v3548_v8  ;;  %vm3893_vm13 = vmand %vm489_vm4, %vm3792_vm5  ;;  %vm1821_vm6 = vcmask 441344  }
  0x11   : > { %254 = vrot.lane.b32.xlu0 %v250_v1, %s3540_s24  ;;  %v319_v54 = vrot.slane %v311_v45, %v3838_v41  ;;  %v315_v58 = vrot.slane %v307_v50, %v3838_v41  ;;  %v1907_v37 = vsel %vm3893_vm13, 1, %v3548_v8  ;;  %vm4405_vm13 = vcmp.lt.s32.totalorder %v3759_v19, 3 }
  0x12   : > { %v296_v1 = vrot.slane %v288_v52, %v3838_v41 }
  0x13   : > { %vm321_vm15 = vcmp.eq.s32.totalorder %v319_v54, 1  ;;  %vm320_vm0 = vcmp.eq.s32.totalorder %v315_v58, 1  ;;  %v1911_v58 = vrot.slane %v1907_v37, %v3909_v35 }
  0x15   : > { %256 = vrot.lane.b32.xlu0 %v251_v2, %s3540_s24  ;;  %v1919_v30 = vrot.slane %v1911_v58, %v3909_v35 }
  0x83   : > { %v255_v3 = vpop.permute.xlu0 %254 }
  0x84   : > { %264 = vst.msk [vmem:[#allocation2] sm:$0xff] %vm263_vm1, %v255_v3  ;;  %vm298_vm1 = vcmp.eq.s32.totalorder %v296_v1, 1 }
  0x87   : > { %v257_v4 = vpop.permute.xlu0 %256 }
  0x88   : > { %v3608_v5 = vsel %vm258_vm2, %v255_v3, %v257_v4  ;;  %266 = vst.msk [vmem:[#allocation2 + $0x10] sm:$0xff] %vm258_vm2, %v257_v4  ;;  %v292_v3 = vrot.slane %v284_v53, %v3838_v41  ;;  %v3359_v4 = vrot.slane %v3805_v32, 9  ;;  %vm3926_vm2 = vmand %vm270_vm3, %vm3819_vm7 }
  0x89   : > { %v606_v59 = vsel %vm3926_vm2, 1, %v3548_v8  ;;  %vm3976_vm2 = vmand %vm4405_vm13, %vm3792_vm5 }
  0x8a   : > { %vm297_vm8 = vcmp.eq.s32.totalorder %v292_v3, 1  ;;  %vm3932_vm10 = vcmp.ne.s32.totalorder %v3359_v4, 0  ;;  %v614_v2 = vrot.slane %v606_v59, %v3827_v38  ;;  %vm2239_vm5 = vmand %vm3976_vm2, %vm3819_vm7 }
  0x8b   : > { %v3610_v6 = vld [vmem:[#allocation2] sm:$0xff] }
  0x8c   : > { %1710 = vrot.lane.b32.xlu0 %v3610_v6, %s3541_s25 }
  0x8f   : > { %v3614_v7 = vld [vmem:[#allocation2 + $0x10] sm:$0xff] }
  0x90   : > { %329 = vrot.lane.b32.xlu0 %v3614_v7, %s3542_s26  ;;  %1714 = vrot.lane.b32.xlu1 %v3614_v7, %s3541_s25 }
  0x94   : > { %1819 = vrot.lane.b32.xlu0 %v3614_v7, %s3543_s27  ;;  %325 = vrot.lane.b32.xlu1 %v3610_v6, %s3542_s26 }
  0x98   : > { %1815 = vrot.lane.b32.xlu0 %v3610_v6, %s3543_s27  ;;  %1926 = vrot.lane.b32.xlu1 %v3610_v6, %s3544_s28 }
  0x9c   : > { %1930 = vrot.lane.b32.xlu0 %v3614_v7, %s3544_s28  ;;  %518 = vrot.lane.b32.xlu1 %v3614_v7, %s3545_s29 }
  0xa0   : > { %514 = vrot.lane.b32.xlu0 %v3610_v6, %s3545_s29  ;;  %2039 = vrot.lane.b32.xlu1 %v3614_v7, %s3546_s30 }
  0xa4   : > { %625 = vrot.lane.b32.xlu0 %v3610_v6, %s3547_s6  ;;  %2035 = vrot.lane.b32.xlu1 %v3610_v6, %s3546_s30 }
  0xa8   : > { %734 = vrot.lane.b32.xlu0 %v3610_v6, %s3549_s7  ;;  %629 = vrot.lane.b32.xlu1 %v3614_v7, %s3547_s6 }
  0xac   : > { %849 = vrot.lane.b32.xlu0 %v3614_v7, %s3550_s8  ;;  %2150 = vrot.lane.b32.xlu1 %v3614_v7, %s3551_s9 }
  0xb0   : > { %2368 = vrot.lane.b32.xlu0 %v3649_v9, %s3542_s26  ;;  %2146 = vrot.lane.b32.xlu1 %v3610_v6, %s3551_s9 }
  0xb4   : > { %964 = vrot.lane.b32.xlu0 %v3614_v7, %s3552_s10  ;;  %738 = vrot.lane.b32.xlu1 %v3614_v7, %s3549_s7 }
  0xb8   : > { %2478 = vrot.lane.b32.xlu0 %v3649_v9, %s3545_s29  ;;  %1712 = vrot.lane.b32.xlu1 %v3608_v5, %s3541_s25 }
  0xbc   : > { %1074 = vrot.lane.b32.xlu0 %v3614_v7, %s3553_s11  ;;  %327 = vrot.lane.b32.xlu1 %v3608_v5, %s3542_s26 }
  0xc0   : > { %2588 = vrot.lane.b32.xlu0 %v3649_v9, %s3547_s6  ;;  %1817 = vrot.lane.b32.xlu1 %v3608_v5, %s3543_s27 }
  0xc4   : > { %516 = vrot.lane.b32.xlu0 %v3608_v5, %s3545_s29  ;;  %2366 = vrot.lane.b32.xlu1 %v3614_v7, %s3542_s26 }
  0xc8   : > { %2037 = vrot.lane.b32.xlu0 %v3608_v5, %s3546_s30  ;;  %1928 = vrot.lane.b32.xlu1 %v3608_v5, %s3544_s28 }
  0xcc   : > { %627 = vrot.lane.b32.xlu0 %v3608_v5, %s3547_s6  ;;  %845 = vrot.lane.b32.xlu1 %v3610_v6, %s3550_s8 }
  0xd0   : > { %2148 = vrot.lane.b32.xlu0 %v3608_v5, %s3551_s9  ;;  %2476 = vrot.lane.b32.xlu1 %v3614_v7, %s3545_s29 }
  0xd4   : > { %1185 = vrot.lane.b32.xlu0 %v3614_v7, %s3554_s12  ;;  %960 = vrot.lane.b32.xlu1 %v3610_v6, %s3552_s10 }
  0xd8   : > { %736 = vrot.lane.b32.xlu0 %v3608_v5, %s3549_s7  ;;  %2586 = vrot.lane.b32.xlu1 %v3614_v7, %s3547_s6 }
  0xdc   : > { %2697 = vrot.lane.b32.xlu0 %v3649_v9, %s3549_s7  ;;  %1070 = vrot.lane.b32.xlu1 %v3610_v6, %s3553_s11 }
  0xe0   : > { %1294 = vrot.lane.b32.xlu0 %v3614_v7, %s3555_s13  ;;  %2695 = vrot.lane.b32.xlu1 %v3614_v7, %s3549_s7 }
  0xe4   : > { %2364 = vrot.lane.b32.xlu0 %v3608_v5, %s3542_s26  ;;  %1181 = vrot.lane.b32.xlu1 %v3610_v6, %s3554_s12 }
  0xe8   : > { %2807 = vrot.lane.b32.xlu0 %v3649_v9, %s3550_s8  ;;  %847 = vrot.lane.b32.xlu1 %v3608_v5, %s3550_s8 }
  0xec   : > { %2474 = vrot.lane.b32.xlu0 %v3608_v5, %s3545_s29  ;;  %2805 = vrot.lane.b32.xlu1 %v3614_v7, %s3550_s8 }
  0xf0   : > { %1403 = vrot.lane.b32.xlu0 %v3614_v7, %s3556_s14  ;;  %962 = vrot.lane.b32.xlu1 %v3608_v5, %s3552_s10 }
  0xf4   : > { %2584 = vrot.lane.b32.xlu0 %v3608_v5, %s3547_s6  ;;  %1290 = vrot.lane.b32.xlu1 %v3610_v6, %s3555_s13 }
  0xf8   : > { %2918 = vrot.lane.b32.xlu0 %v3649_v9, %s3552_s10  ;;  %1072 = vrot.lane.b32.xlu1 %v3608_v5, %s3553_s11 }
  0xfc   : > { %2693 = vrot.lane.b32.xlu0 %v3608_v5, %s3549_s7  ;;  %2916 = vrot.lane.b32.xlu1 %v3614_v7, %s3552_s10 }
  0xfe   : > { %v3726_v10 = vpop.permute.xlu0 %1710 }
 0x100   : > { %2803 = vrot.lane.b32.xlu0 %v3608_v5, %s3550_s8  ;;  %1183 = vrot.lane.b32.xlu1 %v3608_v5, %s3554_s12  ;;  %s239_s8 = scalar_lea.vmem %s4402_s4, %s3601_s20 }
 0x102   : > { %v3732_v11 = vpop.permute.xlu1 %1714  ;;  %v3734_v12 = vpop.permute.xlu0 %329 }
 0x104   : > { %2914 = vrot.lane.b32.xlu0 %v3608_v5, %s3552_s10  ;;  %1399 = vrot.lane.b32.xlu1 %v3610_v6, %s3556_s14 }
 0x106   : > { %v3739_v13 = vpop.permute.xlu1 %325  ;;  %v3741_v14 = vpop.permute.xlu0 %1819 }
 0x108   : > { %1512 = vrot.lane.b32.xlu0 %v3614_v7, %s3557_s15  ;;  %1292 = vrot.lane.b32.xlu1 %v3608_v5, %s3555_s13 }
 0x10a   : > { %v3745_v15 = vpop.permute.xlu1 %1926  ;;  %v3747_v16 = vpop.permute.xlu0 %1815 }
 0x10c   : > { %3027 = vrot.lane.b32.xlu0 %v3649_v9, %s3553_s11  ;;  %1401 = vrot.lane.b32.xlu1 %v3608_v5, %s3556_s14 }
 0x10e   : > { %v3752_v17 = vpop.permute.xlu1 %518  ;;  %v3754_v18 = vpop.permute.xlu0 %1930 }
 0x110   : > { %3023 = vrot.lane.b32.xlu0 %v3608_v5, %s3553_s11  ;;  %1510 = vrot.lane.b32.xlu1 %v3608_v5, %s3557_s15 }
 0x112   : > { %v3765_v20 = vpop.permute.xlu1 %2039  ;;  %v3767_v21 = vpop.permute.xlu0 %514 }
 0x114   : > { %1621 = vrot.lane.b32.xlu0 %v3614_v7, %s3558_s19  ;;  %3025 = vrot.lane.b32.xlu1 %v3614_v7, %s3553_s11  ;;  %s244_s11 = scalar_lea.vmem %s4403_s5, %s3601_s20 }
 0x116   : > { %v3778_v23 = vpop.permute.xlu1 %2035  ;;  %v3780_v24 = vpop.permute.xlu0 %625 }
 0x118   : > { %3137 = vrot.lane.b32.xlu0 %v3649_v9, %s3554_s12  ;;  %1508 = vrot.lane.b32.xlu1 %v3610_v6, %s3557_s15  ;;  %v1812_v9 = vrot.slane %v1804_v55, %v3865_v51 }
 0x11a   : > { %v3786_v27 = vpop.permute.xlu1 %629  ;;  %v3788_v28 = vpop.permute.xlu0 %734 }
 0x11c   : > { %3133 = vrot.lane.b32.xlu0 %v3608_v5, %s3554_s12  ;;  %1619 = vrot.lane.b32.xlu1 %v3608_v5, %s3558_s19 }
 0x11e   : > { %v3807_v33 = vpop.permute.xlu1 %2150  ;;  %v3809_v34 = vpop.permute.xlu0 %849 }
 0x120   : > { %3135 = vrot.lane.b32.xlu1 %v3614_v7, %s3554_s12 }
 0x122   : > { %v3833_v39 = vpop.permute.xlu1 %2146  ;;  %v3835_v40 = vpop.permute.xlu0 %2368 }
 0x124   : > { %1617 = vrot.lane.b32.xlu1 %v3610_v6, %s3558_s19 }
 0x126   : > { %v3858_v48 = vpop.permute.xlu1 %738  ;;  %v3860_v49 = vpop.permute.xlu0 %964 }
 0x128   : > { %3226 = vperm.xlu1 %3527, %v3223_v47   ;;  %v3335_v47 = vld [vmem:[%s4400_s2 + $0x8] sm:$0xff] }
 0x12a   : > { %v1713_v56 = vpop.permute.xlu1 %1712  ;;  %v3877_v57 = vpop.permute.xlu0 %2478 }
 0x12b   : > { %v1718_v61 = vsel %vm1716_vm11, %v1713_v56, %v3732_v11  ;;  %v1717_v62 = vsel %vm1716_vm11, %v3726_v10, %v1713_v56  ;;  %v503_v10 = vrot.slane %v495_v60, %v3827_v38  ;;  %v3902_v11 = vsub.s32 5, %v3800_v31 }
 0x12c   : > { %1724 = vmatprep.subr.mxu0 %v1718_v61  ;;  %vm3936_vm11 = vcmp.eq.s32.totalorder %v1812_v9, 1 }
 0x12d   : > { %1725 = vmatpush1.msra.mxu0 %v1717_v62  ;;  %v511_v53 = vrot.slane %v503_v10, %v3838_v41  ;;  %v1915_v55 = vrot.slane %v1907_v37, %v3902_v11  ;;  %v3390_v62 = vld [vmem:[%s4400_s2 + $0x70] sm:$0xff]  ;;  %v301_v10 = vld [vmem:[%s4400_s2] sm:$0xff]  ;;  %v622_v37 = vrot.slane %v614_v2, %v3838_v41  ;;  %v719_v2 = vrot.slane %v3776_v22, %v3838_v41 }
 0x12e   : > { %v328_v25 = vpop.permute.xlu1 %327  ;;  %3389 = vmatmul.mubr.msk.f32.vlgmr.msra.gmra.mrb[0].mxu0 %vm340_vm12, %v3388_v63  ;;  %v3905_v26 = vpop.permute.xlu0 %1074  ;;  %v2024_v63 = vrot.slane %v3805_v32, %v3902_v11 }
 0x12f   : > { %v333_v43 = vsel %vm331_vm14, %v328_v25, %v3734_v12  ;;  %v332_v45 = vsel %vm331_vm14, %v3739_v13, %v328_v25  ;;  %1897 = vmatprep.mubr.f32.mxu0 %v3539_v0  ;;  %v499_v12 = vrot.slane %v495_v60, %v3838_v41  ;;  %v1923_v1 = vrot.slane %v1915_v55, %v3909_v35  ;;  %v3394_v55 = vld [vmem:[%s4400_s2 + $0x78] sm:$0xff] }
 0x130   : > { %3336 = vmatprep.subr.msk.mxu1 %vm321_vm15, %v333_v43  ;;  %vm1813_vm15 = vcmp.eq.s32.totalorder %v1808_v29, 1  ;;  %v2032_v25 = vrot.slane %v2024_v63, %v3909_v35 }
 0x131   : > { %3337 = vmatpush1.msk.msra.mxu1 %vm320_vm0, %v332_v45  ;;  %vm2126_vm0 = vmand %vm489_vm4, %vm3932_vm10  ;;  %vm513_vm4 = vcmp.eq.s32.totalorder %v511_v53, 1 }
 0x132   : > { %v1818_v54 = vpop.permute.xlu1 %1817  ;;  %3338 = vmatmul.mubr.msk.f32.vlgmr.msra.gmra.mrb[0].mxu1 %vm340_vm12, %v3335_v47  ;;  %3339 = vmatprep.subr.msk.mxu1 %vm298_vm1, %v3608_v5  ;;  %v3945_v56 = vpop.permute.xlu0 %2588  ;;  %vm4404_vm1 = vcmask 1031168   ;;  %v2127_v4 = vsel %vm2126_vm0, 1, %v3548_v8  ;;  %vm1924_vm0 = vcmp.eq.s32.totalorder %v1919_v30, 1 }
 0x133   : > { %v1822_v60 = vsel %vm1821_vm6, %v3747_v16, %v1818_v54  ;;  %v1823_v61 = vsel %vm1821_vm6, %v1818_v54, %v3741_v14  ;;  %3340 = vmatpush1.msk.msra.mxu1 %vm297_vm8, %v3610_v6  ;;  %482 = vmatprep.mubr.f32.mxu1 %v3539_v0  ;;  %v507_v6 = vrot.slane %v499_v12, %v3838_v41  ;;  %vm1932_vm6 = vcmask 392192   ;;  %v3402_v16 = vld [vmem:[%s4400_s2 + $0x88] sm:$0xff] }
 0x134   : > { %3391 = vmatprep.subr.msk.mxu0 %vm3936_vm11, %v1823_v61  ;;  %v2020_v14 = vrot.slane %v3805_v32, %v3909_v35  ;;  %vm1925_vm11 = vcmp.eq.s32.totalorder %v1923_v1, 1  ;;  %v2135_v43 = vrot.slane %v2127_v4, %v3902_v11  ;;  %v2240_v12 = vsel %vm2239_vm5, 1, %v3548_v8 }
 0x135   : > { %3392 = vmatpush1.msk.msra.mxu0 %vm1813_vm15, %v1822_v60  ;;  %vm512_vm8 = vcmp.eq.s32.totalorder %v507_v6, 1  ;;  %vm2041_vm15 = vcmask 384000   ;;  %v2131_v54 = vrot.slane %v2127_v4, %v3909_v35  ;;  %vm624_vm5 = vcmp.eq.s32.totalorder %v622_v37, 1  ;;  %v3347_v37 = vld [vmem:[%s4400_s2 + $0x18] sm:$0xff] }
 0x136   : > { %v3983_v3 = vpop.permute.xlu1 %2366  ;;  %3393 = vmatmul.mubr.msk.f32.vlgmr.msra.gmra.mrb[0].mxu0 %vm340_vm12, %v3390_v62  ;;  %v517_v32 = vpop.permute.xlu0 %516  ;;  %v2028_v29 = vrot.slane %v2020_v14, %v3909_v35  ;;  %v2248_v58 = vrot.slane %v2240_v12, %v3827_v38  ;;  %v723_v6 = vrot.slane %v3776_v22, %v3827_v38  ;;  %v2244_v4 = vrot.slane %v2240_v12, %v3838_v41 }
 0x137   : > { %v522_v9 = vsel %vm4404_vm1, %v517_v32, %v3752_v17  ;;  %2008 = vmatprep.mubr.f32.mxu0 %v3539_v0  ;;  %v610_v17 = vrot.slane %v606_v59, %v3838_v41  ;;  %v521_v45 = vsel %vm4404_vm1, %v3767_v21, %v517_v32  ;;  %vm631_vm1 = vcmask 982016  }
 0x138   : > { %3344 = vmatprep.subr.msk.mxu1 %vm513_vm4, %v522_v9  ;;  %vm2034_vm4 = vcmp.eq.s32.totalorder %v2032_v25, 1  ;;  %vm2033_vm13 = vcmp.eq.s32.totalorder %v2028_v29, 1  ;;  %v2256_v63 = vrot.slane %v2248_v58, %v3838_v41  ;;  %v2342_v32 = vsel %vm3976_vm2, 1, %v3548_v8 }
 0x139   : > { %v618_v21 = vrot.slane %v610_v17, %v3838_v41  ;;  %v731_v9 = vrot.slane %v723_v6, %v3838_v41  ;;  %v727_v17 = vrot.slane %v719_v2, %v3838_v41 }
 0x13a   : > { %v1929_v47 = vpop.permute.xlu1 %1928  ;;  %3341 = vmatmul.mubr.msk.f32.vlgmr.msra.gmra.mrb[0].mxu1 %vm340_vm12, %v301_v10  ;;  %v2038_v50 = vpop.permute.xlu0 %2037  ;;  %v2350_v10 = vrot.slane %v2342_v32, %v3827_v38 }
 0x13b   : > { %v1933_v52 = vsel %vm1932_vm6, %v3745_v15, %v1929_v47  ;;  %v1934_v53 = vsel %vm1932_vm6, %v1929_v47, %v3754_v18  ;;  %3345 = vmatpush1.msk.msra.mxu1 %vm512_vm8, %v521_v45  ;;  %596 = vmatprep.mubr.f32.mxu1 %v3539_v0  ;;  %v2043_v15 = vsel %vm2041_vm15, %v2038_v50, %v3765_v20  ;;  %v3343_v20 = vld [vmem:[%s4400_s2 + $0x10] sm:$0xff]  ;;  %vm623_vm6 = vcmp.eq.s32.totalorder %v618_v21, 1 }
 0x13c   : > { %3395 = vmatprep.subr.msk.mxu0 %vm1925_vm11, %v1934_v53  ;;  %v2143_v18 = vrot.slane %v2135_v43, %v3909_v35  ;;  %v2042_v59 = vsel %vm2041_vm15, %v3778_v23, %v2038_v50  ;;  %vm2152_vm8 = vcmask 375808   ;;  %v2139_v23 = vrot.slane %v2131_v54, %v3909_v35  ;;  %v3351_v54 = vld [vmem:[%s4400_s2 + $0x20] sm:$0xff] }
 0x13d   : > { %3396 = vmatpush1.msk.msra.mxu0 %vm1924_vm0, %v1933_v52  ;;  %vm2258_vm15 = vcmp.eq.s32.totalorder %v2256_v63, 1  ;;  %vm740_vm0 = vcmask 973824   ;;  %v2358_v43 = vrot.slane %v2350_v10, %v3838_v41  ;;  %v2371_v21 = vsel %vm331_vm14, %v3983_v3, %v3835_v40 }
 0x13e   : > { %v4021_v60 = vpop.permute.xlu1 %845  ;;  %3397 = vmatmul.mubr.msk.f32.vlgmr.msra.gmra.mrb[0].mxu0 %vm340_vm12, %v3394_v55  ;;  %3399 = vmatprep.subr.msk.mxu0 %vm2034_vm4, %v2043_v15  ;;  %v628_v61 = vpop.permute.xlu0 %627  ;;  %vm2145_vm11 = vcmp.eq.s32.totalorder %v2143_v18, 1  ;;  %vm2454_vm4 = vmand %vm3976_vm2, %vm3848_vm9 }
 0x13f   : > { %v633_v62 = vsel %vm631_vm1, %v628_v61, %v3786_v27  ;;  %3400 = vmatpush1.msk.msra.mxu0 %vm2033_vm13, %v2042_v59  ;;  %2117 = vmatprep.mubr.f32.mxu0 %v3539_v0  ;;  %v632_v27 = vsel %vm631_vm1, %v3780_v24, %v628_v61  ;;  %v3398_v24 = vld [vmem:[%s4400_s2 + $0x80] sm:$0xff]  ;;  %vm2144_vm13 = vcmp.eq.s32.totalorder %v2139_v23, 1  ;;  %v2455_v12 = vsel %vm2454_vm4, 1, %v3548_v8  ;;  %vm825_vm2 = vmand %vm270_vm3, %vm3848_vm9 }
 0x140   : > { %3348 = vmatprep.subr.msk.mxu1 %vm624_vm5, %v633_v62  ;;  %vm733_vm5 = vcmp.eq.s32.totalorder %v731_v9, 1  ;;  %v2463_v53 = vrot.slane %v2455_v12, %v3827_v38  ;;  %v826_v55 = vsel %vm825_vm2, 1, %v3548_v8  ;;  %vm4112_vm4 = vmand %vm270_vm3, %vm3932_vm10  ;;  %v3406_v62 = vld [vmem:[%s4400_s2 + $0x90] sm:$0xff]  ;;  %v2459_v23 = vrot.slane %v2455_v12, %v3838_v41 }
 0x141   : > { %v834_v15 = vrot.slane %v826_v55, %v3827_v38  ;;  %v830_v61 = vrot.slane %v826_v55, %v3838_v41  ;;  %vm940_vm3 = vmand %vm4112_vm4, %vm3819_vm7  ;;  %vm4427_vm2 = vcmask 1031168  }
 0x142   : > { %v4036_v14 = vpop.permute.xlu1 %2476  ;;  %3346 = vmatmul.mubr.msk.f32.vlgmr.msra.gmra.mrb[0].mxu1 %vm340_vm12, %v3343_v20  ;;  %v2149_v1 = vpop.permute.xlu0 %2148  ;;  %v2471_v59 = vrot.slane %v2463_v53, %v3838_v41 }
 0x143   : > { %3349 = vmatpush1.msk.msra.mxu1 %vm623_vm6, %v632_v27  ;;  %v2154_v30 = vsel %vm2152_vm8, %v2149_v1, %v3807_v33  ;;  %707 = vmatprep.mubr.f32.mxu1 %v3539_v0  ;;  %v2153_v25 = vsel %vm2152_vm8, %v3833_v39, %v2149_v1  ;;  %v2252_v39 = vrot.slane %v2244_v4, %v3838_v41  ;;  %vm732_vm6 = vcmp.eq.s32.totalorder %v727_v17, 1 }
 0x144   : > { %3403 = vmatprep.subr.msk.mxu0 %vm2145_vm11, %v2154_v30  ;;  %vm2360_vm11 = vcmp.eq.s32.totalorder %v2358_v43, 1  ;;  %v842_v63 = vrot.slane %v834_v15, %v3838_v41  ;;  %v838_v1 = vrot.slane %v830_v61, %v3838_v41  ;;  %v2467_v4 = vrot.slane %v2459_v23, %v3838_v41  ;;  %v3355_v43 = vld [vmem:[%s4400_s2 + $0x28] sm:$0xff] }
 0x145   : > { %vm2257_vm8 = vcmp.eq.s32.totalorder %v2252_v39, 1  ;;  %v3410_v39 = vld [vmem:[%s4400_s2 + $0x98] sm:$0xff] }
 0x146   : > { %v4055_v29 = vpop.permute.xlu1 %960  ;;  %3401 = vmatmul.mubr.msk.f32.vlgmr.msra.gmra.mrb[0].mxu0 %vm340_vm12, %v3398_v24  ;;  %v4058_v33 = vpop.permute.xlu0 %1185  ;;  %v2481_v24 = vsel %vm4427_vm2, %v4036_v14, %v3877_v57 }
 0x147   : > { %3404 = vmatpush1.msk.msra.mxu0 %vm2144_vm13, %v2153_v25  ;;  %2228 = vmatprep.mubr.f32.mxu0 %v3539_v0  ;;  %vm4424_vm13 = vcmp.lt.s32.totalorder %v3759_v19, 3 }
 0x148   : > { %3407 = vmatprep.subr.msk.mxu0 %vm2258_vm15, %v3614_v7  ;;  %vm2564_vm15 = vmand %vm4424_vm13, %vm3819_vm7  ;;  %vm843_vm13 = vcmp.eq.s32.totalorder %v838_v1, 1 }
 0x149   : > { %v2565_v20 = vsel %vm2564_vm15, 1, %v3548_v8  ;;  %vm2472_vm15 = vcmp.eq.s32.totalorder %v2467_v4, 1 }
 0x14a   : > { %v4072_v45 = vpop.permute.xlu1 %2586  ;;  %v737_v47 = vpop.permute.xlu0 %736  ;;  %3350 = vmatmul.mubr.msk.f32.vlgmr.msra.gmra.mrb[0].mxu1 %vm340_vm12, %v3347_v37  ;;  %v2573_v2 = vrot.slane %v2565_v20, %v3827_v38 }
 0x14b   : > { %v741_v7 = vsel %vm740_vm0, %v3788_v28, %v737_v47  ;;  %v742_v50 = vsel %vm740_vm0, %v737_v47, %v3858_v48  ;;  %816 = vmatprep.mubr.f32.mxu1 %v3539_v0  ;;  %v2346_v28 = vrot.slane %v2342_v32, %v3838_v41  ;;  %v941_v32 = vsel %vm940_vm3, 1, %v3548_v8 }
 0x14c   : > { %3352 = vmatprep.subr.msk.mxu1 %vm733_vm5, %v742_v50  ;;  %v949_v9 = vrot.slane %v941_v32, %v3827_v38  ;;  %v945_v17 = vrot.slane %v941_v32, %v3838_v41  ;;  %v2591_v55 = vsel %vm631_vm1, %v4072_v45, %v3945_v56 }
 0x14d   : > { %3353 = vmatpush1.msk.msra.mxu1 %vm732_vm6, %v741_v7  ;;  %vm2473_vm6 = vcmp.eq.s32.totalorder %v2471_v59, 1 }
 0x14e   : > { %v4089_v48 = vpop.permute.xlu1 %1070  ;;  %3405 = vmatmul.mubr.msk.f32.vlgmr.msra.gmra.mrb[0].mxu0 %vm340_vm12, %v3402_v16  ;;  %v4092_v52 = vpop.permute.xlu0 %2697  ;;  %v957_v7 = vrot.slane %v949_v9, %v3838_v41  ;;  %v953_v16 = vrot.slane %v945_v17, %v3838_v41  ;;  %v3418_v17 = vld [vmem:[%s4400_s2 + $0xa8] sm:$0xff] }
 0x14f   : > { %3408 = vmatpush1.msk.msra.mxu0 %vm2257_vm8, %v3608_v5  ;;  %2330 = vmatprep.mubr.f32.mxu0 %v3539_v0  ;;  %v2354_v5 = vrot.slane %v2346_v28, %v3838_v41  ;;  %vm851_vm8 = vcmask 965632   ;;  %v4178_v28 = vsel %vm4112_vm4, 1, %v3548_v8 }
 0x150   : > { %3411 = vmatprep.subr.msk.mxu0 %vm2360_vm11, %v2371_v21  ;;  %vm844_vm11 = vcmp.eq.s32.totalorder %v842_v63, 1  ;;  %v1055_v15 = vrot.slane %v4178_v28, %v3838_v41 }
 0x151   : > { %vm2359_vm5 = vcmp.eq.s32.totalorder %v2354_v5, 1 }
 0x152   : > { %v4118_v18 = vpop.permute.xlu1 %2695  ;;  %v4120_v58 = vpop.permute.xlu0 %1294  ;;  %3354 = vmatmul.mubr.msk.f32.vlgmr.msra.gmra.mrb[0].mxu1 %vm340_vm12, %v3351_v54 }
 0x153   : > { %927 = vmatprep.mubr.f32.mxu1 %v3539_v0  ;;  %v2700_v32 = vsel %vm740_vm0, %v4118_v18, %v4092_v52 }
 0x156   : > { %v4136_v6 = vpop.permute.xlu1 %1181  ;;  %3409 = vmatmul.mubr.msk.f32.vlgmr.msra.gmra.mrb[0].mxu0 %vm340_vm12, %v3406_v62  ;;  %v2365_v27 = vpop.permute.xlu0 %2364  ;;  %v3414_v62 = vld [vmem:[%s4400_s2 + $0xa0] sm:$0xff] }
 0x157   : > { %v2370_v30 = vsel %vm331_vm14, %v2365_v27, %v3983_v3  ;;  %2445 = vmatprep.mubr.f32.mxu0 %v3539_v0  ;;  %v2581_v3 = vrot.slane %v2573_v2, %v3838_v41  ;;  %vm4428_vm14 = vcmp.lt.s32.totalorder %v3759_v19, 3  ;;  %v1063_v19 = vrot.slane %v1055_v15, %v3838_v41 }
 0x158   : > { %3412 = vmatpush1.msk.msra.mxu0 %vm2359_vm5, %v2370_v30  ;;  %v2674_v47 = vsel %vm4428_vm14, 1, %v3548_v8  ;;  %vm4429_vm5 = vmmov %vm4427_vm2 }
 0x159   : > { %3415 = vmatprep.subr.msk.mxu0 %vm2473_vm6, %v2481_v24  ;;  %vm2583_vm3 = vcmp.eq.s32.totalorder %v2581_v3, 1  ;;  %v2682_v12 = vrot.slane %v2674_v47, %v3827_v38  ;;  %vm966_vm6 = vcmask 916480   ;;  %vm4430_vm2 = vmmov %vm4428_vm14  ;;  %vm958_vm14 = vcmp.eq.s32.totalorder %v953_v16, 1 }
 0x15a   : > { %v848_v10 = vpop.permute.xlu1 %847  ;;  %v4150_v25 = vpop.permute.xlu0 %2807 }
 0x15b   : > { %v852_v37 = vsel %vm851_vm8, %v4021_v60, %v848_v10  ;;  %v853_v57 = vsel %vm851_vm8, %v848_v10, %v3809_v34  ;;  %v2569_v60 = vrot.slane %v2565_v20, %v3838_v41  ;;  %v2690_v56 = vrot.slane %v2682_v12, %v3838_v41  ;;  %v3360_v20 = vld [vmem:[%s4400_s2 + $0x30] sm:$0xff] }
 0x15c   : > { %3356 = vmatprep.subr.msk.mxu1 %vm844_vm11, %v853_v57  ;;  %vm2783_vm11 = vmand %vm4430_vm2, %vm3848_vm9  ;;  %v1279_v12 = vrot.slane %v3843_v42, %v3902_v11 }
 0x15d   : > { %3357 = vmatpush1.msk.msra.mxu1 %vm843_vm13, %v852_v37  ;;  %vm959_vm13 = vcmp.eq.s32.totalorder %v957_v7, 1  ;;  %v2577_v21 = vrot.slane %v2569_v60, %v3838_v41  ;;  %v2784_v23 = vsel %vm2783_vm11, 1, %v3548_v8  ;;  %vm1076_vm11 = vcmask 908288   ;;  %v3364_v37 = vld [vmem:[%s4400_s2 + $0x38] sm:$0xff] }
 0x15e   : > { %v4169_v34 = vpop.permute.xlu1 %2805  ;;  %3413 = vmatmul.mubr.msk.f32.vlgmr.msra.gmra.mrb[0].mxu0 %vm340_vm12, %v3410_v39  ;;  %v2475_v50 = vpop.permute.xlu0 %2474  ;;  %3358 = vmatmul.mubr.msk.f32.vlgmr.msra.gmra.mrb[0].mxu1 %vm340_vm12, %v3355_v43  ;;  %v2792_v13 = vrot.slane %v2784_v23, %v3827_v38  ;;  %v2788_v57 = vrot.slane %v2784_v23, %v3838_v41 }
 0x15f   : > { %v2480_v53 = vsel %vm4429_vm5, %v2475_v50, %v4036_v14  ;;  %2555 = vmatprep.mubr.f32.mxu0 %v3539_v0  ;;  %1042 = vmatprep.mubr.f32.mxu1 %v3539_v0  ;;  %v1059_v14 = vrot.slane %v4178_v28, %v3827_v38  ;;  %v2810_v7 = vsel %vm851_vm8, %v4169_v34, %v4150_v25 }
 0x160   : > { %3416 = vmatpush1.msk.msra.mxu0 %vm2472_vm15, %v2480_v53  ;;  %vm1161_vm15 = vmand %vm4112_vm4, %vm3848_vm9  ;;  %vm2692_vm4 = vcmp.eq.s32.totalorder %v2690_v56, 1  ;;  %v2800_v36 = vrot.slane %v2792_v13, %v3838_v41  ;;  %v2796_v50 = vrot.slane %v2788_v57, %v3838_v41  ;;  %v3430_v57 = vld [vmem:[%s4400_s2 + $0xc0] sm:$0xff] }
 0x161   : > { %3419 = vmatprep.subr.msk.mxu0 %vm2583_vm3, %v2591_v55  ;;  %vm4431_vm3 = vmmov %vm4430_vm2  ;;  %vm2582_vm2 = vcmp.eq.s32.totalorder %v2577_v21, 1  ;;  %v1067_v63 = vrot.slane %v1059_v14, %v3838_v41  ;;  %v1162_v1 = vsel %vm1161_vm15, 1, %v3548_v8  ;;  %vm1187_vm15 = vcmask 900096   ;;  %v3422_v14 = vld [vmem:[%s4400_s2 + $0xb0] sm:$0xff] }
 0x162   : > { %v963_v54 = vpop.permute.xlu1 %962  ;;  %v4194_v5 = vpop.permute.xlu0 %1403  ;;  %vm4218_vm5 = vmand %vm4431_vm3, %vm3932_vm10  ;;  %v1170_v30 = vrot.slane %v1162_v1, %v3827_v38  ;;  %v1166_v9 = vrot.slane %v1162_v1, %v3838_v41  ;;  %v1275_v55 = vrot.slane %v3843_v42, %v3909_v35  ;;  %v1287_v42 = vrot.slane %v1279_v12, %v3909_v35 }
 0x163   : > { %v967_v59 = vsel %vm966_vm6, %v4055_v29, %v963_v54  ;;  %v968_v61 = vsel %vm966_vm6, %v963_v54, %v3860_v49  ;;  %v2678_v29 = vrot.slane %v2674_v47, %v3838_v41  ;;  %vm2894_vm10 = vmand %vm4218_vm5, %vm3819_vm7  ;;  %v3368_v54 = vld [vmem:[%s4400_s2 + $0x40] sm:$0xff]  ;;  %v3004_v13 = vsel %vm4218_vm5, 1, %v3548_v8 }
 0x164   : > { %3361 = vmatprep.subr.msk.mxu1 %vm959_vm13, %v968_v61  ;;  %vm1069_vm13 = vcmp.eq.s32.totalorder %v1067_v63, 1  ;;  %v2895_v10 = vsel %vm2894_vm10, 1, %v3548_v8  ;;  %v1178_v39 = vrot.slane %v1170_v30, %v3838_v41  ;;  %v1174_v47 = vrot.slane %v1166_v9, %v3838_v41 }
 0x165   : > { %3362 = vmatpush1.msk.msra.mxu1 %vm958_vm14, %v967_v59  ;;  %vm2802_vm14 = vcmp.eq.s32.totalorder %v2800_v36, 1  ;;  %v2899_v56 = vrot.slane %v2895_v10, %v3838_v41  ;;  %v1283_v61 = vrot.slane %v1275_v55, %v3909_v35  ;;  %vm1296_vm10 = vcmask 523264  }
 0x166   : > { %v4224_v27 = vpop.permute.xlu1 %1290  ;;  %3417 = vmatmul.mubr.msk.f32.vlgmr.msra.gmra.mrb[0].mxu0 %vm340_vm12, %v3414_v62  ;;  %v2585_v40 = vpop.permute.xlu0 %2584  ;;  %3363 = vmatmul.mubr.msk.f32.vlgmr.msra.gmra.mrb[0].mxu1 %vm340_vm12, %v3360_v20  ;;  %vm1180_vm3 = vcmp.eq.s32.totalorder %v1178_v39, 1  ;;  %v1384_v62 = vrot.slane %v3776_v22, %v3909_v35  ;;  %v3012_v30 = vrot.slane %v3004_v13, %v3827_v38  ;;  %v3376_v39 = vld [vmem:[%s4400_s2 + $0x50] sm:$0xff] }
 0x167   : > { %v2590_v2 = vsel %vm631_vm1, %v2585_v40, %v4072_v45  ;;  %2665 = vmatprep.mubr.f32.mxu0 %v3539_v0  ;;  %1152 = vmatprep.mubr.f32.mxu1 %v3539_v0  ;;  %v2686_v45 = vrot.slane %v2678_v29, %v3838_v41  ;;  %vm1068_vm1 = vcmp.eq.s32.totalorder %v1063_v19, 1  ;;  %v1497_v29 = vrot.slane %v4178_v28, %v3902_v11 }
 0x168   : > { %3420 = vmatpush1.msk.msra.mxu0 %vm2582_vm2, %v2590_v2  ;;  %vm2801_vm2 = vcmp.eq.s32.totalorder %v2796_v50, 1  ;;  %v1392_v19 = vrot.slane %v1384_v62, %v3909_v35  ;;  %v3380_v50 = vld [vmem:[%s4400_s2 + $0x58] sm:$0xff] }
 0x169   : > { %3423 = vmatprep.subr.msk.mxu0 %vm2692_vm4, %v2700_v32  ;;  %vm2691_vm7 = vcmp.eq.s32.totalorder %v2686_v45, 1  ;;  %v3426_v32 = vld [vmem:[%s4400_s2 + $0xb8] sm:$0xff]  ;;  %v1505_v45 = vrot.slane %v1497_v29, %v3909_v35 }
 0x16a   : > { %v1073_v24 = vpop.permute.xlu1 %1072  ;;  %v2919_v4 = vpop.permute.xlu0 %2918 }
 0x16b   : > { %v1077_v52 = vsel %vm1076_vm11, %v4089_v48, %v1073_v24  ;;  %v1078_v3 = vsel %vm1076_vm11, %v1073_v24, %v3905_v26  ;;  %v2903_v48 = vrot.slane %v2895_v10, %v3827_v38  ;;  %v3020_v10 = vrot.slane %v3012_v30, %v3838_v41 }
 0x16c   : > { %3365 = vmatprep.subr.msk.mxu1 %vm1069_vm13, %v1078_v3  ;;  %vm1288_vm13 = vcmp.eq.s32.totalorder %v1283_v61, 1 }
 0x16d   : > { %3366 = vmatpush1.msk.msra.mxu1 %vm1068_vm1, %v1077_v52  ;;  %v2911_v16 = vrot.slane %v2903_v48, %v3838_v41  ;;  %vm1405_vm1 = vcmask 515072   ;;  %v1493_v52 = vrot.slane %v4178_v28, %v3909_v35  ;;  %v1606_v48 = vrot.slane %v3776_v22, %v1605_v46 }
 0x16e   : > { %v4261_v43 = vpop.permute.xlu1 %2916  ;;  %3421 = vmatmul.mubr.msk.f32.vlgmr.msra.gmra.mrb[0].mxu0 %vm340_vm12, %v3418_v17  ;;  %v2694_v26 = vpop.permute.xlu0 %2693  ;;  %3367 = vmatmul.mubr.msk.f32.vlgmr.msra.gmra.mrb[0].mxu1 %vm340_vm12, %v3364_v37 }
 0x16f   : > { %v2699_v60 = vsel %vm740_vm0, %v2694_v26, %v4118_v18  ;;  %2774 = vmatprep.mubr.f32.mxu0 %v3539_v0  ;;  %1263 = vmatprep.mubr.f32.mxu1 %v3539_v0  ;;  %vm1179_vm0 = vcmp.eq.s32.totalorder %v1174_v47, 1  ;;  %vm2913_vm4 = vcmp.eq.s32.totalorder %v2911_v16, 1  ;;  %v2921_v20 = vsel %vm966_vm6, %v4261_v43, %v2919_v4 }
 0x170   : > { %3424 = vmatpush1.msk.msra.mxu0 %vm2691_vm7, %v2699_v60  ;;  %v3008_v4 = vrot.slane %v3004_v13, %v3838_v41  ;;  %v1501_v28 = vrot.slane %v1493_v52, %v3909_v35  ;;  %v1614_v31 = vrot.slane %v1606_v48, %v3865_v51 }
 0x171   : > { %3427 = vmatprep.subr.msk.mxu0 %vm2802_vm14, %v2810_v7  ;;  %v3434_v7 = vld [vmem:[%s4400_s2 + $0xc8] sm:$0xff] }
 0x172   : > { %v1184_v18 = vpop.permute.xlu1 %1183  ;;  %v2804_v53 = vpop.permute.xlu0 %2803  ;;  %v3016_v37 = vrot.slane %v3008_v4, %v3838_v41 }
 0x173   : > { %v1188_v25 = vsel %vm1187_vm15, %v4136_v6, %v1184_v18  ;;  %v1189_v21 = vsel %vm1187_vm15, %v1184_v18, %v4058_v33  ;;  %v1388_v6 = vrot.slane %v3776_v22, %v3902_v11  ;;  %v2809_v33 = vsel %vm851_vm8, %v2804_v53, %v4169_v34  ;;  %v3372_v11 = vld [vmem:[%s4400_s2 + $0x48] sm:$0xff] }
 0x174   : > { %3369 = vmatprep.subr.msk.mxu1 %vm1180_vm3, %v1189_v21  ;;  %v2907_v34 = vrot.slane %v2899_v56, %v3838_v41  ;;  %vm1289_vm8 = vcmp.eq.s32.totalorder %v1287_v42, 1  ;;  %vm1397_vm3 = vcmp.eq.s32.totalorder %v1392_v19, 1 }
 0x175   : > { %3370 = vmatpush1.msk.msra.mxu1 %vm1179_vm0, %v1188_v25  ;;  %v1396_v23 = vrot.slane %v1388_v6, %v3909_v35  ;;  %vm1514_vm0 = vcmask 506880  }
 0x176   : > { %v1400_v15 = vpop.permute.xlu1 %1399  ;;  %3425 = vmatmul.mubr.msk.f32.vlgmr.msra.gmra.mrb[0].mxu0 %vm340_vm12, %v3422_v14  ;;  %v2915_v59 = vpop.permute.xlu0 %2914  ;;  %3371 = vmatmul.mubr.msk.f32.vlgmr.msra.gmra.mrb[0].mxu1 %vm340_vm12, %v3368_v54  ;;  %vm2912_vm7 = vcmp.eq.s32.totalorder %v2907_v34, 1 }
 0x177   : > { %3428 = vmatpush1.msk.msra.mxu0 %vm2801_vm2, %v2809_v33  ;;  %2884 = vmatprep.mubr.f32.mxu0 %v3539_v0  ;;  %vm1398_vm14 = vcmp.eq.s32.totalorder %v1396_v23, 1  ;;  %vm3113_vm2 = vmand %vm4218_vm5, %vm3848_vm9  ;;  %vm1506_vm9 = vcmp.eq.s32.totalorder %v1501_v28, 1  ;;  %vm1623_vm5 = vcmask 457728  }
 0x178   : > { %3431 = vmatprep.subr.msk.mxu0 %vm2913_vm4, %v2921_v20  ;;  %1372 = vmatprep.mubr.f32.mxu1 %v3539_v0  ;;  %vm3022_vm4 = vcmp.eq.s32.totalorder %v3020_v10, 1  ;;  %v3114_v44 = vsel %vm3113_vm2, 1, %v3548_v8 }
 0x179   : > { %v3122_v46 = vrot.slane %v3114_v44, %v3827_v38  ;;  %v3118_v60 = vrot.slane %v3114_v44, %v3838_v41  ;;  %v1602_v38 = vrot.slane %v3776_v22, %v3865_v51 }
 0x17a   : > { %v1293_v63 = vpop.permute.xlu1 %1292  ;;  %v1513_v40 = vpop.permute.xlu0 %1512 }
 0x17b   : > { %v1297_v1 = vsel %vm1296_vm10, %v4224_v27, %v1293_v63  ;;  %v1298_v2 = vsel %vm1296_vm10, %v1293_v63, %v4120_v58  ;;  %v2920_v58 = vsel %vm966_vm6, %v2915_v59, %v4261_v43  ;;  %vm1507_vm6 = vcmp.eq.s32.totalorder %v1505_v45, 1 }
 0x17c   : > { %3373 = vmatprep.subr.msk.mxu1 %vm1289_vm8, %v1298_v2  ;;  %vm3021_vm10 = vcmp.eq.s32.totalorder %v3016_v37, 1  ;;  %v3130_v12 = vrot.slane %v3122_v46, %v3838_v41  ;;  %v3126_v53 = vrot.slane %v3118_v60, %v3838_v41  ;;  %v1610_v25 = vrot.slane %v1602_v38, %v3865_v51  ;;  %v3438_v41 = vld [vmem:[%s4400_s2 + $0xd0] sm:$0xff] }
 0x17d   : > { %3374 = vmatpush1.msk.msra.mxu1 %vm1288_vm13, %v1297_v1 }
 0x17e   : > { %v1402_v27 = vpop.permute.xlu1 %1401  ;;  %3429 = vmatmul.mubr.msk.f32.vlgmr.msra.gmra.mrb[0].mxu0 %vm340_vm12, %v3426_v32  ;;  %v3028_v24 = vpop.permute.xlu0 %3027  ;;  %3375 = vmatmul.mubr.msk.f32.vlgmr.msra.gmra.mrb[0].mxu1 %vm340_vm12, %v3372_v11  ;;  %vm3132_vm8 = vcmp.eq.s32.totalorder %v3130_v12, 1  ;;  %vm3131_vm13 = vcmp.eq.s32.totalorder %v3126_v53, 1 }
 0x17f   : > { %v1406_v36 = vsel %vm1405_vm1, %v1400_v15, %v1402_v27  ;;  %v1407_v9 = vsel %vm1405_vm1, %v1402_v27, %v4194_v5  ;;  %3432 = vmatpush1.msk.msra.mxu0 %vm2912_vm7, %v2920_v58  ;;  %2995 = vmatprep.mubr.f32.mxu0 %v3539_v0  ;;  %vm1615_vm1 = vcmp.eq.s32.totalorder %v1610_v25, 1  ;;  %v3247_v58 = vld [vmem:[%s239_s8] sm:$0xff]  ;;  %v3248_v27 = vld [vmem:[%s239_s8 + $0x8] sm:$0xff] }
 0x180   : > { %3377 = vmatprep.subr.msk.mxu1 %vm1398_vm14, %v1407_v9  ;;  %1481 = vmatprep.mubr.f32.mxu1 %v3539_v0 }
 0x181   : > { %3378 = vmatpush1.msk.msra.mxu1 %vm1397_vm3, %v1406_v36 }
 0x182   : > { %v1511_v3 = vpop.permute.xlu1 %1510  ;;  %v3024_v17 = vpop.permute.xlu0 %3023 }
 0x183   : > { %v1516_v5 = vsel %vm1514_vm0, %v1511_v3, %v1513_v40 }
 0x184   : > { %3381 = vmatprep.subr.msk.mxu1 %vm1507_vm6, %v1516_v5 }
 0x186   : > { %v3026_v43 = vpop.permute.xlu1 %3025  ;;  %3433 = vmatmul.mubr.msk.f32.vlgmr.msra.gmra.mrb[0].mxu0 %vm340_vm12, %v3430_v57  ;;  %v1622_v26 = vpop.permute.xlu0 %1621  ;;  %3379 = vmatmul.mubr.msk.f32.vlgmr.msra.gmra.mrb[0].mxu1 %vm340_vm12, %v3376_v39 }
 0x187   : > { %v3029_v49 = vsel %vm1076_vm11, %v3024_v17, %v3026_v43  ;;  %v3030_v47 = vsel %vm1076_vm11, %v3026_v43, %v3028_v24  ;;  %3104 = vmatprep.mubr.f32.mxu0 %v3539_v0  ;;  %1590 = vmatprep.mubr.f32.mxu1 %v3539_v0  ;;  %vm1616_vm11 = vcmp.eq.s32.totalorder %v1614_v31, 1 }
 0x188   : > { %3435 = vmatprep.subr.msk.mxu0 %vm3022_vm4, %v3030_v47 }
 0x189   : > { %3436 = vmatpush1.msk.msra.mxu0 %vm3021_vm10, %v3029_v49 }
 0x18a   : > { %v1509_v35 = vpop.permute.xlu1 %1508  ;;  %v3138_v16 = vpop.permute.xlu0 %3137 }
 0x18b   : > { %v1515_v8 = vsel %vm1514_vm0, %v1509_v35, %v1511_v3 }
 0x18c   : > { %3382 = vmatpush1.msk.msra.mxu1 %vm1506_vm9, %v1515_v8 }
 0x18e   : > { %v1620_v18 = vpop.permute.xlu1 %1619  ;;  %3437 = vmatmul.mubr.msk.f32.vlgmr.msra.gmra.mrb[0].mxu0 %vm340_vm12, %v3434_v7  ;;  %3383 = vmatmul.mubr.msk.f32.vlgmr.msra.gmra.mrb[0].mxu1 %vm340_vm12, %v3380_v50  ;;  %v3134_v21 = vpop.permute.xlu0 %3133 }
 0x18f   : > { %v1625_v55 = vsel %vm1623_vm5, %v1620_v18, %v1622_v26  ;;  %3214 = vmatprep.mubr.f32.mxu0 %v3539_v0  ;;  %1699 = vmatprep.mubr.f32.mxu1 %v3539_v0  ;;  %v3384_v0 = vld [vmem:[%s4400_s2 + $0x60] sm:$0xff] }
 0x190   : > { %3385 = vmatprep.subr.msk.mxu1 %vm1616_vm11, %v1625_v55 }
 0x192   : > { %v3136_v14 = vpop.permute.xlu1 %3135 }
 0x193   : > { %v3139_v22 = vsel %vm1187_vm15, %v3134_v21, %v3136_v14  ;;  %v3140_v54 = vsel %vm1187_vm15, %v3136_v14, %v3138_v16 }
 0x194   : > { %3439 = vmatprep.subr.msk.mxu0 %vm3132_vm8, %v3140_v54 }
 0x195   : > { %3440 = vmatpush1.msk.msra.mxu0 %vm3131_vm13, %v3139_v22 }
 0x196   : > { %v1618_v56 = vpop.permute.xlu1 %1617  ;;  %3441 = vmatmul.mubr.msk.f32.vlgmr.msra.gmra.mrb[0].mxu0 %vm340_vm12, %v3438_v41 }
 0x197   : > { %v1624_v51 = vsel %vm1623_vm5, %v1618_v56, %v1620_v18 }
 0x198   : > { %3386 = vmatpush1.msk.msra.mxu1 %vm1615_vm1, %v1624_v51 }
 0x199   : > { %3387 = vmatmul.mubr.msk.f32.vlgmr.msra.gmra.mrb[0].mxu1 %vm340_vm12, %v3384_v0 }
 0x1a7   : > { %v3227_v15 = vpop.permute.xlu1 %3226 }
 0x269   : > { %v3216_v42 = vpop.f32.mrb[0].mxu0 }
 0x26a   : > { %v3218_v6 = vpop.f32.mrb[1].mxu0 }
 0x26c   : > { %v1701_v33 = vpop.f32.mrb[0].mxu1 }
 0x26d   : > { %v3447_v59 = vadd.f32 %v3216_v42, %v1701_v33  ;;  %v1703_v61 = vpop.f32.mrb[1].mxu1 }
 0x26e   : > { %v3448_v62 = vadd.f32 %v3218_v6, %v1703_v61 }
 0x26f   : > { %v3229_v20 = vadd.f32 %v3447_v59, %v3227_v15 }
 0x270   : > { %v3230_v34 = vadd.f32 %v3448_v62, %v3227_v15 }
 0x272   : > { %v3231_v23 = vadd.f32 %v3230_v34, %v3229_v20 }
 0x274   : > { %3232 = vadd.xlane.f32.xlu0 %v3231_v23 }
 0x301   : > { %v3233_v29 = vpop.xlane.xlu0 %3232 }
 0x302   : > { %v3234_v63 = vmul.f32 0.00390625, %v3233_v29 }
 0x304   : > { %v3235_v40 = vsub.f32 %v3229_v20, %v3234_v63  ;;  %v3236_v19 = vsub.f32 %v3230_v34, %v3234_v63 }
 0x306   : > { %v3237_v13 = vmul.f32 %v3235_v40, %v3235_v40  ;;  %v3238_v1 = vmul.f32 %v3236_v19, %v3236_v19 }
 0x308   : > { %v3239_v2 = vadd.f32 %v3238_v1, %v3237_v13 }
 0x30a   : > { %3240 = vadd.xlane.f32.xlu1 %v3239_v2 }
 0x397   : > { %v3241_v32 = vpop.xlane.xlu1 %3240 }
 0x398   : > { %v3242_v11 = vmul.f32 0.00390625, %v3241_v32 }
 0x39a   : > { %v3243_v45 = vadd.f32 1e-05, %v3242_v11 }
 0x39c   : > { %3529 = vrsqrt.f32 %v3243_v45 }
 0x3a6   : > { %v3530_v30 = vpop.eup %3529 }
 0x3a7   : > { %v3245_v24 = vmul.f32 %v3530_v30, %v3235_v40  ;;  %v3246_v4 = vmul.f32 %v3530_v30, %v3236_v19 }
 0x3a9   : > { %v3249_v36 = vadd.f32 %v3247_v58, %v3245_v24  ;;  %v3250_v9 = vadd.f32 %v3248_v27, %v3246_v4 }
 0x3ab   : > { %v3251_v10 = vmax.f32 %v3249_v36, 0.0  ;;  %v3252_v52 = vmax.f32 %v3250_v9, 0.0 }
 0x3ad   : > { %3253 = vst [vmem:[%s244_s11] sm:$0xff] %v3251_v10  ;;  %3254 = vst [vmem:[%s244_s11 + $0x8] sm:$0xff] %v3252_v52 }
 0x3ae PF: > { %s15_s18 = sadd.s32 1, %s3537_s18  }
 0x3af   : > { %p12_p4 = scmp.ge.s32.totalorder %s15_s18, 4  }
 0x3b1   :  { %14 = sbr.rel (!%p12_p4) target bundleno = 1 (0x1), region = 99 }

</bundles_post_ra>
